<compile_context>
chip_gen: v6e
topology: v6e:2x2x1
jax: 0.10.0
libtpu: 0.0.40
codegen_flags: <defaults>
</compile_context>

<pallas_src>
import functools

import jax
import jax.numpy as jnp
from jax.experimental import pallas as pl
from jax.experimental.pallas import tpu as pltpu

LRELU_SLOPE = 0.2
BN_EPS = 1e-5
FIGSIZE = 64
HEAD_PAD = 128           # lane-dense width for the fused heads output
VMEM_LIMIT = 32 * 1024 * 1024


def _round_up(x, m):
    return (x + m - 1) // m * m


def _pick_tm(M, target=1024):
    """Largest divisor of M that is a multiple of 16, <= target, and leaves
    >= 2 M tiles when M > 16 (keeps both v7x TensorCores busy)."""
    if M <= 16:
        return M
    cap = min(target, M // 2)
    for t in range(cap, 15, -1):
        if M % t == 0 and t % 16 == 0:
            return t
    return M


def _pick_tk(K_pad):
    """K tile: single step up to 1024, else 1024-wide steps for deep K."""
    if K_pad <= 1024:
        return K_pad
    for t in (1024, 512, 256, 128):
        if K_pad % t == 0:
            return t
    return K_pad


# ----------------------------------------------------------------------------
# Kernel 1: conv-as-GEMM.  (M,K)@(K,N) tiled over (M parallel, K arbitrary),
# bf16 operands, f32 VMEM accumulator, bf16 output.
#   * optional prologue: previous layer's BN apply + LeakyReLU on the input
#     patches (scale/shift given as (1, K) per-channel-tiled vectors).
#   * optional epilogue: bias + LeakyReLU (conv1 only).
#   * optional BN-stats epilogue: per-M-tile column sum / sumsq written as an
#     (8, N) slab (rows 0-3 = sum, rows 4-7 = sumsq) from the f32 accumulator.
# ----------------------------------------------------------------------------
def _conv_gemm_kernel(*refs, has_prologue, has_bias, leaky_out, emit_stats):
    it = iter(refs)
    x_ref = next(it)
    w_ref = next(it)
    scale_ref = next(it) if has_prologue else None
    shift_ref = next(it) if has_prologue else None
    b_ref = next(it) if has_bias else None
    y_ref = next(it)
    stats_ref = next(it) if emit_stats else None
    acc_ref = next(it)

    k = pl.program_id(1)

    @pl.when(k == 0)
    def _():
        acc_ref[...] = jnp.zeros_like(acc_ref)

    x = x_ref[...]
    if has_prologue:
        # BN apply + LeakyReLU of the *previous* layer, fused on the patches.
        z = x.astype(jnp.float32) * scale_ref[...] + shift_ref[...]
        z = jnp.where(z > 0, z, LRELU_SLOPE * z)
        x = z.astype(jnp.bfloat16)

    acc_ref[...] += jnp.dot(x, w_ref[...], preferred_element_type=jnp.float32)

    @pl.when(k == pl.num_programs(1) - 1)
    def _():
        y = acc_ref[...]
        if emit_stats:
            n = y.shape[1]
            s = jnp.sum(y, axis=0, keepdims=True)          # (1, N)
            q = jnp.sum(y * y, axis=0, keepdims=True)      # (1, N)
            rows = jax.lax.broadcasted_iota(jnp.int32, (8, n), 0)
            stats_ref[...] = jnp.where(rows < 4,
                                       jnp.broadcast_to(s, (8, n)),
                                       jnp.broadcast_to(q, (8, n)))
        if has_bias:
            y = y + b_ref[...]
        if leaky_out:
            y = jnp.where(y > 0, y, LRELU_SLOPE * y)
        y_ref[...] = y.astype(y_ref.dtype)


def conv_gemm(x, w, *, bias=None, scale=None, shift=None, leaky_out=False,
              emit_stats=False, out_dtype=jnp.bfloat16):
    """x:(M,K) bf16 patches, w:(K,N) f32 -> y:(M,N) out_dtype [, stats]."""
    M, K = x.shape
    Kw, N = w.shape
    assert K == Kw
    K_pad = _round_up(K, 128)
    tk = _pick_tk(K_pad)
    tm = _pick_tm(M)
    nmt = M // tm

    xb = x.astype(jnp.bfloat16)
    wb = w.astype(jnp.bfloat16)
    if K_pad != K:
        xb = jnp.pad(xb, ((0, 0), (0, K_pad - K)))
        wb = jnp.pad(wb, ((0, K_pad - K), (0, 0)))

    has_prologue = scale is not None
    has_bias = bias is not None

    in_specs = [pl.BlockSpec((tm, tk), lambda m, k: (m, k)),
                pl.BlockSpec((tk, N), lambda m, k: (k, 0))]
    args = [xb, wb]
    if has_prologue:
        sc = scale.reshape(1, K).astype(jnp.float32)
        sh = shift.reshape(1, K).astype(jnp.float32)
        if K_pad != K:
            sc = jnp.pad(sc, ((0, 0), (0, K_pad - K)))
            sh = jnp.pad(sh, ((0, 0), (0, K_pad - K)))
        in_specs += [pl.BlockSpec((1, tk), lambda m, k: (0, k)),
                     pl.BlockSpec((1, tk), lambda m, k: (0, k))]
        args += [sc, sh]
    if has_bias:
        in_specs.append(pl.BlockSpec((1, N), lambda m, k: (0, 0)))
        args.append(bias.reshape(1, N).astype(jnp.float32))

    y_shape = jax.ShapeDtypeStruct((M, N), out_dtype)
    y_spec = pl.BlockSpec((tm, N), lambda m, k: (m, 0))
    if emit_stats:
        out_shape = (y_shape, jax.ShapeDtypeStruct((nmt * 8, N), jnp.float32))
        out_specs = (y_spec, pl.BlockSpec((8, N), lambda m, k: (m, 0)))
    else:
        out_shape = y_shape
        out_specs = y_spec

    out = pl.pallas_call(
        functools.partial(_conv_gemm_kernel, has_prologue=has_prologue,
                          has_bias=has_bias, leaky_out=leaky_out,
                          emit_stats=emit_stats),
        out_shape=out_shape,
        grid_spec=pltpu.PrefetchScalarGridSpec(
            num_scalar_prefetch=0,
            grid=(M // tm, K_pad // tk),
            in_specs=in_specs,
            out_specs=out_specs,
            scratch_shapes=[pltpu.VMEM((tm, N), jnp.float32)],
        ),
        compiler_params=pltpu.CompilerParams(
            dimension_semantics=("parallel", "arbitrary"),
            vmem_limit_bytes=VMEM_LIMIT),
    )(*args)

    if emit_stats:
        return out[0], out[1]
    return out


def bn_finalize(stats, m_total, gamma, beta):
    """Tiny XLA finalize: combine per-M-tile sums -> per-channel scale/shift."""
    C = stats.shape[1]
    nmt = stats.shape[0] // 8
    st = stats.reshape(nmt, 8, C)
    ssum = jnp.sum(st[:, 0, :], axis=0)
    ssq = jnp.sum(st[:, 4, :], axis=0)
    mean = ssum / m_total
    var = jnp.maximum(ssq / m_total - mean * mean, 0.0)   # clamp (review note)
    rstd = jax.lax.rsqrt(var + BN_EPS)
    scale = gamma.reshape(-1) * rstd
    shift = beta.reshape(-1) - mean * scale
    return scale.reshape(1, C), shift.reshape(1, C)


# ----------------------------------------------------------------------------
# Kernel 2: conv5 (K=8192, single grid step) + both sigmoid heads, with the
# BN4-apply + LeakyReLU prologue fused in.  Lane-dense (B, 128) output.
# ----------------------------------------------------------------------------
def _conv5_heads_kernel(x_ref, s_ref, t_ref, w5_ref, b5_ref, wh_ref, bh_ref,
                        o_ref):
    z = x_ref[...].astype(jnp.float32) * s_ref[...] + t_ref[...]
    z = jnp.where(z > 0, z, LRELU_SLOPE * z)
    f = jnp.dot(z.astype(jnp.bfloat16), w5_ref[...],
                preferred_element_type=jnp.float32) + b5_ref[...]
    h = jnp.dot(f.astype(jnp.bfloat16), wh_ref[...],
                preferred_element_type=jnp.float32) + bh_ref[...]
    o_ref[...] = jax.nn.sigmoid(h)


def conv5_heads(flat, scale_k, shift_k, w5, b5, wh, bh):
    B, K = flat.shape
    F = w5.shape[1]
    HN = wh.shape[1]
    return pl.pallas_call(
        _conv5_heads_kernel,
        out_shape=jax.ShapeDtypeStruct((B, HN), jnp.float32),
        grid_spec=pltpu.PrefetchScalarGridSpec(
            num_scalar_prefetch=0,
            grid=(1,),
            in_specs=[pl.BlockSpec((B, K), lambda i: (0, 0)),
                      pl.BlockSpec((1, K), lambda i: (0, 0)),
                      pl.BlockSpec((1, K), lambda i: (0, 0)),
                      pl.BlockSpec((K, F), lambda i: (0, 0)),
                      pl.BlockSpec((1, F), lambda i: (0, 0)),
                      pl.BlockSpec((F, HN), lambda i: (0, 0)),
                      pl.BlockSpec((1, HN), lambda i: (0, 0))],
            out_specs=pl.BlockSpec((B, HN), lambda i: (0, 0)),
        ),
        compiler_params=pltpu.CompilerParams(
            dimension_semantics=("arbitrary",),
            vmem_limit_bytes=VMEM_LIMIT),
    )(flat.astype(jnp.bfloat16),
      scale_k.astype(jnp.float32), shift_k.astype(jnp.float32),
      w5.astype(jnp.bfloat16), b5.reshape(1, F).astype(jnp.float32),
      wh.astype(jnp.bfloat16), bh.astype(jnp.float32))


# ----------------------------------------------------------------------------
# Glue: bf16 NHWC im2col (layout plumbing only) and weight reshaping.
# ----------------------------------------------------------------------------
def im2col_nhwc(x, k, stride, pad):
    # x: (N, H, W, C) bf16 -> (N*Ho*Wo, k*k*C) bf16, (ki, kj, c) flatten order.
    N, H, W, C = x.shape
    Ho = (H + 2 * pad - k) // stride + 1
    Wo = (W + 2 * pad - k) // stride + 1
    xp = jnp.pad(x, ((0, 0), (pad, pad), (pad, pad), (0, 0)))
    cols = []
    for i in range(k):
        for j in range(k):
            cols.append(xp[:, i:i + stride * Ho:stride,
                           j:j + stride * Wo:stride, :])
    p = jnp.stack(cols, axis=3)              # (N, Ho, Wo, k*k, C)
    return p.reshape(N * Ho * Wo, k * k * C), (N, Ho, Wo)


def _wmat(w):
    # torch Conv2d weight (Cout, Cin, kh, kw) -> (kh*kw*Cin, Cout),
    # row order (ki, kj, c) to match im2col_nhwc flatten order.
    Cout, Cin, kh, kw = w.shape
    return w.transpose(2, 3, 1, 0).reshape(kh * kw * Cin, Cout)


# ----------------------------------------------------------------------------
# Full Discriminator forward (NHWC/bf16 internally, NCHW f32 input like torch).
# ----------------------------------------------------------------------------
def discriminator_forward(params, X):
    x = X.astype(jnp.bfloat16).transpose(0, 2, 3, 1)   # single NCHW -> NHWC

    # conv1: 3 -> 64, k4 s2 p1; bias + LeakyReLU fused in the epilogue.
    p, (n, ho, wo) = im2col_nhwc(x, 4, 2, 1)
    y = conv_gemm(p, _wmat(params["w1"]), bias=params["b1"], leaky_out=True)
    x = y.reshape(n, ho, wo, -1)

    # conv2..conv4: conv bias skipped (cancels under batch-stat BN).  Each conv
    # emits its raw bf16 output + fused BN stats; the BN apply + LeakyReLU of
    # layer l is folded into the prologue of layer l+1's matmul.
    scale_prev = None
    shift_prev = None
    for w_key, g_key, bt_key in (("w2", "g2", "bt2"),
                                 ("w3", "g3", "bt3"),
                                 ("w4", "g4", "bt4")):
        p, (n, ho, wo) = im2col_nhwc(x, 4, 2, 1)
        if scale_prev is not None:
            s_k = jnp.tile(scale_prev, (1, 16))   # (1, 16*C): channel-fastest K
            t_k = jnp.tile(shift_prev, (1, 16))
        else:
            s_k = t_k = None
        y, stats = conv_gemm(p, _wmat(params[w_key]),
                             scale=s_k, shift=t_k, emit_stats=True)
        scale_prev, shift_prev = bn_finalize(stats, float(y.shape[0]),
                                             params[g_key], params[bt_key])
        x = y.reshape(n, ho, wo, -1)

    # conv5: 512 -> 64, 4x4 valid on 4x4 spatial -> patches are a reshape
    # ((h, w, c) order matches _wmat).  BN4 prologue + both sigmoid heads fused.
    B = x.shape[0]
    flat = x.reshape(B, -1)                             # (B, 4*4*512) bf16
    s_k = jnp.tile(scale_prev, (1, 16))
    t_k = jnp.tile(shift_prev, (1, 16))
    wh = jnp.pad(jnp.concatenate([params["wd"], params["wa"]], axis=1),
                 ((0, 0), (0, HEAD_PAD - 2)))           # (64, 128) lane-dense
    bh = jnp.pad(jnp.concatenate([params["bd"], params["ba"]], axis=1),
                 ((0, 0), (0, HEAD_PAD - 2)))           # (1, 128)
    out = conv5_heads(flat, s_k, t_k, _wmat(params["w5"]), params["b5"],
                      wh, bh)
    realfake = out[:, 0:1]                              # sigmoid(fc_dis)
    classes = out[:, 1:2]                               # sigmoid(fc_aux)
    return realfake, classes


def init_params(key):
    ks = jax.random.split(key, 8)

    def winit(k, shape):
        return (0.05 * jax.random.normal(k, shape)).astype(jnp.float32)

    f = FIGSIZE
    return dict(
        # conv weights in torch layout (Cout, Cin, kh, kw)
        w1=winit(ks[0], (f, 3, 4, 4)),        b1=jnp.zeros((f,), jnp.float32),
        w2=winit(ks[1], (2 * f, f, 4, 4)),    b2=jnp.zeros((2 * f,), jnp.float32),
        g2=jnp.ones((1, 2 * f), jnp.float32), bt2=jnp.zeros((1, 2 * f), jnp.float32),
        w3=winit(ks[2], (4 * f, 2 * f, 4, 4)), b3=jnp.zeros((4 * f,), jnp.float32),
        g3=jnp.ones((1, 4 * f), jnp.float32), bt3=jnp.zeros((1, 4 * f), jnp.float32),
        w4=winit(ks[3], (8 * f, 4 * f, 4, 4)), b4=jnp.zeros((8 * f,), jnp.float32),
        g4=jnp.ones((1, 8 * f), jnp.float32), bt4=jnp.zeros((1, 8 * f), jnp.float32),
        w5=winit(ks[4], (f, 8 * f, 4, 4)),    b5=jnp.zeros((f,), jnp.float32),
        # heads stored pre-transposed: wd/wa == fc.weight.T, shape (64, 1)
        wd=winit(ks[5], (f, 1)),              bd=jnp.zeros((1, 1), jnp.float32),
        wa=winit(ks[6], (f, 1)),              ba=jnp.zeros((1, 1), jnp.float32),
        # note: b2/b3/b4 are kept for spec fidelity but are mathematically
        # cancelled by the batch-statistics BatchNorm that follows each conv.
    )


if __name__ == "__main__":
    key = jax.random.PRNGKey(0)
    pkey, xkey = jax.random.split(key)
    params = init_params(pkey)
    # Architecture requires 64x64 spatial input (final 4x4 valid conv on 4x4).
    X = jax.random.normal(xkey, (2, 3, 64, 64), jnp.float32)

    fwd = jax.jit(discriminator_forward)
    realfake, classes = fwd(params, X)
    jax.block_until_ready((realfake, classes))
    assert realfake.shape == (2, 1) and classes.shape == (2, 1)
    print("KERNEL_OK")
</pallas_src>

<mosaic_0001>
module attributes {stable_mosaic.version = 11 : i64} {
  func.func @_conv_gemm_kernel(%arg0: i32, %arg1: i32, %arg2: memref<1024x128xbf16, #tpu.memory_space<vmem>>, %arg3: memref<128x64xbf16, #tpu.memory_space<vmem>>, %arg4: memref<1x64xf32, #tpu.memory_space<vmem>>, %arg5: memref<1024x64xbf16, #tpu.memory_space<vmem>>, %arg6: memref<1024x64xf32, #tpu.memory_space<vmem>>) attributes {dimension_semantics = [#tpu.dimension_semantics<parallel>, #tpu.dimension_semantics<arbitrary>], iteration_bounds = array<i64: 2, 1>, scalar_prefetch = 0 : i64, scratch_operands = 1 : i64, tpu.core_type = #tpu.core_type<tc>, window_params = [{transform_indices = @transform_0, window_bounds = array<i64: 1024, 128>}, {transform_indices = @transform_1, window_bounds = array<i64: 128, 64>}, {pipeline_mode = #tpu.pipeline_mode<synchronous>, transform_indices = @transform_2, window_bounds = array<i64: 1, 64>}, {transform_indices = @transform_3, window_bounds = array<i64: 1024, 64>}]} {
    %c0_i32 = arith.constant 0 : i32
    %0 = arith.cmpi eq, %arg1, %c0_i32 : i32
    %1 = arith.extui %0 : i1 to i32
    %c0_i32_0 = arith.constant 0 : i32
    %2 = arith.cmpi ne, %1, %c0_i32_0 : i32
    scf.if %2 {
      %cst_10 = arith.constant 0.000000e+00 : f32
      %12 = vector.broadcast %cst_10 : f32 to vector<1024x64xf32>
      %c0_11 = arith.constant 0 : index
      %c0_12 = arith.constant 0 : index
      %13 = vector.load %arg6[%c0_11, %c0_12] : memref<1024x64xf32, #tpu.memory_space<vmem>>, vector<1024x64xf32>
      tpu.vector_store %arg6[%c0_11, %c0_12], %12 {strides = array<i32>} : memref<1024x64xf32, #tpu.memory_space<vmem>>, vector<1024x64xf32>,
    } else {
    }
    %c0 = arith.constant 0 : index
    %c0_1 = arith.constant 0 : index
    %3 = vector.load %arg2[%c0, %c0_1] : memref<1024x128xbf16, #tpu.memory_space<vmem>>, vector<1024x128xbf16>
    %c0_2 = arith.constant 0 : index
    %c0_3 = arith.constant 0 : index
    %4 = vector.load %arg6[%c0_2, %c0_3] : memref<1024x64xf32, #tpu.memory_space<vmem>>, vector<1024x64xf32>
    %c0_4 = arith.constant 0 : index
    %c0_5 = arith.constant 0 : index
    %5 = vector.load %arg3[%c0_4, %c0_5] : memref<128x64xbf16, #tpu.memory_space<vmem>>, vector<128x64xbf16>
    %cst = arith.constant dense<0.000000e+00> : vector<1024x64xf32>
    %6 = tpu.matmul %3, %5, %cst {dimension_numbers = #tpu.dot_dimension_numbers<[1], [0], [0], [1], [0, 0, 1, 1], [], []>} : vector<1024x128xbf16>, vector<128x64xbf16>, vector<1024x64xf32> -> vector<1024x64xf32>
    %7 = arith.addf %4, %6 : vector<1024x64xf32>
    %c0_6 = arith.constant 0 : index
    %c0_7 = arith.constant 0 : index
    %8 = vector.load %arg6[%c0_6, %c0_7] : memref<1024x64xf32, #tpu.memory_space<vmem>>, vector<1024x64xf32>
    tpu.vector_store %arg6[%c0_6, %c0_7], %7 {strides = array<i32>} : memref<1024x64xf32, #tpu.memory_space<vmem>>, vector<1024x64xf32>,
    %c0_i32_8 = arith.constant 0 : i32
    %9 = arith.cmpi eq, %arg1, %c0_i32_8 : i32
    %10 = arith.extui %9 : i1 to i32
    %c0_i32_9 = arith.constant 0 : i32
    %11 = arith.cmpi ne, %10, %c0_i32_9 : i32
    scf.if %11 {
      %c0_10 = arith.constant 0 : index
      %c0_11 = arith.constant 0 : index
      %12 = vector.load %arg6[%c0_10, %c0_11] : memref<1024x64xf32, #tpu.memory_space<vmem>>, vector<1024x64xf32>
      %c0_12 = arith.constant 0 : index
      %c0_13 = arith.constant 0 : index
      %13 = vector.load %arg4[%c0_12, %c0_13] : memref<1x64xf32, #tpu.memory_space<vmem>>, vector<1x64xf32>
      %14 = vector.broadcast %13 : vector<1x64xf32> to vector<1024x64xf32>
      %15 = arith.addf %12, %14 : vector<1024x64xf32>
      %cst_14 = arith.constant 0.000000e+00 : f32
      %16 = vector.broadcast %cst_14 : f32 to vector<1024x64xf32>
      %17 = arith.cmpf ogt, %15, %16 : vector<1024x64xf32>
      %cst_15 = arith.constant 2.000000e-01 : f32
      %18 = vector.broadcast %cst_15 : f32 to vector<1024x64xf32>
      %19 = arith.mulf %18, %15 : vector<1024x64xf32>
      %20 = arith.select %17, %15, %19 : vector<1024x64xi1>, vector<1024x64xf32>
      %21 = arith.truncf %20 : vector<1024x64xf32> to vector<1024x64xbf16>
      %c0_16 = arith.constant 0 : index
      %c0_17 = arith.constant 0 : index
      %22 = vector.load %arg5[%c0_16, %c0_17] : memref<1024x64xbf16, #tpu.memory_space<vmem>>, vector<1024x64xbf16>
      tpu.vector_store %arg5[%c0_16, %c0_17], %21 {strides = array<i32>} : memref<1024x64xbf16, #tpu.memory_space<vmem>>, vector<1024x64xbf16>,
    } else {
    }
    return
  }
  func.func @transform_0(%arg0: i32, %arg1: i32) -> (i32, i32) {
    %c0_i32 = arith.constant 0 : i32
    return %arg0, %arg1 : i32, i32
  }
  func.func @transform_1(%arg0: i32, %arg1: i32) -> (i32, i32) {
    %c0_i32 = arith.constant 0 : i32
    %c0_i32_0 = arith.constant 0 : i32
    return %arg1, %c0_i32 : i32, i32
  }
  func.func @transform_2(%arg0: i32, %arg1: i32) -> (i32, i32) {
    %c0_i32 = arith.constant 0 : i32
    %c0_i32_0 = arith.constant 0 : i32
    %c0_i32_1 = arith.constant 0 : i32
    return %c0_i32, %c0_i32_0 : i32, i32
  }
  func.func @transform_3(%arg0: i32, %arg1: i32) -> (i32, i32) {
    %c0_i32 = arith.constant 0 : i32
    %c0_i32_0 = arith.constant 0 : i32
    return %arg0, %c0_i32 : i32, i32
  }
}

module attributes {stable_mosaic.version = 11 : i64} {
  func.func @_conv_gemm_kernel(%arg0: i32, %arg1: i32, %arg2: memref<256x1024xbf16, #tpu.memory_space<vmem>>, %arg3: memref<1024x128xbf16, #tpu.memory_space<vmem>>, %arg4: memref<256x128xbf16, #tpu.memory_space<vmem>>, %arg5: memref<8x128xf32, #tpu.memory_space<vmem>>, %arg6: memref<256x128xf32, #tpu.memory_space<vmem>>) attributes {dimension_semantics = [#tpu.dimension_semantics<parallel>, #tpu.dimension_semantics<arbitrary>], iteration_bounds = array<i64: 2, 1>, scalar_prefetch = 0 : i64, scratch_operands = 1 : i64, tpu.core_type = #tpu.core_type<tc>, window_params = [{transform_indices = @transform_0, window_bounds = array<i64: 256, 1024>}, {transform_indices = @transform_1, window_bounds = array<i64: 1024, 128>}, {transform_indices = @transform_2, window_bounds = array<i64: 256, 128>}, {transform_indices = @transform_3, window_bounds = array<i64: 8, 128>}]} {
    %c0_i32 = arith.constant 0 : i32
    %0 = arith.cmpi eq, %arg1, %c0_i32 : i32
    %1 = arith.extui %0 : i1 to i32
    %c0_i32_0 = arith.constant 0 : i32
    %2 = arith.cmpi ne, %1, %c0_i32_0 : i32
    scf.if %2 {
      %cst_10 = arith.constant 0.000000e+00 : f32
      %12 = vector.broadcast %cst_10 : f32 to vector<256x128xf32>
      %c0_11 = arith.constant 0 : index
      %c0_12 = arith.constant 0 : index
      %13 = vector.load %arg6[%c0_11, %c0_12] : memref<256x128xf32, #tpu.memory_space<vmem>>, vector<256x128xf32>
      tpu.vector_store %arg6[%c0_11, %c0_12], %12 {strides = array<i32>} : memref<256x128xf32, #tpu.memory_space<vmem>>, vector<256x128xf32>,
    } else {
    }
    %c0 = arith.constant 0 : index
    %c0_1 = arith.constant 0 : index
    %3 = vector.load %arg2[%c0, %c0_1] : memref<256x1024xbf16, #tpu.memory_space<vmem>>, vector<256x1024xbf16>
    %c0_2 = arith.constant 0 : index
    %c0_3 = arith.constant 0 : index
    %4 = vector.load %arg6[%c0_2, %c0_3] : memref<256x128xf32, #tpu.memory_space<vmem>>, vector<256x128xf32>
    %c0_4 = arith.constant 0 : index
    %c0_5 = arith.constant 0 : index
    %5 = vector.load %arg3[%c0_4, %c0_5] : memref<1024x128xbf16, #tpu.memory_space<vmem>>, vector<1024x128xbf16>
    %cst = arith.constant dense<0.000000e+00> : vector<256x128xf32>
    %6 = tpu.matmul %3, %5, %cst {dimension_numbers = #tpu.dot_dimension_numbers<[1], [0], [0], [1], [0, 0, 1, 1], [], []>} : vector<256x1024xbf16>, vector<1024x128xbf16>, vector<256x128xf32> -> vector<256x128xf32>
    %7 = arith.addf %4, %6 : vector<256x128xf32>
    %c0_6 = arith.constant 0 : index
    %c0_7 = arith.constant 0 : index
    %8 = vector.load %arg6[%c0_6, %c0_7] : memref<256x128xf32, #tpu.memory_space<vmem>>, vector<256x128xf32>
    tpu.vector_store %arg6[%c0_6, %c0_7], %7 {strides = array<i32>} : memref<256x128xf32, #tpu.memory_space<vmem>>, vector<256x128xf32>,
    %c0_i32_8 = arith.constant 0 : i32
    %9 = arith.cmpi eq, %arg1, %c0_i32_8 : i32
    %10 = arith.extui %9 : i1 to i32
    %c0_i32_9 = arith.constant 0 : i32
    %11 = arith.cmpi ne, %10, %c0_i32_9 : i32
    scf.if %11 {
      %c0_10 = arith.constant 0 : index
      %c0_11 = arith.constant 0 : index
      %12 = vector.load %arg6[%c0_10, %c0_11] : memref<256x128xf32, #tpu.memory_space<vmem>>, vector<256x128xf32>
      %cst_12 = arith.constant dense<0.000000e+00> : vector<128xf32>
      %13 = vector.multi_reduction <add>, %12, %cst_12 [0] : vector<256x128xf32> to vector<128xf32>
      %14 = vector.shape_cast %13 : vector<128xf32> to vector<1x128xf32>
      %15 = arith.mulf %12, %12 : vector<256x128xf32>
      %cst_13 = arith.constant dense<0.000000e+00> : vector<128xf32>
      %16 = vector.multi_reduction <add>, %15, %cst_13 [0] : vector<256x128xf32> to vector<128xf32>
      %17 = vector.shape_cast %16 : vector<128xf32> to vector<1x128xf32>
      %18 = tpu.iota {dimensions = array<i32: 0>} : vector<8x128xi32>
      %c4_i32 = arith.constant 4 : i32
      %19 = vector.broadcast %c4_i32 : i32 to vector<8x128xi32>
      %20 = arith.cmpi slt, %18, %19 : vector<8x128xi32>
      %21 = vector.shape_cast %14 : vector<1x128xf32> to vector<1x128xf32>
      %22 = vector.broadcast %21 : vector<1x128xf32> to vector<8x128xf32>
      %23 = vector.shape_cast %17 : vector<1x128xf32> to vector<1x128xf32>
      %24 = vector.broadcast %23 : vector<1x128xf32> to vector<8x128xf32>
      %25 = arith.select %20, %22, %24 : vector<8x128xi1>, vector<8x128xf32>
      %c0_14 = arith.constant 0 : index
      %c0_15 = arith.constant 0 : index
      %26 = vector.load %arg5[%c0_14, %c0_15] : memref<8x128xf32, #tpu.memory_space<vmem>>, vector<8x128xf32>
      tpu.vector_store %arg5[%c0_14, %c0_15], %25 {strides = array<i32>} : memref<8x128xf32, #tpu.memory_space<vmem>>, vector<8x128xf32>,
      %27 = arith.truncf %12 : vector<256x128xf32> to vector<256x128xbf16>
      %c0_16 = arith.constant 0 : index
      %c0_17 = arith.constant 0 : index
      %28 = vector.load %arg4[%c0_16, %c0_17] : memref<256x128xbf16, #tpu.memory_space<vmem>>, vector<256x128xbf16>
      tpu.vector_store %arg4[%c0_16, %c0_17], %27 {strides = array<i32>} : memref<256x128xbf16, #tpu.memory_space<vmem>>, vector<256x128xbf16>,
    } else {
    }
    return
  }
  func.func @transform_0(%arg0: i32, %arg1: i32) -> (i32, i32) {
    %c0_i32 = arith.constant 0 : i32
    return %arg0, %arg1 : i32, i32
  }
  func.func @transform_1(%arg0: i32, %arg1: i32) -> (i32, i32) {
    %c0_i32 = arith.constant 0 : i32
    %c0_i32_0 = arith.constant 0 : i32
    return %arg1, %c0_i32 : i32, i32
  }
  func.func @transform_2(%arg0: i32, %arg1: i32) -> (i32, i32) {
    %c0_i32 = arith.constant 0 : i32
    %c0_i32_0 = arith.constant 0 : i32
    return %arg0, %c0_i32 : i32, i32
  }
  func.func @transform_3(%arg0: i32, %arg1: i32) -> (i32, i32) {
    %c0_i32 = arith.constant 0 : i32
    %c0_i32_0 = arith.constant 0 : i32
    return %arg0, %c0_i32 : i32, i32
  }
}

module attributes {stable_mosaic.version = 11 : i64} {
  func.func @_conv_gemm_kernel(%arg0: i32, %arg1: i32, %arg2: memref<64x1024xbf16, #tpu.memory_space<vmem>>, %arg3: memref<1024x256xbf16, #tpu.memory_space<vmem>>, %arg4: memref<1x1024xf32, #tpu.memory_space<vmem>>, %arg5: memref<1x1024xf32, #tpu.memory_space<vmem>>, %arg6: memref<64x256xbf16, #tpu.memory_space<vmem>>, %arg7: memref<8x256xf32, #tpu.memory_space<vmem>>, %arg8: memref<64x256xf32, #tpu.memory_space<vmem>>) attributes {dimension_semantics = [#tpu.dimension_semantics<parallel>, #tpu.dimension_semantics<arbitrary>], iteration_bounds = array<i64: 2, 2>, scalar_prefetch = 0 : i64, scratch_operands = 1 : i64, tpu.core_type = #tpu.core_type<tc>, window_params = [{transform_indices = @transform_0, window_bounds = array<i64: 64, 1024>}, {transform_indices = @transform_1, window_bounds = array<i64: 1024, 256>}, {transform_indices = @transform_2, window_bounds = array<i64: 1, 1024>}, {transform_indices = @transform_3, window_bounds = array<i64: 1, 1024>}, {transform_indices = @transform_4, window_bounds = array<i64: 64, 256>}, {transform_indices = @transform_5, window_bounds = array<i64: 8, 256>}]} {
    %c0_i32 = arith.constant 0 : i32
    %0 = arith.cmpi eq, %arg1, %c0_i32 : i32
    %1 = arith.extui %0 : i1 to i32
    %c0_i32_0 = arith.constant 0 : i32
    %2 = arith.cmpi ne, %1, %c0_i32_0 : i32
    scf.if %2 {
      %cst_15 = arith.constant 0.000000e+00 : f32
      %25 = vector.broadcast %cst_15 : f32 to vector<64x256xf32>
      %c0_16 = arith.constant 0 : index
      %c0_17 = arith.constant 0 : index
      %26 = vector.load %arg8[%c0_16, %c0_17] : memref<64x256xf32, #tpu.memory_space<vmem>>, vector<64x256xf32>
      tpu.vector_store %arg8[%c0_16, %c0_17], %25 {strides = array<i32>} : memref<64x256xf32, #tpu.memory_space<vmem>>, vector<64x256xf32>,
    } else {
    }
    %c0 = arith.constant 0 : index
    %c0_1 = arith.constant 0 : index
    %3 = vector.load %arg2[%c0, %c0_1] : memref<64x1024xbf16, #tpu.memory_space<vmem>>, vector<64x1024xbf16>
    %4 = arith.extf %3 : vector<64x1024xbf16> to vector<64x1024xf32>
    %c0_2 = arith.constant 0 : index
    %c0_3 = arith.constant 0 : index
    %5 = vector.load %arg4[%c0_2, %c0_3] : memref<1x1024xf32, #tpu.memory_space<vmem>>, vector<1x1024xf32>
    %6 = vector.broadcast %5 : vector<1x1024xf32> to vector<64x1024xf32>
    %7 = arith.mulf %4, %6 : vector<64x1024xf32>
    %c0_4 = arith.constant 0 : index
    %c0_5 = arith.constant 0 : index
    %8 = vector.load %arg5[%c0_4, %c0_5] : memref<1x1024xf32, #tpu.memory_space<vmem>>, vector<1x1024xf32>
    %9 = vector.broadcast %8 : vector<1x1024xf32> to vector<64x1024xf32>
    %10 = arith.addf %7, %9 : vector<64x1024xf32>
    %cst = arith.constant 0.000000e+00 : f32
    %11 = vector.broadcast %cst : f32 to vector<64x1024xf32>
    %12 = arith.cmpf ogt, %10, %11 : vector<64x1024xf32>
    %cst_6 = arith.constant 2.000000e-01 : f32
    %13 = vector.broadcast %cst_6 : f32 to vector<64x1024xf32>
    %14 = arith.mulf %13, %10 : vector<64x1024xf32>
    %15 = arith.select %12, %10, %14 : vector<64x1024xi1>, vector<64x1024xf32>
    %16 = arith.truncf %15 : vector<64x1024xf32> to vector<64x1024xbf16>
    %c0_7 = arith.constant 0 : index
    %c0_8 = arith.constant 0 : index
    %17 = vector.load %arg8[%c0_7, %c0_8] : memref<64x256xf32, #tpu.memory_space<vmem>>, vector<64x256xf32>
    %c0_9 = arith.constant 0 : index
    %c0_10 = arith.constant 0 : index
    %18 = vector.load %arg3[%c0_9, %c0_10] : memref<1024x256xbf16, #tpu.memory_space<vmem>>, vector<1024x256xbf16>
    %cst_11 = arith.constant dense<0.000000e+00> : vector<64x256xf32>
    %19 = tpu.matmul %16, %18, %cst_11 {dimension_numbers = #tpu.dot_dimension_numbers<[1], [0], [0], [1], [0, 0, 1, 1], [], []>} : vector<64x1024xbf16>, vector<1024x256xbf16>, vector<64x256xf32> -> vector<64x256xf32>
    %20 = arith.addf %17, %19 : vector<64x256xf32>
    %c0_12 = arith.constant 0 : index
    %c0_13 = arith.constant 0 : index
    %21 = vector.load %arg8[%c0_12, %c0_13] : memref<64x256xf32, #tpu.memory_space<vmem>>, vector<64x256xf32>
    tpu.vector_store %arg8[%c0_12, %c0_13], %20 {strides = array<i32>} : memref<64x256xf32, #tpu.memory_space<vmem>>, vector<64x256xf32>,
    %c1_i32 = arith.constant 1 : i32
    %22 = arith.cmpi eq, %arg1, %c1_i32 : i32
    %23 = arith.extui %22 : i1 to i32
    %c0_i32_14 = arith.constant 0 : i32
    %24 = arith.cmpi ne, %23, %c0_i32_14 : i32
    scf.if %24 {
      %c0_15 = arith.constant 0 : index
      %c0_16 = arith.constant 0 : index
      %25 = vector.load %arg8[%c0_15, %c0_16] : memref<64x256xf32, #tpu.memory_space<vmem>>, vector<64x256xf32>
      %cst_17 = arith.constant dense<0.000000e+00> : vector<256xf32>
      %26 = vector.multi_reduction <add>, %25, %cst_17 [0] : vector<64x256xf32> to vector<256xf32>
      %27 = vector.shape_cast %26 : vector<256xf32> to vector<1x256xf32>
      %28 = arith.mulf %25, %25 : vector<64x256xf32>
      %cst_18 = arith.constant dense<0.000000e+00> : vector<256xf32>
      %29 = vector.multi_reduction <add>, %28, %cst_18 [0] : vector<64x256xf32> to vector<256xf32>
      %30 = vector.shape_cast %29 : vector<256xf32> to vector<1x256xf32>
      %31 = tpu.iota {dimensions = array<i32: 0>} : vector<8x256xi32>
      %c4_i32 = arith.constant 4 : i32
      %32 = vector.broadcast %c4_i32 : i32 to vector<8x256xi32>
      %33 = arith.cmpi slt, %31, %32 : vector<8x256xi32>
      %34 = vector.shape_cast %27 : vector<1x256xf32> to vector<1x256xf32>
      %35 = vector.broadcast %34 : vector<1x256xf32> to vector<8x256xf32>
      %36 = vector.shape_cast %30 : vector<1x256xf32> to vector<1x256xf32>
      %37 = vector.broadcast %36 : vector<1x256xf32> to vector<8x256xf32>
      %38 = arith.select %33, %35, %37 : vector<8x256xi1>, vector<8x256xf32>
      %c0_19 = arith.constant 0 : index
      %c0_20 = arith.constant 0 : index
      %39 = vector.load %arg7[%c0_19, %c0_20] : memref<8x256xf32, #tpu.memory_space<vmem>>, vector<8x256xf32>
      tpu.vector_store %arg7[%c0_19, %c0_20], %38 {strides = array<i32>} : memref<8x256xf32, #tpu.memory_space<vmem>>, vector<8x256xf32>,
      %40 = arith.truncf %25 : vector<64x256xf32> to vector<64x256xbf16>
      %c0_21 = arith.constant 0 : index
      %c0_22 = arith.constant 0 : index
      %41 = vector.load %arg6[%c0_21, %c0_22] : memref<64x256xbf16, #tpu.memory_space<vmem>>, vector<64x256xbf16>
      tpu.vector_store %arg6[%c0_21, %c0_22], %40 {strides = array<i32>} : memref<64x256xbf16, #tpu.memory_space<vmem>>, vector<64x256xbf16>,
    } else {
    }
    return
  }
  func.func @transform_0(%arg0: i32, %arg1: i32) -> (i32, i32) {
    %c0_i32 = arith.constant 0 : i32
    return %arg0, %arg1 : i32, i32
  }
  func.func @transform_1(%arg0: i32, %arg1: i32) -> (i32, i32) {
    %c0_i32 = arith.constant 0 : i32
    %c0_i32_0 = arith.constant 0 : i32
    return %arg1, %c0_i32 : i32, i32
  }
  func.func @transform_2(%arg0: i32, %arg1: i32) -> (i32, i32) {
    %c0_i32 = arith.constant 0 : i32
    %c0_i32_0 = arith.constant 0 : i32
    return %c0_i32, %arg1 : i32, i32
  }
  func.func @transform_3(%arg0: i32, %arg1: i32) -> (i32, i32) {
    %c0_i32 = arith.constant 0 : i32
    %c0_i32_0 = arith.constant 0 : i32
    return %c0_i32, %arg1 : i32, i32
  }
  func.func @transform_4(%arg0: i32, %arg1: i32) -> (i32, i32) {
    %c0_i32 = arith.constant 0 : i32
    %c0_i32_0 = arith.constant 0 : i32
    return %arg0, %c0_i32 : i32, i32
  }
  func.func @transform_5(%arg0: i32, %arg1: i32) -> (i32, i32) {
    %c0_i32 = arith.constant 0 : i32
    %c0_i32_0 = arith.constant 0 : i32
    return %arg0, %c0_i32 : i32, i32
  }
}

module attributes {stable_mosaic.version = 11 : i64} {
  func.func @_conv_gemm_kernel(%arg0: i32, %arg1: i32, %arg2: memref<16x1024xbf16, #tpu.memory_space<vmem>>, %arg3: memref<1024x512xbf16, #tpu.memory_space<vmem>>, %arg4: memref<1x1024xf32, #tpu.memory_space<vmem>>, %arg5: memref<1x1024xf32, #tpu.memory_space<vmem>>, %arg6: memref<16x512xbf16, #tpu.memory_space<vmem>>, %arg7: memref<8x512xf32, #tpu.memory_space<vmem>>, %arg8: memref<16x512xf32, #tpu.memory_space<vmem>>) attributes {dimension_semantics = [#tpu.dimension_semantics<parallel>, #tpu.dimension_semantics<arbitrary>], iteration_bounds = array<i64: 2, 4>, scalar_prefetch = 0 : i64, scratch_operands = 1 : i64, tpu.core_type = #tpu.core_type<tc>, window_params = [{transform_indices = @transform_0, window_bounds = array<i64: 16, 1024>}, {transform_indices = @transform_1, window_bounds = array<i64: 1024, 512>}, {transform_indices = @transform_2, window_bounds = array<i64: 1, 1024>}, {transform_indices = @transform_3, window_bounds = array<i64: 1, 1024>}, {transform_indices = @transform_4, window_bounds = array<i64: 16, 512>}, {transform_indices = @transform_5, window_bounds = array<i64: 8, 512>}]} {
    %c0_i32 = arith.constant 0 : i32
    %0 = arith.cmpi eq, %arg1, %c0_i32 : i32
    %1 = arith.extui %0 : i1 to i32
    %c0_i32_0 = arith.constant 0 : i32
    %2 = arith.cmpi ne, %1, %c0_i32_0 : i32
    scf.if %2 {
      %cst_15 = arith.constant 0.000000e+00 : f32
      %25 = vector.broadcast %cst_15 : f32 to vector<16x512xf32>
      %c0_16 = arith.constant 0 : index
      %c0_17 = arith.constant 0 : index
      %26 = vector.load %arg8[%c0_16, %c0_17] : memref<16x512xf32, #tpu.memory_space<vmem>>, vector<16x512xf32>
      tpu.vector_store %arg8[%c0_16, %c0_17], %25 {strides = array<i32>} : memref<16x512xf32, #tpu.memory_space<vmem>>, vector<16x512xf32>,
    } else {
    }
    %c0 = arith.constant 0 : index
    %c0_1 = arith.constant 0 : index
    %3 = vector.load %arg2[%c0, %c0_1] : memref<16x1024xbf16, #tpu.memory_space<vmem>>, vector<16x1024xbf16>
    %4 = arith.extf %3 : vector<16x1024xbf16> to vector<16x1024xf32>
    %c0_2 = arith.constant 0 : index
    %c0_3 = arith.constant 0 : index
    %5 = vector.load %arg4[%c0_2, %c0_3] : memref<1x1024xf32, #tpu.memory_space<vmem>>, vector<1x1024xf32>
    %6 = vector.broadcast %5 : vector<1x1024xf32> to vector<16x1024xf32>
    %7 = arith.mulf %4, %6 : vector<16x1024xf32>
    %c0_4 = arith.constant 0 : index
    %c0_5 = arith.constant 0 : index
    %8 = vector.load %arg5[%c0_4, %c0_5] : memref<1x1024xf32, #tpu.memory_space<vmem>>, vector<1x1024xf32>
    %9 = vector.broadcast %8 : vector<1x1024xf32> to vector<16x1024xf32>
    %10 = arith.addf %7, %9 : vector<16x1024xf32>
    %cst = arith.constant 0.000000e+00 : f32
    %11 = vector.broadcast %cst : f32 to vector<16x1024xf32>
    %12 = arith.cmpf ogt, %10, %11 : vector<16x1024xf32>
    %cst_6 = arith.constant 2.000000e-01 : f32
    %13 = vector.broadcast %cst_6 : f32 to vector<16x1024xf32>
    %14 = arith.mulf %13, %10 : vector<16x1024xf32>
    %15 = arith.select %12, %10, %14 : vector<16x1024xi1>, vector<16x1024xf32>
    %16 = arith.truncf %15 : vector<16x1024xf32> to vector<16x1024xbf16>
    %c0_7 = arith.constant 0 : index
    %c0_8 = arith.constant 0 : index
    %17 = vector.load %arg8[%c0_7, %c0_8] : memref<16x512xf32, #tpu.memory_space<vmem>>, vector<16x512xf32>
    %c0_9 = arith.constant 0 : index
    %c0_10 = arith.constant 0 : index
    %18 = vector.load %arg3[%c0_9, %c0_10] : memref<1024x512xbf16, #tpu.memory_space<vmem>>, vector<1024x512xbf16>
    %cst_11 = arith.constant dense<0.000000e+00> : vector<16x512xf32>
    %19 = tpu.matmul %16, %18, %cst_11 {dimension_numbers = #tpu.dot_dimension_numbers<[1], [0], [0], [1], [0, 0, 1, 1], [], []>} : vector<16x1024xbf16>, vector<1024x512xbf16>, vector<16x512xf32> -> vector<16x512xf32>
    %20 = arith.addf %17, %19 : vector<16x512xf32>
    %c0_12 = arith.constant 0 : index
    %c0_13 = arith.constant 0 : index
    %21 = vector.load %arg8[%c0_12, %c0_13] : memref<16x512xf32, #tpu.memory_space<vmem>>, vector<16x512xf32>
    tpu.vector_store %arg8[%c0_12, %c0_13], %20 {strides = array<i32>} : memref<16x512xf32, #tpu.memory_space<vmem>>, vector<16x512xf32>,
    %c3_i32 = arith.constant 3 : i32
    %22 = arith.cmpi eq, %arg1, %c3_i32 : i32
    %23 = arith.extui %22 : i1 to i32
    %c0_i32_14 = arith.constant 0 : i32
    %24 = arith.cmpi ne, %23, %c0_i32_14 : i32
    scf.if %24 {
      %c0_15 = arith.constant 0 : index
      %c0_16 = arith.constant 0 : index
      %25 = vector.load %arg8[%c0_15, %c0_16] : memref<16x512xf32, #tpu.memory_space<vmem>>, vector<16x512xf32>
      %cst_17 = arith.constant dense<0.000000e+00> : vector<512xf32>
      %26 = vector.multi_reduction <add>, %25, %cst_17 [0] : vector<16x512xf32> to vector<512xf32>
      %27 = vector.shape_cast %26 : vector<512xf32> to vector<1x512xf32>
      %28 = arith.mulf %25, %25 : vector<16x512xf32>
      %cst_18 = arith.constant dense<0.000000e+00> : vector<512xf32>
      %29 = vector.multi_reduction <add>, %28, %cst_18 [0] : vector<16x512xf32> to vector<512xf32>
      %30 = vector.shape_cast %29 : vector<512xf32> to vector<1x512xf32>
      %31 = tpu.iota {dimensions = array<i32: 0>} : vector<8x512xi32>
      %c4_i32 = arith.constant 4 : i32
      %32 = vector.broadcast %c4_i32 : i32 to vector<8x512xi32>
      %33 = arith.cmpi slt, %31, %32 : vector<8x512xi32>
      %34 = vector.shape_cast %27 : vector<1x512xf32> to vector<1x512xf32>
      %35 = vector.broadcast %34 : vector<1x512xf32> to vector<8x512xf32>
      %36 = vector.shape_cast %30 : vector<1x512xf32> to vector<1x512xf32>
      %37 = vector.broadcast %36 : vector<1x512xf32> to vector<8x512xf32>
      %38 = arith.select %33, %35, %37 : vector<8x512xi1>, vector<8x512xf32>
      %c0_19 = arith.constant 0 : index
      %c0_20 = arith.constant 0 : index
      %39 = vector.load %arg7[%c0_19, %c0_20] : memref<8x512xf32, #tpu.memory_space<vmem>>, vector<8x512xf32>
      tpu.vector_store %arg7[%c0_19, %c0_20], %38 {strides = array<i32>} : memref<8x512xf32, #tpu.memory_space<vmem>>, vector<8x512xf32>,
      %40 = arith.truncf %25 : vector<16x512xf32> to vector<16x512xbf16>
      %c0_21 = arith.constant 0 : index
      %c0_22 = arith.constant 0 : index
      %41 = vector.load %arg6[%c0_21, %c0_22] : memref<16x512xbf16, #tpu.memory_space<vmem>>, vector<16x512xbf16>
      tpu.vector_store %arg6[%c0_21, %c0_22], %40 {strides = array<i32>} : memref<16x512xbf16, #tpu.memory_space<vmem>>, vector<16x512xbf16>,
    } else {
    }
    return
  }
  func.func @transform_0(%arg0: i32, %arg1: i32) -> (i32, i32) {
    %c0_i32 = arith.constant 0 : i32
    return %arg0, %arg1 : i32, i32
  }
  func.func @transform_1(%arg0: i32, %arg1: i32) -> (i32, i32) {
    %c0_i32 = arith.constant 0 : i32
    %c0_i32_0 = arith.constant 0 : i32
    return %arg1, %c0_i32 : i32, i32
  }
  func.func @transform_2(%arg0: i32, %arg1: i32) -> (i32, i32) {
    %c0_i32 = arith.constant 0 : i32
    %c0_i32_0 = arith.constant 0 : i32
    return %c0_i32, %arg1 : i32, i32
  }
  func.func @transform_3(%arg0: i32, %arg1: i32) -> (i32, i32) {
    %c0_i32 = arith.constant 0 : i32
    %c0_i32_0 = arith.constant 0 : i32
    return %c0_i32, %arg1 : i32, i32
  }
  func.func @transform_4(%arg0: i32, %arg1: i32) -> (i32, i32) {
    %c0_i32 = arith.constant 0 : i32
    %c0_i32_0 = arith.constant 0 : i32
    return %arg0, %c0_i32 : i32, i32
  }
  func.func @transform_5(%arg0: i32, %arg1: i32) -> (i32, i32) {
    %c0_i32 = arith.constant 0 : i32
    %c0_i32_0 = arith.constant 0 : i32
    return %arg0, %c0_i32 : i32, i32
  }
}

module attributes {stable_mosaic.version = 11 : i64} {
  func.func @_conv5_heads_kernel(%arg0: i32, %arg1: memref<2x8192xbf16, #tpu.memory_space<vmem>>, %arg2: memref<1x8192xf32, #tpu.memory_space<vmem>>, %arg3: memref<1x8192xf32, #tpu.memory_space<vmem>>, %arg4: memref<8192x64xbf16, #tpu.memory_space<vmem>>, %arg5: memref<1x64xf32, #tpu.memory_space<vmem>>, %arg6: memref<64x128xbf16, #tpu.memory_space<vmem>>, %arg7: memref<1x128xf32, #tpu.memory_space<vmem>>, %arg8: memref<2x128xf32, #tpu.memory_space<vmem>>) attributes {dimension_semantics = [#tpu.dimension_semantics<arbitrary>], iteration_bounds = array<i64: 1>, scalar_prefetch = 0 : i64, scratch_operands = 0 : i64, tpu.core_type = #tpu.core_type<tc>, window_params = [{pipeline_mode = #tpu.pipeline_mode<synchronous>, transform_indices = @transform_0, window_bounds = array<i64: 2, 8192>}, {pipeline_mode = #tpu.pipeline_mode<synchronous>, transform_indices = @transform_1, window_bounds = array<i64: 1, 8192>}, {pipeline_mode = #tpu.pipeline_mode<synchronous>, transform_indices = @transform_2, window_bounds = array<i64: 1, 8192>}, {pipeline_mode = #tpu.pipeline_mode<synchronous>, transform_indices = @transform_3, window_bounds = array<i64: 8192, 64>}, {pipeline_mode = #tpu.pipeline_mode<synchronous>, transform_indices = @transform_4, window_bounds = array<i64: 1, 64>}, {pipeline_mode = #tpu.pipeline_mode<synchronous>, transform_indices = @transform_5, window_bounds = array<i64: 64, 128>}, {pipeline_mode = #tpu.pipeline_mode<synchronous>, transform_indices = @transform_6, window_bounds = array<i64: 1, 128>}, {pipeline_mode = #tpu.pipeline_mode<synchronous>, transform_indices = @transform_7, window_bounds = array<i64: 2, 128>}]} {
    %c0 = arith.constant 0 : index
    %c0_0 = arith.constant 0 : index
    %0 = vector.load %arg1[%c0, %c0_0] : memref<2x8192xbf16, #tpu.memory_space<vmem>>, vector<2x8192xbf16>
    %1 = arith.extf %0 : vector<2x8192xbf16> to vector<2x8192xf32>
    %c0_1 = arith.constant 0 : index
    %c0_2 = arith.constant 0 : index
    %2 = vector.load %arg2[%c0_1, %c0_2] : memref<1x8192xf32, #tpu.memory_space<vmem>>, vector<1x8192xf32>
    %3 = vector.broadcast %2 : vector<1x8192xf32> to vector<2x8192xf32>
    %4 = arith.mulf %1, %3 : vector<2x8192xf32>
    %c0_3 = arith.constant 0 : index
    %c0_4 = arith.constant 0 : index
    %5 = vector.load %arg3[%c0_3, %c0_4] : memref<1x8192xf32, #tpu.memory_space<vmem>>, vector<1x8192xf32>
    %6 = vector.broadcast %5 : vector<1x8192xf32> to vector<2x8192xf32>
    %7 = arith.addf %4, %6 : vector<2x8192xf32>
    %cst = arith.constant 0.000000e+00 : f32
    %8 = vector.broadcast %cst : f32 to vector<2x8192xf32>
    %9 = arith.cmpf ogt, %7, %8 : vector<2x8192xf32>
    %cst_5 = arith.constant 2.000000e-01 : f32
    %10 = vector.broadcast %cst_5 : f32 to vector<2x8192xf32>
    %11 = arith.mulf %10, %7 : vector<2x8192xf32>
    %12 = arith.select %9, %7, %11 : vector<2x8192xi1>, vector<2x8192xf32>
    %13 = arith.truncf %12 : vector<2x8192xf32> to vector<2x8192xbf16>
    %c0_6 = arith.constant 0 : index
    %c0_7 = arith.constant 0 : index
    %14 = vector.load %arg4[%c0_6, %c0_7] : memref<8192x64xbf16, #tpu.memory_space<vmem>>, vector<8192x64xbf16>
    %cst_8 = arith.constant dense<0.000000e+00> : vector<2x64xf32>
    %15 = tpu.matmul %13, %14, %cst_8 {dimension_numbers = #tpu.dot_dimension_numbers<[1], [0], [0], [1], [0, 0, 1, 1], [], []>} : vector<2x8192xbf16>, vector<8192x64xbf16>, vector<2x64xf32> -> vector<2x64xf32>
    %c0_9 = arith.constant 0 : index
    %c0_10 = arith.constant 0 : index
    %16 = vector.load %arg5[%c0_9, %c0_10] : memref<1x64xf32, #tpu.memory_space<vmem>>, vector<1x64xf32>
    %17 = vector.broadcast %16 : vector<1x64xf32> to vector<2x64xf32>
    %18 = arith.addf %15, %17 : vector<2x64xf32>
    %19 = arith.truncf %18 : vector<2x64xf32> to vector<2x64xbf16>
    %c0_11 = arith.constant 0 : index
    %c0_12 = arith.constant 0 : index
    %20 = vector.load %arg6[%c0_11, %c0_12] : memref<64x128xbf16, #tpu.memory_space<vmem>>, vector<64x128xbf16>
    %cst_13 = arith.constant dense<0.000000e+00> : vector<2x128xf32>
    %21 = tpu.matmul %19, %20, %cst_13 {dimension_numbers = #tpu.dot_dimension_numbers<[1], [0], [0], [1], [0, 0, 1, 1], [], []>} : vector<2x64xbf16>, vector<64x128xbf16>, vector<2x128xf32> -> vector<2x128xf32>
    %c0_14 = arith.constant 0 : index
    %c0_15 = arith.constant 0 : index
    %22 = vector.load %arg7[%c0_14, %c0_15] : memref<1x128xf32, #tpu.memory_space<vmem>>, vector<1x128xf32>
    %23 = vector.broadcast %22 : vector<1x128xf32> to vector<2x128xf32>
    %24 = arith.addf %21, %23 : vector<2x128xf32>
    %25 = arith.negf %24 : vector<2x128xf32>
    %26 = math.exp %25 : vector<2x128xf32>
    %cst_16 = arith.constant 1.000000e+00 : f32
    %27 = vector.broadcast %cst_16 : f32 to vector<2x128xf32>
    %28 = arith.addf %27, %26 : vector<2x128xf32>
    %29 = arith.divf %27, %28 : vector<2x128xf32>
    %c0_17 = arith.constant 0 : index
    %c0_18 = arith.constant 0 : index
    %30 = vector.load %arg8[%c0_17, %c0_18] : memref<2x128xf32, #tpu.memory_space<vmem>>, vector<2x128xf32>
    tpu.vector_store %arg8[%c0_17, %c0_18], %29 {strides = array<i32>} : memref<2x128xf32, #tpu.memory_space<vmem>>, vector<2x128xf32>,
    return
  }
  func.func @transform_0(%arg0: i32) -> (i32, i32) {
    %c0_i32 = arith.constant 0 : i32
    %c0_i32_0 = arith.constant 0 : i32
    %c0_i32_1 = arith.constant 0 : i32
    return %c0_i32, %c0_i32_0 : i32, i32
  }
  func.func @transform_1(%arg0: i32) -> (i32, i32) {
    %c0_i32 = arith.constant 0 : i32
    %c0_i32_0 = arith.constant 0 : i32
    %c0_i32_1 = arith.constant 0 : i32
    return %c0_i32, %c0_i32_0 : i32, i32
  }
  func.func @transform_2(%arg0: i32) -> (i32, i32) {
    %c0_i32 = arith.constant 0 : i32
    %c0_i32_0 = arith.constant 0 : i32
    %c0_i32_1 = arith.constant 0 : i32
    return %c0_i32, %c0_i32_0 : i32, i32
  }
  func.func @transform_3(%arg0: i32) -> (i32, i32) {
    %c0_i32 = arith.constant 0 : i32
    %c0_i32_0 = arith.constant 0 : i32
    %c0_i32_1 = arith.constant 0 : i32
    return %c0_i32, %c0_i32_0 : i32, i32
  }
  func.func @transform_4(%arg0: i32) -> (i32, i32) {
    %c0_i32 = arith.constant 0 : i32
    %c0_i32_0 = arith.constant 0 : i32
    %c0_i32_1 = arith.constant 0 : i32
    return %c0_i32, %c0_i32_0 : i32, i32
  }
  func.func @transform_5(%arg0: i32) -> (i32, i32) {
    %c0_i32 = arith.constant 0 : i32
    %c0_i32_0 = arith.constant 0 : i32
    %c0_i32_1 = arith.constant 0 : i32
    return %c0_i32, %c0_i32_0 : i32, i32
  }
  func.func @transform_6(%arg0: i32) -> (i32, i32) {
    %c0_i32 = arith.constant 0 : i32
    %c0_i32_0 = arith.constant 0 : i32
    %c0_i32_1 = arith.constant 0 : i32
    return %c0_i32, %c0_i32_0 : i32, i32
  }
  func.func @transform_7(%arg0: i32) -> (i32, i32) {
    %c0_i32 = arith.constant 0 : i32
    %c0_i32_0 = arith.constant 0 : i32
    %c0_i32_1 = arith.constant 0 : i32
    return %c0_i32, %c0_i32_0 : i32, i32
  }
}

</mosaic_0001>

<bundles_post_ra>
// kernel: discriminator_forward.5
= control target key start
LH: loop header
LB: loop body
LE: loop exit
PB: predicated region body
PF: predicated region fallthrough
CT: control target
= control target key end

     0   :  { %s3950_s12 = smov 0   ;;  %s3952_s13 = smov 0   ;;  %s5189_s0 = inlined_call_operand.vmem [shape: bf16[2048,128], index: 0, kind: input, shape index: {}]   ;;  %s5190_s1 = inlined_call_operand.vmem [shape: bf16[128,64], index: 1, kind: input, shape index: {}]   ;;  %s5191_s2 = inlined_call_operand.vmem [shape: f32[1,64], index: 2, kind: input, shape index: {}]   ;;  %s5192_s3 = inlined_call_operand.vmem [shape: bf16[2048,64], index: 3, kind: output, shape index: {}]  }
   0x1   :  { %s3954_s14 = smov 0  }
   0x2 LB: > { %s25_s15 = sadd.s32 1, %s3923_s13  ;;  %p3238_p0 = scmp.ge.s32.totalorder %s3927_s14, 1  ;;  %s3927_s14 = sphi %s3954_s14, %s13_s14   ;;  %s3923_s13 = sphi %s3952_s13, %s5194_s13   ;;  %s3919_s12 = sphi %s3950_s12, %s5193_s12  }
   0x3   : > { %p27_p1 = scmp.ge.s32.totalorder %s25_s15, 2  ;;  %p166_p2 = scmp.lt.s32.totalorder %s3927_s14, 3 }
   0x5   : > { %s5196_s15 = smov (%p27_p1, %s25_s15), 0  ;;  %p167_p3 = pnand %p3238_p0, %p166_p2 }
   0x6   : > { %s3239_s18 = sshll.u32 (!%p167_p3), %s3919_s12, 7 }
   0x7   : > { %170 = sbr.rel (%p167_p3) target bundleno = 457 (0x1c9), region = 32  ;;  %p199_p4 = scmp.lt.s32.totalorder (!%p167_p3), %s3239_s18, 255 }
   0xc   : > { %v3831_v0 = vld [vmem:[%s5190_s1 + $0x38] sm:$0xff]   ;;  %v3832_v1 = vld [vmem:[%s5190_s1 + $0x30] sm:$0xff]   ;;  %s5198_s18 = smov (!%p199_p4, %s3239_s18), 255  ;;  %v3833_v2 = vld [vmem:[%s5190_s1 + $0x28] sm:$0xff]   ;;  %vm224_vm0 = vcmask 523264   ;;  %v3929_v11 = vmov 0.0  }
   0xd   : > { %3646 = vmatprep.subr.bf16.mxu0 %v3831_v0  ;;  %3790 = vmatprep.subr.bf16.mxu1 %v3831_v0  ;;  %s3240_s23 = sshll.u32 %s5198_s18, 2  ;;  %v3834_v3 = vld [vmem:[%s5190_s1 + $0x20] sm:$0xff]   ;;  %v3835_v6 = vld [vmem:[%s5190_s1 + $0x18] sm:$0xff]   ;;  %v3836_v7 = vld [vmem:[%s5190_s1 + $0x10] sm:$0xff]   ;;  %227 = vst.msk [vmem:[#allocation2 + $0x10] sm:$0xff] %vm224_vm0, %v3929_v11  ;;  %vm3021_vm1 = vcmask 519168  }
   0xe   : > { %3647 = vmatpush3.bf16.msra.mxu0 %v3831_v0  ;;  %3798 = vmatpush3.bf16.msra.mxu1 %v3831_v0  ;;  %s3985_s26 = scalar_lea.vmem %s5189_s0, %s3240_s23  ;;  %v3837_v8 = vld [vmem:[%s5190_s1 + $0x8] sm:$0xff]   ;;  %v4004_v9 = vld [vmem:[%s5190_s1] sm:$0xff]   ;;  %225 = vst.msk [vmem:[#allocation2] sm:$0xff] %vm224_vm0, %v3929_v11  ;;  %226 = vst.msk [vmem:[#allocation2 + $0x8] sm:$0xff] %vm224_vm0, %v3929_v11  ;;  %s4357_s17 = scalar_lea.vmem %s5192_s3, %s3240_s23 }
   0xf   : > { %3648 = vmatprep.subr.bf16.mxu0 %v3832_v1  ;;  %3791 = vmatprep.subr.bf16.mxu1 %v3832_v1  ;;  %v3839_v4 = vld [vmem:[%s3985_s26] sm:$0xff]   ;;  %v4009_v10 = vld [vmem:[%s3985_s26 + $0x8] sm:$0xff]   ;;  %228 = vst.msk [vmem:[#allocation2 + $0x18] sm:$0xff] %vm224_vm0, %v3929_v11  ;;  %229 = vst.msk [vmem:[#allocation2 + $0x20] sm:$0xff] %vm224_vm0, %v3929_v11 }
  0x10   : > { %v3840_v5 = vld [vmem:[%s3985_s26 + $0x100] sm:$0xff]   ;;  %3662 = vmatprep.mubr.bf16.mxu0 %v3839_v4  ;;  %230 = vst.msk [vmem:[#allocation2 + $0x28] sm:$0xff] %vm224_vm0, %v3929_v11  ;;  %231 = vst.msk [vmem:[#allocation2 + $0x30] sm:$0xff] %vm224_vm0, %v3929_v11  ;;  %v3842_v12 = vld [vmem:[%s3985_s26 + $0x108] sm:$0xff]  }
  0x11   : > { %3726 = vmatprep.mubr.bf16.mxu1 %v3840_v5  ;;  %232 = vst.msk [vmem:[#allocation2 + $0x38] sm:$0xff] %vm224_vm0, %v3929_v11  ;;  %233 = vst.msk [vmem:[#allocation2 + $0x40] sm:$0xff] %vm224_vm0, %v3929_v11  ;;  %v3843_v13 = vld [vmem:[%s3985_s26 + $0x10] sm:$0xff]   ;;  %v3845_v15 = vld [vmem:[%s3985_s26 + $0x18] sm:$0xff]  }
  0x12   : > { %3649 = vmatpush3.bf16.msra.mxu0 %v3832_v1  ;;  %3799 = vmatpush3.bf16.msra.mxu1 %v3832_v1  ;;  %234 = vst.msk [vmem:[#allocation2 + $0x48] sm:$0xff] %vm224_vm0, %v3929_v11  ;;  %235 = vst.msk [vmem:[#allocation2 + $0x50] sm:$0xff] %vm224_vm0, %v3929_v11  ;;  %v3844_v14 = vld [vmem:[%s3985_s26 + $0x110] sm:$0xff]   ;;  %v3846_v16 = vld [vmem:[%s3985_s26 + $0x118] sm:$0xff]  }
  0x13   : > { %3650 = vmatprep.subr.bf16.mxu0 %v3833_v2  ;;  %3792 = vmatprep.subr.bf16.mxu1 %v3833_v2  ;;  %236 = vst.msk [vmem:[#allocation2 + $0x58] sm:$0xff] %vm224_vm0, %v3929_v11  ;;  %237 = vst.msk [vmem:[#allocation2 + $0x60] sm:$0xff] %vm224_vm0, %v3929_v11  ;;  %v3847_v17 = vld [vmem:[%s3985_s26 + $0x20] sm:$0xff]   ;;  %v3849_v19 = vld [vmem:[%s3985_s26 + $0x28] sm:$0xff]  }
  0x14   : > { %238 = vst.msk [vmem:[#allocation2 + $0x68] sm:$0xff] %vm224_vm0, %v3929_v11  ;;  %239 = vst.msk [vmem:[#allocation2 + $0x70] sm:$0xff] %vm224_vm0, %v3929_v11  ;;  %v3848_v18 = vld [vmem:[%s3985_s26 + $0x120] sm:$0xff]   ;;  %v3850_v20 = vld [vmem:[%s3985_s26 + $0x128] sm:$0xff]  }
  0x15   : > { %240 = vst.msk [vmem:[#allocation2 + $0x78] sm:$0xff] %vm224_vm0, %v3929_v11  ;;  %241 = vst.msk [vmem:[#allocation2 + $0x80] sm:$0xff] %vm224_vm0, %v3929_v11  ;;  %v3851_v21 = vld [vmem:[%s3985_s26 + $0x30] sm:$0xff]   ;;  %v3853_v23 = vld [vmem:[%s3985_s26 + $0x38] sm:$0xff]  }
  0x16   : > { %3651 = vmatpush3.bf16.msra.mxu0 %v3833_v2  ;;  %3800 = vmatpush3.bf16.msra.mxu1 %v3833_v2  ;;  %242 = vst.msk [vmem:[#allocation2 + $0x88] sm:$0xff] %vm224_vm0, %v3929_v11  ;;  %243 = vst.msk [vmem:[#allocation2 + $0x90] sm:$0xff] %vm224_vm0, %v3929_v11  ;;  %v3852_v22 = vld [vmem:[%s3985_s26 + $0x130] sm:$0xff]   ;;  %v3854_v24 = vld [vmem:[%s3985_s26 + $0x138] sm:$0xff]  }
  0x17   : > { %3652 = vmatprep.subr.bf16.mxu0 %v3834_v3  ;;  %3793 = vmatprep.subr.bf16.mxu1 %v3834_v3  ;;  %244 = vst.msk [vmem:[#allocation2 + $0x98] sm:$0xff] %vm224_vm0, %v3929_v11  ;;  %245 = vst.msk [vmem:[#allocation2 + $0xa0] sm:$0xff] %vm224_vm0, %v3929_v11  ;;  %v3855_v25 = vld [vmem:[%s3985_s26 + $0x40] sm:$0xff]   ;;  %v3857_v27 = vld [vmem:[%s3985_s26 + $0x48] sm:$0xff]  }
  0x18   : > { %246 = vst.msk [vmem:[#allocation2 + $0xa8] sm:$0xff] %vm224_vm0, %v3929_v11  ;;  %247 = vst.msk [vmem:[#allocation2 + $0xb0] sm:$0xff] %vm224_vm0, %v3929_v11  ;;  %v3856_v26 = vld [vmem:[%s3985_s26 + $0x140] sm:$0xff]   ;;  %v3858_v28 = vld [vmem:[%s3985_s26 + $0x148] sm:$0xff]  }
  0x19   : > { %248 = vst.msk [vmem:[#allocation2 + $0xb8] sm:$0xff] %vm224_vm0, %v3929_v11  ;;  %249 = vst.msk [vmem:[#allocation2 + $0xc0] sm:$0xff] %vm224_vm0, %v3929_v11  ;;  %v3859_v29 = vld [vmem:[%s3985_s26 + $0x50] sm:$0xff]   ;;  %v3861_v31 = vld [vmem:[%s3985_s26 + $0x58] sm:$0xff]  }
  0x1a   : > { %3653 = vmatpush3.bf16.msra.mxu0 %v3834_v3  ;;  %3801 = vmatpush3.bf16.msra.mxu1 %v3834_v3  ;;  %250 = vst.msk [vmem:[#allocation2 + $0xc8] sm:$0xff] %vm224_vm0, %v3929_v11  ;;  %251 = vst.msk [vmem:[#allocation2 + $0xd0] sm:$0xff] %vm224_vm0, %v3929_v11  ;;  %v3860_v30 = vld [vmem:[%s3985_s26 + $0x150] sm:$0xff]   ;;  %v3862_v32 = vld [vmem:[%s3985_s26 + $0x158] sm:$0xff]  }
  0x1b   : > { %3654 = vmatprep.subr.bf16.mxu0 %v3835_v6  ;;  %3794 = vmatprep.subr.bf16.mxu1 %v3835_v6  ;;  %252 = vst.msk [vmem:[#allocation2 + $0xd8] sm:$0xff] %vm224_vm0, %v3929_v11  ;;  %253 = vst.msk [vmem:[#allocation2 + $0xe0] sm:$0xff] %vm224_vm0, %v3929_v11  ;;  %v3863_v33 = vld [vmem:[%s3985_s26 + $0x60] sm:$0xff]   ;;  %v3865_v35 = vld [vmem:[%s3985_s26 + $0x68] sm:$0xff]  }
  0x1c   : > { %254 = vst.msk [vmem:[#allocation2 + $0xe8] sm:$0xff] %vm224_vm0, %v3929_v11  ;;  %255 = vst.msk [vmem:[#allocation2 + $0xf0] sm:$0xff] %vm224_vm0, %v3929_v11  ;;  %v3864_v34 = vld [vmem:[%s3985_s26 + $0x160] sm:$0xff]   ;;  %v3866_v36 = vld [vmem:[%s3985_s26 + $0x168] sm:$0xff]  }
  0x1d   : > { %256 = vst.msk [vmem:[#allocation2 + $0xf8] sm:$0xff] %vm224_vm0, %v3929_v11  ;;  %257 = vst.msk [vmem:[#allocation2 + $0x100] sm:$0xff] %vm224_vm0, %v3929_v11  ;;  %v3867_v37 = vld [vmem:[%s3985_s26 + $0x70] sm:$0xff]   ;;  %v3869_v39 = vld [vmem:[%s3985_s26 + $0x78] sm:$0xff]  }
  0x1e   : > { %3655 = vmatpush3.bf16.msra.mxu0 %v3835_v6  ;;  %3802 = vmatpush3.bf16.msra.mxu1 %v3835_v6  ;;  %258 = vst.msk [vmem:[#allocation2 + $0x108] sm:$0xff] %vm224_vm0, %v3929_v11  ;;  %259 = vst.msk [vmem:[#allocation2 + $0x110] sm:$0xff] %vm224_vm0, %v3929_v11  ;;  %v3868_v38 = vld [vmem:[%s3985_s26 + $0x170] sm:$0xff]   ;;  %v3870_v40 = vld [vmem:[%s3985_s26 + $0x178] sm:$0xff]  }
  0x1f   : > { %3656 = vmatprep.subr.bf16.mxu0 %v3836_v7  ;;  %3795 = vmatprep.subr.bf16.mxu1 %v3836_v7  ;;  %260 = vst.msk [vmem:[#allocation2 + $0x118] sm:$0xff] %vm224_vm0, %v3929_v11  ;;  %261 = vst.msk [vmem:[#allocation2 + $0x120] sm:$0xff] %vm224_vm0, %v3929_v11  ;;  %v3871_v41 = vld [vmem:[%s3985_s26 + $0x80] sm:$0xff]   ;;  %v3873_v43 = vld [vmem:[%s3985_s26 + $0x88] sm:$0xff]  }
  0x20   : > { %262 = vst.msk [vmem:[#allocation2 + $0x128] sm:$0xff] %vm224_vm0, %v3929_v11  ;;  %263 = vst.msk [vmem:[#allocation2 + $0x130] sm:$0xff] %vm224_vm0, %v3929_v11  ;;  %v3872_v42 = vld [vmem:[%s3985_s26 + $0x180] sm:$0xff]   ;;  %v3874_v44 = vld [vmem:[%s3985_s26 + $0x188] sm:$0xff]  }
  0x21   : > { %264 = vst.msk [vmem:[#allocation2 + $0x138] sm:$0xff] %vm224_vm0, %v3929_v11  ;;  %265 = vst.msk [vmem:[#allocation2 + $0x140] sm:$0xff] %vm224_vm0, %v3929_v11  ;;  %v3875_v45 = vld [vmem:[%s3985_s26 + $0x90] sm:$0xff]   ;;  %v3877_v47 = vld [vmem:[%s3985_s26 + $0x98] sm:$0xff]  }
  0x22   : > { %3657 = vmatpush3.bf16.msra.mxu0 %v3836_v7  ;;  %3803 = vmatpush3.bf16.msra.mxu1 %v3836_v7  ;;  %266 = vst.msk [vmem:[#allocation2 + $0x148] sm:$0xff] %vm224_vm0, %v3929_v11  ;;  %267 = vst.msk [vmem:[#allocation2 + $0x150] sm:$0xff] %vm224_vm0, %v3929_v11  ;;  %v3876_v46 = vld [vmem:[%s3985_s26 + $0x190] sm:$0xff]   ;;  %v3878_v48 = vld [vmem:[%s3985_s26 + $0x198] sm:$0xff]  }
  0x23   : > { %3658 = vmatprep.subr.bf16.mxu0 %v3837_v8  ;;  %3796 = vmatprep.subr.bf16.mxu1 %v3837_v8  ;;  %268 = vst.msk [vmem:[#allocation2 + $0x158] sm:$0xff] %vm224_vm0, %v3929_v11  ;;  %269 = vst.msk [vmem:[#allocation2 + $0x160] sm:$0xff] %vm224_vm0, %v3929_v11  ;;  %v3879_v49 = vld [vmem:[%s3985_s26 + $0xa0] sm:$0xff]   ;;  %v3881_v51 = vld [vmem:[%s3985_s26 + $0xa8] sm:$0xff]  }
  0x24   : > { %270 = vst.msk [vmem:[#allocation2 + $0x168] sm:$0xff] %vm224_vm0, %v3929_v11  ;;  %271 = vst.msk [vmem:[#allocation2 + $0x170] sm:$0xff] %vm224_vm0, %v3929_v11  ;;  %v3880_v50 = vld [vmem:[%s3985_s26 + $0x1a0] sm:$0xff]   ;;  %v3882_v52 = vld [vmem:[%s3985_s26 + $0x1a8] sm:$0xff]  }
  0x25   : > { %272 = vst.msk [vmem:[#allocation2 + $0x178] sm:$0xff] %vm224_vm0, %v3929_v11  ;;  %273 = vst.msk [vmem:[#allocation2 + $0x180] sm:$0xff] %vm224_vm0, %v3929_v11  ;;  %v3883_v53 = vld [vmem:[%s3985_s26 + $0xb0] sm:$0xff]   ;;  %v3885_v55 = vld [vmem:[%s3985_s26 + $0xb8] sm:$0xff]  }
  0x26   : > { %3659 = vmatpush3.bf16.msra.mxu0 %v3837_v8  ;;  %3804 = vmatpush3.bf16.msra.mxu1 %v3837_v8  ;;  %274 = vst.msk [vmem:[#allocation2 + $0x188] sm:$0xff] %vm224_vm0, %v3929_v11  ;;  %275 = vst.msk [vmem:[#allocation2 + $0x190] sm:$0xff] %vm224_vm0, %v3929_v11  ;;  %v3884_v54 = vld [vmem:[%s3985_s26 + $0x1b0] sm:$0xff]   ;;  %v3886_v56 = vld [vmem:[%s3985_s26 + $0x1b8] sm:$0xff]  }
  0x27   : > { %3660 = vmatprep.subr.bf16.mxu0 %v4004_v9  ;;  %3797 = vmatprep.subr.bf16.mxu1 %v4004_v9  ;;  %276 = vst.msk [vmem:[#allocation2 + $0x198] sm:$0xff] %vm224_vm0, %v3929_v11  ;;  %277 = vst.msk [vmem:[#allocation2 + $0x1a0] sm:$0xff] %vm224_vm0, %v3929_v11  ;;  %v3887_v57 = vld [vmem:[%s3985_s26 + $0xc0] sm:$0xff]   ;;  %v3889_v59 = vld [vmem:[%s3985_s26 + $0xc8] sm:$0xff]  }
  0x28   : > { %278 = vst.msk [vmem:[#allocation2 + $0x1a8] sm:$0xff] %vm224_vm0, %v3929_v11  ;;  %279 = vst.msk [vmem:[#allocation2 + $0x1b0] sm:$0xff] %vm224_vm0, %v3929_v11  ;;  %v3888_v58 = vld [vmem:[%s3985_s26 + $0x1c0] sm:$0xff]   ;;  %v3890_v60 = vld [vmem:[%s3985_s26 + $0x1c8] sm:$0xff]  }
  0x29   : > { %280 = vst.msk [vmem:[#allocation2 + $0x1b8] sm:$0xff] %vm224_vm0, %v3929_v11  ;;  %281 = vst.msk [vmem:[#allocation2 + $0x1c0] sm:$0xff] %vm224_vm0, %v3929_v11  ;;  %v3891_v61 = vld [vmem:[%s3985_s26 + $0xd0] sm:$0xff]   ;;  %v3893_v63 = vld [vmem:[%s3985_s26 + $0xd8] sm:$0xff]  }
  0x2a   : > { %282 = vst.msk [vmem:[#allocation2 + $0x1c8] sm:$0xff] %vm224_vm0, %v3929_v11  ;;  %283 = vst.msk [vmem:[#allocation2 + $0x1d0] sm:$0xff] %vm224_vm0, %v3929_v11  ;;  %3661 = vmatpush3.bf16.msra.mxu0 %v4004_v9  ;;  %3805 = vmatpush3.bf16.msra.mxu1 %v4004_v9  ;;  %v3892_v62 = vld [vmem:[%s3985_s26 + $0x1d0] sm:$0xff]   ;;  %v3894_v0 = vld [vmem:[%s3985_s26 + $0x1d8] sm:$0xff]  }
  0x2b   : > { %284 = vst.msk [vmem:[#allocation2 + $0x1d8] sm:$0xff] %vm224_vm0, %v3929_v11  ;;  %285 = vst.msk [vmem:[#allocation2 + $0x1e0] sm:$0xff] %vm224_vm0, %v3929_v11  ;;  %v3895_v1 = vld [vmem:[%s3985_s26 + $0xe0] sm:$0xff]   ;;  %v3897_v3 = vld [vmem:[%s3985_s26 + $0xe8] sm:$0xff]  }
  0x2c   : > { %286 = vst.msk [vmem:[#allocation2 + $0x1e8] sm:$0xff] %vm224_vm0, %v3929_v11  ;;  %287 = vst.msk [vmem:[#allocation2 + $0x1f0] sm:$0xff] %vm224_vm0, %v3929_v11  ;;  %v3896_v2 = vld [vmem:[%s3985_s26 + $0x1e0] sm:$0xff]   ;;  %v3898_v4 = vld [vmem:[%s3985_s26 + $0x1e8] sm:$0xff]  }
  0x2d   : > { %288 = vst.msk [vmem:[#allocation2 + $0x1f8] sm:$0xff] %vm224_vm0, %v3929_v11  ;;  %289 = vst.msk [vmem:[#allocation2 + $0x200] sm:$0xff] %vm224_vm0, %v3929_v11  ;;  %3663 = vmatmul.mubr.bf16.vlgmr.msra.gmra.mxu0 %v4009_v10  ;;  %3727 = vmatmul.mubr.bf16.vlgmr.msra.gmra.mxu1 %v3842_v12  ;;  %v3899_v5 = vld [vmem:[%s3985_s26 + $0xf0] sm:$0xff]   ;;  %v3901_v7 = vld [vmem:[%s3985_s26 + $0xf8] sm:$0xff]  }
  0x2e   : > { %290 = vst.msk [vmem:[#allocation2 + $0x208] sm:$0xff] %vm224_vm0, %v3929_v11  ;;  %291 = vst.msk [vmem:[#allocation2 + $0x210] sm:$0xff] %vm224_vm0, %v3929_v11  ;;  %3666 = vmatprep.mubr.bf16.mxu0 %v3843_v13  ;;  %3730 = vmatprep.mubr.bf16.mxu1 %v3844_v14  ;;  %v3900_v6 = vld [vmem:[%s3985_s26 + $0x1f0] sm:$0xff]   ;;  %v3902_v8 = vld [vmem:[%s3985_s26 + $0x1f8] sm:$0xff]  }
  0x2f   : > { %292 = vst.msk [vmem:[#allocation2 + $0x218] sm:$0xff] %vm224_vm0, %v3929_v11  ;;  %293 = vst.msk [vmem:[#allocation2 + $0x220] sm:$0xff] %vm224_vm0, %v3929_v11  ;;  %v483_v9 = vld [vmem:[#allocation2 + $0x10] sm:$0xff]  ;;  %v481_v13 = vld [vmem:[#allocation2] sm:$0xff] }
  0x30   : > { %294 = vst.msk [vmem:[#allocation2 + $0x228] sm:$0xff] %vm224_vm0, %v3929_v11  ;;  %295 = vst.msk [vmem:[#allocation2 + $0x230] sm:$0xff] %vm224_vm0, %v3929_v11 }
  0x31   : > { %296 = vst.msk [vmem:[#allocation2 + $0x238] sm:$0xff] %vm224_vm0, %v3929_v11  ;;  %297 = vst.msk [vmem:[#allocation2 + $0x240] sm:$0xff] %vm224_vm0, %v3929_v11 }
  0x32   : > { %298 = vst.msk [vmem:[#allocation2 + $0x248] sm:$0xff] %vm224_vm0, %v3929_v11  ;;  %299 = vst.msk [vmem:[#allocation2 + $0x250] sm:$0xff] %vm224_vm0, %v3929_v11 }
  0x33   : > { %300 = vst.msk [vmem:[#allocation2 + $0x258] sm:$0xff] %vm224_vm0, %v3929_v11  ;;  %301 = vst.msk [vmem:[#allocation2 + $0x260] sm:$0xff] %vm224_vm0, %v3929_v11 }
  0x34   : > { %302 = vst.msk [vmem:[#allocation2 + $0x268] sm:$0xff] %vm224_vm0, %v3929_v11  ;;  %303 = vst.msk [vmem:[#allocation2 + $0x270] sm:$0xff] %vm224_vm0, %v3929_v11  ;;  %v545_v14 = vld [vmem:[#allocation2 + $0x200] sm:$0xff] }
  0x35   : > { %304 = vst.msk [vmem:[#allocation2 + $0x278] sm:$0xff] %vm224_vm0, %v3929_v11  ;;  %305 = vst.msk [vmem:[#allocation2 + $0x280] sm:$0xff] %vm224_vm0, %v3929_v11  ;;  %3667 = vmatmul.mubr.bf16.gmra.mxu0 %v3845_v15  ;;  %3731 = vmatmul.mubr.bf16.gmra.mxu1 %v3846_v16  ;;  %v547_v10 = vld [vmem:[#allocation2 + $0x210] sm:$0xff] }
  0x36   : > { %306 = vst.msk [vmem:[#allocation2 + $0x288] sm:$0xff] %vm224_vm0, %v3929_v11  ;;  %307 = vst.msk [vmem:[#allocation2 + $0x290] sm:$0xff] %vm224_vm0, %v3929_v11  ;;  %3670 = vmatprep.mubr.bf16.mxu0 %v3847_v17  ;;  %3734 = vmatprep.mubr.bf16.mxu1 %v3848_v18 }
  0x37   : > { %308 = vst.msk [vmem:[#allocation2 + $0x298] sm:$0xff] %vm224_vm0, %v3929_v11  ;;  %309 = vst.msk [vmem:[#allocation2 + $0x2a0] sm:$0xff] %vm224_vm0, %v3929_v11 }
  0x38   : > { %310 = vst.msk [vmem:[#allocation2 + $0x2a8] sm:$0xff] %vm224_vm0, %v3929_v11  ;;  %311 = vst.msk [vmem:[#allocation2 + $0x2b0] sm:$0xff] %vm224_vm0, %v3929_v11 }
  0x39   : > { %312 = vst.msk [vmem:[#allocation2 + $0x2b8] sm:$0xff] %vm224_vm0, %v3929_v11  ;;  %313 = vst.msk [vmem:[#allocation2 + $0x2c0] sm:$0xff] %vm224_vm0, %v3929_v11 }
  0x3a   : > { %314 = vst.msk [vmem:[#allocation2 + $0x2c8] sm:$0xff] %vm224_vm0, %v3929_v11  ;;  %315 = vst.msk [vmem:[#allocation2 + $0x2d0] sm:$0xff] %vm224_vm0, %v3929_v11 }
  0x3b   : > { %316 = vst.msk [vmem:[#allocation2 + $0x2d8] sm:$0xff] %vm224_vm0, %v3929_v11  ;;  %317 = vst.msk [vmem:[#allocation2 + $0x2e0] sm:$0xff] %vm224_vm0, %v3929_v11 }
  0x3c   : > { %318 = vst.msk [vmem:[#allocation2 + $0x2e8] sm:$0xff] %vm224_vm0, %v3929_v11  ;;  %319 = vst.msk [vmem:[#allocation2 + $0x2f0] sm:$0xff] %vm224_vm0, %v3929_v11 }
  0x3d   : > { %320 = vst.msk [vmem:[#allocation2 + $0x2f8] sm:$0xff] %vm224_vm0, %v3929_v11  ;;  %321 = vst.msk [vmem:[#allocation2 + $0x300] sm:$0xff] %vm224_vm0, %v3929_v11  ;;  %3671 = vmatmul.mubr.bf16.gmra.mxu0 %v3849_v19  ;;  %3735 = vmatmul.mubr.bf16.gmra.mxu1 %v3850_v20  ;;  %v484_v19 = vld [vmem:[#allocation2 + $0x18] sm:$0xff] }
  0x3e   : > { %322 = vst.msk [vmem:[#allocation2 + $0x308] sm:$0xff] %vm224_vm0, %v3929_v11  ;;  %323 = vst.msk [vmem:[#allocation2 + $0x310] sm:$0xff] %vm224_vm0, %v3929_v11  ;;  %3674 = vmatprep.mubr.bf16.mxu0 %v3851_v21  ;;  %3738 = vmatprep.mubr.bf16.mxu1 %v3852_v22  ;;  %v548_v20 = vld [vmem:[#allocation2 + $0x218] sm:$0xff] }
  0x3f   : > { %324 = vst.msk [vmem:[#allocation2 + $0x318] sm:$0xff] %vm224_vm0, %v3929_v11  ;;  %325 = vst.msk [vmem:[#allocation2 + $0x320] sm:$0xff] %vm224_vm0, %v3929_v11 }
  0x40   : > { %326 = vst.msk [vmem:[#allocation2 + $0x328] sm:$0xff] %vm224_vm0, %v3929_v11  ;;  %327 = vst.msk [vmem:[#allocation2 + $0x330] sm:$0xff] %vm224_vm0, %v3929_v11 }
  0x41   : > { %328 = vst.msk [vmem:[#allocation2 + $0x338] sm:$0xff] %vm224_vm0, %v3929_v11  ;;  %329 = vst.msk [vmem:[#allocation2 + $0x340] sm:$0xff] %vm224_vm0, %v3929_v11 }
  0x42   : > { %330 = vst.msk [vmem:[#allocation2 + $0x348] sm:$0xff] %vm224_vm0, %v3929_v11  ;;  %331 = vst.msk [vmem:[#allocation2 + $0x350] sm:$0xff] %vm224_vm0, %v3929_v11 }
  0x43   : > { %332 = vst.msk [vmem:[#allocation2 + $0x358] sm:$0xff] %vm224_vm0, %v3929_v11  ;;  %333 = vst.msk [vmem:[#allocation2 + $0x360] sm:$0xff] %vm224_vm0, %v3929_v11 }
  0x44   : > { %334 = vst.msk [vmem:[#allocation2 + $0x368] sm:$0xff] %vm224_vm0, %v3929_v11  ;;  %335 = vst.msk [vmem:[#allocation2 + $0x370] sm:$0xff] %vm224_vm0, %v3929_v11 }
  0x45   : > { %336 = vst.msk [vmem:[#allocation2 + $0x378] sm:$0xff] %vm224_vm0, %v3929_v11  ;;  %337 = vst.msk [vmem:[#allocation2 + $0x380] sm:$0xff] %vm224_vm0, %v3929_v11  ;;  %3675 = vmatmul.mubr.bf16.gmra.mxu0 %v3853_v23  ;;  %3739 = vmatmul.mubr.bf16.gmra.mxu1 %v3854_v24 }
  0x46   : > { %338 = vst.msk [vmem:[#allocation2 + $0x388] sm:$0xff] %vm224_vm0, %v3929_v11  ;;  %339 = vst.msk [vmem:[#allocation2 + $0x390] sm:$0xff] %vm224_vm0, %v3929_v11  ;;  %3678 = vmatprep.mubr.bf16.mxu0 %v3855_v25  ;;  %3742 = vmatprep.mubr.bf16.mxu1 %v3856_v26  ;;  %v482_v25 = vld [vmem:[#allocation2 + $0x8] sm:$0xff] }
  0x47   : > { %340 = vst.msk [vmem:[#allocation2 + $0x398] sm:$0xff] %vm224_vm0, %v3929_v11  ;;  %341 = vst.msk [vmem:[#allocation2 + $0x3a0] sm:$0xff] %vm224_vm0, %v3929_v11  ;;  %v546_v26 = vld [vmem:[#allocation2 + $0x208] sm:$0xff] }
  0x48   : > { %342 = vst.msk [vmem:[#allocation2 + $0x3a8] sm:$0xff] %vm224_vm0, %v3929_v11  ;;  %343 = vst.msk [vmem:[#allocation2 + $0x3b0] sm:$0xff] %vm224_vm0, %v3929_v11 }
  0x49   : > { %344 = vst.msk [vmem:[#allocation2 + $0x3b8] sm:$0xff] %vm224_vm0, %v3929_v11  ;;  %345 = vst.msk [vmem:[#allocation2 + $0x3c0] sm:$0xff] %vm224_vm0, %v3929_v11 }
  0x4a   : > { %346 = vst.msk [vmem:[#allocation2 + $0x3c8] sm:$0xff] %vm224_vm0, %v3929_v11  ;;  %347 = vst.msk [vmem:[#allocation2 + $0x3d0] sm:$0xff] %vm224_vm0, %v3929_v11 }
  0x4b   : > { %348 = vst.msk [vmem:[#allocation2 + $0x3d8] sm:$0xff] %vm224_vm0, %v3929_v11  ;;  %349 = vst.msk [vmem:[#allocation2 + $0x3e0] sm:$0xff] %vm224_vm0, %v3929_v11 }
  0x4c   : > { %350 = vst.msk [vmem:[#allocation2 + $0x3e8] sm:$0xff] %vm224_vm0, %v3929_v11  ;;  %351 = vst.msk [vmem:[#allocation2 + $0x3f0] sm:$0xff] %vm224_vm0, %v3929_v11 }
  0x4d   : > { %352 = vst.msk [vmem:[#allocation2 + $0x3f8] sm:$0xff] %vm224_vm0, %v3929_v11  ;;  %3679 = vmatmul.mubr.bf16.gmra.mxu0 %v3857_v27  ;;  %3743 = vmatmul.mubr.bf16.gmra.mxu1 %v3858_v28 }
  0x4e   : > { %3682 = vmatprep.mubr.bf16.mxu0 %v3859_v29  ;;  %3746 = vmatprep.mubr.bf16.mxu1 %v3860_v30 }
  0x55   : > { %3683 = vmatmul.mubr.bf16.gmra.mxu0 %v3861_v31  ;;  %3747 = vmatmul.mubr.bf16.gmra.mxu1 %v3862_v32  ;;  %v487_v31 = vld [vmem:[#allocation2 + $0x30] sm:$0xff] }
  0x56   : > { %3686 = vmatprep.mubr.bf16.mxu0 %v3863_v33  ;;  %3750 = vmatprep.mubr.bf16.mxu1 %v3864_v34  ;;  %v551_v32 = vld [vmem:[#allocation2 + $0x230] sm:$0xff] }
  0x5d   : > { %3687 = vmatmul.mubr.bf16.gmra.mxu0 %v3865_v35  ;;  %3751 = vmatmul.mubr.bf16.gmra.mxu1 %v3866_v36  ;;  %v4340_v35 = vld [vmem:[%s5191_s2] ss:$0 sm:$0xff] }
  0x5e   : > { %3690 = vmatprep.mubr.bf16.mxu0 %v3867_v37  ;;  %3754 = vmatprep.mubr.bf16.mxu1 %v3868_v38  ;;  %v485_v38 = vld [vmem:[#allocation2 + $0x20] sm:$0xff] }
  0x65   : > { %3691 = vmatmul.mubr.bf16.gmra.mxu0 %v3869_v39  ;;  %3755 = vmatmul.mubr.bf16.gmra.mxu1 %v3870_v40  ;;  %v549_v39 = vld [vmem:[#allocation2 + $0x220] sm:$0xff] }
  0x66   : > { %3694 = vmatprep.mubr.bf16.mxu0 %v3871_v41  ;;  %3758 = vmatprep.mubr.bf16.mxu1 %v3872_v42 }
  0x6d   : > { %3695 = vmatmul.mubr.bf16.gmra.mxu0 %v3873_v43  ;;  %3759 = vmatmul.mubr.bf16.gmra.mxu1 %v3874_v44 }
  0x6e   : > { %3698 = vmatprep.mubr.bf16.mxu0 %v3875_v45  ;;  %3762 = vmatprep.mubr.bf16.mxu1 %v3876_v46 }
  0x75   : > { %3699 = vmatmul.mubr.bf16.gmra.mxu0 %v3877_v47  ;;  %3763 = vmatmul.mubr.bf16.gmra.mxu1 %v3878_v48 }
  0x76   : > { %3702 = vmatprep.mubr.bf16.mxu0 %v3879_v49  ;;  %3766 = vmatprep.mubr.bf16.mxu1 %v3880_v50  ;;  %v488_v50 = vld [vmem:[#allocation2 + $0x38] sm:$0xff] }
  0x7d   : > { %3703 = vmatmul.mubr.bf16.gmra.mxu0 %v3881_v51  ;;  %3767 = vmatmul.mubr.bf16.gmra.mxu1 %v3882_v52  ;;  %v552_v51 = vld [vmem:[#allocation2 + $0x238] sm:$0xff] }
  0x7e   : > { %3706 = vmatprep.mubr.bf16.mxu0 %v3883_v53  ;;  %3770 = vmatprep.mubr.bf16.mxu1 %v3884_v54 }
  0x85   : > { %3707 = vmatmul.mubr.bf16.gmra.mxu0 %v3885_v55  ;;  %3771 = vmatmul.mubr.bf16.gmra.mxu1 %v3886_v56 }
  0x86   : > { %3710 = vmatprep.mubr.bf16.mxu0 %v3887_v57  ;;  %3774 = vmatprep.mubr.bf16.mxu1 %v3888_v58 }
  0x8d   : > { %3711 = vmatmul.mubr.bf16.gmra.mxu0 %v3889_v59  ;;  %3775 = vmatmul.mubr.bf16.gmra.mxu1 %v3890_v60 }
  0x8e   : > { %3714 = vmatprep.mubr.bf16.mxu0 %v3891_v61  ;;  %3778 = vmatprep.mubr.bf16.mxu1 %v3892_v62 }
  0x95   : > { %3715 = vmatmul.mubr.bf16.gmra.mxu0 %v3893_v63  ;;  %3779 = vmatmul.mubr.bf16.gmra.mxu1 %v3894_v0 }
  0x96   : > { %3718 = vmatprep.mubr.bf16.mxu0 %v3895_v1  ;;  %3782 = vmatprep.mubr.bf16.mxu1 %v3896_v2 }
  0x9d   : > { %3719 = vmatmul.mubr.bf16.gmra.mxu0 %v3897_v3  ;;  %3783 = vmatmul.mubr.bf16.gmra.mxu1 %v3898_v4 }
  0x9e   : > { %3722 = vmatprep.mubr.bf16.mxu0 %v3899_v5  ;;  %3786 = vmatprep.mubr.bf16.mxu1 %v3900_v6 }
  0xa5   : > { %3723 = vmatmul.mubr.bf16.gmra.mxu0 %v3901_v7  ;;  %3787 = vmatmul.mubr.bf16.gmra.mxu1 %v3902_v8 }
  0xed   : > { %v3664_v11 = vpop.f32.mrf.mxu0  ;;  %v3728_v12 = vpop.f32.mrf.mxu1 }
  0xee   : > { %v1604_v15 = vadd.f32 %v3664_v11, %v483_v9  ;;  %v1668_v16 = vadd.f32 %v3728_v12, %v547_v10 }
  0xef   : > { %v1091_v17 = vpop.f32.mrf.mxu0  ;;  %v1347_v18 = vpop.f32.mrf.mxu1 }
  0xf0   : > { %1733 = vst.msk [vmem:[#allocation2 + $0x10] sm:$0xff] %vm224_vm0, %v1604_v15  ;;  %1797 = vst.msk [vmem:[#allocation2 + $0x210] sm:$0xff] %vm224_vm0, %v1668_v16  ;;  %v1602_v21 = vadd.f32 %v1091_v17, %v481_v13  ;;  %v1666_v22 = vadd.f32 %v1347_v18, %v545_v14 }
  0xf1   : > { %v3665_v23 = vpop.f32.mrf.mxu0  ;;  %v3729_v24 = vpop.f32.mrf.mxu1 }
  0xf2   : > { %1731 = vst.msk [vmem:[#allocation2] sm:$0xff] %vm224_vm0, %v1602_v21  ;;  %1795 = vst.msk [vmem:[#allocation2 + $0x200] sm:$0xff] %vm224_vm0, %v1666_v22  ;;  %v1605_v27 = vadd.f32 %v3665_v23, %v484_v19  ;;  %v1669_v28 = vadd.f32 %v3729_v24, %v548_v20 }
  0xf3   : > { %v1094_v29 = vpop.f32.mrf.mxu0  ;;  %v1350_v30 = vpop.f32.mrf.mxu1 }
  0xf4   : > { %1734 = vst.msk [vmem:[#allocation2 + $0x18] sm:$0xff] %vm224_vm0, %v1605_v27  ;;  %1798 = vst.msk [vmem:[#allocation2 + $0x218] sm:$0xff] %vm224_vm0, %v1669_v28  ;;  %v1603_v33 = vadd.f32 %v1094_v29, %v482_v25  ;;  %v1667_v34 = vadd.f32 %v1350_v30, %v546_v26  ;;  %v486_v26 = vld [vmem:[#allocation2 + $0x28] sm:$0xff] }
  0xf5   : > { %v3668_v36 = vpop.f32.mrf.mxu0  ;;  %v3732_v37 = vpop.f32.mrf.mxu1 }
  0xf6   : > { %1732 = vst.msk [vmem:[#allocation2 + $0x8] sm:$0xff] %vm224_vm0, %v1603_v33  ;;  %1796 = vst.msk [vmem:[#allocation2 + $0x208] sm:$0xff] %vm224_vm0, %v1667_v34  ;;  %v1608_v40 = vadd.f32 %v3668_v36, %v487_v31  ;;  %v1672_v41 = vadd.f32 %v3732_v37, %v551_v32  ;;  %v550_v32 = vld [vmem:[#allocation2 + $0x228] sm:$0xff] }
  0xf7   : > { %v1864_v42 = vld [vmem:[#allocation2 + $0x10] sm:$0xff]  ;;  %v1107_v44 = vpop.f32.mrf.mxu0  ;;  %v1363_v45 = vpop.f32.mrf.mxu1 }
  0xf8   : > { %v1928_v43 = vld [vmem:[#allocation2 + $0x210] sm:$0xff]  ;;  %v1999_v46 = vadd.f32 %v4340_v35, %v1864_v42  ;;  %1737 = vst.msk [vmem:[#allocation2 + $0x30] sm:$0xff] %vm224_vm0, %v1608_v40  ;;  %1801 = vst.msk [vmem:[#allocation2 + $0x230] sm:$0xff] %vm224_vm0, %v1672_v41  ;;  %v1606_v48 = vadd.f32 %v1107_v44, %v485_v38  ;;  %v1670_v49 = vadd.f32 %v1363_v45, %v549_v39 }
  0xf9   : > { %v2063_v47 = vadd.f32 %v4340_v35, %v1928_v43  ;;  %v1862_v52 = vld [vmem:[#allocation2] sm:$0xff]  ;;  %v3669_v54 = vpop.f32.mrf.mxu0  ;;  %v3733_v55 = vpop.f32.mrf.mxu1 }
  0xfa   : > { %v1926_v53 = vld [vmem:[#allocation2 + $0x200] sm:$0xff]  ;;  %vm2127_vm2 = vcmp.gt.f32.partialorder %v1999_v46, 0.0  ;;  %v2255_v56 = vmul.f32 0.2, %v1999_v46  ;;  %1735 = vst.msk [vmem:[#allocation2 + $0x20] sm:$0xff] %vm224_vm0, %v1606_v48  ;;  %1799 = vst.msk [vmem:[#allocation2 + $0x220] sm:$0xff] %vm224_vm0, %v1670_v49  ;;  %v1997_v58 = vadd.f32 %v4340_v35, %v1862_v52  ;;  %v1609_v62 = vadd.f32 %v3669_v54, %v488_v50 }
  0xfb   : > { %vm2191_vm3 = vcmp.gt.f32.partialorder %v2063_v47, 0.0  ;;  %v2319_v57 = vmul.f32 0.2, %v2063_v47  ;;  %v2061_v59 = vadd.f32 %v4340_v35, %v1926_v53  ;;  %v1865_v60 = vld [vmem:[#allocation2 + $0x18] sm:$0xff]  ;;  %v1673_v63 = vadd.f32 %v3733_v55, %v552_v51  ;;  %v1110_v0 = vpop.f32.mrf.mxu0  ;;  %v1366_v1 = vpop.f32.mrf.mxu1 }
  0xfc   : > { %v1929_v61 = vld [vmem:[#allocation2 + $0x218] sm:$0xff]  ;;  %v2383_v2 = vsel %vm2127_vm2, %v1999_v46, %v2255_v56  ;;  %v2000_v4 = vadd.f32 %v4340_v35, %v1865_v60  ;;  %vm2125_vm4 = vcmp.gt.f32.partialorder %v1997_v58, 0.0  ;;  %v2253_v8 = vmul.f32 0.2, %v1997_v58  ;;  %1738 = vst.msk [vmem:[#allocation2 + $0x38] sm:$0xff] %vm224_vm0, %v1609_v62  ;;  %v555_v62 = vld [vmem:[#allocation2 + $0x250] sm:$0xff] }
  0xfd   : > { %v2447_v3 = vsel %vm2191_vm3, %v2063_v47, %v2319_v57  ;;  %v2064_v5 = vadd.f32 %v4340_v35, %v1929_v61  ;;  %v3448_v6 = vpack.c.bf16 %v2383_v2, %v2383_v2  ;;  %v1863_v9 = vld [vmem:[#allocation2 + $0x8] sm:$0xff]  ;;  %1802 = vst.msk [vmem:[#allocation2 + $0x238] sm:$0xff] %vm224_vm0, %v1673_v63  ;;  %v4363_v11 = vpop.f32.mrf.mxu0  ;;  %v4365_v12 = vpop.f32.mrf.mxu1  ;;  %vm2189_vm5 = vcmp.gt.f32.partialorder %v2061_v59, 0.0  ;;  %v491_v61 = vld [vmem:[#allocation2 + $0x50] sm:$0xff] }
  0xfe   : > { %v3512_v7 = vpack.c.bf16 %v2447_v3, %v2447_v3  ;;  %v1927_v10 = vld [vmem:[#allocation2 + $0x208] sm:$0xff]  ;;  %v2317_v13 = vmul.f32 0.2, %v2061_v59  ;;  %vm2128_vm6 = vcmp.gt.f32.partialorder %v2000_v4, 0.0  ;;  %v2256_v14 = vmul.f32 0.2, %v2000_v4 }
  0xff   : > { %3024 = vst.msk [vmem:[%s4357_s17 + $0x8] sm:$0xf] %vm3021_vm1, %v3448_v6  ;;  %v2381_v15 = vsel %vm2125_vm4, %v1997_v58, %v2253_v8  ;;  %vm2192_vm7 = vcmp.gt.f32.partialorder %v2064_v5, 0.0  ;;  %v2320_v16 = vmul.f32 0.2, %v2064_v5  ;;  %v1998_v17 = vadd.f32 %v4340_v35, %v1863_v9  ;;  %v4372_v18 = vpop.f32.mrf.mxu0  ;;  %v4374_v19 = vpop.f32.mrf.mxu1  ;;  %v1868_v24 = vld [vmem:[#allocation2 + $0x30] sm:$0xff] }
 0x100   : > { %3088 = vst.msk [vmem:[%s4357_s17 + $0x108] sm:$0xf] %vm3021_vm1, %v3512_v7  ;;  %v3446_v20 = vpack.c.bf16 %v2381_v15, %v2381_v15  ;;  %v2445_v21 = vsel %vm2189_vm5, %v2061_v59, %v2317_v13  ;;  %v2384_v22 = vsel %vm2128_vm6, %v2000_v4, %v2256_v14  ;;  %v2062_v23 = vadd.f32 %v4340_v35, %v1927_v10  ;;  %v1932_v25 = vld [vmem:[#allocation2 + $0x230] sm:$0xff]  ;;  %v553_v6 = vld [vmem:[#allocation2 + $0x240] sm:$0xff]  ;;  %v492_v7 = vld [vmem:[#allocation2 + $0x58] sm:$0xff] }
 0x101   : > { %v3510_v27 = vpack.c.bf16 %v2445_v21, %v2445_v21  ;;  %v3449_v28 = vpack.c.bf16 %v2384_v22, %v2384_v22  ;;  %v2448_v29 = vsel %vm2192_vm7, %v2064_v5, %v2320_v16  ;;  %vm2126_vm8 = vcmp.gt.f32.partialorder %v1998_v17, 0.0  ;;  %v1866_v30 = vld [vmem:[#allocation2 + $0x20] sm:$0xff]  ;;  %v4377_v33 = vpop.f32.mrf.mxu0  ;;  %v4379_v34 = vpop.f32.mrf.mxu1  ;;  %v556_v13 = vld [vmem:[#allocation2 + $0x258] sm:$0xff]  ;;  %v490_v14 = vld [vmem:[#allocation2 + $0x48] sm:$0xff] }
 0x102   : > { %v1930_v31 = vld [vmem:[#allocation2 + $0x220] sm:$0xff]  ;;  %3022 = vst.msk [vmem:[%s4357_s17] sm:$0xf] %vm3021_vm1, %v3446_v20  ;;  %v3513_v36 = vpack.c.bf16 %v2448_v29, %v2448_v29  ;;  %v2254_v37 = vmul.f32 0.2, %v1998_v17  ;;  %vm2190_vm9 = vcmp.gt.f32.partialorder %v2062_v23, 0.0  ;;  %v2003_v39 = vadd.f32 %v4340_v35, %v1868_v24 }
 0x103   : > { %v2318_v38 = vmul.f32 0.2, %v2062_v23  ;;  %3086 = vst.msk [vmem:[%s4357_s17 + $0x100] sm:$0xf] %vm3021_vm1, %v3510_v27  ;;  %3025 = vst.msk [vmem:[%s4357_s17 + $0xc] sm:$0xf] %vm3021_vm1, %v3449_v28  ;;  %v2067_v40 = vadd.f32 %v4340_v35, %v1932_v25  ;;  %v2001_v41 = vadd.f32 %v4340_v35, %v1866_v30  ;;  %v2065_v42 = vadd.f32 %v4340_v35, %v1930_v31  ;;  %v4391_v43 = vpop.f32.mrf.mxu0  ;;  %v4393_v44 = vpop.f32.mrf.mxu1 }
 0x104   : > { %3089 = vst.msk [vmem:[%s4357_s17 + $0x10c] sm:$0xf] %vm3021_vm1, %v3513_v36  ;;  %v2382_v45 = vsel %vm2126_vm8, %v1998_v17, %v2254_v37  ;;  %v1869_v47 = vld [vmem:[#allocation2 + $0x38] sm:$0xff]  ;;  %v1607_v48 = vadd.f32 %v1110_v0, %v486_v26  ;;  %v1671_v49 = vadd.f32 %v1366_v1, %v550_v32  ;;  %vm2131_vm10 = vcmp.gt.f32.partialorder %v2003_v39, 0.0  ;;  %v489_v5 = vld [vmem:[#allocation2 + $0x40] sm:$0xff]  ;;  %v554_v15 = vld [vmem:[#allocation2 + $0x248] sm:$0xff] }
 0x105   : > { %v2446_v46 = vsel %vm2190_vm9, %v2062_v23, %v2318_v38  ;;  %v3447_v50 = vpack.c.bf16 %v2382_v45, %v2382_v45  ;;  %v2259_v52 = vmul.f32 0.2, %v2003_v39  ;;  %v1933_v53 = vld [vmem:[#allocation2 + $0x238] sm:$0xff]  ;;  %v4398_v54 = vpop.f32.mrf.mxu0  ;;  %v4400_v55 = vpop.f32.mrf.mxu1  ;;  %vm2195_vm11 = vcmp.gt.f32.partialorder %v2067_v40, 0.0  ;;  %v495_v23 = vld [vmem:[#allocation2 + $0x70] sm:$0xff]  ;;  %v493_v29 = vld [vmem:[#allocation2 + $0x60] sm:$0xff] }
 0x106   : > { %v3511_v51 = vpack.c.bf16 %v2446_v46, %v2446_v46  ;;  %v2323_v56 = vmul.f32 0.2, %v2067_v40  ;;  %vm2129_vm12 = vcmp.gt.f32.partialorder %v2001_v41, 0.0  ;;  %v2257_v57 = vmul.f32 0.2, %v2001_v41  ;;  %1736 = vst.msk [vmem:[#allocation2 + $0x28] sm:$0xff] %vm224_vm0, %v1607_v48 }
 0x107   : > { %1800 = vst.msk [vmem:[#allocation2 + $0x228] sm:$0xff] %vm224_vm0, %v1671_v49  ;;  %v2387_v58 = vsel %vm2131_vm10, %v2003_v39, %v2259_v52  ;;  %vm2193_vm13 = vcmp.gt.f32.partialorder %v2065_v42, 0.0  ;;  %v2321_v59 = vmul.f32 0.2, %v2065_v42  ;;  %v2004_v60 = vadd.f32 %v4340_v35, %v1869_v47  ;;  %v4409_v63 = vpop.f32.mrf.mxu0  ;;  %v4411_v0 = vpop.f32.mrf.mxu1  ;;  %v559_v28 = vld [vmem:[#allocation2 + $0x270] sm:$0xff]  ;;  %v557_v30 = vld [vmem:[#allocation2 + $0x260] sm:$0xff] }
 0x108   : > { %3023 = vst.msk [vmem:[%s4357_s17 + $0x4] sm:$0xf] %vm3021_vm1, %v3447_v50  ;;  %3087 = vst.msk [vmem:[%s4357_s17 + $0x104] sm:$0xf] %vm3021_vm1, %v3511_v51  ;;  %v3452_v1 = vpack.c.bf16 %v2387_v58, %v2387_v58  ;;  %v2451_v2 = vsel %vm2195_vm11, %v2067_v40, %v2323_v56  ;;  %v2385_v3 = vsel %vm2129_vm12, %v2001_v41, %v2257_v57  ;;  %v560_v39 = vld [vmem:[#allocation2 + $0x278] sm:$0xff]  ;;  %v558_v45 = vld [vmem:[#allocation2 + $0x268] sm:$0xff] }
 0x109   : > { %v2068_v4 = vadd.f32 %v4340_v35, %v1933_v53  ;;  %v3516_v8 = vpack.c.bf16 %v2451_v2, %v2451_v2  ;;  %v3450_v9 = vpack.c.bf16 %v2385_v3, %v2385_v3  ;;  %v2449_v10 = vsel %vm2193_vm13, %v2065_v42, %v2321_v59  ;;  %v3677_v16 = vpop.f32.mrf.mxu0  ;;  %v3741_v17 = vpop.f32.mrf.mxu1  ;;  %v499_v52 = vld [vmem:[#allocation2 + $0x90] sm:$0xff]  ;;  %v561_v59 = vld [vmem:[#allocation2 + $0x280] sm:$0xff] }
 0x10a   : > { %vm2132_vm14 = vcmp.gt.f32.partialorder %v2004_v60, 0.0  ;;  %3028 = vst.msk [vmem:[%s4357_s17 + $0x18] sm:$0xf] %vm3021_vm1, %v3452_v1  ;;  %v3514_v20 = vpack.c.bf16 %v2449_v10, %v2449_v10  ;;  %v2260_v21 = vmul.f32 0.2, %v2004_v60  ;;  %v1612_v24 = vadd.f32 %v4363_v11, %v491_v61  ;;  %v563_v53 = vld [vmem:[#allocation2 + $0x290] sm:$0xff] }
 0x10b   : > { %vm2196_vm15 = vcmp.gt.f32.partialorder %v2068_v4, 0.0  ;;  %v2324_v22 = vmul.f32 0.2, %v2068_v4  ;;  %3092 = vst.msk [vmem:[%s4357_s17 + $0x118] sm:$0xf] %vm3021_vm1, %v3516_v8  ;;  %v1676_v25 = vadd.f32 %v4365_v12, %v555_v62  ;;  %v1610_v26 = vadd.f32 %v4372_v18, %v489_v5  ;;  %v1142_v31 = vpop.f32.mrf.mxu0  ;;  %v1398_v32 = vpop.f32.mrf.mxu1  ;;  %v496_v12 = vld [vmem:[#allocation2 + $0x78] sm:$0xff] }
 0x10c   : > { %3026 = vst.msk [vmem:[%s4357_s17 + $0x10] sm:$0xf] %vm3021_vm1, %v3450_v9  ;;  %v1674_v27 = vadd.f32 %v4374_v19, %v553_v6  ;;  %3090 = vst.msk [vmem:[%s4357_s17 + $0x110] sm:$0xf] %vm3021_vm1, %v3514_v20  ;;  %v2388_v36 = vsel %vm2132_vm14, %v2004_v60, %v2260_v21  ;;  %v1613_v38 = vadd.f32 %v4377_v33, %v492_v7  ;;  %v494_v18 = vld [vmem:[#allocation2 + $0x68] sm:$0xff]  ;;  %v500_v60 = vld [vmem:[#allocation2 + $0x98] sm:$0xff] }
 0x10d   : > { %v2452_v37 = vsel %vm2196_vm15, %v2068_v4, %v2324_v22  ;;  %v1677_v11 = vadd.f32 %v4379_v34, %v556_v13  ;;  %v3453_v40 = vpack.c.bf16 %v2388_v36, %v2388_v36  ;;  %v1867_v41 = vld [vmem:[#allocation2 + $0x28] sm:$0xff]  ;;  %1741 = vst.msk [vmem:[#allocation2 + $0x50] sm:$0xff] %vm224_vm0, %v1612_v24  ;;  %1805 = vst.msk [vmem:[#allocation2 + $0x250] sm:$0xff] %vm224_vm0, %v1676_v25  ;;  %v3680_v46 = vpop.f32.mrf.mxu0  ;;  %v3744_v47 = vpop.f32.mrf.mxu1  ;;  %v564_v61 = vld [vmem:[#allocation2 + $0x298] sm:$0xff] }
 0x10e   : > { %v3517_v19 = vpack.c.bf16 %v2452_v37, %v2452_v37  ;;  %v1931_v42 = vld [vmem:[#allocation2 + $0x228] sm:$0xff]  ;;  %1739 = vst.msk [vmem:[#allocation2 + $0x40] sm:$0xff] %vm224_vm0, %v1610_v26  ;;  %1803 = vst.msk [vmem:[#allocation2 + $0x240] sm:$0xff] %vm224_vm0, %v1674_v27  ;;  %v1611_v33 = vadd.f32 %v4391_v43, %v490_v14  ;;  %v1675_v34 = vadd.f32 %v4393_v44, %v554_v15  ;;  %v497_v43 = vld [vmem:[#allocation2 + $0x80] sm:$0xff] }
 0x10f   : > { %v2002_v48 = vadd.f32 %v4340_v35, %v1867_v41  ;;  %v2066_v49 = vadd.f32 %v4340_v35, %v1931_v42  ;;  %1742 = vst.msk [vmem:[#allocation2 + $0x58] sm:$0xff] %vm224_vm0, %v1613_v38  ;;  %1806 = vst.msk [vmem:[#allocation2 + $0x258] sm:$0xff] %vm224_vm0, %v1677_v11  ;;  %v1616_v50 = vadd.f32 %v4398_v54, %v495_v23  ;;  %v1155_v54 = vpop.f32.mrf.mxu0  ;;  %v498_v6 = vld [vmem:[#allocation2 + $0x88] sm:$0xff]  ;;  %v503_v22 = vld [vmem:[#allocation2 + $0xb0] sm:$0xff] }
 0x110   : > { %v1680_v51 = vadd.f32 %v4400_v55, %v559_v28  ;;  %3029 = vst.msk [vmem:[%s4357_s17 + $0x1c] sm:$0xf] %vm3021_vm1, %v3453_v40  ;;  %3093 = vst.msk [vmem:[%s4357_s17 + $0x11c] sm:$0xf] %vm3021_vm1, %v3517_v19  ;;  %v1614_v44 = vadd.f32 %v4409_v63, %v493_v29  ;;  %v1678_v56 = vadd.f32 %v4411_v0, %v557_v30  ;;  %v1411_v55 = vpop.f32.mrf.mxu1  ;;  %v562_v7 = vld [vmem:[#allocation2 + $0x288] sm:$0xff] }
 0x111   : > { %1740 = vst.msk [vmem:[#allocation2 + $0x48] sm:$0xff] %vm224_vm0, %v1611_v33  ;;  %1804 = vst.msk [vmem:[#allocation2 + $0x248] sm:$0xff] %vm224_vm0, %v1675_v34  ;;  %v1617_v57 = vadd.f32 %v3677_v16, %v496_v12  ;;  %v1681_v58 = vadd.f32 %v3741_v17, %v560_v39  ;;  %vm2130_vm2 = vcmp.gt.f32.partialorder %v2002_v48, 0.0  ;;  %v2258_v62 = vmul.f32 0.2, %v2002_v48  ;;  %v3681_v4 = vpop.f32.mrf.mxu0 }
 0x112   : > { %vm2194_vm3 = vcmp.gt.f32.partialorder %v2066_v49, 0.0  ;;  %v2322_v1 = vmul.f32 0.2, %v2066_v49  ;;  %1745 = vst.msk [vmem:[#allocation2 + $0x70] sm:$0xff] %vm224_vm0, %v1616_v50  ;;  %1809 = vst.msk [vmem:[#allocation2 + $0x270] sm:$0xff] %vm224_vm0, %v1680_v51  ;;  %v1615_v63 = vadd.f32 %v1142_v31, %v494_v18  ;;  %v1679_v0 = vadd.f32 %v1398_v32, %v558_v45  ;;  %v3745_v5 = vpop.f32.mrf.mxu1 }
 0x113   : > { %1743 = vst.msk [vmem:[#allocation2 + $0x60] sm:$0xff] %vm224_vm0, %v1614_v44  ;;  %1807 = vst.msk [vmem:[#allocation2 + $0x260] sm:$0xff] %vm224_vm0, %v1678_v56  ;;  %v1620_v2 = vadd.f32 %v3680_v46, %v499_v52  ;;  %v1684_v3 = vadd.f32 %v3744_v47, %v563_v53  ;;  %v2386_v8 = vsel %vm2130_vm2, %v2002_v48, %v2258_v62  ;;  %v1158_v20 = vpop.f32.mrf.mxu0 }
 0x114   : > { %1746 = vst.msk [vmem:[#allocation2 + $0x78] sm:$0xff] %vm224_vm0, %v1617_v57  ;;  %1810 = vst.msk [vmem:[#allocation2 + $0x278] sm:$0xff] %vm224_vm0, %v1681_v58  ;;  %v2450_v9 = vsel %vm2194_vm3, %v2066_v49, %v2322_v1  ;;  %v1618_v10 = vadd.f32 %v1155_v54, %v497_v43  ;;  %v1682_v13 = vadd.f32 %v1411_v55, %v561_v59  ;;  %v1414_v21 = vpop.f32.mrf.mxu1  ;;  %v1872_v23 = vld [vmem:[#allocation2 + $0x50] sm:$0xff] }
 0x115   : > { %v3451_v14 = vpack.c.bf16 %v2386_v8, %v2386_v8  ;;  %v3515_v15 = vpack.c.bf16 %v2450_v9, %v2450_v9  ;;  %1744 = vst.msk [vmem:[#allocation2 + $0x68] sm:$0xff] %vm224_vm0, %v1615_v63  ;;  %1808 = vst.msk [vmem:[#allocation2 + $0x268] sm:$0xff] %vm224_vm0, %v1679_v0  ;;  %v1621_v16 = vadd.f32 %v3681_v4, %v500_v60  ;;  %v1936_v24 = vld [vmem:[#allocation2 + $0x250] sm:$0xff]  ;;  %v1870_v25 = vld [vmem:[#allocation2 + $0x40] sm:$0xff]  ;;  %v3684_v37 = vpop.f32.mrf.mxu0 }
 0x116   : > { %1749 = vst.msk [vmem:[#allocation2 + $0x90] sm:$0xff] %vm224_vm0, %v1620_v2  ;;  %1813 = vst.msk [vmem:[#allocation2 + $0x290] sm:$0xff] %vm224_vm0, %v1684_v3  ;;  %v1685_v17 = vadd.f32 %v3745_v5, %v564_v61  ;;  %v1619_v26 = vadd.f32 %v1158_v20, %v498_v6  ;;  %v1683_v27 = vadd.f32 %v1414_v21, %v562_v7  ;;  %v1934_v31 = vld [vmem:[#allocation2 + $0x240] sm:$0xff]  ;;  %v1873_v32 = vld [vmem:[#allocation2 + $0x58] sm:$0xff]  ;;  %v4476_v38 = vpop.f32.mrf.mxu1 }
 0x117   : > { %1747 = vst.msk [vmem:[#allocation2 + $0x80] sm:$0xff] %vm224_vm0, %v1618_v10  ;;  %1811 = vst.msk [vmem:[#allocation2 + $0x280] sm:$0xff] %vm224_vm0, %v1682_v13  ;;  %v2007_v28 = vadd.f32 %v4340_v35, %v1872_v23  ;;  %v2071_v29 = vadd.f32 %v4340_v35, %v1936_v24  ;;  %v2005_v30 = vadd.f32 %v4340_v35, %v1870_v25  ;;  %v1937_v36 = vld [vmem:[#allocation2 + $0x258] sm:$0xff]  ;;  %v4483_v41 = vpop.f32.mrf.mxu0 }
 0x118   : > { %3027 = vst.msk [vmem:[%s4357_s17 + $0x14] sm:$0xf] %vm3021_vm1, %v3451_v14  ;;  %3091 = vst.msk [vmem:[%s4357_s17 + $0x114] sm:$0xf] %vm3021_vm1, %v3515_v15  ;;  %v2069_v11 = vadd.f32 %v4340_v35, %v1934_v31  ;;  %v2008_v12 = vadd.f32 %v4340_v35, %v1873_v32  ;;  %v2072_v39 = vadd.f32 %v4340_v35, %v1937_v36  ;;  %v4485_v42 = vpop.f32.mrf.mxu1  ;;  %v1871_v48 = vld [vmem:[#allocation2 + $0x48] sm:$0xff] }
 0x119   : > { %1750 = vst.msk [vmem:[#allocation2 + $0x98] sm:$0xff] %vm224_vm0, %v1621_v16  ;;  %1814 = vst.msk [vmem:[#allocation2 + $0x298] sm:$0xff] %vm224_vm0, %v1685_v17  ;;  %v1624_v18 = vadd.f32 %v3684_v37, %v503_v22  ;;  %vm2135_vm4 = vcmp.gt.f32.partialorder %v2007_v28, 0.0  ;;  %v2263_v40 = vmul.f32 0.2, %v2007_v28  ;;  %vm2199_vm5 = vcmp.gt.f32.partialorder %v2071_v29, 0.0  ;;  %v4488_v51 = vpop.f32.mrf.mxu0 }
 0x11a   : > { %1748 = vst.msk [vmem:[#allocation2 + $0x88] sm:$0xff] %vm224_vm0, %v1619_v26  ;;  %1812 = vst.msk [vmem:[#allocation2 + $0x288] sm:$0xff] %vm224_vm0, %v1683_v27  ;;  %v2327_v19 = vmul.f32 0.2, %v2071_v29  ;;  %vm2133_vm6 = vcmp.gt.f32.partialorder %v2005_v30, 0.0  ;;  %vm2197_vm7 = vcmp.gt.f32.partialorder %v2069_v11, 0.0  ;;  %v4490_v52 = vpop.f32.mrf.mxu1  ;;  %v2006_v0 = vadd.f32 %v4340_v35, %v1871_v48 }
 0x11b   : > { %v2261_v33 = vmul.f32 0.2, %v2005_v30  ;;  %v2325_v34 = vmul.f32 0.2, %v2069_v11  ;;  %1753 = vst.msk [vmem:[#allocation2 + $0xb0] sm:$0xff] %vm224_vm0, %v1624_v18  ;;  %v2391_v45 = vsel %vm2135_vm4, %v2007_v28, %v2263_v40  ;;  %vm2136_vm8 = vcmp.gt.f32.partialorder %v2008_v12, 0.0  ;;  %v4494_v61 = vpop.f32.mrf.mxu0 }
 0x11c   : > { %v2455_v46 = vsel %vm2199_vm5, %v2071_v29, %v2327_v19  ;;  %v2264_v47 = vmul.f32 0.2, %v2008_v12  ;;  %v1935_v49 = vld [vmem:[#allocation2 + $0x248] sm:$0xff]  ;;  %v1876_v50 = vld [vmem:[#allocation2 + $0x70] sm:$0xff]  ;;  %v3456_v53 = vpack.c.bf16 %v2391_v45, %v2391_v45  ;;  %v1874_v58 = vld [vmem:[#allocation2 + $0x60] sm:$0xff]  ;;  %vm2200_vm9 = vcmp.gt.f32.partialorder %v2072_v39, 0.0  ;;  %v4496_v62 = vpop.f32.mrf.mxu1 }
 0x11d   : > { %v3520_v43 = vpack.c.bf16 %v2455_v46, %v2455_v46  ;;  %v2389_v44 = vsel %vm2133_vm6, %v2005_v30, %v2261_v33  ;;  %v2453_v56 = vsel %vm2197_vm7, %v2069_v11, %v2325_v34  ;;  %v1940_v57 = vld [vmem:[#allocation2 + $0x270] sm:$0xff]  ;;  %v1938_v54 = vld [vmem:[#allocation2 + $0x260] sm:$0xff]  ;;  %v2328_v63 = vmul.f32 0.2, %v2072_v39  ;;  %v4512_v7 = vpop.f32.mrf.mxu0  ;;  %v1877_v22 = vld [vmem:[#allocation2 + $0x78] sm:$0xff] }
 0x11e   : > { %v3454_v59 = vpack.c.bf16 %v2389_v44, %v2389_v44  ;;  %v3518_v55 = vpack.c.bf16 %v2453_v56, %v2453_v56  ;;  %v2392_v60 = vsel %vm2136_vm8, %v2008_v12, %v2264_v47  ;;  %3032 = vst.msk [vmem:[%s4357_s17 + $0x28] sm:$0xf] %vm3021_vm1, %v3456_v53  ;;  %v2070_v2 = vadd.f32 %v4340_v35, %v1935_v49  ;;  %v4514_v8 = vpop.f32.mrf.mxu1  ;;  %v1941_v27 = vld [vmem:[#allocation2 + $0x278] sm:$0xff]  ;;  %v1875_v28 = vld [vmem:[#allocation2 + $0x68] sm:$0xff]  ;;  %v1880_v11 = vld [vmem:[#allocation2 + $0x90] sm:$0xff] }
 0x11f   : > { %3096 = vst.msk [vmem:[%s4357_s17 + $0x128] sm:$0xf] %vm3021_vm1, %v3520_v43  ;;  %v3457_v1 = vpack.c.bf16 %v2392_v60, %v2392_v60  ;;  %v2011_v3 = vadd.f32 %v4340_v35, %v1876_v50  ;;  %v2075_v4 = vadd.f32 %v4340_v35, %v1940_v57  ;;  %v2009_v5 = vadd.f32 %v4340_v35, %v1874_v58  ;;  %v4519_v16 = vpop.f32.mrf.mxu0  ;;  %v1939_v29 = vld [vmem:[#allocation2 + $0x268] sm:$0xff]  ;;  %v1944_v57 = vld [vmem:[#allocation2 + $0x290] sm:$0xff] }
 0x120   : > { %3030 = vst.msk [vmem:[%s4357_s17 + $0x20] sm:$0xf] %vm3021_vm1, %v3454_v59  ;;  %3094 = vst.msk [vmem:[%s4357_s17 + $0x120] sm:$0xf] %vm3021_vm1, %v3518_v55  ;;  %v2073_v6 = vadd.f32 %v4340_v35, %v1938_v54  ;;  %v2456_v9 = vsel %vm2200_vm9, %v2072_v39, %v2328_v63  ;;  %vm2134_vm10 = vcmp.gt.f32.partialorder %v2006_v0, 0.0  ;;  %vm2198_vm11 = vcmp.gt.f32.partialorder %v2070_v2, 0.0  ;;  %v4521_v17 = vpop.f32.mrf.mxu1 }
 0x121   : > { %3033 = vst.msk [vmem:[%s4357_s17 + $0x2c] sm:$0xf] %vm3021_vm1, %v3457_v1  ;;  %v2262_v10 = vmul.f32 0.2, %v2006_v0  ;;  %v3521_v13 = vpack.c.bf16 %v2456_v9, %v2456_v9  ;;  %v2326_v14 = vmul.f32 0.2, %v2070_v2  ;;  %v4525_v30 = vpop.f32.mrf.mxu0  ;;  %v2012_v40 = vadd.f32 %v4340_v35, %v1877_v22 }
 0x122   : > { %vm2139_vm12 = vcmp.gt.f32.partialorder %v2011_v3, 0.0  ;;  %v2267_v15 = vmul.f32 0.2, %v2011_v3  ;;  %vm2203_vm13 = vcmp.gt.f32.partialorder %v2075_v4, 0.0  ;;  %v2331_v21 = vmul.f32 0.2, %v2075_v4  ;;  %v4527_v31 = vpop.f32.mrf.mxu1 }
 0x123   : > { %v2390_v20 = vsel %vm2134_vm10, %v2006_v0, %v2262_v10  ;;  %vm2137_vm14 = vcmp.gt.f32.partialorder %v2009_v5, 0.0  ;;  %3097 = vst.msk [vmem:[%s4357_s17 + $0x12c] sm:$0xf] %vm3021_vm1, %v3521_v13  ;;  %v2454_v24 = vsel %vm2198_vm11, %v2070_v2, %v2326_v14  ;;  %v2265_v26 = vmul.f32 0.2, %v2009_v5  ;;  %v4534_v19 = vpop.f32.mrf.mxu0  ;;  %v1878_v55 = vld [vmem:[#allocation2 + $0x80] sm:$0xff] }
 0x124   : > { %v3455_v23 = vpack.c.bf16 %v2390_v20, %v2390_v20  ;;  %v2395_v25 = vsel %vm2139_vm12, %v2011_v3, %v2267_v15  ;;  %v3519_v32 = vpack.c.bf16 %v2454_v24, %v2454_v24  ;;  %v2459_v37 = vsel %vm2203_vm13, %v2075_v4, %v2331_v21  ;;  %v4536_v33 = vpop.f32.mrf.mxu1  ;;  %v1942_v3 = vld [vmem:[#allocation2 + $0x280] sm:$0xff]  ;;  %v1881_v10 = vld [vmem:[#allocation2 + $0x98] sm:$0xff]  ;;  %v1879_v24 = vld [vmem:[#allocation2 + $0x88] sm:$0xff] }
 0x125   : > { %v3460_v36 = vpack.c.bf16 %v2395_v25, %v2395_v25  ;;  %vm2201_vm15 = vcmp.gt.f32.partialorder %v2073_v6, 0.0  ;;  %v3524_v12 = vpack.c.bf16 %v2459_v37, %v2459_v37  ;;  %v2393_v39 = vsel %vm2137_vm14, %v2009_v5, %v2265_v26  ;;  %v4549_v53 = vpop.f32.mrf.mxu0  ;;  %v1945_v13 = vld [vmem:[#allocation2 + $0x298] sm:$0xff] }
 0x126   : > { %3031 = vst.msk [vmem:[%s4357_s17 + $0x24] sm:$0xf] %vm3021_vm1, %v3455_v23  ;;  %v2329_v18 = vmul.f32 0.2, %v2073_v6  ;;  %3095 = vst.msk [vmem:[%s4357_s17 + $0x124] sm:$0xf] %vm3021_vm1, %v3519_v32  ;;  %v3458_v34 = vpack.c.bf16 %v2393_v39, %v2393_v39  ;;  %v2076_v45 = vadd.f32 %v4340_v35, %v1941_v27  ;;  %v2010_v46 = vadd.f32 %v4340_v35, %v1875_v28  ;;  %v4551_v43 = vpop.f32.mrf.mxu1 }
 0x127   : > { %3036 = vst.msk [vmem:[%s4357_s17 + $0x38] sm:$0xf] %vm3021_vm1, %v3460_v36  ;;  %v2074_v47 = vadd.f32 %v4340_v35, %v1939_v29  ;;  %3100 = vst.msk [vmem:[%s4357_s17 + $0x138] sm:$0xf] %vm3021_vm1, %v3524_v12  ;;  %vm2140_vm2 = vcmp.gt.f32.partialorder %v2012_v40, 0.0  ;;  %v2015_v50 = vadd.f32 %v4340_v35, %v1880_v11  ;;  %v4555_v60 = vpop.f32.mrf.mxu0  ;;  %v2079_v9 = vadd.f32 %v4340_v35, %v1944_v57  ;;  %v501_v57 = vld [vmem:[#allocation2 + $0xa0] sm:$0xff] }
 0x128   : > { %v2457_v48 = vsel %vm2201_vm15, %v2073_v6, %v2329_v18  ;;  %v2268_v49 = vmul.f32 0.2, %v2012_v40  ;;  %3034 = vst.msk [vmem:[%s4357_s17 + $0x30] sm:$0xf] %vm3021_vm1, %v3458_v34  ;;  %vm2204_vm3 = vcmp.gt.f32.partialorder %v2076_v45, 0.0  ;;  %vm2138_vm4 = vcmp.gt.f32.partialorder %v2010_v46, 0.0  ;;  %v4557_v1 = vpop.f32.mrf.mxu1 }
 0x129   : > { %v3522_v44 = vpack.c.bf16 %v2457_v48, %v2457_v48  ;;  %v2332_v56 = vmul.f32 0.2, %v2076_v45  ;;  %v2266_v54 = vmul.f32 0.2, %v2010_v46  ;;  %vm2202_vm5 = vcmp.gt.f32.partialorder %v2074_v47, 0.0  ;;  %v4563_v14 = vpop.f32.mrf.mxu0  ;;  %v1884_v48 = vld [vmem:[#allocation2 + $0xb0] sm:$0xff] }
 0x12a   : > { %v2396_v58 = vsel %vm2140_vm2, %v2012_v40, %v2268_v49  ;;  %v2330_v59 = vmul.f32 0.2, %v2074_v47  ;;  %vm2143_vm6 = vcmp.gt.f32.partialorder %v2015_v50, 0.0  ;;  %v2271_v2 = vmul.f32 0.2, %v2015_v50  ;;  %v4565_v15 = vpop.f32.mrf.mxu1 }
 0x12b   : > { %3098 = vst.msk [vmem:[%s4357_s17 + $0x130] sm:$0xf] %vm3021_vm1, %v3522_v44  ;;  %v3461_v63 = vpack.c.bf16 %v2396_v58, %v2396_v58  ;;  %v2460_v0 = vsel %vm2204_vm3, %v2076_v45, %v2332_v56  ;;  %v2394_v5 = vsel %vm2138_vm4, %v2010_v46, %v2266_v54  ;;  %v2013_v23 = vadd.f32 %v4340_v35, %v1878_v55  ;;  %v4573_v28 = vpop.f32.mrf.mxu0  ;;  %v567_v56 = vld [vmem:[#allocation2 + $0x2b0] sm:$0xff]  ;;  %v565_v58 = vld [vmem:[#allocation2 + $0x2a0] sm:$0xff] }
 0x12c   : > { %v3525_v4 = vpack.c.bf16 %v2460_v0, %v2460_v0  ;;  %v2458_v6 = vsel %vm2202_vm5, %v2074_v47, %v2330_v59  ;;  %v3459_v20 = vpack.c.bf16 %v2394_v5, %v2394_v5  ;;  %v2399_v22 = vsel %vm2143_vm6, %v2015_v50, %v2271_v2  ;;  %v4575_v29 = vpop.f32.mrf.mxu1  ;;  %v1943_v47 = vld [vmem:[#allocation2 + $0x288] sm:$0xff]  ;;  %v504_v2 = vld [vmem:[#allocation2 + $0xb8] sm:$0xff] }
 0x12d   : > { %3037 = vst.msk [vmem:[%s4357_s17 + $0x3c] sm:$0xf] %vm3021_vm1, %v3461_v63  ;;  %v3523_v21 = vpack.c.bf16 %v2458_v6, %v2458_v6  ;;  %v3464_v25 = vpack.c.bf16 %v2399_v22, %v2399_v22  ;;  %vm2207_vm7 = vcmp.gt.f32.partialorder %v2079_v9, 0.0  ;;  %v2335_v26 = vmul.f32 0.2, %v2079_v9  ;;  %v4586_v18 = vpop.f32.mrf.mxu0 }
 0x12e   : > { %3101 = vst.msk [vmem:[%s4357_s17 + $0x13c] sm:$0xf] %vm3021_vm1, %v3525_v4  ;;  %v2077_v27 = vadd.f32 %v4340_v35, %v1942_v3  ;;  %3035 = vst.msk [vmem:[%s4357_s17 + $0x34] sm:$0xf] %vm3021_vm1, %v3459_v20  ;;  %vm2141_vm8 = vcmp.gt.f32.partialorder %v2013_v23, 0.0  ;;  %v2016_v36 = vadd.f32 %v4340_v35, %v1881_v10  ;;  %v2080_v37 = vadd.f32 %v4340_v35, %v1945_v13  ;;  %v4588_v40 = vpop.f32.mrf.mxu1  ;;  %v568_v3 = vld [vmem:[#allocation2 + $0x2b8] sm:$0xff] }
 0x12f   : > { %3099 = vst.msk [vmem:[%s4357_s17 + $0x134] sm:$0xf] %vm3021_vm1, %v3523_v21  ;;  %v2269_v32 = vmul.f32 0.2, %v2013_v23  ;;  %3040 = vst.msk [vmem:[%s4357_s17 + $0x48] sm:$0xf] %vm3021_vm1, %v3464_v25  ;;  %v2463_v11 = vsel %vm2207_vm7, %v2079_v9, %v2335_v26  ;;  %v2014_v39 = vadd.f32 %v4340_v35, %v1879_v24  ;;  %v4590_v54 = vpop.f32.mrf.mxu0  ;;  %v2078_v9 = vadd.f32 %v4340_v35, %v1943_v47 }
 0x130   : > { %vm2205_vm9 = vcmp.gt.f32.partialorder %v2077_v27, 0.0  ;;  %v2333_v12 = vmul.f32 0.2, %v2077_v27  ;;  %v3528_v34 = vpack.c.bf16 %v2463_v11, %v2463_v11  ;;  %vm2144_vm10 = vcmp.gt.f32.partialorder %v2016_v36, 0.0  ;;  %v4592_v59 = vpop.f32.mrf.mxu1  ;;  %v502_v4 = vld [vmem:[#allocation2 + $0xa8] sm:$0xff]  ;;  %v507_v20 = vld [vmem:[#allocation2 + $0xd0] sm:$0xff] }
 0x131   : > { %v2397_v45 = vsel %vm2141_vm8, %v2013_v23, %v2269_v32  ;;  %v2272_v46 = vmul.f32 0.2, %v2016_v36  ;;  %vm2208_vm11 = vcmp.gt.f32.partialorder %v2080_v37, 0.0  ;;  %v2336_v44 = vmul.f32 0.2, %v2080_v37  ;;  %v566_v13 = vld [vmem:[#allocation2 + $0x2a8] sm:$0xff]  ;;  %v4601_v22 = vpop.f32.mrf.mxu0 }
 0x132   : > { %v3462_v49 = vpack.c.bf16 %v2397_v45, %v2397_v45  ;;  %v2461_v50 = vsel %vm2205_vm9, %v2077_v27, %v2333_v12  ;;  %3104 = vst.msk [vmem:[%s4357_s17 + $0x148] sm:$0xf] %vm3021_vm1, %v3528_v34  ;;  %vm2142_vm12 = vcmp.gt.f32.partialorder %v2014_v39, 0.0  ;;  %v2270_v0 = vmul.f32 0.2, %v2014_v39  ;;  %v571_v21 = vld [vmem:[#allocation2 + $0x2d0] sm:$0xff]  ;;  %v4603_v23 = vpop.f32.mrf.mxu1 }
 0x133   : > { %v3526_v55 = vpack.c.bf16 %v2461_v50, %v2461_v50  ;;  %v2400_v63 = vsel %vm2144_vm10, %v2016_v36, %v2272_v46  ;;  %v2464_v6 = vsel %vm2208_vm11, %v2080_v37, %v2336_v44  ;;  %v2019_v10 = vadd.f32 %v4340_v35, %v1884_v48  ;;  %v505_v32 = vld [vmem:[#allocation2 + $0xc0] sm:$0xff]  ;;  %v508_v35 = vld [vmem:[#allocation2 + $0xd8] sm:$0xff]  ;;  %v506_v34 = vld [vmem:[#allocation2 + $0xc8] sm:$0xff]  ;;  %v4612_v45 = vpop.f32.mrf.mxu0 }
 0x134   : > { %3038 = vst.msk [vmem:[%s4357_s17 + $0x40] sm:$0xf] %vm3021_vm1, %v3462_v49  ;;  %v3465_v5 = vpack.c.bf16 %v2400_v63, %v2400_v63  ;;  %v3529_v24 = vpack.c.bf16 %v2464_v6, %v2464_v6  ;;  %v2398_v25 = vsel %vm2142_vm12, %v2014_v39, %v2270_v0  ;;  %v1688_v26 = vadd.f32 %v4476_v38, %v567_v56  ;;  %v569_v36 = vld [vmem:[#allocation2 + $0x2c0] sm:$0xff]  ;;  %v572_v12 = vld [vmem:[#allocation2 + $0x2d8] sm:$0xff]  ;;  %v4614_v46 = vpop.f32.mrf.mxu1  ;;  %v570_v48 = vld [vmem:[#allocation2 + $0x2c8] sm:$0xff] }
 0x135   : > { %3102 = vst.msk [vmem:[%s4357_s17 + $0x140] sm:$0xf] %vm3021_vm1, %v3526_v55  ;;  %v1622_v27 = vadd.f32 %v4483_v41, %v501_v57  ;;  %v3463_v37 = vpack.c.bf16 %v2398_v25, %v2398_v25  ;;  %vm2206_vm13 = vcmp.gt.f32.partialorder %v2078_v9, 0.0  ;;  %v2334_v11 = vmul.f32 0.2, %v2078_v9  ;;  %v511_v49 = vld [vmem:[#allocation2 + $0xf0] sm:$0xff] }
 0x136   : > { %3041 = vst.msk [vmem:[%s4357_s17 + $0x4c] sm:$0xf] %vm3021_vm1, %v3465_v5  ;;  %vm2147_vm14 = vcmp.gt.f32.partialorder %v2019_v10, 0.0  ;;  %3105 = vst.msk [vmem:[%s4357_s17 + $0x14c] sm:$0xf] %vm3021_vm1, %v3529_v24  ;;  %v1686_v41 = vadd.f32 %v4485_v42, %v565_v58  ;;  %v1625_v39 = vadd.f32 %v4488_v51, %v504_v2  ;;  %v1689_v47 = vadd.f32 %v4490_v52, %v568_v3  ;;  %v575_v50 = vld [vmem:[#allocation2 + $0x2f0] sm:$0xff]  ;;  %v4629_v58 = vpop.f32.mrf.mxu0  ;;  %v4631_v51 = vpop.f32.mrf.mxu1 }
 0x137   : > { %v2275_v38 = vmul.f32 0.2, %v2019_v10  ;;  %1817 = vst.msk [vmem:[#allocation2 + $0x2b0] sm:$0xff] %vm224_vm0, %v1688_v26  ;;  %1751 = vst.msk [vmem:[#allocation2 + $0xa0] sm:$0xff] %vm224_vm0, %v1622_v27  ;;  %v2462_v44 = vsel %vm2206_vm13, %v2078_v9, %v2334_v11  ;;  %v1623_v56 = vadd.f32 %v4494_v61, %v502_v4  ;;  %v1687_v57 = vadd.f32 %v4496_v62, %v566_v13  ;;  %v509_v63 = vld [vmem:[#allocation2 + $0xe0] sm:$0xff]  ;;  %v512_v42 = vld [vmem:[#allocation2 + $0xf8] sm:$0xff] }
 0x138   : > { %3039 = vst.msk [vmem:[%s4357_s17 + $0x44] sm:$0xf] %vm3021_vm1, %v3463_v37  ;;  %v1628_v55 = vadd.f32 %v4512_v7, %v507_v20  ;;  %v573_v0 = vld [vmem:[#allocation2 + $0x2e0] sm:$0xff]  ;;  %v3527_v52 = vpack.c.bf16 %v2462_v44, %v2462_v44  ;;  %v1692_v61 = vadd.f32 %v4514_v8, %v571_v21  ;;  %v1626_v62 = vadd.f32 %v4519_v16, %v505_v32  ;;  %v576_v7 = vld [vmem:[#allocation2 + $0x2f8] sm:$0xff]  ;;  %v510_v3 = vld [vmem:[#allocation2 + $0xe8] sm:$0xff]  ;;  %v4645_v20 = vpop.f32.mrf.mxu0  ;;  %v4647_v21 = vpop.f32.mrf.mxu1 }
 0x139   : > { %v2403_v2 = vsel %vm2147_vm14, %v2019_v10, %v2275_v38  ;;  %1815 = vst.msk [vmem:[#allocation2 + $0x2a0] sm:$0xff] %vm224_vm0, %v1686_v41  ;;  %1754 = vst.msk [vmem:[#allocation2 + $0xb8] sm:$0xff] %vm224_vm0, %v1625_v39  ;;  %v574_v4 = vld [vmem:[#allocation2 + $0x2e8] sm:$0xff]  ;;  %v1690_v6 = vadd.f32 %v4521_v17, %v569_v36  ;;  %v1629_v9 = vadd.f32 %v4525_v30, %v508_v35  ;;  %v515_v8 = vld [vmem:[#allocation2 + $0x110] sm:$0xff] }
 0x13a   : > { %1818 = vst.msk [vmem:[#allocation2 + $0x2b8] sm:$0xff] %vm224_vm0, %v1689_v47  ;;  %v3468_v5 = vpack.c.bf16 %v2403_v2, %v2403_v2  ;;  %1752 = vst.msk [vmem:[#allocation2 + $0xa8] sm:$0xff] %vm224_vm0, %v1623_v56  ;;  %v1693_v10 = vadd.f32 %v4527_v31, %v572_v12  ;;  %v579_v16 = vld [vmem:[#allocation2 + $0x310] sm:$0xff]  ;;  %v513_v13 = vld [vmem:[#allocation2 + $0x100] sm:$0xff]  ;;  %v1627_v17 = vadd.f32 %v4534_v19, %v506_v34  ;;  %v4666_v37 = vpop.f32.mrf.mxu0  ;;  %v4668_v11 = vpop.f32.mrf.mxu1 }
 0x13b   : > { %1816 = vst.msk [vmem:[#allocation2 + $0x2a8] sm:$0xff] %vm224_vm0, %v1687_v57  ;;  %1757 = vst.msk [vmem:[#allocation2 + $0xd0] sm:$0xff] %vm224_vm0, %v1628_v55  ;;  %v1691_v30 = vadd.f32 %v4536_v33, %v570_v48  ;;  %v1632_v31 = vadd.f32 %v4549_v53, %v511_v49  ;;  %v1696_v24 = vadd.f32 %v4551_v43, %v575_v50  ;;  %v577_v25 = vld [vmem:[#allocation2 + $0x300] sm:$0xff]  ;;  %v516_v26 = vld [vmem:[#allocation2 + $0x118] sm:$0xff] }
 0x13c   : > { %3103 = vst.msk [vmem:[%s4357_s17 + $0x144] sm:$0xf] %vm3021_vm1, %v3527_v52  ;;  %v580_v27 = vld [vmem:[#allocation2 + $0x318] sm:$0xff]  ;;  %3044 = vst.msk [vmem:[%s4357_s17 + $0x58] sm:$0xf] %vm3021_vm1, %v3468_v5  ;;  %v1630_v32 = vadd.f32 %v4555_v60, %v509_v63  ;;  %v1694_v19 = vadd.f32 %v4557_v1, %v573_v0  ;;  %v1633_v33 = vadd.f32 %v4563_v14, %v512_v42  ;;  %v514_v43 = vld [vmem:[#allocation2 + $0x108] sm:$0xff]  ;;  %v4686_v47 = vpop.f32.mrf.mxu0  ;;  %v4688_v48 = vpop.f32.mrf.mxu1 }
 0x13d   : > { %1821 = vst.msk [vmem:[#allocation2 + $0x2d0] sm:$0xff] %vm224_vm0, %v1692_v61  ;;  %1755 = vst.msk [vmem:[#allocation2 + $0xc0] sm:$0xff] %vm224_vm0, %v1626_v62  ;;  %v1697_v53 = vadd.f32 %v4565_v15, %v576_v7  ;;  %v578_v36 = vld [vmem:[#allocation2 + $0x308] sm:$0xff]  ;;  %v519_v35 = vld [vmem:[#allocation2 + $0x130] sm:$0xff]  ;;  %v1631_v60 = vadd.f32 %v4573_v28, %v510_v3  ;;  %v1695_v1 = vadd.f32 %v4575_v29, %v574_v4 }
 0x13e   : > { %1819 = vst.msk [vmem:[#allocation2 + $0x2c0] sm:$0xff] %vm224_vm0, %v1690_v6  ;;  %1758 = vst.msk [vmem:[#allocation2 + $0xd8] sm:$0xff] %vm224_vm0, %v1629_v9  ;;  %v1636_v14 = vadd.f32 %v4586_v18, %v515_v8  ;;  %v1700_v15 = vadd.f32 %v4588_v40, %v579_v16  ;;  %v583_v12 = vld [vmem:[#allocation2 + $0x330] sm:$0xff]  ;;  %v517_v34 = vld [vmem:[#allocation2 + $0x120] sm:$0xff]  ;;  %v1634_v28 = vadd.f32 %v4590_v54, %v513_v13  ;;  %v4711_v0 = vpop.f32.mrf.mxu0  ;;  %v4713_v42 = vpop.f32.mrf.mxu1 }
 0x13f   : > { %1822 = vst.msk [vmem:[#allocation2 + $0x2d8] sm:$0xff] %vm224_vm0, %v1693_v10  ;;  %1756 = vst.msk [vmem:[#allocation2 + $0xc8] sm:$0xff] %vm224_vm0, %v1627_v17  ;;  %v581_v38 = vld [vmem:[#allocation2 + $0x320] sm:$0xff]  ;;  %v1948_v41 = vld [vmem:[#allocation2 + $0x2b0] sm:$0xff]  ;;  %v1698_v29 = vadd.f32 %v4592_v59, %v577_v25  ;;  %v1637_v18 = vadd.f32 %v4601_v22, %v516_v26  ;;  %v1701_v40 = vadd.f32 %v4603_v23, %v580_v27 }
 0x140   : > { %1820 = vst.msk [vmem:[#allocation2 + $0x2c8] sm:$0xff] %vm224_vm0, %v1691_v30  ;;  %1761 = vst.msk [vmem:[#allocation2 + $0xf0] sm:$0xff] %vm224_vm0, %v1632_v31  ;;  %v1882_v39 = vld [vmem:[#allocation2 + $0xa0] sm:$0xff]  ;;  %v1635_v54 = vadd.f32 %v4612_v45, %v514_v43  ;;  %v1699_v59 = vadd.f32 %v4614_v46, %v578_v36  ;;  %v520_v22 = vld [vmem:[#allocation2 + $0x138] sm:$0xff]  ;;  %v1640_v55 = vadd.f32 %v4629_v58, %v519_v35  ;;  %v4725_v4 = vpop.f32.mrf.mxu0  ;;  %v4727_v5 = vpop.f32.mrf.mxu1 }
 0x141   : > { %1825 = vst.msk [vmem:[#allocation2 + $0x2f0] sm:$0xff] %vm224_vm0, %v1696_v24  ;;  %1759 = vst.msk [vmem:[#allocation2 + $0xe0] sm:$0xff] %vm224_vm0, %v1630_v32  ;;  %v4693_v49 = vld [vmem:[%s5191_s2] ss:$0 sm:$0xff]  ;;  %v1885_v56 = vld [vmem:[#allocation2 + $0xb8] sm:$0xff]  ;;  %v1704_v63 = vadd.f32 %v4631_v51, %v583_v12  ;;  %v1638_v45 = vadd.f32 %v4645_v20, %v517_v34  ;;  %v1702_v46 = vadd.f32 %v4647_v21, %v581_v38 }
 0x142   : > { %1823 = vst.msk [vmem:[#allocation2 + $0x2e0] sm:$0xff] %vm224_vm0, %v1694_v19  ;;  %1762 = vst.msk [vmem:[#allocation2 + $0xf8] sm:$0xff] %vm224_vm0, %v1633_v33  ;;  %v2083_v50 = vadd.f32 %v4693_v49, %v1948_v41  ;;  %v2017_v44 = vadd.f32 %v4693_v49, %v1882_v39  ;;  %v1946_v23 = vld [vmem:[#allocation2 + $0x2a0] sm:$0xff]  ;;  %v1949_v57 = vld [vmem:[#allocation2 + $0x2b8] sm:$0xff]  ;;  %v2020_v51 = vadd.f32 %v4693_v49, %v1885_v56  ;;  %v4734_v17 = vpop.f32.mrf.mxu0  ;;  %v4736_v30 = vpop.f32.mrf.mxu1 }
 0x143   : > { %1826 = vst.msk [vmem:[#allocation2 + $0x2f8] sm:$0xff] %vm224_vm0, %v1697_v53  ;;  %1760 = vst.msk [vmem:[#allocation2 + $0xe8] sm:$0xff] %vm224_vm0, %v1631_v60  ;;  %v2081_v58 = vadd.f32 %v4693_v49, %v1946_v23  ;;  %v2084_v61 = vadd.f32 %v4693_v49, %v1949_v57  ;;  %v1883_v62 = vld [vmem:[#allocation2 + $0xa8] sm:$0xff]  ;;  %v1641_v3 = vadd.f32 %v4666_v37, %v520_v22  ;;  %v1888_v21 = vld [vmem:[#allocation2 + $0xd0] sm:$0xff] }
 0x144   : > { %1824 = vst.msk [vmem:[#allocation2 + $0x2e8] sm:$0xff] %vm224_vm0, %v1695_v1  ;;  %1765 = vst.msk [vmem:[#allocation2 + $0x110] sm:$0xff] %vm224_vm0, %v1636_v14  ;;  %vm2211_vm15 = vcmp.gt.f32.partialorder %v2083_v50, 0.0  ;;  %v2339_v52 = vmul.f32 0.2, %v2083_v50  ;;  %vm2145_vm2 = vcmp.gt.f32.partialorder %v2017_v44, 0.0  ;;  %v2018_v10 = vadd.f32 %v4693_v49, %v1883_v62  ;;  %v4742_v19 = vpop.f32.mrf.mxu0  ;;  %v4744_v33 = vpop.f32.mrf.mxu1 }
 0x145   : > { %1829 = vst.msk [vmem:[#allocation2 + $0x310] sm:$0xff] %vm224_vm0, %v1700_v15  ;;  %1763 = vst.msk [vmem:[#allocation2 + $0x100] sm:$0xff] %vm224_vm0, %v1634_v28  ;;  %v2273_v2 = vmul.f32 0.2, %v2017_v44  ;;  %v1947_v7 = vld [vmem:[#allocation2 + $0x2a8] sm:$0xff]  ;;  %vm2209_vm3 = vcmp.gt.f32.partialorder %v2081_v58, 0.0  ;;  %v2023_v15 = vadd.f32 %v4693_v49, %v1888_v21 }
 0x146   : > { %1827 = vst.msk [vmem:[#allocation2 + $0x300] sm:$0xff] %vm224_vm0, %v1698_v29  ;;  %1766 = vst.msk [vmem:[#allocation2 + $0x118] sm:$0xff] %vm224_vm0, %v1637_v18  ;;  %v2467_v6 = vsel %vm2211_vm15, %v2083_v50, %v2339_v52  ;;  %v2082_v8 = vadd.f32 %v4693_v49, %v1947_v7  ;;  %v2337_v20 = vmul.f32 0.2, %v2081_v58  ;;  %vm2148_vm4 = vcmp.gt.f32.partialorder %v2020_v51, 0.0  ;;  %v1952_v27 = vld [vmem:[#allocation2 + $0x2d0] sm:$0xff]  ;;  %v4747_v12 = vpop.f32.mrf.mxu0  ;;  %v4749_v34 = vpop.f32.mrf.mxu1 }
 0x147   : > { %1830 = vst.msk [vmem:[#allocation2 + $0x318] sm:$0xff] %vm224_vm0, %v1701_v40  ;;  %1764 = vst.msk [vmem:[#allocation2 + $0x108] sm:$0xff] %vm224_vm0, %v1635_v54  ;;  %v2401_v9 = vsel %vm2145_vm2, %v2017_v44, %v2273_v2  ;;  %v3532_v16 = vpack.c.bf16 %v2467_v6, %v2467_v6  ;;  %v2276_v31 = vmul.f32 0.2, %v2020_v51  ;;  %vm2212_vm5 = vcmp.gt.f32.partialorder %v2084_v61, 0.0  ;;  %v1886_v32 = vld [vmem:[#allocation2 + $0xc0] sm:$0xff] }
 0x148   : > { %1828 = vst.msk [vmem:[#allocation2 + $0x308] sm:$0xff] %vm224_vm0, %v1699_v59  ;;  %1769 = vst.msk [vmem:[#allocation2 + $0x130] sm:$0xff] %vm224_vm0, %v1640_v55  ;;  %v3466_v13 = vpack.c.bf16 %v2401_v9, %v2401_v9  ;;  %v2340_v24 = vmul.f32 0.2, %v2084_v61  ;;  %v2465_v25 = vsel %vm2209_vm3, %v2081_v58, %v2337_v20  ;;  %vm2146_vm6 = vcmp.gt.f32.partialorder %v2018_v10, 0.0  ;;  %v1950_v37 = vld [vmem:[#allocation2 + $0x2c0] sm:$0xff]  ;;  %v4763_v22 = vpop.f32.mrf.mxu0 }
 0x149   : > { %1833 = vst.msk [vmem:[#allocation2 + $0x330] sm:$0xff] %vm224_vm0, %v1704_v63  ;;  %1767 = vst.msk [vmem:[#allocation2 + $0x120] sm:$0xff] %vm224_vm0, %v1638_v45  ;;  %v2274_v26 = vmul.f32 0.2, %v2018_v10  ;;  %vm2210_vm7 = vcmp.gt.f32.partialorder %v2082_v8, 0.0  ;;  %v3530_v53 = vpack.c.bf16 %v2465_v25, %v2465_v25  ;;  %v2404_v43 = vsel %vm2148_vm4, %v2020_v51, %v2276_v31  ;;  %v1889_v29 = vld [vmem:[#allocation2 + $0xd8] sm:$0xff]  ;;  %v4768_v63 = vpop.f32.mrf.mxu1 }
 0x14a   : > { %1831 = vst.msk [vmem:[#allocation2 + $0x320] sm:$0xff] %vm224_vm0, %v1702_v46  ;;  %1770 = vst.msk [vmem:[#allocation2 + $0x138] sm:$0xff] %vm224_vm0, %v1641_v3  ;;  %v2468_v36 = vsel %vm2212_vm5, %v2084_v61, %v2340_v24  ;;  %v2338_v35 = vmul.f32 0.2, %v2082_v8  ;;  %v3469_v60 = vpack.c.bf16 %v2404_v43, %v2404_v43  ;;  %v2087_v39 = vadd.f32 %v4693_v49, %v1952_v27  ;;  %v1953_v44 = vld [vmem:[#allocation2 + $0x2d8] sm:$0xff]  ;;  %v1887_v55 = vld [vmem:[#allocation2 + $0xc8] sm:$0xff] }
 0x14b   : > { %3108 = vst.msk [vmem:[%s4357_s17 + $0x158] sm:$0xf] %vm3021_vm1, %v3532_v16  ;;  %3042 = vst.msk [vmem:[%s4357_s17 + $0x50] sm:$0xf] %vm3021_vm1, %v3466_v13  ;;  %v3533_v1 = vpack.c.bf16 %v2468_v36, %v2468_v36  ;;  %v2402_v14 = vsel %vm2146_vm6, %v2018_v10, %v2274_v26  ;;  %v2021_v28 = vadd.f32 %v4693_v49, %v1886_v32  ;;  %vm2151_vm8 = vcmp.gt.f32.partialorder %v2023_v15, 0.0  ;;  %v1951_v58 = vld [vmem:[#allocation2 + $0x2c8] sm:$0xff]  ;;  %v4773_v13 = vpop.f32.mrf.mxu0  ;;  %v4783_v25 = vpop.f32.mrf.mxu1 }
 0x14c   : > { %3106 = vst.msk [vmem:[%s4357_s17 + $0x150] sm:$0xf] %vm3021_vm1, %v3530_v53  ;;  %v3467_v38 = vpack.c.bf16 %v2402_v14, %v2402_v14  ;;  %v2466_v41 = vsel %vm2210_vm7, %v2082_v8, %v2338_v35  ;;  %3045 = vst.msk [vmem:[%s4357_s17 + $0x5c] sm:$0xf] %vm3021_vm1, %v3469_v60  ;;  %v2279_v40 = vmul.f32 0.2, %v2023_v15  ;;  %v2085_v50 = vadd.f32 %v4693_v49, %v1950_v37 }
 0x14d   : > { %3109 = vst.msk [vmem:[%s4357_s17 + $0x15c] sm:$0xf] %vm3021_vm1, %v3533_v1  ;;  %v3531_v18 = vpack.c.bf16 %v2466_v41, %v2466_v41  ;;  %vm2215_vm9 = vcmp.gt.f32.partialorder %v2087_v39, 0.0  ;;  %v2343_v54 = vmul.f32 0.2, %v2087_v39  ;;  %vm2149_vm10 = vcmp.gt.f32.partialorder %v2021_v28, 0.0  ;;  %v4790_v1 = vpop.f32.mrf.mxu0  ;;  %v4796_v41 = vpop.f32.mrf.mxu1 }
 0x14e   : > { %3043 = vst.msk [vmem:[%s4357_s17 + $0x54] sm:$0xf] %vm3021_vm1, %v3467_v38  ;;  %v2277_v59 = vmul.f32 0.2, %v2021_v28  ;;  %v2407_v23 = vsel %vm2151_vm8, %v2023_v15, %v2279_v40  ;;  %vm2213_vm11 = vcmp.gt.f32.partialorder %v2085_v50, 0.0  ;;  %v2024_v57 = vadd.f32 %v4693_v49, %v1889_v29  ;;  %v1892_v51 = vld [vmem:[#allocation2 + $0xf0] sm:$0xff] }
 0x14f   : > { %3107 = vst.msk [vmem:[%s4357_s17 + $0x154] sm:$0xf] %vm3021_vm1, %v3531_v18  ;;  %v2341_v56 = vmul.f32 0.2, %v2085_v50  ;;  %v3472_v45 = vpack.c.bf16 %v2407_v23, %v2407_v23  ;;  %v2471_v46 = vsel %vm2215_vm9, %v2087_v39, %v2343_v54  ;;  %v2088_v2 = vadd.f32 %v4693_v49, %v1953_v44  ;;  %v1956_v61 = vld [vmem:[#allocation2 + $0x2f0] sm:$0xff]  ;;  %v1890_v6 = vld [vmem:[#allocation2 + $0xe0] sm:$0xff] }
 0x150   : > { %v2405_v52 = vsel %vm2149_vm10, %v2021_v28, %v2277_v59  ;;  %v3536_v62 = vpack.c.bf16 %v2471_v46, %v2471_v46  ;;  %vm2152_vm12 = vcmp.gt.f32.partialorder %v2024_v57, 0.0  ;;  %v1954_v9 = vld [vmem:[#allocation2 + $0x2e0] sm:$0xff]  ;;  %v2280_v8 = vmul.f32 0.2, %v2024_v57  ;;  %v1893_v38 = vld [vmem:[#allocation2 + $0xf8] sm:$0xff]  ;;  %v1955_v44 = vld [vmem:[#allocation2 + $0x2e8] sm:$0xff] }
 0x151   : > { %v3470_v7 = vpack.c.bf16 %v2405_v52, %v2405_v52  ;;  %v2469_v3 = vsel %vm2213_vm11, %v2085_v50, %v2341_v56  ;;  %3048 = vst.msk [vmem:[%s4357_s17 + $0x68] sm:$0xf] %vm3021_vm1, %v3472_v45  ;;  %vm2216_vm13 = vcmp.gt.f32.partialorder %v2088_v2, 0.0  ;;  %v2344_v16 = vmul.f32 0.2, %v2088_v2  ;;  %v1957_v40 = vld [vmem:[#allocation2 + $0x2f8] sm:$0xff]  ;;  %v4802_v52 = vpop.f32.mrf.mxu0 }
 0x152   : > { %v3534_v10 = vpack.c.bf16 %v2469_v3, %v2469_v3  ;;  %3112 = vst.msk [vmem:[%s4357_s17 + $0x168] sm:$0xf] %vm3021_vm1, %v3536_v62  ;;  %v2022_v20 = vadd.f32 %v4693_v49, %v1887_v55  ;;  %v2086_v21 = vadd.f32 %v4693_v49, %v1951_v58  ;;  %v2027_v31 = vadd.f32 %v4693_v49, %v1892_v51  ;;  %v1891_v50 = vld [vmem:[#allocation2 + $0xe8] sm:$0xff]  ;;  %v1896_v56 = vld [vmem:[#allocation2 + $0x110] sm:$0xff]  ;;  %v4811_v62 = vpop.f32.mrf.mxu1 }
 0x153   : > { %3046 = vst.msk [vmem:[%s4357_s17 + $0x60] sm:$0xf] %vm3021_vm1, %v3470_v7  ;;  %v2091_v24 = vadd.f32 %v4693_v49, %v1956_v61  ;;  %v2408_v26 = vsel %vm2152_vm12, %v2024_v57, %v2280_v8  ;;  %v2472_v27 = vsel %vm2216_vm13, %v2088_v2, %v2344_v16  ;;  %v2025_v32 = vadd.f32 %v4693_v49, %v1890_v6  ;;  %v1960_v8 = vld [vmem:[#allocation2 + $0x310] sm:$0xff] }
 0x154   : > { %3110 = vst.msk [vmem:[%s4357_s17 + $0x160] sm:$0xf] %vm3021_vm1, %v3534_v10  ;;  %v2089_v53 = vadd.f32 %v4693_v49, %v1954_v9  ;;  %v3473_v43 = vpack.c.bf16 %v2408_v26, %v2408_v26  ;;  %v3537_v36 = vpack.c.bf16 %v2472_v27, %v2472_v27  ;;  %vm2150_vm14 = vcmp.gt.f32.partialorder %v2022_v20, 0.0 }
 0x155   : > { %v2278_v35 = vmul.f32 0.2, %v2022_v20  ;;  %vm2214_vm15 = vcmp.gt.f32.partialorder %v2086_v21, 0.0  ;;  %v2342_v37 = vmul.f32 0.2, %v2086_v21  ;;  %vm2155_vm2 = vcmp.gt.f32.partialorder %v2027_v31, 0.0 }
 0x156   : > { %v2283_v60 = vmul.f32 0.2, %v2027_v31  ;;  %3049 = vst.msk [vmem:[%s4357_s17 + $0x6c] sm:$0xf] %vm3021_vm1, %v3473_v43  ;;  %3113 = vst.msk [vmem:[%s4357_s17 + $0x16c] sm:$0xf] %vm3021_vm1, %v3537_v36  ;;  %v2028_v46 = vadd.f32 %v4693_v49, %v1893_v38  ;;  %v2092_v58 = vadd.f32 %v4693_v49, %v1957_v40  ;;  %v2026_v51 = vadd.f32 %v4693_v49, %v1891_v50  ;;  %v4823_v43 = vpop.f32.mrf.mxu1 }
 0x157   : > { %v2406_v14 = vsel %vm2150_vm14, %v2022_v20, %v2278_v35  ;;  %vm2219_vm3 = vcmp.gt.f32.partialorder %v2091_v24, 0.0  ;;  %v2347_v15 = vmul.f32 0.2, %v2091_v24  ;;  %vm2153_vm4 = vcmp.gt.f32.partialorder %v2025_v32, 0.0 }
 0x158   : > { %v3471_v39 = vpack.c.bf16 %v2406_v14, %v2406_v14  ;;  %v2470_v28 = vsel %vm2214_vm15, %v2086_v21, %v2342_v37  ;;  %v2411_v29 = vsel %vm2155_vm2, %v2027_v31, %v2283_v60  ;;  %v2281_v18 = vmul.f32 0.2, %v2025_v32  ;;  %v1894_v31 = vld [vmem:[#allocation2 + $0x100] sm:$0xff]  ;;  %v1897_v14 = vld [vmem:[#allocation2 + $0x118] sm:$0xff] }
 0x159   : > { %v3535_v54 = vpack.c.bf16 %v2470_v28, %v2470_v28  ;;  %v3476_v59 = vpack.c.bf16 %v2411_v29, %v2411_v29  ;;  %v2475_v23 = vsel %vm2219_vm3, %v2091_v24, %v2347_v15  ;;  %vm2217_vm5 = vcmp.gt.f32.partialorder %v2089_v53, 0.0  ;;  %v4819_v24 = vpop.f32.mrf.mxu0  ;;  %v1961_v15 = vld [vmem:[#allocation2 + $0x318] sm:$0xff] }
 0x15a   : > { %3047 = vst.msk [vmem:[%s4357_s17 + $0x64] sm:$0xf] %vm3021_vm1, %v3471_v39  ;;  %v3540_v57 = vpack.c.bf16 %v2475_v23, %v2475_v23  ;;  %v2409_v55 = vsel %vm2153_vm4, %v2025_v32, %v2281_v18  ;;  %v2345_v45 = vmul.f32 0.2, %v2089_v53  ;;  %v2090_v61 = vadd.f32 %v4693_v49, %v1955_v44  ;;  %v1895_v18 = vld [vmem:[#allocation2 + $0x108] sm:$0xff] }
 0x15b   : > { %3111 = vst.msk [vmem:[%s4357_s17 + $0x164] sm:$0xf] %vm3021_vm1, %v3535_v54  ;;  %3052 = vst.msk [vmem:[%s4357_s17 + $0x78] sm:$0xf] %vm3021_vm1, %v3476_v59  ;;  %v3474_v2 = vpack.c.bf16 %v2409_v55, %v2409_v55  ;;  %vm2156_vm6 = vcmp.gt.f32.partialorder %v2028_v46, 0.0  ;;  %v2031_v6 = vadd.f32 %v4693_v49, %v1896_v56  ;;  %vm2220_vm7 = vcmp.gt.f32.partialorder %v2092_v58, 0.0  ;;  %v4833_v54 = vpop.f32.mrf.mxu0 }
 0x15c   : > { %3116 = vst.msk [vmem:[%s4357_s17 + $0x178] sm:$0xf] %vm3021_vm1, %v3540_v57  ;;  %v2473_v7 = vsel %vm2217_vm5, %v2089_v53, %v2345_v45  ;;  %v2284_v3 = vmul.f32 0.2, %v2028_v46  ;;  %v2348_v10 = vmul.f32 0.2, %v2092_v58  ;;  %v2095_v60 = vadd.f32 %v4693_v49, %v1960_v8  ;;  %v4841_v57 = vpop.f32.mrf.mxu1 }
 0x15d   : > { %3050 = vst.msk [vmem:[%s4357_s17 + $0x70] sm:$0xf] %vm3021_vm1, %v3474_v2  ;;  %v3538_v9 = vpack.c.bf16 %v2473_v7, %v2473_v7  ;;  %vm2154_vm8 = vcmp.gt.f32.partialorder %v2026_v51, 0.0  ;;  %v2282_v20 = vmul.f32 0.2, %v2026_v51  ;;  %vm2218_vm9 = vcmp.gt.f32.partialorder %v2090_v61, 0.0 }
 0x15e   : > { %v2412_v16 = vsel %vm2156_vm6, %v2028_v46, %v2284_v3  ;;  %v2346_v21 = vmul.f32 0.2, %v2090_v61  ;;  %v2476_v27 = vsel %vm2220_vm7, %v2092_v58, %v2348_v10  ;;  %vm2159_vm10 = vcmp.gt.f32.partialorder %v2031_v6, 0.0  ;;  %v1958_v53 = vld [vmem:[#allocation2 + $0x300] sm:$0xff]  ;;  %v1900_v7 = vld [vmem:[#allocation2 + $0x130] sm:$0xff] }
 0x15f   : > { %3114 = vst.msk [vmem:[%s4357_s17 + $0x170] sm:$0xf] %vm3021_vm1, %v3538_v9  ;;  %v3477_v26 = vpack.c.bf16 %v2412_v16, %v2412_v16  ;;  %v2287_v32 = vmul.f32 0.2, %v2031_v6  ;;  %v3541_v36 = vpack.c.bf16 %v2476_v27, %v2476_v27  ;;  %v2410_v35 = vsel %vm2154_vm8, %v2026_v51, %v2282_v20  ;;  %v1964_v10 = vld [vmem:[#allocation2 + $0x330] sm:$0xff]  ;;  %v1898_v8 = vld [vmem:[#allocation2 + $0x120] sm:$0xff]  ;;  %v4846_v16 = vpop.f32.mrf.mxu0 }
 0x160   : > { %v2474_v37 = vsel %vm2218_vm9, %v2090_v61, %v2346_v21  ;;  %v3475_v38 = vpack.c.bf16 %v2410_v35, %v2410_v35  ;;  %v2029_v29 = vadd.f32 %v4693_v49, %v1894_v31  ;;  %vm2223_vm11 = vcmp.gt.f32.partialorder %v2095_v60, 0.0  ;;  %v1959_v61 = vld [vmem:[#allocation2 + $0x308] sm:$0xff] }
 0x161   : > { %3053 = vst.msk [vmem:[%s4357_s17 + $0x7c] sm:$0xf] %vm3021_vm1, %v3477_v26  ;;  %v3539_v39 = vpack.c.bf16 %v2474_v37, %v2474_v37  ;;  %v2415_v28 = vsel %vm2159_vm10, %v2031_v6, %v2287_v32  ;;  %3117 = vst.msk [vmem:[%s4357_s17 + $0x17c] sm:$0xf] %vm3021_vm1, %v3541_v36  ;;  %v2351_v50 = vmul.f32 0.2, %v2095_v60  ;;  %v2093_v44 = vadd.f32 %v4693_v49, %v1958_v53  ;;  %v4850_v26 = vpop.f32.mrf.mxu1 }
 0x162   : > { %v3480_v40 = vpack.c.bf16 %v2415_v28, %v2415_v28  ;;  %3051 = vst.msk [vmem:[%s4357_s17 + $0x74] sm:$0xf] %vm3021_vm1, %v3475_v38  ;;  %vm2157_vm12 = vcmp.gt.f32.partialorder %v2029_v29, 0.0  ;;  %v2285_v59 = vmul.f32 0.2, %v2029_v29  ;;  %v2032_v23 = vadd.f32 %v4693_v49, %v1897_v14  ;;  %v1901_v38 = vld [vmem:[#allocation2 + $0x138] sm:$0xff] }
 0x163   : > { %3115 = vst.msk [vmem:[%s4357_s17 + $0x174] sm:$0xf] %vm3021_vm1, %v3539_v39  ;;  %v2096_v56 = vadd.f32 %v4693_v49, %v1961_v15  ;;  %v2479_v55 = vsel %vm2223_vm11, %v2095_v60, %v2351_v50  ;;  %vm2221_vm13 = vcmp.gt.f32.partialorder %v2093_v44, 0.0  ;;  %v2349_v45 = vmul.f32 0.2, %v2093_v44  ;;  %v1962_v15 = vld [vmem:[#allocation2 + $0x320] sm:$0xff] }
 0x164   : > { %3056 = vst.msk [vmem:[%s4357_s17 + $0x88] sm:$0xf] %vm3021_vm1, %v3480_v40  ;;  %v2030_v46 = vadd.f32 %v4693_v49, %v1895_v18  ;;  %v3544_v2 = vpack.c.bf16 %v2479_v55, %v2479_v55  ;;  %v2413_v58 = vsel %vm2157_vm12, %v2029_v29, %v2285_v59  ;;  %vm2160_vm14 = vcmp.gt.f32.partialorder %v2032_v23, 0.0  ;;  %v584_v29 = vld [vmem:[#allocation2 + $0x338] sm:$0xff]  ;;  %v4862_v18 = vpop.f32.mrf.mxu0  ;;  %v582_v59 = vld [vmem:[#allocation2 + $0x328] sm:$0xff] }
 0x165   : > { %v2288_v51 = vmul.f32 0.2, %v2032_v23  ;;  %v3478_v3 = vpack.c.bf16 %v2413_v58, %v2413_v58  ;;  %v2477_v6 = vsel %vm2221_vm13, %v2093_v44, %v2349_v45  ;;  %vm2224_vm15 = vcmp.gt.f32.partialorder %v2096_v56, 0.0  ;;  %v518_v44 = vld [vmem:[#allocation2 + $0x128] sm:$0xff]  ;;  %v587_v58 = vld [vmem:[#allocation2 + $0x350] sm:$0xff] }
 0x166   : > { %v2352_v9 = vmul.f32 0.2, %v2096_v56  ;;  %3120 = vst.msk [vmem:[%s4357_s17 + $0x188] sm:$0xf] %vm3021_vm1, %v3544_v2  ;;  %v3542_v20 = vpack.c.bf16 %v2477_v6, %v2477_v6  ;;  %vm2158_vm2 = vcmp.gt.f32.partialorder %v2030_v46, 0.0  ;;  %v2094_v53 = vadd.f32 %v4693_v49, %v1959_v61  ;;  %v523_v2 = vld [vmem:[#allocation2 + $0x150] sm:$0xff] }
 0x167   : > { %v2416_v21 = vsel %vm2160_vm14, %v2032_v23, %v2288_v51  ;;  %v2286_v31 = vmul.f32 0.2, %v2030_v46  ;;  %3054 = vst.msk [vmem:[%s4357_s17 + $0x80] sm:$0xf] %vm3021_vm1, %v3478_v3  ;;  %v2035_v36 = vadd.f32 %v4693_v49, %v1900_v7  ;;  %v2099_v60 = vadd.f32 %v4693_v49, %v1964_v10  ;;  %v4866_v23 = vpop.f32.mrf.mxu1  ;;  %v521_v51 = vld [vmem:[#allocation2 + $0x140] sm:$0xff]  ;;  %v524_v10 = vld [vmem:[#allocation2 + $0x158] sm:$0xff] }
 0x168   : > { %v3481_v27 = vpack.c.bf16 %v2416_v21, %v2416_v21  ;;  %v2480_v32 = vsel %vm2224_vm15, %v2096_v56, %v2352_v9  ;;  %3118 = vst.msk [vmem:[%s4357_s17 + $0x180] sm:$0xf] %vm3021_vm1, %v3542_v20  ;;  %v2033_v14 = vadd.f32 %v4693_v49, %v1898_v8  ;;  %vm2222_vm3 = vcmp.gt.f32.partialorder %v2094_v53, 0.0  ;;  %v585_v9 = vld [vmem:[#allocation2 + $0x340] sm:$0xff]  ;;  %v588_v8 = vld [vmem:[#allocation2 + $0x358] sm:$0xff] }
 0x169   : > { %v3545_v35 = vpack.c.bf16 %v2480_v32, %v2480_v32  ;;  %v2414_v37 = vsel %vm2158_vm2, %v2030_v46, %v2286_v31  ;;  %v2350_v28 = vmul.f32 0.2, %v2094_v53  ;;  %vm2163_vm4 = vcmp.gt.f32.partialorder %v2035_v36, 0.0  ;;  %v586_v32 = vld [vmem:[#allocation2 + $0x348] sm:$0xff] }
 0x16a   : > { %3057 = vst.msk [vmem:[%s4357_s17 + $0x8c] sm:$0xf] %vm3021_vm1, %v3481_v27  ;;  %v3479_v39 = vpack.c.bf16 %v2414_v37, %v2414_v37  ;;  %v2291_v40 = vmul.f32 0.2, %v2035_v36  ;;  %vm2227_vm5 = vcmp.gt.f32.partialorder %v2099_v60, 0.0  ;;  %vm2161_vm6 = vcmp.gt.f32.partialorder %v2033_v14, 0.0  ;;  %v4876_v37 = vpop.f32.mrf.mxu0 }
 0x16b   : > { %3121 = vst.msk [vmem:[%s4357_s17 + $0x18c] sm:$0xf] %vm3021_vm1, %v3545_v35  ;;  %v2355_v50 = vmul.f32 0.2, %v2099_v60  ;;  %v2478_v56 = vsel %vm2222_vm3, %v2094_v53, %v2350_v28  ;;  %v2289_v55 = vmul.f32 0.2, %v2033_v14  ;;  %v2097_v45 = vadd.f32 %v4693_v49, %v1962_v15 }
 0x16c   : > { %3055 = vst.msk [vmem:[%s4357_s17 + $0x84] sm:$0xf] %vm3021_vm1, %v3479_v39  ;;  %v2036_v46 = vadd.f32 %v4693_v49, %v1901_v38  ;;  %v3543_v61 = vpack.c.bf16 %v2478_v56, %v2478_v56  ;;  %v2419_v7 = vsel %vm2163_vm4, %v2035_v36, %v2291_v40  ;;  %v1705_v6 = vadd.f32 %v4668_v11, %v584_v29  ;;  %v522_v27 = vld [vmem:[#allocation2 + $0x148] sm:$0xff]  ;;  %v527_v53 = vld [vmem:[#allocation2 + $0x170] sm:$0xff]  ;;  %v525_v15 = vld [vmem:[#allocation2 + $0x160] sm:$0xff]  ;;  %v4881_v38 = vpop.f32.mrf.mxu1 }
 0x16d   : > { %v2483_v3 = vsel %vm2227_vm5, %v2099_v60, %v2355_v50  ;;  %v3484_v20 = vpack.c.bf16 %v2419_v7, %v2419_v7  ;;  %v2417_v31 = vsel %vm2161_vm6, %v2033_v14, %v2289_v55  ;;  %vm2225_vm7 = vcmp.gt.f32.partialorder %v2097_v45, 0.0  ;;  %v591_v35 = vld [vmem:[#allocation2 + $0x370] sm:$0xff]  ;;  %v589_v40 = vld [vmem:[#allocation2 + $0x360] sm:$0xff]  ;;  %v528_v50 = vld [vmem:[#allocation2 + $0x178] sm:$0xff] }
 0x16e   : > { %v3548_v21 = vpack.c.bf16 %v2483_v3, %v2483_v3  ;;  %3119 = vst.msk [vmem:[%s4357_s17 + $0x184] sm:$0xf] %vm3021_vm1, %v3543_v61  ;;  %v3482_v36 = vpack.c.bf16 %v2417_v31, %v2417_v31  ;;  %v2353_v11 = vmul.f32 0.2, %v2097_v45  ;;  %vm2164_vm8 = vcmp.gt.f32.partialorder %v2036_v46, 0.0  ;;  %v592_v56 = vld [vmem:[#allocation2 + $0x378] sm:$0xff] }
 0x16f   : > { %v2292_v60 = vmul.f32 0.2, %v2036_v46  ;;  %1834 = vst.msk [vmem:[#allocation2 + $0x338] sm:$0xff] %vm224_vm0, %v1705_v6  ;;  %v1639_v14 = vadd.f32 %v4686_v47, %v518_v44  ;;  %v1703_v39 = vadd.f32 %v4688_v48, %v582_v59  ;;  %v1644_v28 = vadd.f32 %v4711_v0, %v523_v2  ;;  %v526_v47 = vld [vmem:[#allocation2 + $0x168] sm:$0xff]  ;;  %v531_v48 = vld [vmem:[#allocation2 + $0x190] sm:$0xff]  ;;  %v3717_v2 = vpop.f32.mrf.mxu0 }
 0x170   : > { %3060 = vst.msk [vmem:[%s4357_s17 + $0x98] sm:$0xf] %vm3021_vm1, %v3484_v20  ;;  %3124 = vst.msk [vmem:[%s4357_s17 + $0x198] sm:$0xf] %vm3021_vm1, %v3548_v21  ;;  %v1708_v29 = vadd.f32 %v4713_v42, %v587_v58  ;;  %v2481_v55 = vsel %vm2225_vm7, %v2097_v45, %v2353_v11  ;;  %v1642_v7 = vadd.f32 %v4725_v4, %v521_v51  ;;  %v590_v44 = vld [vmem:[#allocation2 + $0x368] sm:$0xff]  ;;  %v529_v45 = vld [vmem:[#allocation2 + $0x180] sm:$0xff] }
 0x171   : > { %3058 = vst.msk [vmem:[%s4357_s17 + $0x90] sm:$0xf] %vm3021_vm1, %v3482_v36  ;;  %v2420_v61 = vsel %vm2164_vm8, %v2036_v46, %v2292_v60  ;;  %v1706_v3 = vadd.f32 %v4727_v5, %v585_v9  ;;  %v3546_v59 = vpack.c.bf16 %v2481_v55, %v2481_v55  ;;  %v1645_v42 = vadd.f32 %v4734_v17, %v524_v10  ;;  %v595_v5 = vld [vmem:[#allocation2 + $0x390] sm:$0xff]  ;;  %v593_v46 = vld [vmem:[#allocation2 + $0x380] sm:$0xff]  ;;  %v532_v9 = vld [vmem:[#allocation2 + $0x198] sm:$0xff]  ;;  %v1302_v60 = vpop.f32.mrf.mxu0 }
 0x172   : > { %v3485_v0 = vpack.c.bf16 %v2420_v61, %v2420_v61  ;;  %1768 = vst.msk [vmem:[#allocation2 + $0x128] sm:$0xff] %vm224_vm0, %v1639_v14  ;;  %1832 = vst.msk [vmem:[#allocation2 + $0x328] sm:$0xff] %vm224_vm0, %v1703_v39  ;;  %v1709_v4 = vadd.f32 %v4736_v30, %v588_v8  ;;  %v1643_v58 = vadd.f32 %v4742_v19, %v522_v27  ;;  %v596_v10 = vld [vmem:[#allocation2 + $0x398] sm:$0xff]  ;;  %v530_v30 = vld [vmem:[#allocation2 + $0x188] sm:$0xff]  ;;  %v3781_v8 = vpop.f32.mrf.mxu1 }
 0x173   : > { %1773 = vst.msk [vmem:[#allocation2 + $0x150] sm:$0xff] %vm224_vm0, %v1644_v28  ;;  %1837 = vst.msk [vmem:[#allocation2 + $0x350] sm:$0xff] %vm224_vm0, %v1708_v29  ;;  %v1707_v51 = vadd.f32 %v4744_v33, %v586_v32  ;;  %v1648_v6 = vadd.f32 %v4747_v12, %v527_v53  ;;  %v1712_v17 = vadd.f32 %v4749_v34, %v591_v35  ;;  %v594_v20 = vld [vmem:[#allocation2 + $0x388] sm:$0xff]  ;;  %v535_v21 = vld [vmem:[#allocation2 + $0x1b0] sm:$0xff] }
 0x174   : > { %1771 = vst.msk [vmem:[#allocation2 + $0x140] sm:$0xff] %vm224_vm0, %v1642_v7  ;;  %1835 = vst.msk [vmem:[#allocation2 + $0x340] sm:$0xff] %vm224_vm0, %v1706_v3  ;;  %v1646_v19 = vadd.f32 %v4763_v22, %v525_v15  ;;  %v1710_v33 = vadd.f32 %v4768_v63, %v589_v40  ;;  %v1649_v12 = vadd.f32 %v4773_v13, %v528_v50  ;;  %v599_v31 = vld [vmem:[#allocation2 + $0x3b0] sm:$0xff]  ;;  %v597_v32 = vld [vmem:[#allocation2 + $0x3a0] sm:$0xff]  ;;  %v1558_v14 = vpop.f32.mrf.mxu1 }
 0x175   : > { %3122 = vst.msk [vmem:[%s4357_s17 + $0x190] sm:$0xf] %vm3021_vm1, %v3546_v59  ;;  %3061 = vst.msk [vmem:[%s4357_s17 + $0x9c] sm:$0xf] %vm3021_vm1, %v3485_v0  ;;  %v1713_v34 = vadd.f32 %v4783_v25, %v592_v56  ;;  %v1647_v27 = vadd.f32 %v4790_v1, %v526_v47  ;;  %v1711_v22 = vadd.f32 %v4796_v41, %v590_v44  ;;  %v533_v25 = vld [vmem:[#allocation2 + $0x1a0] sm:$0xff]  ;;  %v536_v53 = vld [vmem:[#allocation2 + $0x1b8] sm:$0xff] }
 0x176   : > { %1774 = vst.msk [vmem:[#allocation2 + $0x158] sm:$0xff] %vm224_vm0, %v1645_v42  ;;  %1838 = vst.msk [vmem:[#allocation2 + $0x358] sm:$0xff] %vm224_vm0, %v1709_v4  ;;  %v1652_v63 = vadd.f32 %v4802_v52, %v531_v48  ;;  %v1716_v13 = vadd.f32 %v4811_v62, %v595_v5  ;;  %v1965_v35 = vld [vmem:[#allocation2 + $0x338] sm:$0xff]  ;;  %v1650_v1 = vadd.f32 %v4819_v24, %v529_v45  ;;  %v534_v11 = vld [vmem:[#allocation2 + $0x1a8] sm:$0xff] }
 0x177   : > { %1772 = vst.msk [vmem:[#allocation2 + $0x148] sm:$0xff] %vm224_vm0, %v1643_v58  ;;  %1836 = vst.msk [vmem:[#allocation2 + $0x348] sm:$0xff] %vm224_vm0, %v1707_v51  ;;  %v1714_v41 = vadd.f32 %v4823_v43, %v593_v46  ;;  %v1653_v52 = vadd.f32 %v4833_v54, %v532_v9  ;;  %v1717_v62 = vadd.f32 %v4841_v57, %v596_v10  ;;  %v600_v36 = vld [vmem:[#allocation2 + $0x3b8] sm:$0xff]  ;;  %v598_v57 = vld [vmem:[#allocation2 + $0x3a8] sm:$0xff] }
 0x178   : > { %1777 = vst.msk [vmem:[#allocation2 + $0x170] sm:$0xff] %vm224_vm0, %v1648_v6  ;;  %1841 = vst.msk [vmem:[#allocation2 + $0x370] sm:$0xff] %vm224_vm0, %v1712_v17  ;;  %v2100_v15 = vadd.f32 %v4693_v49, %v1965_v35  ;;  %v1651_v24 = vadd.f32 %v4846_v16, %v530_v30  ;;  %v1715_v43 = vadd.f32 %v4850_v26, %v594_v20 }
 0x179   : > { %1775 = vst.msk [vmem:[#allocation2 + $0x160] sm:$0xff] %vm224_vm0, %v1646_v19  ;;  %1839 = vst.msk [vmem:[#allocation2 + $0x360] sm:$0xff] %vm224_vm0, %v1710_v33  ;;  %v1656_v54 = vadd.f32 %v4862_v18, %v535_v21  ;;  %v1720_v39 = vadd.f32 %v4866_v23, %v599_v31  ;;  %v1654_v28 = vadd.f32 %v4876_v37, %v533_v25  ;;  %v1899_v18 = vld [vmem:[#allocation2 + $0x128] sm:$0xff] }
 0x17a   : > { %1778 = vst.msk [vmem:[#allocation2 + $0x178] sm:$0xff] %vm224_vm0, %v1649_v12  ;;  %1842 = vst.msk [vmem:[#allocation2 + $0x378] sm:$0xff] %vm224_vm0, %v1713_v34  ;;  %v1718_v16 = vadd.f32 %v4881_v38, %v597_v32  ;;  %v1657_v29 = vadd.f32 %v3717_v2, %v536_v53  ;;  %vm2228_vm9 = vcmp.gt.f32.partialorder %v2100_v15, 0.0  ;;  %v2356_v26 = vmul.f32 0.2, %v2100_v15  ;;  %v1963_v40 = vld [vmem:[#allocation2 + $0x328] sm:$0xff] }
 0x17b   : > { %1776 = vst.msk [vmem:[#allocation2 + $0x168] sm:$0xff] %vm224_vm0, %v1647_v27  ;;  %1840 = vst.msk [vmem:[#allocation2 + $0x368] sm:$0xff] %vm224_vm0, %v1711_v22  ;;  %v1904_v50 = vld [vmem:[#allocation2 + $0x150] sm:$0xff]  ;;  %v1721_v56 = vadd.f32 %v3781_v8, %v600_v36  ;;  %v1655_v55 = vadd.f32 %v1302_v60, %v534_v11  ;;  %v2034_v23 = vadd.f32 %v4693_v49, %v1899_v18  ;;  %v1902_v7 = vld [vmem:[#allocation2 + $0x140] sm:$0xff] }
 0x17c   : > { %1781 = vst.msk [vmem:[#allocation2 + $0x190] sm:$0xff] %vm224_vm0, %v1652_v63  ;;  %1845 = vst.msk [vmem:[#allocation2 + $0x390] sm:$0xff] %vm224_vm0, %v1716_v13  ;;  %v2098_v37 = vadd.f32 %v4693_v49, %v1963_v40  ;;  %v2039_v38 = vadd.f32 %v4693_v49, %v1904_v50  ;;  %v1968_v61 = vld [vmem:[#allocation2 + $0x350] sm:$0xff]  ;;  %v1966_v3 = vld [vmem:[#allocation2 + $0x340] sm:$0xff]  ;;  %v1719_v47 = vadd.f32 %v1558_v14, %v598_v57 }
 0x17d   : > { %1779 = vst.msk [vmem:[#allocation2 + $0x180] sm:$0xff] %vm224_vm0, %v1650_v1  ;;  %1843 = vst.msk [vmem:[#allocation2 + $0x380] sm:$0xff] %vm224_vm0, %v1714_v41  ;;  %v2484_v44 = vsel %vm2228_vm9, %v2100_v15, %v2356_v26  ;;  %v2103_v48 = vadd.f32 %v4693_v49, %v1968_v61  ;;  %v2037_v59 = vadd.f32 %v4693_v49, %v1902_v7  ;;  %vm2162_vm10 = vcmp.gt.f32.partialorder %v2034_v23, 0.0  ;;  %v1905_v5 = vld [vmem:[#allocation2 + $0x158] sm:$0xff]  ;;  %v4996_v7 = vpop.f32.mrf.mxu0 }
 0x17e   : > { %1782 = vst.msk [vmem:[#allocation2 + $0x198] sm:$0xff] %vm224_vm0, %v1653_v52  ;;  %1846 = vst.msk [vmem:[#allocation2 + $0x398] sm:$0xff] %vm224_vm0, %v1717_v62  ;;  %v2101_v0 = vadd.f32 %v4693_v49, %v1966_v3  ;;  %v3549_v42 = vpack.c.bf16 %v2484_v44, %v2484_v44  ;;  %v2290_v4 = vmul.f32 0.2, %v2034_v23  ;;  %vm2226_vm11 = vcmp.gt.f32.partialorder %v2098_v37, 0.0  ;;  %v1969_v6 = vld [vmem:[#allocation2 + $0x358] sm:$0xff] }
 0x17f   : > { %1780 = vst.msk [vmem:[#allocation2 + $0x188] sm:$0xff] %vm224_vm0, %v1651_v24  ;;  %1844 = vst.msk [vmem:[#allocation2 + $0x388] sm:$0xff] %vm224_vm0, %v1715_v43  ;;  %v2354_v45 = vmul.f32 0.2, %v2098_v37  ;;  %vm2167_vm12 = vcmp.gt.f32.partialorder %v2039_v38, 0.0  ;;  %vm2231_vm13 = vcmp.gt.f32.partialorder %v2103_v48, 0.0  ;;  %v2040_v63 = vadd.f32 %v4693_v49, %v1905_v5 }
 0x180   : > { %1785 = vst.msk [vmem:[#allocation2 + $0x1b0] sm:$0xff] %vm224_vm0, %v1656_v54  ;;  %1849 = vst.msk [vmem:[#allocation2 + $0x3b0] sm:$0xff] %vm224_vm0, %v1720_v39  ;;  %v2295_v46 = vmul.f32 0.2, %v2039_v38  ;;  %v2418_v2 = vsel %vm2162_vm10, %v2034_v23, %v2290_v4  ;;  %v2359_v58 = vmul.f32 0.2, %v2103_v48  ;;  %v2104_v13 = vadd.f32 %v4693_v49, %v1969_v6 }
 0x181   : > { %1783 = vst.msk [vmem:[#allocation2 + $0x1a0] sm:$0xff] %vm224_vm0, %v1654_v28  ;;  %1847 = vst.msk [vmem:[#allocation2 + $0x3a0] sm:$0xff] %vm224_vm0, %v1718_v16  ;;  %vm2165_vm14 = vcmp.gt.f32.partialorder %v2037_v59, 0.0  ;;  %v2293_v51 = vmul.f32 0.2, %v2037_v59  ;;  %v3483_v17 = vpack.c.bf16 %v2418_v2, %v2418_v2  ;;  %v2482_v9 = vsel %vm2226_vm11, %v2098_v37, %v2354_v45  ;;  %v1903_v30 = vld [vmem:[#allocation2 + $0x148] sm:$0xff] }
 0x182   : > { %1786 = vst.msk [vmem:[#allocation2 + $0x1b8] sm:$0xff] %vm224_vm0, %v1657_v29  ;;  %1850 = vst.msk [vmem:[#allocation2 + $0x3b8] sm:$0xff] %vm224_vm0, %v1721_v56  ;;  %v2423_v10 = vsel %vm2167_vm12, %v2039_v38, %v2295_v46  ;;  %vm2229_vm15 = vcmp.gt.f32.partialorder %v2101_v0, 0.0  ;;  %v1967_v8 = vld [vmem:[#allocation2 + $0x348] sm:$0xff]  ;;  %v1908_v19 = vld [vmem:[#allocation2 + $0x170] sm:$0xff]  ;;  %v3547_v33 = vpack.c.bf16 %v2482_v9, %v2482_v9  ;;  %v2487_v34 = vsel %vm2231_vm13, %v2103_v48, %v2359_v58 }
 0x183   : > { %1784 = vst.msk [vmem:[#allocation2 + $0x1a8] sm:$0xff] %vm224_vm0, %v1655_v55  ;;  %1848 = vst.msk [vmem:[#allocation2 + $0x3a8] sm:$0xff] %vm224_vm0, %v1719_v47  ;;  %v3488_v12 = vpack.c.bf16 %v2423_v10, %v2423_v10  ;;  %v2421_v20 = vsel %vm2165_vm14, %v2037_v59, %v2293_v51  ;;  %v1972_v21 = vld [vmem:[#allocation2 + $0x370] sm:$0xff]  ;;  %v3552_v31 = vpack.c.bf16 %v2487_v34, %v2487_v34  ;;  %v2357_v22 = vmul.f32 0.2, %v2101_v0  ;;  %v1906_v54 = vld [vmem:[#allocation2 + $0x160] sm:$0xff]  ;;  %v5006_v59 = vpop.f32.mrf.mxu1  ;;  %v5012_v51 = vpop.f32.mrf.mxu0 }
 0x184   : > { %3125 = vst.msk [vmem:[%s4357_s17 + $0x19c] sm:$0xf] %vm3021_vm1, %v3549_v42  ;;  %3059 = vst.msk [vmem:[%s4357_s17 + $0x94] sm:$0xf] %vm3021_vm1, %v3483_v17  ;;  %v3486_v27 = vpack.c.bf16 %v2421_v20, %v2421_v20  ;;  %v2038_v25 = vadd.f32 %v4693_v49, %v1903_v30  ;;  %v2102_v32 = vadd.f32 %v4693_v49, %v1967_v8  ;;  %vm2168_vm2 = vcmp.gt.f32.partialorder %v2040_v63, 0.0  ;;  %v1970_v57 = vld [vmem:[#allocation2 + $0x360] sm:$0xff] }
 0x185   : > { %3123 = vst.msk [vmem:[%s4357_s17 + $0x194] sm:$0xf] %vm3021_vm1, %v3547_v33  ;;  %3064 = vst.msk [vmem:[%s4357_s17 + $0xa8] sm:$0xf] %vm3021_vm1, %v3488_v12  ;;  %v2043_v53 = vadd.f32 %v4693_v49, %v1908_v19  ;;  %v2485_v35 = vsel %vm2229_vm15, %v2101_v0, %v2357_v22  ;;  %v2296_v1 = vmul.f32 0.2, %v2040_v63  ;;  %v2107_v41 = vadd.f32 %v4693_v49, %v1972_v21  ;;  %v5014_v19 = vpop.f32.mrf.mxu1 }
 0x186   : > { %3128 = vst.msk [vmem:[%s4357_s17 + $0x1a8] sm:$0xf] %vm3021_vm1, %v3552_v31  ;;  %3062 = vst.msk [vmem:[%s4357_s17 + $0xa0] sm:$0xf] %vm3021_vm1, %v3486_v27  ;;  %v3550_v52 = vpack.c.bf16 %v2485_v35, %v2485_v35  ;;  %vm2232_vm3 = vcmp.gt.f32.partialorder %v2104_v13, 0.0  ;;  %vm2166_vm4 = vcmp.gt.f32.partialorder %v2038_v25, 0.0  ;;  %v2041_v37 = vadd.f32 %v4693_v49, %v1906_v54 }
 0x187   : > { %v2360_v62 = vmul.f32 0.2, %v2104_v13  ;;  %v2424_v36 = vsel %vm2168_vm2, %v2040_v63, %v2296_v1  ;;  %v2294_v11 = vmul.f32 0.2, %v2038_v25  ;;  %vm2230_vm5 = vcmp.gt.f32.partialorder %v2102_v32, 0.0  ;;  %v1909_v14 = vld [vmem:[#allocation2 + $0x178] sm:$0xff]  ;;  %v5033_v1 = vpop.f32.mrf.mxu0 }
 0x188   : > { %v2358_v60 = vmul.f32 0.2, %v2102_v32  ;;  %3126 = vst.msk [vmem:[%s4357_s17 + $0x1a0] sm:$0xf] %vm3021_vm1, %v3550_v52  ;;  %v3489_v15 = vpack.c.bf16 %v2424_v36, %v2424_v36  ;;  %vm2171_vm6 = vcmp.gt.f32.partialorder %v2043_v53, 0.0  ;;  %vm2235_vm7 = vcmp.gt.f32.partialorder %v2107_v41, 0.0  ;;  %v5041_v36 = vpop.f32.mrf.mxu1 }
 0x189   : > { %v2488_v24 = vsel %vm2232_vm3, %v2104_v13, %v2360_v62  ;;  %v2299_v43 = vmul.f32 0.2, %v2043_v53  ;;  %v2422_v28 = vsel %vm2166_vm4, %v2038_v25, %v2294_v11  ;;  %v1973_v29 = vld [vmem:[#allocation2 + $0x378] sm:$0xff]  ;;  %v1907_v26 = vld [vmem:[#allocation2 + $0x168] sm:$0xff]  ;;  %v2363_v55 = vmul.f32 0.2, %v2107_v41 }
 0x18a   : > { %v3553_v39 = vpack.c.bf16 %v2488_v24, %v2488_v24  ;;  %v2486_v16 = vsel %vm2230_vm5, %v2102_v32, %v2358_v60  ;;  %v1971_v18 = vld [vmem:[#allocation2 + $0x368] sm:$0xff]  ;;  %3065 = vst.msk [vmem:[%s4357_s17 + $0xac] sm:$0xf] %vm3021_vm1, %v3489_v15  ;;  %v3487_v40 = vpack.c.bf16 %v2422_v28, %v2422_v28  ;;  %v2105_v38 = vadd.f32 %v4693_v49, %v1970_v57  ;;  %v1912_v4 = vld [vmem:[#allocation2 + $0x190] sm:$0xff]  ;;  %v1910_v10 = vld [vmem:[#allocation2 + $0x180] sm:$0xff] }
 0x18b   : > { %v3551_v50 = vpack.c.bf16 %v2486_v16, %v2486_v16  ;;  %v2427_v56 = vsel %vm2171_vm6, %v2043_v53, %v2299_v43  ;;  %v2044_v61 = vadd.f32 %v4693_v49, %v1909_v14  ;;  %v2491_v3 = vsel %vm2235_vm7, %v2107_v41, %v2363_v55  ;;  %v1974_v30 = vld [vmem:[#allocation2 + $0x380] sm:$0xff]  ;;  %v1913_v8 = vld [vmem:[#allocation2 + $0x198] sm:$0xff]  ;;  %v1975_v28 = vld [vmem:[#allocation2 + $0x388] sm:$0xff] }
 0x18c   : > { %3129 = vst.msk [vmem:[%s4357_s17 + $0x1ac] sm:$0xf] %vm3021_vm1, %v3553_v39  ;;  %v3492_v23 = vpack.c.bf16 %v2427_v56, %v2427_v56  ;;  %3063 = vst.msk [vmem:[%s4357_s17 + $0xa4] sm:$0xf] %vm3021_vm1, %v3487_v40  ;;  %v2108_v47 = vadd.f32 %v4693_v49, %v1973_v29  ;;  %v2042_v44 = vadd.f32 %v4693_v49, %v1907_v26  ;;  %vm2169_vm8 = vcmp.gt.f32.partialorder %v2041_v37, 0.0  ;;  %v1977_v21 = vld [vmem:[#allocation2 + $0x398] sm:$0xff]  ;;  %v5045_v29 = vpop.f32.mrf.mxu0 }
 0x18d   : > { %3127 = vst.msk [vmem:[%s4357_s17 + $0x1a4] sm:$0xf] %vm3021_vm1, %v3551_v50  ;;  %v2106_v48 = vadd.f32 %v4693_v49, %v1971_v18  ;;  %v3556_v0 = vpack.c.bf16 %v2491_v3, %v2491_v3  ;;  %v2297_v42 = vmul.f32 0.2, %v2041_v37  ;;  %vm2233_vm9 = vcmp.gt.f32.partialorder %v2105_v38, 0.0  ;;  %v1976_v49 = vld [vmem:[#allocation2 + $0x390] sm:$0xff] }
 0x18e   : > { %3068 = vst.msk [vmem:[%s4357_s17 + $0xb8] sm:$0xf] %vm3021_vm1, %v3492_v23  ;;  %v2361_v5 = vmul.f32 0.2, %v2105_v38  ;;  %vm2172_vm10 = vcmp.gt.f32.partialorder %v2044_v61, 0.0  ;;  %vm2236_vm11 = vcmp.gt.f32.partialorder %v2108_v47, 0.0  ;;  %v5047_v23 = vpop.f32.mrf.mxu1 }
 0x18f   : > { %v2300_v45 = vmul.f32 0.2, %v2044_v61  ;;  %3132 = vst.msk [vmem:[%s4357_s17 + $0x1b8] sm:$0xf] %vm3021_vm1, %v3556_v0  ;;  %v2425_v46 = vsel %vm2169_vm8, %v2041_v37, %v2297_v42  ;;  %v2364_v2 = vmul.f32 0.2, %v2108_v47 }
 0x190   : > { %vm2170_vm12 = vcmp.gt.f32.partialorder %v2042_v44, 0.0  ;;  %v2298_v58 = vmul.f32 0.2, %v2042_v44  ;;  %v3490_v6 = vpack.c.bf16 %v2425_v46, %v2425_v46  ;;  %v2489_v17 = vsel %vm2233_vm9, %v2105_v38, %v2361_v5  ;;  %v5022_v63 = vld [vmem:[%s5191_s2] ss:$0 sm:$0xff]  ;;  %v1911_v39 = vld [vmem:[#allocation2 + $0x188] sm:$0xff]  ;;  %v5065_v46 = vpop.f32.mrf.mxu0 }
 0x191   : > { %v2428_v9 = vsel %vm2172_vm10, %v2044_v61, %v2300_v45  ;;  %vm2234_vm13 = vcmp.gt.f32.partialorder %v2106_v48, 0.0  ;;  %v3554_v33 = vpack.c.bf16 %v2489_v17, %v2489_v17  ;;  %v2492_v34 = vsel %vm2236_vm11, %v2108_v47, %v2364_v2  ;;  %v1916_v16 = vld [vmem:[#allocation2 + $0x1b0] sm:$0xff]  ;;  %v1914_v56 = vld [vmem:[#allocation2 + $0x1a0] sm:$0xff] }
 0x192   : > { %v3493_v12 = vpack.c.bf16 %v2428_v9, %v2428_v9  ;;  %v2426_v20 = vsel %vm2170_vm12, %v2042_v44, %v2298_v58  ;;  %3066 = vst.msk [vmem:[%s4357_s17 + $0xb0] sm:$0xf] %vm3021_vm1, %v3490_v6  ;;  %v3557_v31 = vpack.c.bf16 %v2492_v34, %v2492_v34  ;;  %v2362_v22 = vmul.f32 0.2, %v2106_v48  ;;  %v1980_v50 = vld [vmem:[#allocation2 + $0x3b0] sm:$0xff]  ;;  %v1978_v55 = vld [vmem:[#allocation2 + $0x3a0] sm:$0xff] }
 0x193   : > { %v3491_v27 = vpack.c.bf16 %v2426_v20, %v2426_v20  ;;  %v2047_v13 = vadd.f32 %v5022_v63, %v1912_v4  ;;  %3130 = vst.msk [vmem:[%s4357_s17 + $0x1b0] sm:$0xf] %vm3021_vm1, %v3554_v33  ;;  %v2111_v25 = vadd.f32 %v5022_v63, %v1976_v49  ;;  %v2045_v32 = vadd.f32 %v5022_v63, %v1910_v10  ;;  %v5069_v49 = vpop.f32.mrf.mxu1  ;;  %v539_v9 = vld [vmem:[#allocation2 + $0x1d0] sm:$0xff]  ;;  %v1917_v33 = vld [vmem:[#allocation2 + $0x1b8] sm:$0xff] }
 0x194   : > { %3069 = vst.msk [vmem:[%s4357_s17 + $0xbc] sm:$0xf] %vm3021_vm1, %v3493_v12  ;;  %v2109_v53 = vadd.f32 %v5022_v63, %v1974_v30  ;;  %v2048_v35 = vadd.f32 %v5022_v63, %v1913_v8  ;;  %3133 = vst.msk [vmem:[%s4357_s17 + $0x1bc] sm:$0xf] %vm3021_vm1, %v3557_v31  ;;  %v2490_v41 = vsel %vm2234_vm13, %v2106_v48, %v2362_v22  ;;  %v1915_v31 = vld [vmem:[#allocation2 + $0x1a8] sm:$0xff]  ;;  %v5073_v22 = vpop.f32.mrf.mxu0 }
 0x195   : > { %3067 = vst.msk [vmem:[%s4357_s17 + $0xb4] sm:$0xf] %vm3021_vm1, %v3491_v27  ;;  %vm2175_vm14 = vcmp.gt.f32.partialorder %v2047_v13, 0.0  ;;  %v2303_v52 = vmul.f32 0.2, %v2047_v13  ;;  %v2112_v62 = vadd.f32 %v5022_v63, %v1977_v21  ;;  %v3555_v11 = vpack.c.bf16 %v2490_v41, %v2490_v41  ;;  %v1981_v21 = vld [vmem:[#allocation2 + $0x3b8] sm:$0xff]  ;;  %v5076_v41 = vpop.f32.mrf.mxu1 }
 0x196   : > { %vm2239_vm15 = vcmp.gt.f32.partialorder %v2111_v25, 0.0  ;;  %v2367_v60 = vmul.f32 0.2, %v2111_v25  ;;  %vm2173_vm2 = vcmp.gt.f32.partialorder %v2045_v32, 0.0  ;;  %v2301_v24 = vmul.f32 0.2, %v2045_v32 }
 0x197   : > { %v2431_v15 = vsel %vm2175_vm14, %v2047_v13, %v2303_v52  ;;  %vm2237_vm3 = vcmp.gt.f32.partialorder %v2109_v53, 0.0  ;;  %v2365_v43 = vmul.f32 0.2, %v2109_v53  ;;  %3131 = vst.msk [vmem:[%s4357_s17 + $0x1b4] sm:$0xf] %vm3021_vm1, %v3555_v11  ;;  %vm2176_vm4 = vcmp.gt.f32.partialorder %v2048_v35, 0.0 }
 0x198   : > { %v3496_v54 = vpack.c.bf16 %v2431_v15, %v2431_v15  ;;  %v2495_v57 = vsel %vm2239_vm15, %v2111_v25, %v2367_v60  ;;  %v2304_v14 = vmul.f32 0.2, %v2048_v35  ;;  %v2429_v18 = vsel %vm2173_vm2, %v2045_v32, %v2301_v24  ;;  %v1979_v27 = vld [vmem:[#allocation2 + $0x3a8] sm:$0xff] }
 0x199   : > { %v3560_v26 = vpack.c.bf16 %v2495_v57, %v2495_v57  ;;  %v2493_v40 = vsel %vm2237_vm3, %v2109_v53, %v2365_v43  ;;  %vm2240_vm5 = vcmp.gt.f32.partialorder %v2112_v62, 0.0  ;;  %v3494_v37 = vpack.c.bf16 %v2429_v18, %v2429_v18  ;;  %v537_v57 = vld [vmem:[#allocation2 + $0x1c0] sm:$0xff]  ;;  %v604_v18 = vld [vmem:[#allocation2 + $0x3d8] sm:$0xff] }
 0x19a   : > { %3072 = vst.msk [vmem:[%s4357_s17 + $0xc8] sm:$0xf] %vm3021_vm1, %v3496_v54  ;;  %v3558_v38 = vpack.c.bf16 %v2493_v40, %v2493_v40  ;;  %v2432_v61 = vsel %vm2176_vm4, %v2048_v35, %v2304_v14  ;;  %v2368_v3 = vmul.f32 0.2, %v2112_v62  ;;  %v2046_v44 = vadd.f32 %v5022_v63, %v1911_v39  ;;  %v603_v35 = vld [vmem:[#allocation2 + $0x3d0] sm:$0xff]  ;;  %v3725_v40 = vpop.f32.mrf.mxu0 }
 0x19b   : > { %3136 = vst.msk [vmem:[%s4357_s17 + $0x1c8] sm:$0xf] %vm3021_vm1, %v3560_v26  ;;  %v3497_v47 = vpack.c.bf16 %v2432_v61, %v2432_v61  ;;  %v2110_v48 = vadd.f32 %v5022_v63, %v1975_v28  ;;  %v2051_v0 = vadd.f32 %v5022_v63, %v1916_v16  ;;  %3070 = vst.msk [vmem:[%s4357_s17 + $0xc0] sm:$0xf] %vm3021_vm1, %v3494_v37  ;;  %v601_v16 = vld [vmem:[#allocation2 + $0x3c0] sm:$0xff]  ;;  %v540_v26 = vld [vmem:[#allocation2 + $0x1d8] sm:$0xff]  ;;  %v3789_v37 = vpop.f32.mrf.mxu1 }
 0x19c   : > { %3134 = vst.msk [vmem:[%s4357_s17 + $0x1c0] sm:$0xf] %vm3021_vm1, %v3558_v38  ;;  %v2496_v42 = vsel %vm2240_vm5, %v2112_v62, %v2368_v3  ;;  %v2115_v4 = vadd.f32 %v5022_v63, %v1980_v50  ;;  %v2049_v5 = vadd.f32 %v5022_v63, %v1914_v56  ;;  %v2113_v45 = vadd.f32 %v5022_v63, %v1978_v55  ;;  %v602_v55 = vld [vmem:[#allocation2 + $0x3c8] sm:$0xff] }
 0x19d   : > { %3073 = vst.msk [vmem:[%s4357_s17 + $0xcc] sm:$0xf] %vm3021_vm1, %v3497_v47  ;;  %v3561_v2 = vpack.c.bf16 %v2496_v42, %v2496_v42  ;;  %vm2174_vm6 = vcmp.gt.f32.partialorder %v2046_v44, 0.0  ;;  %v2302_v58 = vmul.f32 0.2, %v2046_v44  ;;  %vm2238_vm7 = vcmp.gt.f32.partialorder %v2110_v48, 0.0 }
 0x19e   : > { %v2366_v6 = vmul.f32 0.2, %v2110_v48  ;;  %vm2179_vm8 = vcmp.gt.f32.partialorder %v2051_v0, 0.0  ;;  %v2307_v17 = vmul.f32 0.2, %v2051_v0  ;;  %vm2243_vm9 = vcmp.gt.f32.partialorder %v2115_v4, 0.0 }
 0x19f   : > { %3137 = vst.msk [vmem:[%s4357_s17 + $0x1cc] sm:$0xf] %vm3021_vm1, %v3561_v2  ;;  %v2430_v10 = vsel %vm2174_vm6, %v2046_v44, %v2302_v58  ;;  %v2371_v30 = vmul.f32 0.2, %v2115_v4  ;;  %vm2177_vm10 = vcmp.gt.f32.partialorder %v2049_v5, 0.0  ;;  %vm2241_vm11 = vcmp.gt.f32.partialorder %v2113_v45, 0.0 }
 0x1a0   : > { %v2305_v8 = vmul.f32 0.2, %v2049_v5  ;;  %v3495_v12 = vpack.c.bf16 %v2430_v10, %v2430_v10  ;;  %v2494_v34 = vsel %vm2238_vm7, %v2110_v48, %v2366_v6  ;;  %v2435_v20 = vsel %vm2179_vm8, %v2051_v0, %v2307_v17  ;;  %v607_v42 = vld [vmem:[#allocation2 + $0x3f0] sm:$0xff]  ;;  %v544_v17 = vld [vmem:[#allocation2 + $0x1f8] sm:$0xff]  ;;  %v542_v10 = vld [vmem:[#allocation2 + $0x1e8] sm:$0xff] }
 0x1a1   : > { %v3559_v13 = vpack.c.bf16 %v2494_v34, %v2494_v34  ;;  %v3500_v25 = vpack.c.bf16 %v2435_v20, %v2435_v20  ;;  %v2499_v32 = vsel %vm2243_vm9, %v2115_v4, %v2371_v30  ;;  %v2369_v11 = vmul.f32 0.2, %v2113_v45  ;;  %v541_v4 = vld [vmem:[#allocation2 + $0x1e0] sm:$0xff]  ;;  %v1334_v30 = vpop.f32.mrf.mxu0 }
 0x1a2   : > { %v2433_v53 = vsel %vm2177_vm10, %v2049_v5, %v2305_v8  ;;  %3071 = vst.msk [vmem:[%s4357_s17 + $0xc4] sm:$0xf] %vm3021_vm1, %v3495_v12  ;;  %v3564_v52 = vpack.c.bf16 %v2499_v32, %v2499_v32  ;;  %v2052_v60 = vadd.f32 %v5022_v63, %v1917_v33  ;;  %v2116_v15 = vadd.f32 %v5022_v63, %v1981_v21  ;;  %v605_v5 = vld [vmem:[#allocation2 + $0x3e0] sm:$0xff]  ;;  %v606_v12 = vld [vmem:[#allocation2 + $0x3e8] sm:$0xff] }
 0x1a3   : > { %v3498_v62 = vpack.c.bf16 %v2433_v53, %v2433_v53  ;;  %3135 = vst.msk [vmem:[%s4357_s17 + $0x1c4] sm:$0xf] %vm3021_vm1, %v3559_v13  ;;  %3076 = vst.msk [vmem:[%s4357_s17 + $0xd8] sm:$0xf] %vm3021_vm1, %v3500_v25  ;;  %v2050_v24 = vadd.f32 %v5022_v63, %v1915_v31  ;;  %v2114_v43 = vadd.f32 %v5022_v63, %v1979_v27 }
 0x1a4   : > { %v1660_v54 = vadd.f32 %v4996_v7, %v539_v9  ;;  %3140 = vst.msk [vmem:[%s4357_s17 + $0x1d8] sm:$0xf] %vm3021_vm1, %v3564_v52  ;;  %v2497_v14 = vsel %vm2241_vm11, %v2113_v45, %v2369_v11  ;;  %vm2180_vm12 = vcmp.gt.f32.partialorder %v2052_v60, 0.0  ;;  %v2308_v39 = vmul.f32 0.2, %v2052_v60  ;;  %v538_v7 = vld [vmem:[#allocation2 + $0x1c8] sm:$0xff] }
 0x1a5   : > { %3074 = vst.msk [vmem:[%s4357_s17 + $0xd0] sm:$0xf] %vm3021_vm1, %v3498_v62  ;;  %v1724_v28 = vadd.f32 %v5006_v59, %v603_v35  ;;  %v3562_v50 = vpack.c.bf16 %v2497_v14, %v2497_v14  ;;  %vm2244_vm13 = vcmp.gt.f32.partialorder %v2116_v15, 0.0  ;;  %v2372_v56 = vmul.f32 0.2, %v2116_v15  ;;  %v543_v59 = vld [vmem:[#allocation2 + $0x1f0] sm:$0xff] }
 0x1a6   : > { %vm2178_vm14 = vcmp.gt.f32.partialorder %v2050_v24, 0.0  ;;  %1789 = vst.msk [vmem:[#allocation2 + $0x1d0] sm:$0xff] %vm224_vm0, %v1660_v54  ;;  %v2436_v38 = vsel %vm2180_vm12, %v2052_v60, %v2308_v39  ;;  %v2306_v61 = vmul.f32 0.2, %v2050_v24  ;;  %vm2242_vm15 = vcmp.gt.f32.partialorder %v2114_v43, 0.0  ;;  %v608_v9 = vld [vmem:[#allocation2 + $0x3f8] sm:$0xff] }
 0x1a7   : > { %v2370_v3 = vmul.f32 0.2, %v2114_v43  ;;  %1853 = vst.msk [vmem:[#allocation2 + $0x3d0] sm:$0xff] %vm224_vm0, %v1724_v28  ;;  %v3501_v47 = vpack.c.bf16 %v2436_v38, %v2436_v38  ;;  %v2500_v44 = vsel %vm2244_vm13, %v2116_v15, %v2372_v56  ;;  %v1658_v48 = vadd.f32 %v5012_v51, %v537_v57 }
 0x1a8   : > { %3138 = vst.msk [vmem:[%s4357_s17 + $0x1d0] sm:$0xf] %vm3021_vm1, %v3562_v50  ;;  %v1722_v0 = vadd.f32 %v5014_v19, %v601_v16  ;;  %v3565_v45 = vpack.c.bf16 %v2500_v44, %v2500_v44  ;;  %v2434_v2 = vsel %vm2178_vm14, %v2050_v24, %v2306_v61  ;;  %v1661_v6 = vadd.f32 %v5033_v1, %v540_v26  ;;  %v1590_v1 = vpop.f32.mrf.mxu1 }
 0x1a9   : > { %v2498_v58 = vsel %vm2242_vm15, %v2114_v43, %v2370_v3  ;;  %3077 = vst.msk [vmem:[%s4357_s17 + $0xdc] sm:$0xf] %vm3021_vm1, %v3501_v47  ;;  %v3499_v51 = vpack.c.bf16 %v2434_v2, %v2434_v2  ;;  %v1725_v8 = vadd.f32 %v5041_v36, %v604_v18  ;;  %v1659_v33 = vadd.f32 %v5045_v29, %v538_v7 }
 0x1aa   : > { %v3563_v19 = vpack.c.bf16 %v2498_v58, %v2498_v58  ;;  %1787 = vst.msk [vmem:[#allocation2 + $0x1c0] sm:$0xff] %vm224_vm0, %v1658_v48  ;;  %1851 = vst.msk [vmem:[#allocation2 + $0x3c0] sm:$0xff] %vm224_vm0, %v1722_v0  ;;  %v1723_v34 = vadd.f32 %v5047_v23, %v602_v55  ;;  %v1664_v20 = vadd.f32 %v5065_v46, %v543_v59 }
 0x1ab   : > { %3141 = vst.msk [vmem:[%s4357_s17 + $0x1dc] sm:$0xf] %vm3021_vm1, %v3565_v45  ;;  %v1728_v21 = vadd.f32 %v5069_v49, %v607_v42  ;;  %v1662_v31 = vadd.f32 %v5073_v22, %v541_v4  ;;  %3075 = vst.msk [vmem:[%s4357_s17 + $0xd4] sm:$0xf] %vm3021_vm1, %v3499_v51  ;;  %v1726_v36 = vadd.f32 %v5076_v41, %v605_v5 }
 0x1ac   : > { %1790 = vst.msk [vmem:[#allocation2 + $0x1d8] sm:$0xff] %vm224_vm0, %v1661_v6  ;;  %1854 = vst.msk [vmem:[#allocation2 + $0x3d8] sm:$0xff] %vm224_vm0, %v1725_v8  ;;  %v1665_v29 = vadd.f32 %v3725_v40, %v544_v17  ;;  %v1729_v27 = vadd.f32 %v3789_v37, %v608_v9  ;;  %v1663_v13 = vadd.f32 %v1334_v30, %v542_v10 }
 0x1ad   : > { %3139 = vst.msk [vmem:[%s4357_s17 + $0x1d4] sm:$0xf] %vm3021_vm1, %v3563_v19  ;;  %v1920_v23 = vld [vmem:[#allocation2 + $0x1d0] sm:$0xff]  ;;  %v1727_v46 = vadd.f32 %v1590_v1, %v606_v12 }
 0x1ae   : > { %1788 = vst.msk [vmem:[#allocation2 + $0x1c8] sm:$0xff] %vm224_vm0, %v1659_v33  ;;  %1852 = vst.msk [vmem:[#allocation2 + $0x3c8] sm:$0xff] %vm224_vm0, %v1723_v34  ;;  %v2055_v49 = vadd.f32 %v5022_v63, %v1920_v23  ;;  %v1984_v22 = vld [vmem:[#allocation2 + $0x3d0] sm:$0xff] }
 0x1af   : > { %1793 = vst.msk [vmem:[#allocation2 + $0x1f0] sm:$0xff] %vm224_vm0, %v1664_v20  ;;  %1857 = vst.msk [vmem:[#allocation2 + $0x3f0] sm:$0xff] %vm224_vm0, %v1728_v21  ;;  %v2119_v25 = vadd.f32 %v5022_v63, %v1984_v22 }
 0x1b0   : > { %1791 = vst.msk [vmem:[#allocation2 + $0x1e0] sm:$0xff] %vm224_vm0, %v1662_v31  ;;  %1855 = vst.msk [vmem:[#allocation2 + $0x3e0] sm:$0xff] %vm224_vm0, %v1726_v36  ;;  %vm2183_vm2 = vcmp.gt.f32.partialorder %v2055_v49, 0.0  ;;  %v2311_v32 = vmul.f32 0.2, %v2055_v49 }
 0x1b1   : > { %1794 = vst.msk [vmem:[#allocation2 + $0x1f8] sm:$0xff] %vm224_vm0, %v1665_v29  ;;  %1858 = vst.msk [vmem:[#allocation2 + $0x3f8] sm:$0xff] %vm224_vm0, %v1729_v27  ;;  %vm2247_vm3 = vcmp.gt.f32.partialorder %v2119_v25, 0.0  ;;  %v2375_v53 = vmul.f32 0.2, %v2119_v25  ;;  %v1918_v35 = vld [vmem:[#allocation2 + $0x1c0] sm:$0xff] }
 0x1b2   : > { %1792 = vst.msk [vmem:[#allocation2 + $0x1e8] sm:$0xff] %vm224_vm0, %v1663_v13  ;;  %1856 = vst.msk [vmem:[#allocation2 + $0x3e8] sm:$0xff] %vm224_vm0, %v1727_v46  ;;  %v1982_v41 = vld [vmem:[#allocation2 + $0x3c0] sm:$0xff]  ;;  %v2439_v52 = vsel %vm2183_vm2, %v2055_v49, %v2311_v32  ;;  %v2053_v62 = vadd.f32 %v5022_v63, %v1918_v35 }
 0x1b3   : > { %v2117_v11 = vadd.f32 %v5022_v63, %v1982_v41  ;;  %v1921_v60 = vld [vmem:[#allocation2 + $0x1d8] sm:$0xff]  ;;  %v3504_v15 = vpack.c.bf16 %v2439_v52, %v2439_v52  ;;  %v2503_v24 = vsel %vm2247_vm3, %v2119_v25, %v2375_v53 }
 0x1b4   : > { %v2056_v43 = vadd.f32 %v5022_v63, %v1921_v60  ;;  %v1985_v54 = vld [vmem:[#allocation2 + $0x3d8] sm:$0xff]  ;;  %v3568_v14 = vpack.c.bf16 %v2503_v24, %v2503_v24  ;;  %vm2181_vm0 = vcmp.gt.f32.partialorder %v2053_v62, 0.0  ;;  %v2309_v39 = vmul.f32 0.2, %v2053_v62 }
 0x1b5   : > { %v1919_v57 = vld [vmem:[#allocation2 + $0x1c8] sm:$0xff]  ;;  %vm2245_vm4 = vcmp.gt.f32.partialorder %v2117_v11, 0.0  ;;  %3080 = vst.msk [vmem:[%s4357_s17 + $0xe8] sm:$0xf] %vm3021_vm1, %v3504_v15  ;;  %v2373_v26 = vmul.f32 0.2, %v2117_v11  ;;  %v2120_v40 = vadd.f32 %v5022_v63, %v1985_v54 }
 0x1b6   : > { %v1983_v28 = vld [vmem:[#allocation2 + $0x3c8] sm:$0xff]  ;;  %v1924_v16 = vld [vmem:[#allocation2 + $0x1f0] sm:$0xff]  ;;  %vm2184_vm5 = vcmp.gt.f32.partialorder %v2056_v43, 0.0  ;;  %v2312_v18 = vmul.f32 0.2, %v2056_v43  ;;  %v2437_v50 = vsel %vm2181_vm0, %v2053_v62, %v2309_v39  ;;  %v2054_v56 = vadd.f32 %v5022_v63, %v1919_v57 }
 0x1b7   : > { %3144 = vst.msk [vmem:[%s4357_s17 + $0x1e8] sm:$0xf] %vm3021_vm1, %v3568_v14  ;;  %v2118_v7 = vadd.f32 %v5022_v63, %v1983_v28  ;;  %v2059_v55 = vadd.f32 %v5022_v63, %v1924_v16  ;;  %v3502_v37 = vpack.c.bf16 %v2437_v50, %v2437_v50  ;;  %v2501_v38 = vsel %vm2245_vm4, %v2117_v11, %v2373_v26  ;;  %v1988_v3 = vld [vmem:[#allocation2 + $0x3f0] sm:$0xff]  ;;  %v1922_v59 = vld [vmem:[#allocation2 + $0x1e0] sm:$0xff] }
 0x1b8   : > { %v2440_v61 = vsel %vm2184_vm5, %v2056_v43, %v2312_v18  ;;  %vm2248_vm6 = vcmp.gt.f32.partialorder %v2120_v40, 0.0  ;;  %v3566_v47 = vpack.c.bf16 %v2501_v38, %v2501_v38  ;;  %v2376_v48 = vmul.f32 0.2, %v2120_v40  ;;  %v1986_v0 = vld [vmem:[#allocation2 + $0x3e0] sm:$0xff]  ;;  %v1925_v30 = vld [vmem:[#allocation2 + $0x1f8] sm:$0xff] }
 0x1b9   : > { %v3505_v44 = vpack.c.bf16 %v2440_v61, %v2440_v61  ;;  %vm2182_vm7 = vcmp.gt.f32.partialorder %v2054_v56, 0.0  ;;  %3078 = vst.msk [vmem:[%s4357_s17 + $0xe0] sm:$0xf] %vm3021_vm1, %v3502_v37  ;;  %v2310_v42 = vmul.f32 0.2, %v2054_v56  ;;  %vm2246_vm8 = vcmp.gt.f32.partialorder %v2118_v7, 0.0 }
 0x1ba   : > { %v2374_v4 = vmul.f32 0.2, %v2118_v7  ;;  %vm2187_vm9 = vcmp.gt.f32.partialorder %v2059_v55, 0.0  ;;  %3142 = vst.msk [vmem:[%s4357_s17 + $0x1e0] sm:$0xf] %vm3021_vm1, %v3566_v47  ;;  %v2504_v5 = vsel %vm2248_vm6, %v2120_v40, %v2376_v48  ;;  %v2123_v2 = vadd.f32 %v5022_v63, %v1988_v3  ;;  %v1989_v51 = vld [vmem:[#allocation2 + $0x3f8] sm:$0xff] }
 0x1bb   : > { %3081 = vst.msk [vmem:[%s4357_s17 + $0xec] sm:$0xf] %vm3021_vm1, %v3505_v44  ;;  %v2315_v45 = vmul.f32 0.2, %v2059_v55  ;;  %v2057_v58 = vadd.f32 %v5022_v63, %v1922_v59  ;;  %v3569_v6 = vpack.c.bf16 %v2504_v5, %v2504_v5  ;;  %v2438_v17 = vsel %vm2182_vm7, %v2054_v56, %v2310_v42  ;;  %v1923_v12 = vld [vmem:[#allocation2 + $0x1e8] sm:$0xff] }
 0x1bc   : > { %v2502_v9 = vsel %vm2246_vm8, %v2118_v7, %v2374_v4  ;;  %v2121_v10 = vadd.f32 %v5022_v63, %v1986_v0  ;;  %v3503_v19 = vpack.c.bf16 %v2438_v17, %v2438_v17  ;;  %vm2251_vm10 = vcmp.gt.f32.partialorder %v2123_v2, 0.0  ;;  %v1987_v1 = vld [vmem:[#allocation2 + $0x3e8] sm:$0xff] }
 0x1bd   : > { %v3567_v8 = vpack.c.bf16 %v2502_v9, %v2502_v9  ;;  %v2443_v33 = vsel %vm2187_vm9, %v2059_v55, %v2315_v45  ;;  %3145 = vst.msk [vmem:[%s4357_s17 + $0x1ec] sm:$0xf] %vm3021_vm1, %v3569_v6  ;;  %v2379_v20 = vmul.f32 0.2, %v2123_v2  ;;  %vm2185_vm11 = vcmp.gt.f32.partialorder %v2057_v58, 0.0 }
 0x1be   : > { %v3508_v34 = vpack.c.bf16 %v2443_v33, %v2443_v33  ;;  %v2313_v21 = vmul.f32 0.2, %v2057_v58  ;;  %3079 = vst.msk [vmem:[%s4357_s17 + $0xe4] sm:$0xf] %vm3021_vm1, %v3503_v19  ;;  %vm2249_vm12 = vcmp.gt.f32.partialorder %v2121_v10, 0.0  ;;  %v2060_v36 = vadd.f32 %v5022_v63, %v1925_v30 }
 0x1bf   : > { %3143 = vst.msk [vmem:[%s4357_s17 + $0x1e4] sm:$0xf] %vm3021_vm1, %v3567_v8  ;;  %v2377_v31 = vmul.f32 0.2, %v2121_v10  ;;  %v2124_v29 = vadd.f32 %v5022_v63, %v1989_v51  ;;  %v2507_v27 = vsel %vm2251_vm10, %v2123_v2, %v2379_v20  ;;  %v2058_v23 = vadd.f32 %v5022_v63, %v1923_v12 }
 0x1c0   : > { %3084 = vst.msk [vmem:[%s4357_s17 + $0xf8] sm:$0xf] %vm3021_vm1, %v3508_v34  ;;  %v2441_v13 = vsel %vm2185_vm11, %v2057_v58, %v2313_v21  ;;  %v2122_v46 = vadd.f32 %v5022_v63, %v1987_v1  ;;  %v3572_v49 = vpack.c.bf16 %v2507_v27, %v2507_v27  ;;  %vm2188_vm13 = vcmp.gt.f32.partialorder %v2060_v36, 0.0 }
 0x1c1   : > { %v3506_v22 = vpack.c.bf16 %v2441_v13, %v2441_v13  ;;  %v2505_v25 = vsel %vm2249_vm12, %v2121_v10, %v2377_v31  ;;  %v2316_v53 = vmul.f32 0.2, %v2060_v36  ;;  %vm2252_vm14 = vcmp.gt.f32.partialorder %v2124_v29, 0.0 }
 0x1c2   : > { %v3570_v32 = vpack.c.bf16 %v2505_v25, %v2505_v25  ;;  %v2380_v35 = vmul.f32 0.2, %v2124_v29  ;;  %3148 = vst.msk [vmem:[%s4357_s17 + $0x1f8] sm:$0xf] %vm3021_vm1, %v3572_v49  ;;  %vm2186_vm15 = vcmp.gt.f32.partialorder %v2058_v23, 0.0  ;;  %vm2250_vm2 = vcmp.gt.f32.partialorder %v2122_v46, 0.0 }
 0x1c3   : > { %3082 = vst.msk [vmem:[%s4357_s17 + $0xf0] sm:$0xf] %vm3021_vm1, %v3506_v22  ;;  %v2314_v41 = vmul.f32 0.2, %v2058_v23  ;;  %v2378_v63 = vmul.f32 0.2, %v2122_v46  ;;  %v2444_v52 = vsel %vm2188_vm13, %v2060_v36, %v2316_v53 }
 0x1c4   : > { %3146 = vst.msk [vmem:[%s4357_s17 + $0x1f0] sm:$0xf] %vm3021_vm1, %v3570_v32  ;;  %v2508_v62 = vsel %vm2252_vm14, %v2124_v29, %v2380_v35  ;;  %v3509_v11 = vpack.c.bf16 %v2444_v52, %v2444_v52 }
 0x1c5   : > { %v3573_v60 = vpack.c.bf16 %v2508_v62, %v2508_v62  ;;  %v2442_v15 = vsel %vm2186_vm15, %v2058_v23, %v2314_v41  ;;  %v2506_v24 = vsel %vm2250_vm2, %v2122_v46, %v2378_v63 }
 0x1c6   : > { %v3507_v43 = vpack.c.bf16 %v2442_v15, %v2442_v15  ;;  %v3571_v54 = vpack.c.bf16 %v2506_v24, %v2506_v24  ;;  %3085 = vst.msk [vmem:[%s4357_s17 + $0xfc] sm:$0xf] %vm3021_vm1, %v3509_v11 }
 0x1c7   : > { %3149 = vst.msk [vmem:[%s4357_s17 + $0x1fc] sm:$0xf] %vm3021_vm1, %v3573_v60 }
 0x1c8   : > { %3083 = vst.msk [vmem:[%s4357_s17 + $0xf4] sm:$0xf] %vm3021_vm1, %v3507_v43  ;;  %3147 = vst.msk [vmem:[%s4357_s17 + $0x1f4] sm:$0xf] %vm3021_vm1, %v3571_v54 }
 0x1c9 PF: > { %s13_s14 = sadd.s32 1, %s3927_s14   ;;  %s5193_s12 = smov %s3923_s13 }
 0x1ca   : > { %p10_p5 = scmp.ge.s32.totalorder %s13_s14, 4   ;;  %s5194_s13 = smov %s5196_s15 }
 0x1cc   :  { %12 = sbr.rel (!%p10_p5) target bundleno = 2 (0x2), region = 73 }

// kernel: discriminator_forward.6
= control target key start
LH: loop header
LB: loop body
LE: loop exit
PB: predicated region body
PF: predicated region fallthrough
CT: control target
= control target key end

     0   :  { %s3664_s12 = smov 0   ;;  %s3666_s13 = smov 0   ;;  %s4145_s0 = inlined_call_operand.vmem [shape: bf16[512,1024], index: 0, kind: input, shape index: {}]   ;;  %s4146_s1 = inlined_call_operand.vmem [shape: bf16[1024,128], index: 1, kind: input, shape index: {}]   ;;  %s4147_s2 = inlined_call_operand.vmem [shape: bf16[512,128], index: 2, kind: output, shape index: {0}]   ;;  %s4148_s3 = inlined_call_operand.vmem [shape: f32[16,128], index: 3, kind: output, shape index: {1}]  }
   0x1   :  { %s3668_s14 = smov 0  }
   0x2 LB: > { %s26_s15 = sadd.s32 1, %s3638_s13  ;;  %p2723_p0 = scmp.ge.s32.totalorder %s3642_s14, 1  ;;  %s3642_s14 = sphi %s3668_s14, %s14_s14   ;;  %s3638_s13 = sphi %s3666_s13, %s4150_s13   ;;  %s3634_s12 = sphi %s3664_s12, %s4149_s12  }
   0x3   : > { %p28_p1 = scmp.ge.s32.totalorder %s26_s15, 2  ;;  %p172_p2 = scmp.lt.s32.totalorder %s3642_s14, 3 }
   0x5   : > { %s4152_s15 = smov (%p28_p1, %s26_s15), 0  ;;  %p173_p3 = pnand %p2723_p0, %p172_p2 }
   0x6   : > { %s2724_s25 = sshll.u32 (!%p173_p3), %s3634_s12, 5  ;;  %p234_p5 = scmp.lt.s32.totalorder (!%p173_p3), %s3634_s12, 1 }
   0x7   : > { %176 = sbr.rel (%p173_p3) target bundleno = 517 (0x205), region = 28  ;;  %p212_p4 = scmp.lt.s32.totalorder (!%p173_p3), %s2724_s25, 63 }
   0xc   : > { %v3556_v0 = vld [vmem:[%s4146_s1 + $0x78] sm:$0xff]   ;;  %v3560_v4 = vld [vmem:[%s4146_s1 + $0x70] sm:$0xff]   ;;  %v3564_v8 = vld [vmem:[%s4146_s1 + $0x68] sm:$0xff]   ;;  %s4154_s25 = smov (!%p212_p4, %s2724_s25), 63  ;;  %s4156_s12 = smov (!%p234_p5, %s3634_s12), 1 }
   0xd   : > { %v3557_v1 = vld [vmem:[%s4146_s1 + $0xf8] sm:$0xff]   ;;  %3084 = vmatprep.subr.bf16.mxu0 %v3556_v0  ;;  %v3561_v5 = vld [vmem:[%s4146_s1 + $0xf0] sm:$0xff]   ;;  %v3565_v9 = vld [vmem:[%s4146_s1 + $0xe8] sm:$0xff]   ;;  %s2956_s26 = sshll.u32 %s4154_s25, 5 }
   0xe   : > { %v3558_v2 = vld [vmem:[%s4146_s1 + $0x38] sm:$0xff]   ;;  %3196 = vmatprep.subr.bf16.mxu1 %v3557_v1  ;;  %v3562_v6 = vld [vmem:[%s4146_s1 + $0x30] sm:$0xff]   ;;  %v3566_v10 = vld [vmem:[%s4146_s1 + $0x28] sm:$0xff]   ;;  %s3781_s8 = scalar_lea.vmem %s4145_s0, %s2956_s26 }
   0xf   : > { %v3559_v3 = vld [vmem:[%s4146_s1 + $0xb8] sm:$0xff]   ;;  %3085 = vmatpush3.bf16.msra.mxu0 %v3558_v2  ;;  %v3563_v7 = vld [vmem:[%s4146_s1 + $0xb0] sm:$0xff]   ;;  %v3567_v11 = vld [vmem:[%s4146_s1 + $0xa8] sm:$0xff]  }
  0x10   : > { %3197 = vmatpush3.bf16.msra.mxu1 %v3559_v3  ;;  %3086 = vmatprep.subr.bf16.mxu0 %v3560_v4  ;;  %v3568_v12 = vld [vmem:[%s4146_s1 + $0x60] sm:$0xff]   ;;  %v3572_v16 = vld [vmem:[%s4146_s1 + $0x58] sm:$0xff]   ;;  %v3576_v20 = vld [vmem:[%s4146_s1 + $0x50] sm:$0xff]  }
  0x11   : > { %3198 = vmatprep.subr.bf16.mxu1 %v3561_v5  ;;  %v3569_v13 = vld [vmem:[%s4146_s1 + $0xe0] sm:$0xff]   ;;  %v3573_v17 = vld [vmem:[%s4146_s1 + $0xd8] sm:$0xff]   ;;  %v3577_v21 = vld [vmem:[%s4146_s1 + $0xd0] sm:$0xff]  }
  0x12   : > { %v3570_v14 = vld [vmem:[%s4146_s1 + $0x20] sm:$0xff]   ;;  %v3574_v18 = vld [vmem:[%s4146_s1 + $0x18] sm:$0xff]   ;;  %v3578_v22 = vld [vmem:[%s4146_s1 + $0x10] sm:$0xff]  }
  0x13   : > { %3087 = vmatpush3.bf16.msra.mxu0 %v3562_v6  ;;  %v3571_v15 = vld [vmem:[%s4146_s1 + $0xa0] sm:$0xff]   ;;  %v3575_v19 = vld [vmem:[%s4146_s1 + $0x98] sm:$0xff]   ;;  %v3579_v23 = vld [vmem:[%s4146_s1 + $0x90] sm:$0xff]  }
  0x14   : > { %3199 = vmatpush3.bf16.msra.mxu1 %v3563_v7  ;;  %3088 = vmatprep.subr.bf16.mxu0 %v3564_v8  ;;  %v3580_v24 = vld [vmem:[%s4146_s1 + $0x48] sm:$0xff]   ;;  %v3584_v28 = vld [vmem:[%s4146_s1 + $0x40] sm:$0xff]   ;;  %v3588_v40 = vld [vmem:[%s4146_s1 + $0x178] sm:$0xff]  }
  0x15   : > { %3200 = vmatprep.subr.bf16.mxu1 %v3565_v9  ;;  %v3581_v25 = vld [vmem:[%s4146_s1 + $0xc8] sm:$0xff]   ;;  %v3585_v29 = vld [vmem:[%s4146_s1 + $0xc0] sm:$0xff]   ;;  %v3589_v41 = vld [vmem:[%s4146_s1 + $0x138] sm:$0xff]  }
  0x16   : > { %v3582_v26 = vld [vmem:[%s4146_s1 + $0x8] sm:$0xff]   ;;  %v3586_v30 = vld [vmem:[%s4146_s1] sm:$0xff]   ;;  %v3590_v42 = vld [vmem:[%s4146_s1 + $0x1f8] sm:$0xff]  }
  0x17   : > { %3089 = vmatpush3.bf16.msra.mxu0 %v3566_v10  ;;  %v3583_v27 = vld [vmem:[%s4146_s1 + $0x88] sm:$0xff]   ;;  %v3587_v31 = vld [vmem:[%s4146_s1 + $0x80] sm:$0xff]   ;;  %v3591_v43 = vld [vmem:[%s4146_s1 + $0x1b8] sm:$0xff]  }
  0x18   : > { %3201 = vmatpush3.bf16.msra.mxu1 %v3567_v11  ;;  %3090 = vmatprep.subr.bf16.mxu0 %v3568_v12  ;;  %v275_v32 = vld [vmem:[%s3781_s8] sm:$0xff]  ;;  %v276_v34 = vld [vmem:[%s3781_s8 + $0x8] sm:$0xff]  ;;  %v3592_v55 = vld [vmem:[%s4146_s1 + $0x170] sm:$0xff]  }
  0x19   : > { %3202 = vmatprep.subr.bf16.mxu1 %v3569_v13  ;;  %v279_v33 = vld [vmem:[%s3781_s8 + $0x20] sm:$0xff]  ;;  %v280_v37 = vld [vmem:[%s3781_s8 + $0x28] sm:$0xff]  ;;  %v3593_v58 = vld [vmem:[%s4146_s1 + $0x130] sm:$0xff]  }
  0x1a   : > { %v2730_v35 = vcombine.low %v275_v32, %v279_v33  ;;  %v2731_v36 = vcombine.high %v275_v32, %v279_v33  ;;  %v2732_v38 = vcombine.low %v276_v34, %v280_v37  ;;  %v2733_v39 = vcombine.high %v276_v34, %v280_v37  ;;  %v283_v44 = vld [vmem:[%s3781_s8 + $0x40] sm:$0xff]  ;;  %v284_v47 = vld [vmem:[%s3781_s8 + $0x48] sm:$0xff]  ;;  %v3594_v60 = vld [vmem:[%s4146_s1 + $0x1f0] sm:$0xff]  }
  0x1b   : > { %3091 = vmatpush3.bf16.msra.mxu0 %v3570_v14  ;;  %v287_v45 = vld [vmem:[%s3781_s8 + $0x60] sm:$0xff]  ;;  %v288_v48 = vld [vmem:[%s3781_s8 + $0x68] sm:$0xff]  ;;  %v3595_v61 = vld [vmem:[%s4146_s1 + $0x1b0] sm:$0xff]  }
  0x1c   : > { %3203 = vmatpush3.bf16.msra.mxu1 %v3571_v15  ;;  %3092 = vmatprep.subr.bf16.mxu0 %v3572_v16  ;;  %v2739_v46 = vcombine.high %v283_v44, %v287_v45  ;;  %v291_v49 = vld [vmem:[%s3781_s8 + $0x80] sm:$0xff]  ;;  %v2741_v50 = vcombine.high %v284_v47, %v288_v48  ;;  %v292_v52 = vld [vmem:[%s3781_s8 + $0x88] sm:$0xff]  ;;  %v2738_v54 = vcombine.low %v283_v44, %v287_v45  ;;  %v3608_v34 = vld [vmem:[%s4146_s1 + $0x150] sm:$0xff]  }
  0x1d   : > { %3204 = vmatprep.subr.bf16.mxu1 %v3573_v17  ;;  %1619 = vmatprep.mubr.bf16.mxu0 %v2731_v36  ;;  %v295_v51 = vld [vmem:[%s3781_s8 + $0xa0] sm:$0xff]  ;;  %v296_v53 = vld [vmem:[%s3781_s8 + $0xa8] sm:$0xff]  ;;  %v2740_v56 = vcombine.low %v284_v47, %v288_v48  ;;  %v3609_v36 = vld [vmem:[%s4146_s1 + $0x110] sm:$0xff]  }
  0x1e   : > { %1780 = vmatprep.mubr.bf16.mxu1 %v2733_v39  ;;  %v2747_v57 = vcombine.high %v291_v49, %v295_v51  ;;  %v2749_v59 = vcombine.high %v292_v52, %v296_v53  ;;  %v299_v62 = vld [vmem:[%s3781_s8 + $0xc0] sm:$0xff]  ;;  %v300_v0 = vld [vmem:[%s3781_s8 + $0xc8] sm:$0xff]  ;;  %v2746_v3 = vcombine.low %v291_v49, %v295_v51  ;;  %v2748_v5 = vcombine.low %v292_v52, %v296_v53  ;;  %v3610_v37 = vld [vmem:[%s4146_s1 + $0x1d0] sm:$0xff]  }
  0x1f   : > { %3093 = vmatpush3.bf16.msra.mxu0 %v3574_v18  ;;  %v303_v63 = vld [vmem:[%s3781_s8 + $0xe0] sm:$0xff]  ;;  %v304_v1 = vld [vmem:[%s3781_s8 + $0xe8] sm:$0xff]  ;;  %v3611_v39 = vld [vmem:[%s4146_s1 + $0x190] sm:$0xff]  }
  0x20   : > { %3205 = vmatpush3.bf16.msra.mxu1 %v3575_v19  ;;  %3094 = vmatprep.subr.bf16.mxu0 %v3576_v20  ;;  %v3596_v2 = vld [vmem:[%s4146_s1 + $0x168] sm:$0xff]   ;;  %v2755_v6 = vcombine.high %v299_v62, %v303_v63  ;;  %v2757_v8 = vcombine.high %v300_v0, %v304_v1  ;;  %v307_v10 = vld [vmem:[%s3781_s8 + $0x100] sm:$0xff]  ;;  %v2754_v16 = vcombine.low %v299_v62, %v303_v63 }
  0x21   : > { %3206 = vmatprep.subr.bf16.mxu1 %v3577_v21  ;;  %v3597_v4 = vld [vmem:[%s4146_s1 + $0x128] sm:$0xff]   ;;  %v311_v11 = vld [vmem:[%s3781_s8 + $0x120] sm:$0xff]  ;;  %v2756_v18 = vcombine.low %v300_v0, %v304_v1 }
  0x22   : > { %v3598_v7 = vld [vmem:[%s4146_s1 + $0x1e8] sm:$0xff]   ;;  %v3600_v14 = vld [vmem:[%s4146_s1 + $0x160] sm:$0xff]   ;;  %v2763_v19 = vcombine.high %v307_v10, %v311_v11 }
  0x23   : > { %3095 = vmatpush3.bf16.msra.mxu0 %v3578_v22  ;;  %v3599_v9 = vld [vmem:[%s4146_s1 + $0x1a8] sm:$0xff]   ;;  %v3601_v15 = vld [vmem:[%s4146_s1 + $0x120] sm:$0xff]  }
  0x24   : > { %3207 = vmatpush3.bf16.msra.mxu1 %v3579_v23  ;;  %3096 = vmatprep.subr.bf16.mxu0 %v3580_v24  ;;  %v308_v12 = vld [vmem:[%s3781_s8 + $0x108] sm:$0xff]  ;;  %v3602_v17 = vld [vmem:[%s4146_s1 + $0x1e0] sm:$0xff]   ;;  %v3604_v24 = vld [vmem:[%s4146_s1 + $0x158] sm:$0xff]  }
  0x25   : > { %3208 = vmatprep.subr.bf16.mxu1 %v3581_v25  ;;  %v312_v13 = vld [vmem:[%s3781_s8 + $0x128] sm:$0xff]  ;;  %v3603_v20 = vld [vmem:[%s4146_s1 + $0x1a0] sm:$0xff]  }
  0x26   : > { %v2765_v21 = vcombine.high %v308_v12, %v312_v13  ;;  %v315_v22 = vld [vmem:[%s3781_s8 + $0x140] sm:$0xff]  ;;  %v316_v25 = vld [vmem:[%s3781_s8 + $0x148] sm:$0xff] }
  0x27   : > { %3097 = vmatpush3.bf16.msra.mxu0 %v3582_v26  ;;  %v319_v23 = vld [vmem:[%s3781_s8 + $0x160] sm:$0xff]  ;;  %v320_v26 = vld [vmem:[%s3781_s8 + $0x168] sm:$0xff] }
  0x28   : > { %3209 = vmatpush3.bf16.msra.mxu1 %v3583_v27  ;;  %3098 = vmatprep.subr.bf16.mxu0 %v3584_v28  ;;  %v3605_v27 = vld [vmem:[%s4146_s1 + $0x118] sm:$0xff]   ;;  %v2771_v32 = vcombine.high %v315_v22, %v319_v23  ;;  %v2773_v33 = vcombine.high %v316_v25, %v320_v26  ;;  %v3613_v47 = vld [vmem:[%s4146_s1 + $0x108] sm:$0xff]   ;;  %v335_v51 = vld [vmem:[%s3781_s8 + $0x1e0] sm:$0xff] }
  0x29   : > { %3210 = vmatprep.subr.bf16.mxu1 %v3585_v29  ;;  %v3606_v28 = vld [vmem:[%s4146_s1 + $0x1d8] sm:$0xff]   ;;  %v3614_v48 = vld [vmem:[%s4146_s1 + $0x1c8] sm:$0xff]   ;;  %v339_v62 = vld [vmem:[%s3781_s8 + $0x200] sm:$0xff] }
  0x2a   : > { %v3607_v29 = vld [vmem:[%s4146_s1 + $0x198] sm:$0xff]   ;;  %v3615_v49 = vld [vmem:[%s4146_s1 + $0x188] sm:$0xff]   ;;  %v343_v63 = vld [vmem:[%s3781_s8 + $0x220] sm:$0xff] }
  0x2b   : > { %3099 = vmatpush3.bf16.msra.mxu0 %v3586_v30  ;;  %v2762_v30 = vcombine.low %v307_v10, %v311_v11  ;;  %v332_v52 = vld [vmem:[%s3781_s8 + $0x1c8] sm:$0xff]  ;;  %v2794_v10 = vcombine.low %v339_v62, %v343_v63 }
  0x2c   : > { %3211 = vmatpush3.bf16.msra.mxu1 %v3587_v31  ;;  %3308 = vmatprep.subr.bf16.mxu0 %v3588_v40  ;;  %v2764_v31 = vcombine.low %v308_v12, %v312_v13  ;;  %v324_v40 = vld [vmem:[%s3781_s8 + $0x188] sm:$0xff] }
  0x2d   : > { %3420 = vmatprep.subr.bf16.mxu1 %v3590_v42  ;;  %v2770_v42 = vcombine.low %v315_v22, %v319_v23  ;;  %v336_v53 = vld [vmem:[%s3781_s8 + $0x1e8] sm:$0xff]  ;;  %v363_v22 = vld [vmem:[%s3781_s8 + $0x2c0] sm:$0xff] }
  0x2e   : > { %1620 = vmatmul.mubr.bf16.vlgmr.msra.gmra.mxu0 %v2730_v35  ;;  %v323_v35 = vld [vmem:[%s3781_s8 + $0x180] sm:$0xff]  ;;  %v340_v0 = vld [vmem:[%s3781_s8 + $0x208] sm:$0xff] }
  0x2f   : > { %1781 = vmatmul.mubr.bf16.vlgmr.msra.gmra.mxu1 %v2732_v38  ;;  %3309 = vmatpush3.bf16.msra.mxu0 %v3589_v41  ;;  %v327_v38 = vld [vmem:[%s3781_s8 + $0x1a0] sm:$0xff]  ;;  %v328_v41 = vld [vmem:[%s3781_s8 + $0x1a8] sm:$0xff] }
  0x30   : > { %3421 = vmatpush3.bf16.msra.mxu1 %v3591_v43  ;;  %1627 = vmatprep.mubr.bf16.mxu0 %v2739_v46  ;;  %v2772_v43 = vcombine.low %v316_v25, %v320_v26  ;;  %v2779_v44 = vcombine.high %v323_v35, %v327_v38  ;;  %v2781_v45 = vcombine.high %v324_v40, %v328_v41  ;;  %v3612_v46 = vld [vmem:[%s4146_s1 + $0x148] sm:$0xff]   ;;  %v367_v23 = vld [vmem:[%s3781_s8 + $0x2e0] sm:$0xff] }
  0x31   : > { %1788 = vmatprep.mubr.bf16.mxu1 %v2741_v50  ;;  %3310 = vmatprep.subr.bf16.mxu0 %v3592_v55  ;;  %v331_v50 = vld [vmem:[%s3781_s8 + $0x1c0] sm:$0xff]  ;;  %v344_v1 = vld [vmem:[%s3781_s8 + $0x228] sm:$0xff] }
  0x32   : > { %3422 = vmatprep.subr.bf16.mxu1 %v3594_v60  ;;  %v3616_v55 = vld [vmem:[%s4146_s1 + $0x140] sm:$0xff]   ;;  %v2796_v11 = vcombine.low %v340_v0, %v344_v1  ;;  %v368_v25 = vld [vmem:[%s3781_s8 + $0x2e8] sm:$0xff] }
  0x33   : > { %3311 = vmatpush3.bf16.msra.mxu0 %v3593_v58  ;;  %v3617_v58 = vld [vmem:[%s4146_s1 + $0x100] sm:$0xff]  }
  0x34   : > { %3423 = vmatpush3.bf16.msra.mxu1 %v3595_v61  ;;  %3312 = vmatprep.subr.bf16.mxu0 %v3596_v2  ;;  %v3618_v60 = vld [vmem:[%s4146_s1 + $0x1c0] sm:$0xff]   ;;  %v2786_v2 = vcombine.low %v331_v50, %v335_v51 }
  0x35   : > { %3424 = vmatprep.subr.bf16.mxu1 %v3598_v7  ;;  %v3619_v61 = vld [vmem:[%s4146_s1 + $0x180] sm:$0xff]  }
  0x36   : > { %1628 = vmatmul.mubr.bf16.gmra.mxu0 %v2738_v54  ;;  %v2778_v54 = vcombine.low %v323_v35, %v327_v38  ;;  %v351_v7 = vld [vmem:[%s3781_s8 + $0x260] sm:$0xff] }
  0x37   : > { %1789 = vmatmul.mubr.bf16.gmra.mxu1 %v2740_v56  ;;  %1635 = vmatprep.mubr.bf16.mxu0 %v2747_v57  ;;  %v2780_v56 = vcombine.low %v324_v40, %v328_v41  ;;  %v2787_v57 = vcombine.high %v331_v50, %v335_v51  ;;  %v379_v38 = vld [vmem:[%s3781_s8 + $0x340] sm:$0xff]  ;;  %v380_v40 = vld [vmem:[%s3781_s8 + $0x348] sm:$0xff] }
  0x38   : > { %1796 = vmatprep.mubr.bf16.mxu1 %v2749_v59  ;;  %3313 = vmatpush3.bf16.msra.mxu0 %v3597_v4  ;;  %v2789_v59 = vcombine.high %v332_v52, %v336_v53  ;;  %v2795_v4 = vcombine.high %v339_v62, %v343_v63  ;;  %v384_v41 = vld [vmem:[%s3781_s8 + $0x368] sm:$0xff]  ;;  %v277_v62 = vld [vmem:[%s3781_s8 + $0x10] sm:$0xff] }
  0x39   : > { %3425 = vmatpush3.bf16.msra.mxu1 %v3599_v9  ;;  %3314 = vmatprep.subr.bf16.mxu0 %v3600_v14  ;;  %v352_v9 = vld [vmem:[%s3781_s8 + $0x268] sm:$0xff]  ;;  %v355_v14 = vld [vmem:[%s3781_s8 + $0x280] sm:$0xff]  ;;  %v2836_v51 = vcombine.low %v380_v40, %v384_v41  ;;  %v281_v63 = vld [vmem:[%s3781_s8 + $0x30] sm:$0xff] }
  0x3a   : > { %3426 = vmatprep.subr.bf16.mxu1 %v3602_v17  ;;  %v360_v17 = vld [vmem:[%s3781_s8 + $0x2a8] sm:$0xff] }
  0x3c   : > { %3315 = vmatpush3.bf16.msra.mxu0 %v3601_v15  ;;  %v359_v15 = vld [vmem:[%s3781_s8 + $0x2a0] sm:$0xff] }
  0x3d   : > { %3427 = vmatpush3.bf16.msra.mxu1 %v3603_v20  ;;  %3316 = vmatprep.subr.bf16.mxu0 %v3604_v24  ;;  %v2811_v20 = vcombine.high %v355_v14, %v359_v15  ;;  %v364_v24 = vld [vmem:[%s3781_s8 + $0x2c8] sm:$0xff]  ;;  %v2810_v26 = vcombine.low %v355_v14, %v359_v15  ;;  %v293_v14 = vld [vmem:[%s3781_s8 + $0x90] sm:$0xff] }
  0x3e   : > { %1636 = vmatmul.mubr.bf16.gmra.mxu0 %v2746_v3  ;;  %3428 = vmatprep.subr.bf16.mxu1 %v3606_v28  ;;  %v2788_v3 = vcombine.low %v332_v52, %v336_v53  ;;  %v2819_v28 = vcombine.high %v363_v22, %v367_v23  ;;  %v2820_v35 = vcombine.low %v364_v24, %v368_v25  ;;  %v297_v15 = vld [vmem:[%s3781_s8 + $0xb0] sm:$0xff] }
  0x3f   : > { %1797 = vmatmul.mubr.bf16.gmra.mxu1 %v2748_v5  ;;  %1643 = vmatprep.mubr.bf16.mxu0 %v2755_v6  ;;  %v2797_v5 = vcombine.high %v340_v0, %v344_v1  ;;  %v347_v6 = vld [vmem:[%s3781_s8 + $0x240] sm:$0xff]  ;;  %v278_v0 = vld [vmem:[%s3781_s8 + $0x18] sm:$0xff] }
  0x40   : > { %1804 = vmatprep.mubr.bf16.mxu1 %v2757_v8  ;;  %3317 = vmatpush3.bf16.msra.mxu0 %v3605_v27  ;;  %v348_v8 = vld [vmem:[%s3781_s8 + $0x248] sm:$0xff]  ;;  %v2803_v12 = vcombine.high %v347_v6, %v351_v7  ;;  %v282_v1 = vld [vmem:[%s3781_s8 + $0x38] sm:$0xff] }
  0x41   : > { %3429 = vmatpush3.bf16.msra.mxu1 %v3607_v29  ;;  %3318 = vmatprep.subr.bf16.mxu0 %v3608_v34  ;;  %v2805_v13 = vcombine.high %v348_v8, %v352_v9  ;;  %v2821_v29 = vcombine.high %v364_v24, %v368_v25  ;;  %v2818_v34 = vcombine.low %v363_v22, %v367_v23  ;;  %v301_v22 = vld [vmem:[%s3781_s8 + $0xd0] sm:$0xff]  ;;  %v302_v24 = vld [vmem:[%s3781_s8 + $0xd8] sm:$0xff] }
  0x42   : > { %3430 = vmatprep.subr.bf16.mxu1 %v3610_v37  ;;  %v305_v23 = vld [vmem:[%s3781_s8 + $0xf0] sm:$0xff]  ;;  %v306_v25 = vld [vmem:[%s3781_s8 + $0xf8] sm:$0xff] }
  0x44   : > { %3319 = vmatpush3.bf16.msra.mxu0 %v3609_v36 }
  0x45   : > { %3431 = vmatpush3.bf16.msra.mxu1 %v3611_v39  ;;  %3320 = vmatprep.subr.bf16.mxu0 %v3612_v46  ;;  %v383_v39 = vld [vmem:[%s3781_s8 + $0x360] sm:$0xff] }
  0x46   : > { %1644 = vmatmul.mubr.bf16.gmra.mxu0 %v2754_v16  ;;  %3432 = vmatprep.subr.bf16.mxu1 %v3614_v48  ;;  %v356_v16 = vld [vmem:[%s3781_s8 + $0x288] sm:$0xff]  ;;  %v387_v46 = vld [vmem:[%s3781_s8 + $0x380] sm:$0xff]  ;;  %v2834_v50 = vcombine.low %v379_v38, %v383_v39 }
  0x47   : > { %1805 = vmatmul.mubr.bf16.gmra.mxu1 %v2756_v18  ;;  %1651 = vmatprep.mubr.bf16.mxu0 %v2763_v19  ;;  %v2802_v18 = vcombine.low %v347_v6, %v351_v7  ;;  %v2804_v19 = vcombine.low %v348_v8, %v352_v9  ;;  %v2812_v27 = vcombine.low %v356_v16, %v360_v17  ;;  %v388_v48 = vld [vmem:[%s3781_s8 + $0x388] sm:$0xff]  ;;  %v285_v6 = vld [vmem:[%s3781_s8 + $0x50] sm:$0xff]  ;;  %v286_v8 = vld [vmem:[%s3781_s8 + $0x58] sm:$0xff] }
  0x48   : > { %1812 = vmatprep.mubr.bf16.mxu1 %v2765_v21  ;;  %3321 = vmatpush3.bf16.msra.mxu0 %v3613_v47  ;;  %v2813_v21 = vcombine.high %v356_v16, %v360_v17  ;;  %v391_v47 = vld [vmem:[%s3781_s8 + $0x3a0] sm:$0xff]  ;;  %v289_v7 = vld [vmem:[%s3781_s8 + $0x70] sm:$0xff]  ;;  %v290_v9 = vld [vmem:[%s3781_s8 + $0x78] sm:$0xff] }
  0x49   : > { %3433 = vmatpush3.bf16.msra.mxu1 %v3615_v49  ;;  %3322 = vmatprep.subr.bf16.mxu0 %v3616_v55  ;;  %v392_v49 = vld [vmem:[%s3781_s8 + $0x3a8] sm:$0xff]  ;;  %v2843_v52 = vcombine.high %v387_v46, %v391_v47  ;;  %v399_v55 = vld [vmem:[%s3781_s8 + $0x3e0] sm:$0xff]  ;;  %v294_v16 = vld [vmem:[%s3781_s8 + $0x98] sm:$0xff] }
  0x4a   : > { %3434 = vmatprep.subr.bf16.mxu1 %v3618_v60  ;;  %v2845_v53 = vcombine.high %v388_v48, %v392_v49  ;;  %v298_v17 = vld [vmem:[%s3781_s8 + $0xb8] sm:$0xff] }
  0x4c   : > { %3323 = vmatpush3.bf16.msra.mxu0 %v3617_v58  ;;  %v2842_v58 = vcombine.low %v387_v46, %v391_v47  ;;  %v325_v46 = vld [vmem:[%s3781_s8 + $0x190] sm:$0xff] }
  0x4d   : > { %3435 = vmatpush3.bf16.msra.mxu1 %v3619_v61  ;;  %v329_v47 = vld [vmem:[%s3781_s8 + $0x1b0] sm:$0xff] }
  0x4e   : > { %1652 = vmatmul.mubr.bf16.gmra.mxu0 %v2762_v30  ;;  %v371_v30 = vld [vmem:[%s3781_s8 + $0x300] sm:$0xff] }
  0x4f   : > { %1813 = vmatmul.mubr.bf16.gmra.mxu1 %v2764_v31  ;;  %1659 = vmatprep.mubr.bf16.mxu0 %v2771_v32  ;;  %v375_v31 = vld [vmem:[%s3781_s8 + $0x320] sm:$0xff]  ;;  %v372_v32 = vld [vmem:[%s3781_s8 + $0x308] sm:$0xff] }
  0x50   : > { %1820 = vmatprep.mubr.bf16.mxu1 %v2773_v33  ;;  %v376_v33 = vld [vmem:[%s3781_s8 + $0x328] sm:$0xff]  ;;  %v2827_v36 = vcombine.high %v371_v30, %v375_v31 }
  0x51   : > { %v2829_v37 = vcombine.high %v372_v32, %v376_v33 }
  0x56   : > { %1660 = vmatmul.mubr.bf16.gmra.mxu0 %v2770_v42  ;;  %v2826_v42 = vcombine.low %v371_v30, %v375_v31  ;;  %v309_v30 = vld [vmem:[%s3781_s8 + $0x110] sm:$0xff] }
  0x57   : > { %1821 = vmatmul.mubr.bf16.gmra.mxu1 %v2772_v43  ;;  %1667 = vmatprep.mubr.bf16.mxu0 %v2779_v44  ;;  %v2828_v43 = vcombine.low %v372_v32, %v376_v33  ;;  %v2835_v44 = vcombine.high %v379_v38, %v383_v39  ;;  %v313_v31 = vld [vmem:[%s3781_s8 + $0x130] sm:$0xff]  ;;  %v310_v32 = vld [vmem:[%s3781_s8 + $0x118] sm:$0xff] }
  0x58   : > { %1828 = vmatprep.mubr.bf16.mxu1 %v2781_v45  ;;  %v2837_v45 = vcombine.high %v380_v40, %v384_v41  ;;  %v314_v33 = vld [vmem:[%s3781_s8 + $0x138] sm:$0xff]  ;;  %v317_v38 = vld [vmem:[%s3781_s8 + $0x150] sm:$0xff] }
  0x59   : > { %v321_v39 = vld [vmem:[%s3781_s8 + $0x170] sm:$0xff]  ;;  %v318_v40 = vld [vmem:[%s3781_s8 + $0x158] sm:$0xff] }
  0x5a   : > { %v322_v41 = vld [vmem:[%s3781_s8 + $0x178] sm:$0xff] }
  0x5e   : > { %1668 = vmatmul.mubr.bf16.gmra.mxu0 %v2778_v54  ;;  %v395_v54 = vld [vmem:[%s3781_s8 + $0x3c0] sm:$0xff] }
  0x5f   : > { %1829 = vmatmul.mubr.bf16.gmra.mxu1 %v2780_v56  ;;  %1675 = vmatprep.mubr.bf16.mxu0 %v2787_v57  ;;  %v396_v56 = vld [vmem:[%s3781_s8 + $0x3c8] sm:$0xff]  ;;  %v2851_v60 = vcombine.high %v395_v54, %v399_v55 }
  0x60   : > { %1836 = vmatprep.mubr.bf16.mxu1 %v2789_v59  ;;  %v400_v57 = vld [vmem:[%s3781_s8 + $0x3e8] sm:$0xff]  ;;  %v2844_v59 = vcombine.low %v388_v48, %v392_v49  ;;  %v326_v48 = vld [vmem:[%s3781_s8 + $0x198] sm:$0xff] }
  0x61   : > { %v2853_v61 = vcombine.high %v396_v56, %v400_v57  ;;  %v330_v49 = vld [vmem:[%s3781_s8 + $0x1b8] sm:$0xff] }
  0x66   : > { %1676 = vmatmul.mubr.bf16.gmra.mxu0 %v2786_v2  ;;  %v2850_v2 = vcombine.low %v395_v54, %v399_v55  ;;  %v333_v54 = vld [vmem:[%s3781_s8 + $0x1d0] sm:$0xff] }
  0x67   : > { %1837 = vmatmul.mubr.bf16.gmra.mxu1 %v2788_v3  ;;  %1683 = vmatprep.mubr.bf16.mxu0 %v2795_v4  ;;  %v2852_v3 = vcombine.low %v396_v56, %v400_v57  ;;  %v2735_v4 = vcombine.high %v277_v62, %v281_v63  ;;  %v337_v55 = vld [vmem:[%s3781_s8 + $0x1f0] sm:$0xff]  ;;  %v334_v56 = vld [vmem:[%s3781_s8 + $0x1d8] sm:$0xff] }
  0x68   : > { %1844 = vmatprep.mubr.bf16.mxu1 %v2797_v5  ;;  %v2737_v5 = vcombine.high %v278_v0, %v282_v1  ;;  %v338_v57 = vld [vmem:[%s3781_s8 + $0x1f8] sm:$0xff] }
  0x6e   : > { %1684 = vmatmul.mubr.bf16.gmra.mxu0 %v2794_v10  ;;  %v2734_v10 = vcombine.low %v277_v62, %v281_v63  ;;  %v341_v62 = vld [vmem:[%s3781_s8 + $0x210] sm:$0xff] }
  0x6f   : > { %1845 = vmatmul.mubr.bf16.gmra.mxu1 %v2796_v11  ;;  %1691 = vmatprep.mubr.bf16.mxu0 %v2803_v12  ;;  %v2736_v11 = vcombine.low %v278_v0, %v282_v1  ;;  %v2743_v12 = vcombine.high %v285_v6, %v289_v7  ;;  %v345_v63 = vld [vmem:[%s3781_s8 + $0x230] sm:$0xff]  ;;  %v342_v0 = vld [vmem:[%s3781_s8 + $0x218] sm:$0xff] }
  0x70   : > { %1852 = vmatprep.mubr.bf16.mxu1 %v2805_v13  ;;  %v2745_v13 = vcombine.high %v286_v8, %v290_v9  ;;  %v346_v1 = vld [vmem:[%s3781_s8 + $0x238] sm:$0xff] }
  0x76   : > { %1692 = vmatmul.mubr.bf16.gmra.mxu0 %v2802_v18  ;;  %v2742_v18 = vcombine.low %v285_v6, %v289_v7  ;;  %v349_v6 = vld [vmem:[%s3781_s8 + $0x250] sm:$0xff] }
  0x77   : > { %1853 = vmatmul.mubr.bf16.gmra.mxu1 %v2804_v19  ;;  %1699 = vmatprep.mubr.bf16.mxu0 %v2811_v20  ;;  %v2744_v19 = vcombine.low %v286_v8, %v290_v9  ;;  %v2751_v20 = vcombine.high %v293_v14, %v297_v15  ;;  %v353_v7 = vld [vmem:[%s3781_s8 + $0x270] sm:$0xff]  ;;  %v350_v8 = vld [vmem:[%s3781_s8 + $0x258] sm:$0xff] }
  0x78   : > { %1860 = vmatprep.mubr.bf16.mxu1 %v2813_v21  ;;  %v2753_v21 = vcombine.high %v294_v16, %v298_v17  ;;  %v354_v9 = vld [vmem:[%s3781_s8 + $0x278] sm:$0xff] }
  0x7e   : > { %1700 = vmatmul.mubr.bf16.gmra.mxu0 %v2810_v26  ;;  %v2750_v26 = vcombine.low %v293_v14, %v297_v15 }
  0x7f   : > { %1861 = vmatmul.mubr.bf16.gmra.mxu1 %v2812_v27  ;;  %1707 = vmatprep.mubr.bf16.mxu0 %v2819_v28  ;;  %v2752_v27 = vcombine.low %v294_v16, %v298_v17  ;;  %v2759_v28 = vcombine.high %v301_v22, %v305_v23  ;;  %v357_v17 = vld [vmem:[%s3781_s8 + $0x290] sm:$0xff] }
  0x80   : > { %1868 = vmatprep.mubr.bf16.mxu1 %v2821_v29  ;;  %v2761_v29 = vcombine.high %v302_v24, %v306_v25 }
  0x86   : > { %1708 = vmatmul.mubr.bf16.gmra.mxu0 %v2818_v34  ;;  %v2758_v34 = vcombine.low %v301_v22, %v305_v23  ;;  %v362_v22 = vld [vmem:[%s3781_s8 + $0x2b8] sm:$0xff] }
  0x87   : > { %1869 = vmatmul.mubr.bf16.gmra.mxu1 %v2820_v35  ;;  %1715 = vmatprep.mubr.bf16.mxu0 %v2827_v36  ;;  %v2760_v35 = vcombine.low %v302_v24, %v306_v25  ;;  %v2767_v36 = vcombine.high %v309_v30, %v313_v31  ;;  %v2806_v25 = vcombine.low %v349_v6, %v353_v7 }
  0x88   : > { %1876 = vmatprep.mubr.bf16.mxu1 %v2829_v37  ;;  %v2769_v37 = vcombine.high %v310_v32, %v314_v33 }
  0x8e   : > { %1716 = vmatmul.mubr.bf16.gmra.mxu0 %v2826_v42  ;;  %v2766_v42 = vcombine.low %v309_v30, %v313_v31 }
  0x8f   : > { %1877 = vmatmul.mubr.bf16.gmra.mxu1 %v2828_v43  ;;  %1723 = vmatprep.mubr.bf16.mxu0 %v2835_v44  ;;  %v2768_v43 = vcombine.low %v310_v32, %v314_v33  ;;  %v2775_v44 = vcombine.high %v317_v38, %v321_v39 }
  0x90   : > { %1884 = vmatprep.mubr.bf16.mxu1 %v2837_v45  ;;  %v2777_v45 = vcombine.high %v318_v40, %v322_v41 }
  0x96   : > { %1724 = vmatmul.mubr.bf16.gmra.mxu0 %v2834_v50  ;;  %v2774_v50 = vcombine.low %v317_v38, %v321_v39  ;;  %v365_v39 = vld [vmem:[%s3781_s8 + $0x2d0] sm:$0xff] }
  0x97   : > { %1885 = vmatmul.mubr.bf16.gmra.mxu1 %v2836_v51  ;;  %1731 = vmatprep.mubr.bf16.mxu0 %v2843_v52  ;;  %v2776_v51 = vcombine.low %v318_v40, %v322_v41  ;;  %v2783_v52 = vcombine.high %v325_v46, %v329_v47  ;;  %v369_v40 = vld [vmem:[%s3781_s8 + $0x2f0] sm:$0xff] }
  0x98   : > { %1892 = vmatprep.mubr.bf16.mxu1 %v2845_v53  ;;  %v2785_v53 = vcombine.high %v326_v48, %v330_v49 }
  0x9e   : > { %1732 = vmatmul.mubr.bf16.gmra.mxu0 %v2842_v58  ;;  %v2782_v58 = vcombine.low %v325_v46, %v329_v47 }
  0x9f   : > { %1893 = vmatmul.mubr.bf16.gmra.mxu1 %v2844_v59  ;;  %1739 = vmatprep.mubr.bf16.mxu0 %v2851_v60  ;;  %v2784_v59 = vcombine.low %v326_v48, %v330_v49  ;;  %v2791_v60 = vcombine.high %v333_v54, %v337_v55 }
  0xa0   : > { %1900 = vmatprep.mubr.bf16.mxu1 %v2853_v61  ;;  %v2793_v61 = vcombine.high %v334_v56, %v338_v57 }
  0xa6   : > { %1740 = vmatmul.mubr.bf16.gmra.mxu0 %v2850_v2  ;;  %v2790_v2 = vcombine.low %v333_v54, %v337_v55 }
  0xa7   : > { %1901 = vmatmul.mubr.bf16.gmra.mxu1 %v2852_v3  ;;  %1941 = vmatprep.mubr.bf16.mxu0 %v2735_v4  ;;  %v2792_v3 = vcombine.low %v334_v56, %v338_v57  ;;  %v2799_v4 = vcombine.high %v341_v62, %v345_v63 }
  0xa8   : > { %2102 = vmatprep.mubr.bf16.mxu1 %v2737_v5  ;;  %v2801_v5 = vcombine.high %v342_v0, %v346_v1 }
  0xae   : > { %1942 = vmatmul.mubr.bf16.vlgmr.msra.gmra.mxu0 %v2734_v10  ;;  %v2798_v10 = vcombine.low %v341_v62, %v345_v63  ;;  %v377_v62 = vld [vmem:[%s3781_s8 + $0x330] sm:$0xff] }
  0xaf   : > { %2103 = vmatmul.mubr.bf16.vlgmr.msra.gmra.mxu1 %v2736_v11  ;;  %1949 = vmatprep.mubr.bf16.mxu0 %v2743_v12  ;;  %v2800_v11 = vcombine.low %v342_v0, %v346_v1  ;;  %v2807_v12 = vcombine.high %v349_v6, %v353_v7  ;;  %v374_v1 = vld [vmem:[%s3781_s8 + $0x318] sm:$0xff] }
  0xb0   : > { %2110 = vmatprep.mubr.bf16.mxu1 %v2745_v13  ;;  %v2809_v13 = vcombine.high %v350_v8, %v354_v9 }
  0xb6   : > { %1950 = vmatmul.mubr.bf16.gmra.mxu0 %v2742_v18  ;;  %v361_v18 = vld [vmem:[%s3781_s8 + $0x2b0] sm:$0xff] }
  0xb7   : > { %2111 = vmatmul.mubr.bf16.gmra.mxu1 %v2744_v19  ;;  %1957 = vmatprep.mubr.bf16.mxu0 %v2751_v20  ;;  %v2814_v47 = vcombine.low %v357_v17, %v361_v18 }
  0xb8   : > { %2118 = vmatprep.mubr.bf16.mxu1 %v2753_v21  ;;  %v358_v21 = vld [vmem:[%s3781_s8 + $0x298] sm:$0xff] }
  0xb9   : > { %v2817_v31 = vcombine.high %v358_v21, %v362_v22  ;;  %v2816_v49 = vcombine.low %v358_v21, %v362_v22 }
  0xbe   : > { %1958 = vmatmul.mubr.bf16.gmra.mxu0 %v2750_v26 }
  0xbf   : > { %2119 = vmatmul.mubr.bf16.gmra.mxu1 %v2752_v27  ;;  %1965 = vmatprep.mubr.bf16.mxu0 %v2759_v28  ;;  %v2808_v27 = vcombine.low %v350_v8, %v354_v9  ;;  %v2815_v28 = vcombine.high %v357_v17, %v361_v18 }
  0xc0   : > { %2126 = vmatprep.mubr.bf16.mxu1 %v2761_v29 }
  0xc6   : > { %1966 = vmatmul.mubr.bf16.gmra.mxu0 %v2758_v34 }
  0xc7   : > { %2127 = vmatmul.mubr.bf16.gmra.mxu1 %v2760_v35  ;;  %1973 = vmatprep.mubr.bf16.mxu0 %v2767_v36 }
  0xc8   : > { %2134 = vmatprep.mubr.bf16.mxu1 %v2769_v37 }
  0xce   : > { %1974 = vmatmul.mubr.bf16.gmra.mxu0 %v2766_v42 }
  0xcf   : > { %2135 = vmatmul.mubr.bf16.gmra.mxu1 %v2768_v43  ;;  %1981 = vmatprep.mubr.bf16.mxu0 %v2775_v44  ;;  %v366_v43 = vld [vmem:[%s3781_s8 + $0x2d8] sm:$0xff] }
  0xd0   : > { %2142 = vmatprep.mubr.bf16.mxu1 %v2777_v45  ;;  %v370_v44 = vld [vmem:[%s3781_s8 + $0x2f8] sm:$0xff] }
  0xd1   : > { %v2824_v7 = vcombine.low %v366_v43, %v370_v44 }
  0xd6   : > { %1982 = vmatmul.mubr.bf16.gmra.mxu0 %v2774_v50  ;;  %v2823_v50 = vcombine.high %v365_v39, %v369_v40 }
  0xd7   : > { %2143 = vmatmul.mubr.bf16.gmra.mxu1 %v2776_v51  ;;  %1989 = vmatprep.mubr.bf16.mxu0 %v2783_v52 }
  0xd8   : > { %2150 = vmatprep.mubr.bf16.mxu1 %v2785_v53  ;;  %v2825_v53 = vcombine.high %v366_v43, %v370_v44  ;;  %v389_v43 = vld [vmem:[%s3781_s8 + $0x390] sm:$0xff] }
  0xd9   : > { %v393_v44 = vld [vmem:[%s3781_s8 + $0x3b0] sm:$0xff] }
  0xde   : > { %1990 = vmatmul.mubr.bf16.gmra.mxu0 %v2782_v58 }
  0xdf   : > { %2151 = vmatmul.mubr.bf16.gmra.mxu1 %v2784_v59  ;;  %1997 = vmatprep.mubr.bf16.mxu0 %v2791_v60 }
  0xe0   : > { %2158 = vmatprep.mubr.bf16.mxu1 %v2793_v61  ;;  %v373_v61 = vld [vmem:[%s3781_s8 + $0x310] sm:$0xff] }
  0xe1   : > { %v2831_v8 = vcombine.high %v373_v61, %v377_v62 }
  0xe6   : > { %1998 = vmatmul.mubr.bf16.gmra.mxu0 %v2790_v2  ;;  %v378_v2 = vld [vmem:[%s3781_s8 + $0x338] sm:$0xff] }
  0xe7   : > { %2159 = vmatmul.mubr.bf16.gmra.mxu1 %v2792_v3  ;;  %2005 = vmatprep.mubr.bf16.mxu0 %v2799_v4 }
  0xe8   : > { %2166 = vmatprep.mubr.bf16.mxu1 %v2801_v5  ;;  %v2822_v5 = vcombine.low %v365_v39, %v369_v40 }
  0xee   : > { %v3100_v14 = vpop.f32.mrf.mxu0  ;;  %2006 = vmatmul.mubr.bf16.gmra.mxu0 %v2798_v10 }
  0xef   : > { %v3212_v15 = vpop.f32.mrf.mxu1  ;;  %2167 = vmatmul.mubr.bf16.gmra.mxu1 %v2800_v11  ;;  %2013 = vmatprep.mubr.bf16.mxu0 %v2807_v12  ;;  %v2833_v11 = vcombine.high %v374_v1, %v378_v2 }
  0xf0   : > { %v3101_v16 = vpop.f32.mrf.mxu0  ;;  %2174 = vmatprep.mubr.bf16.mxu1 %v2809_v13 }
  0xf1   : > { %v3102_v19 = vadd.f32 %v3101_v16, %v3100_v14  ;;  %v3213_v20 = vpop.f32.mrf.mxu1 }
  0xf2   : > { %v3214_v23 = vadd.f32 %v3213_v20, %v3212_v15  ;;  %v3103_v24 = vpop.f32.mrf.mxu0  ;;  %v385_v20 = vld [vmem:[%s3781_s8 + $0x370] sm:$0xff] }
  0xf3   : > { %v3215_v26 = vpop.f32.mrf.mxu1 }
  0xf4   : > { %v3993_v29 = vadd.f32 %v3214_v23, %v3102_v19  ;;  %v3104_v30 = vpop.f32.mrf.mxu0  ;;  %v381_v19 = vld [vmem:[%s3781_s8 + $0x350] sm:$0xff]  ;;  %v382_v23 = vld [vmem:[%s3781_s8 + $0x358] sm:$0xff] }
  0xf5   : > { %v3105_v32 = vadd.f32 %v3104_v30, %v3103_v24  ;;  %v3216_v33 = vpop.f32.mrf.mxu1  ;;  %v386_v24 = vld [vmem:[%s3781_s8 + $0x378] sm:$0xff]  ;;  %v2832_v30 = vcombine.low %v374_v1, %v378_v2 }
  0xf6   : > { %v3217_v34 = vadd.f32 %v3216_v33, %v3215_v26  ;;  %v3106_v35 = vpop.f32.mrf.mxu0  ;;  %2014 = vmatmul.mubr.bf16.gmra.mxu0 %v2806_v25 }
  0xf7   : > { %v3218_v36 = vpop.f32.mrf.mxu1  ;;  %2175 = vmatmul.mubr.bf16.gmra.mxu1 %v2808_v27  ;;  %2021 = vmatprep.mubr.bf16.mxu0 %v2815_v28  ;;  %v2830_v27 = vcombine.low %v373_v61, %v377_v62 }
  0xf8   : > { %v3995_v37 = vadd.f32 %v3217_v34, %v3105_v32  ;;  %v3107_v38 = vpop.f32.mrf.mxu0  ;;  %2182 = vmatprep.mubr.bf16.mxu1 %v2817_v31  ;;  %v2839_v31 = vcombine.high %v381_v19, %v385_v20  ;;  %v2841_v34 = vcombine.high %v382_v23, %v386_v24 }
  0xf9   : > { %v3108_v41 = vadd.f32 %v3107_v38, %v3106_v35  ;;  %v3219_v42 = vpop.f32.mrf.mxu1 }
  0xfa   : > { %v3220_v45 = vadd.f32 %v3219_v42, %v3218_v36  ;;  %v3109_v46 = vpop.f32.mrf.mxu0 }
  0xfb   : > { %v3221_v48 = vpop.f32.mrf.mxu1 }
  0xfc   : > { %v4001_v51 = vadd.f32 %v3220_v45, %v3108_v41  ;;  %v3110_v52 = vpop.f32.mrf.mxu0 }
  0xfd   : > { %v3111_v54 = vadd.f32 %v3110_v52, %v3109_v46  ;;  %v3222_v55 = vpop.f32.mrf.mxu1  ;;  %v2838_v52 = vcombine.low %v381_v19, %v385_v20 }
  0xfe   : > { %v3223_v56 = vadd.f32 %v3222_v55, %v3221_v48  ;;  %v3112_v57 = vpop.f32.mrf.mxu0  ;;  %2022 = vmatmul.mubr.bf16.gmra.mxu0 %v2814_v47  ;;  %v390_v47 = vld [vmem:[%s3781_s8 + $0x398] sm:$0xff]  ;;  %v2847_v55 = vcombine.high %v389_v43, %v393_v44 }
  0xff   : > { %v3224_v58 = vpop.f32.mrf.mxu1  ;;  %2183 = vmatmul.mubr.bf16.gmra.mxu1 %v2816_v49  ;;  %2029 = vmatprep.mubr.bf16.mxu0 %v2823_v50  ;;  %v394_v48 = vld [vmem:[%s3781_s8 + $0x3b8] sm:$0xff] }
 0x100   : > { %v4003_v59 = vadd.f32 %v3223_v56, %v3111_v54  ;;  %v3113_v60 = vpop.f32.mrf.mxu0  ;;  %2190 = vmatprep.mubr.bf16.mxu1 %v2825_v53  ;;  %v2840_v54 = vcombine.low %v382_v23, %v386_v24 }
 0x101   : > { %v3114_v63 = vadd.f32 %v3113_v60, %v3112_v57  ;;  %v3225_v0 = vpop.f32.mrf.mxu1 }
 0x102   : > { %v3226_v3 = vadd.f32 %v3225_v0, %v3224_v58  ;;  %v3115_v4 = vpop.f32.mrf.mxu0  ;;  %v2849_v58 = vcombine.high %v390_v47, %v394_v48 }
 0x103   : > { %v3227_v6 = vpop.f32.mrf.mxu1 }
 0x104   : > { %v4009_v9 = vadd.f32 %v3226_v3, %v3114_v63  ;;  %v3116_v10 = vpop.f32.mrf.mxu0  ;;  %v397_v3 = vld [vmem:[%s3781_s8 + $0x3d0] sm:$0xff] }
 0x105   : > { %v3117_v12 = vadd.f32 %v3116_v10, %v3115_v4  ;;  %v3228_v13 = vpop.f32.mrf.mxu1  ;;  %v401_v4 = vld [vmem:[%s3781_s8 + $0x3f0] sm:$0xff] }
 0x106   : > { %v3229_v14 = vadd.f32 %v3228_v13, %v3227_v6  ;;  %v3118_v15 = vpop.f32.mrf.mxu0  ;;  %2030 = vmatmul.mubr.bf16.gmra.mxu0 %v2822_v5 }
 0x107   : > { %v3230_v16 = vpop.f32.mrf.mxu1  ;;  %2191 = vmatmul.mubr.bf16.gmra.mxu1 %v2824_v7  ;;  %2037 = vmatprep.mubr.bf16.mxu0 %v2831_v8  ;;  %v398_v7 = vld [vmem:[%s3781_s8 + $0x3d8] sm:$0xff] }
 0x108   : > { %v4011_v17 = vadd.f32 %v3229_v14, %v3117_v12  ;;  %v3119_v18 = vpop.f32.mrf.mxu0  ;;  %2198 = vmatprep.mubr.bf16.mxu1 %v2833_v11  ;;  %v402_v8 = vld [vmem:[%s3781_s8 + $0x3f8] sm:$0xff]  ;;  %v2846_v12 = vcombine.low %v389_v43, %v393_v44  ;;  %v2848_v14 = vcombine.low %v390_v47, %v394_v48  ;;  %s2728_s8 = sshll.u32 %s4154_s25, 2  ;;  %s2729_s25 = sshll.u32 %s4156_s12, 3 }
 0x109   : > { %v3120_v21 = vadd.f32 %v3119_v18, %v3118_v15  ;;  %v3231_v22 = vpop.f32.mrf.mxu1  ;;  %v2855_v15 = vcombine.high %v397_v3, %v401_v4  ;;  %v2857_v19 = vcombine.high %v398_v7, %v402_v8  ;;  %s4083_s20 = scalar_lea.vmem %s4147_s2, %s2728_s8  ;;  %s237_s23 = scalar_lea.vmem %s4148_s3, %s2729_s25 }
 0x10a   : > { %v3232_v25 = vadd.f32 %v3231_v22, %v3230_v16  ;;  %v3121_v26 = vpop.f32.mrf.mxu0 }
 0x10b   : > { %v3233_v28 = vpop.f32.mrf.mxu1 }
 0x10c   : > { %v4017_v32 = vadd.f32 %v3232_v25, %v3120_v21  ;;  %v3122_v33 = vpop.f32.mrf.mxu0 }
 0x10d   : > { %v3123_v35 = vadd.f32 %v3122_v33, %v3121_v26  ;;  %v3234_v36 = vpop.f32.mrf.mxu1  ;;  %v2854_v33 = vcombine.low %v397_v3, %v401_v4 }
 0x10e   : > { %v3235_v38 = vadd.f32 %v3234_v36, %v3233_v28  ;;  %v3124_v39 = vpop.f32.mrf.mxu0  ;;  %2038 = vmatmul.mubr.bf16.gmra.mxu0 %v2830_v27 }
 0x10f   : > { %v3236_v40 = vpop.f32.mrf.mxu1  ;;  %2199 = vmatmul.mubr.bf16.gmra.mxu1 %v2832_v30  ;;  %2045 = vmatprep.mubr.bf16.mxu0 %v2839_v31 }
 0x110   : > { %v4019_v41 = vadd.f32 %v3235_v38, %v3123_v35  ;;  %v3125_v42 = vpop.f32.mrf.mxu0  ;;  %2206 = vmatprep.mubr.bf16.mxu1 %v2841_v34  ;;  %v2856_v35 = vcombine.low %v398_v7, %v402_v8 }
 0x111   : > { %v3126_v45 = vadd.f32 %v3125_v42, %v3124_v39  ;;  %v3237_v46 = vpop.f32.mrf.mxu1 }
 0x112   : > { %v3238_v49 = vadd.f32 %v3237_v46, %v3236_v40  ;;  %v3127_v50 = vpop.f32.mrf.mxu0 }
 0x113   : > { %v3239_v53 = vpop.f32.mrf.mxu1 }
 0x114   : > { %v4025_v56 = vadd.f32 %v3238_v49, %v3126_v45  ;;  %v3128_v57 = vpop.f32.mrf.mxu0 }
 0x115   : > { %v3129_v60 = vadd.f32 %v3128_v57, %v3127_v50  ;;  %v3240_v61 = vpop.f32.mrf.mxu1 }
 0x116   : > { %v3241_v62 = vadd.f32 %v3240_v61, %v3239_v53  ;;  %v3130_v63 = vpop.f32.mrf.mxu0  ;;  %2046 = vmatmul.mubr.bf16.gmra.mxu0 %v2838_v52 }
 0x117   : > { %v3242_v0 = vpop.f32.mrf.mxu1  ;;  %2207 = vmatmul.mubr.bf16.gmra.mxu1 %v2840_v54  ;;  %2053 = vmatprep.mubr.bf16.mxu0 %v2847_v55 }
 0x118   : > { %v4027_v1 = vadd.f32 %v3241_v62, %v3129_v60  ;;  %v3131_v2 = vpop.f32.mrf.mxu0  ;;  %2214 = vmatprep.mubr.bf16.mxu1 %v2849_v58 }
 0x119   : > { %v3132_v5 = vadd.f32 %v3131_v2, %v3130_v63  ;;  %v3243_v6 = vpop.f32.mrf.mxu1 }
 0x11a   : > { %v3244_v10 = vadd.f32 %v3243_v6, %v3242_v0  ;;  %v3133_v11 = vpop.f32.mrf.mxu0 }
 0x11b   : > { %v3245_v13 = vpop.f32.mrf.mxu1 }
 0x11c   : > { %v4033_v16 = vadd.f32 %v3244_v10, %v3132_v5  ;;  %v3134_v18 = vpop.f32.mrf.mxu0 }
 0x11d   : > { %v3135_v20 = vadd.f32 %v3134_v18, %v3133_v11  ;;  %v3246_v21 = vpop.f32.mrf.mxu1 }
 0x11e   : > { %v3247_v22 = vadd.f32 %v3246_v21, %v3245_v13  ;;  %v3136_v23 = vpop.f32.mrf.mxu0  ;;  %2054 = vmatmul.mubr.bf16.gmra.mxu0 %v2846_v12 }
 0x11f   : > { %v3248_v24 = vpop.f32.mrf.mxu1  ;;  %2215 = vmatmul.mubr.bf16.gmra.mxu1 %v2848_v14  ;;  %2061 = vmatprep.mubr.bf16.mxu0 %v2855_v15 }
 0x120   : > { %v4035_v25 = vadd.f32 %v3247_v22, %v3135_v20  ;;  %v3137_v26 = vpop.f32.mrf.mxu0  ;;  %2222 = vmatprep.mubr.bf16.mxu1 %v2857_v19 }
 0x121   : > { %v3138_v27 = vadd.f32 %v3137_v26, %v3136_v23  ;;  %v3249_v28 = vpop.f32.mrf.mxu1 }
 0x122   : > { %v3250_v30 = vadd.f32 %v3249_v28, %v3248_v24  ;;  %v3139_v31 = vpop.f32.mrf.mxu0 }
 0x123   : > { %v3251_v34 = vpop.f32.mrf.mxu1 }
 0x124   : > { %v4037_v36 = vadd.f32 %v3250_v30, %v3138_v27  ;;  %v3140_v38 = vpop.f32.mrf.mxu0 }
 0x125   : > { %v3141_v39 = vadd.f32 %v3140_v38, %v3139_v31  ;;  %v3252_v40 = vpop.f32.mrf.mxu1 }
 0x126   : > { %v3253_v42 = vadd.f32 %v3252_v40, %v3251_v34  ;;  %v3142_v43 = vpop.f32.mrf.mxu0  ;;  %2062 = vmatmul.mubr.bf16.gmra.mxu0 %v2854_v33 }
 0x127   : > { %v3254_v44 = vpop.f32.mrf.mxu1  ;;  %2223 = vmatmul.mubr.bf16.gmra.mxu1 %v2856_v35 }
 0x128   : > { %v4039_v45 = vadd.f32 %v3253_v42, %v3141_v39  ;;  %v3143_v46 = vpop.f32.mrf.mxu0 }
 0x129   : > { %v3144_v47 = vadd.f32 %v3143_v46, %v3142_v43  ;;  %v3255_v48 = vpop.f32.mrf.mxu1 }
 0x12a   : > { %v3256_v49 = vadd.f32 %v3255_v48, %v3254_v44  ;;  %v3145_v50 = vpop.f32.mrf.mxu0 }
 0x12b   : > { %v3257_v52 = vpop.f32.mrf.mxu1 }
 0x12c   : > { %v4041_v53 = vadd.f32 %v3256_v49, %v3144_v47  ;;  %v3146_v54 = vpop.f32.mrf.mxu0 }
 0x12d   : > { %v3147_v55 = vadd.f32 %v3146_v54, %v3145_v50  ;;  %v3258_v57 = vpop.f32.mrf.mxu1 }
 0x12e   : > { %v3259_v58 = vadd.f32 %v3258_v57, %v3257_v52  ;;  %v3148_v60 = vpop.f32.mrf.mxu0 }
 0x12f   : > { %v3260_v61 = vpop.f32.mrf.mxu1 }
 0x130   : > { %v4043_v62 = vadd.f32 %v3259_v58, %v3147_v55  ;;  %v3149_v63 = vpop.f32.mrf.mxu0 }
 0x131   : > { %v3150_v0 = vadd.f32 %v3149_v63, %v3148_v60  ;;  %v3261_v2 = vpop.f32.mrf.mxu1 }
 0x132   : > { %v3262_v3 = vadd.f32 %v3261_v2, %v3260_v61  ;;  %v3151_v4 = vpop.f32.mrf.mxu0 }
 0x133   : > { %v3263_v5 = vpop.f32.mrf.mxu1 }
 0x134   : > { %v4045_v6 = vadd.f32 %v3262_v3, %v3150_v0  ;;  %v3152_v7 = vpop.f32.mrf.mxu0 }
 0x135   : > { %v3153_v8 = vadd.f32 %v3152_v7, %v3151_v4  ;;  %v3264_v10 = vpop.f32.mrf.mxu1 }
 0x136   : > { %v3265_v11 = vadd.f32 %v3264_v10, %v3263_v5  ;;  %v3154_v12 = vpop.f32.mrf.mxu0 }
 0x137   : > { %v3266_v13 = vpop.f32.mrf.mxu1 }
 0x138   : > { %v4047_v14 = vadd.f32 %v3265_v11, %v3153_v8  ;;  %v3155_v15 = vpop.f32.mrf.mxu0 }
 0x139   : > { %v3156_v18 = vadd.f32 %v3155_v15, %v3154_v12  ;;  %v3267_v19 = vpop.f32.mrf.mxu1 }
 0x13a   : > { %v3268_v20 = vadd.f32 %v3267_v19, %v3266_v13  ;;  %v3157_v21 = vpop.f32.mrf.mxu0 }
 0x13b   : > { %v3269_v22 = vpop.f32.mrf.mxu1 }
 0x13c   : > { %v4049_v23 = vadd.f32 %v3268_v20, %v3156_v18  ;;  %v3158_v24 = vpop.f32.mrf.mxu0 }
 0x13d   : > { %v3159_v26 = vadd.f32 %v3158_v24, %v3157_v21  ;;  %v3270_v27 = vpop.f32.mrf.mxu1 }
 0x13e   : > { %v3271_v28 = vadd.f32 %v3270_v27, %v3269_v22  ;;  %v3160_v30 = vpop.f32.mrf.mxu0 }
 0x13f   : > { %v3272_v31 = vpop.f32.mrf.mxu1 }
 0x140   : > { %v4051_v33 = vadd.f32 %v3271_v28, %v3159_v26  ;;  %v3161_v34 = vpop.f32.mrf.mxu0 }
 0x141   : > { %v3162_v35 = vadd.f32 %v3161_v34, %v3160_v30  ;;  %v3273_v38 = vpop.f32.mrf.mxu1 }
 0x142   : > { %v3274_v39 = vadd.f32 %v3273_v38, %v3272_v31  ;;  %v3163_v40 = vpop.f32.mrf.mxu0 }
 0x143   : > { %v3275_v42 = vpop.f32.mrf.mxu1 }
 0x144   : > { %v4053_v43 = vadd.f32 %v3274_v39, %v3162_v35  ;;  %v3164_v44 = vpop.f32.mrf.mxu0 }
 0x145   : > { %v3165_v46 = vadd.f32 %v3164_v44, %v3163_v40  ;;  %v3276_v47 = vpop.f32.mrf.mxu1 }
 0x146   : > { %v3277_v48 = vadd.f32 %v3276_v47, %v3275_v42  ;;  %v3166_v49 = vpop.f32.mrf.mxu0 }
 0x147   : > { %v3278_v50 = vpop.f32.mrf.mxu1 }
 0x148   : > { %v4055_v52 = vadd.f32 %v3277_v48, %v3165_v46  ;;  %v3167_v54 = vpop.f32.mrf.mxu0 }
 0x149   : > { %v3168_v55 = vadd.f32 %v3167_v54, %v3166_v49  ;;  %v3279_v57 = vpop.f32.mrf.mxu1 }
 0x14a   : > { %v3280_v58 = vadd.f32 %v3279_v57, %v3278_v50  ;;  %v3169_v60 = vpop.f32.mrf.mxu0 }
 0x14b   : > { %v3281_v61 = vpop.f32.mrf.mxu1 }
 0x14c   : > { %v4057_v63 = vadd.f32 %v3280_v58, %v3168_v55  ;;  %v3170_v0 = vpop.f32.mrf.mxu0 }
 0x14d   : > { %v3171_v2 = vadd.f32 %v3170_v0, %v3169_v60  ;;  %v3282_v3 = vpop.f32.mrf.mxu1 }
 0x14e   : > { %v3283_v4 = vadd.f32 %v3282_v3, %v3281_v61  ;;  %v3172_v5 = vpop.f32.mrf.mxu0 }
 0x14f   : > { %v3284_v7 = vpop.f32.mrf.mxu1 }
 0x150   : > { %v4059_v8 = vadd.f32 %v3283_v4, %v3171_v2  ;;  %v3173_v10 = vpop.f32.mrf.mxu0 }
 0x151   : > { %v3174_v11 = vadd.f32 %v3173_v10, %v3172_v5  ;;  %v3285_v12 = vpop.f32.mrf.mxu1 }
 0x152   : > { %v3286_v13 = vadd.f32 %v3285_v12, %v3284_v7  ;;  %v3175_v15 = vpop.f32.mrf.mxu0 }
 0x153   : > { %v3287_v18 = vpop.f32.mrf.mxu1 }
 0x154   : > { %v4061_v19 = vadd.f32 %v3286_v13, %v3174_v11  ;;  %v3176_v20 = vpop.f32.mrf.mxu0 }
 0x155   : > { %v3177_v21 = vadd.f32 %v3176_v20, %v3175_v15  ;;  %v3288_v22 = vpop.f32.mrf.mxu1 }
 0x156   : > { %v3289_v24 = vadd.f32 %v3288_v22, %v3287_v18  ;;  %v3178_v26 = vpop.f32.mrf.mxu0 }
 0x157   : > { %v3290_v27 = vpop.f32.mrf.mxu1 }
 0x158   : > { %v4063_v28 = vadd.f32 %v3289_v24, %v3177_v21  ;;  %v3179_v30 = vpop.f32.mrf.mxu0 }
 0x159   : > { %v3180_v31 = vadd.f32 %v3179_v30, %v3178_v26  ;;  %v3291_v34 = vpop.f32.mrf.mxu1 }
 0x15a   : > { %v3292_v35 = vadd.f32 %v3291_v34, %v3290_v27  ;;  %v3181_v38 = vpop.f32.mrf.mxu0 }
 0x15b   : > { %v3293_v39 = vpop.f32.mrf.mxu1 }
 0x15c   : > { %v4065_v40 = vadd.f32 %v3292_v35, %v3180_v31  ;;  %v3182_v42 = vpop.f32.mrf.mxu0 }
 0x15d   : > { %v3183_v44 = vadd.f32 %v3182_v42, %v3181_v38  ;;  %v3294_v46 = vpop.f32.mrf.mxu1 }
 0x15e   : > { %v3295_v47 = vadd.f32 %v3294_v46, %v3293_v39  ;;  %v3184_v48 = vpop.f32.mrf.mxu0 }
 0x15f   : > { %v3296_v49 = vpop.f32.mrf.mxu1 }
 0x160   : > { %v4067_v50 = vadd.f32 %v3295_v47, %v3183_v44  ;;  %v3185_v54 = vpop.f32.mrf.mxu0 }
 0x161   : > { %v3186_v55 = vadd.f32 %v3185_v54, %v3184_v48  ;;  %v3297_v57 = vpop.f32.mrf.mxu1 }
 0x162   : > { %v3298_v58 = vadd.f32 %v3297_v57, %v3296_v49  ;;  %v3187_v60 = vpop.f32.mrf.mxu0 }
 0x163   : > { %v3299_v61 = vpop.f32.mrf.mxu1 }
 0x164   : > { %v4069_v0 = vadd.f32 %v3298_v58, %v3186_v55  ;;  %v3188_v2 = vpop.f32.mrf.mxu0 }
 0x165   : > { %v3189_v3 = vadd.f32 %v3188_v2, %v3187_v60  ;;  %v3300_v4 = vpop.f32.mrf.mxu1 }
 0x166   : > { %v3301_v5 = vadd.f32 %v3300_v4, %v3299_v61  ;;  %v3190_v7 = vpop.f32.mrf.mxu0 }
 0x167   : > { %v3302_v10 = vpop.f32.mrf.mxu1 }
 0x168   : > { %v4071_v11 = vadd.f32 %v3301_v5, %v3189_v3  ;;  %v3191_v12 = vpop.f32.mrf.mxu0 }
 0x169   : > { %v3192_v13 = vadd.f32 %v3191_v12, %v3190_v7  ;;  %v3303_v15 = vpop.f32.mrf.mxu1 }
 0x16a   : > { %v3304_v18 = vadd.f32 %v3303_v15, %v3302_v10  ;;  %v3193_v20 = vpop.f32.mrf.mxu0 }
 0x16b   : > { %v3305_v21 = vpop.f32.mrf.mxu1 }
 0x16c   : > { %v4073_v22 = vadd.f32 %v3304_v18, %v3192_v13  ;;  %v3194_v24 = vpop.f32.mrf.mxu0 }
 0x16d   : > { %v3195_v26 = vadd.f32 %v3194_v24, %v3193_v20  ;;  %v3306_v27 = vpop.f32.mrf.mxu1 }
 0x16e   : > { %v3307_v30 = vadd.f32 %v3306_v27, %v3305_v21  ;;  %v3324_v31 = vpop.f32.mrf.mxu0 }
 0x16f   : > { %v3436_v34 = vpop.f32.mrf.mxu1 }
 0x170   : > { %v4075_v35 = vadd.f32 %v3307_v30, %v3195_v26  ;;  %v3325_v38 = vpop.f32.mrf.mxu0 }
 0x171   : > { %v3326_v39 = vadd.f32 %v3325_v38, %v3324_v31  ;;  %v3437_v42 = vpop.f32.mrf.mxu1 }
 0x172   : > { %v3327_v44 = vpop.f32.mrf.mxu0  ;;  %v3438_v48 = vadd.f32 %v3437_v42, %v3436_v34 }
 0x173   : > { %v1944_v46 = vadd.f32 %v3326_v39, %v3993_v29  ;;  %v3439_v47 = vpop.f32.mrf.mxu1 }
 0x174   : > { %v3328_v49 = vpop.f32.mrf.mxu0 }
 0x175   : > { %v3329_v54 = vadd.f32 %v3328_v49, %v3327_v44  ;;  %v3440_v55 = vpop.f32.mrf.mxu1  ;;  %v2105_v57 = vadd.f32 %v3438_v48, %v1944_v46 }
 0x176   : > { %v3330_v58 = vpop.f32.mrf.mxu0  ;;  %v3441_v61 = vadd.f32 %v3440_v55, %v3439_v47 }
 0x177   : > { %v1947_v60 = vadd.f32 %v3329_v54, %v3995_v37  ;;  %v3442_v2 = vpop.f32.mrf.mxu1  ;;  %v2367_v10 = vmul.f32 %v2105_v57, %v2105_v57 }
 0x178   : > { %v3331_v3 = vpop.f32.mrf.mxu0 }
 0x179   : > { %v2108_v4 = vadd.f32 %v3441_v61, %v1947_v60  ;;  %v3332_v5 = vadd.f32 %v3331_v3, %v3330_v58  ;;  %v3443_v7 = vpop.f32.mrf.mxu1 }
 0x17a   : > { %v3444_v29 = vadd.f32 %v3443_v7, %v3442_v2  ;;  %v3333_v12 = vpop.f32.mrf.mxu0 }
 0x17b   : > { %v2330_v13 = vadd.f32 %v2108_v4, %v2105_v57  ;;  %v2368_v15 = vmul.f32 %v2108_v4, %v2108_v4  ;;  %v2992_v18 = vpack.c.bf16 %v2108_v4, %v2105_v57  ;;  %v1952_v37 = vadd.f32 %v3332_v5, %v4001_v51  ;;  %v3445_v20 = vpop.f32.mrf.mxu1 }
 0x17c   : > { %v3334_v21 = vpop.f32.mrf.mxu0 }
 0x17d   : > { %v2399_v24 = vadd.f32 %v2368_v15, %v2367_v10  ;;  %2993 = vst [vmem:[%s4083_s20] sm:$0xff] %v2992_v18   ;;  %v2113_v26 = vadd.f32 %v3444_v29, %v1952_v37  ;;  %v3335_v27 = vadd.f32 %v3334_v21, %v3333_v12  ;;  %v3446_v30 = vpop.f32.mrf.mxu1 }
 0x17e   : > { %v3336_v31 = vpop.f32.mrf.mxu0  ;;  %v3447_v42 = vadd.f32 %v3446_v30, %v3445_v20 }
 0x17f   : > { %v2331_v34 = vadd.f32 %v2330_v13, %v2113_v26  ;;  %v2369_v38 = vmul.f32 %v2113_v26, %v2113_v26  ;;  %v1955_v39 = vadd.f32 %v3335_v27, %v4003_v59  ;;  %v3448_v44 = vpop.f32.mrf.mxu1 }
 0x180   : > { %v3337_v46 = vpop.f32.mrf.mxu0 }
 0x181   : > { %v2400_v47 = vadd.f32 %v2399_v24, %v2369_v38  ;;  %v2116_v48 = vadd.f32 %v3447_v42, %v1955_v39  ;;  %v3338_v49 = vadd.f32 %v3337_v46, %v3336_v31  ;;  %v3449_v51 = vpop.f32.mrf.mxu1 }
 0x182   : > { %v3450_v54 = vadd.f32 %v3449_v51, %v3448_v44  ;;  %v3339_v55 = vpop.f32.mrf.mxu0 }
 0x183   : > { %v2332_v57 = vadd.f32 %v2331_v34, %v2116_v48  ;;  %v2370_v58 = vmul.f32 %v2116_v48, %v2116_v48  ;;  %v2997_v60 = vpack.c.bf16 %v2116_v48, %v2113_v26  ;;  %v1960_v61 = vadd.f32 %v3338_v49, %v4009_v9  ;;  %v3451_v2 = vpop.f32.mrf.mxu1 }
 0x184   : > { %v3340_v3 = vpop.f32.mrf.mxu0 }
 0x185   : > { %v2401_v4 = vadd.f32 %v2400_v47, %v2370_v58  ;;  %3069 = vst [vmem:[%s4083_s20 + $0x8] sm:$0xff] %v2997_v60   ;;  %v2121_v59 = vadd.f32 %v3450_v54, %v1960_v61  ;;  %v3341_v5 = vadd.f32 %v3340_v3, %v3339_v55  ;;  %v3452_v7 = vpop.f32.mrf.mxu1 }
 0x186   : > { %v3342_v10 = vpop.f32.mrf.mxu0  ;;  %v3453_v15 = vadd.f32 %v3452_v7, %v3451_v2 }
 0x187   : > { %v2333_v29 = vadd.f32 %v2332_v57, %v2121_v59  ;;  %v2371_v12 = vmul.f32 %v2121_v59, %v2121_v59  ;;  %v1963_v13 = vadd.f32 %v3341_v5, %v4011_v17  ;;  %v3454_v18 = vpop.f32.mrf.mxu1 }
 0x188   : > { %v3343_v37 = vpop.f32.mrf.mxu0 }
 0x189   : > { %v2402_v20 = vadd.f32 %v2401_v4, %v2371_v12  ;;  %v2124_v21 = vadd.f32 %v3453_v15, %v1963_v13  ;;  %v3344_v24 = vadd.f32 %v3343_v37, %v3342_v10  ;;  %v3455_v9 = vpop.f32.mrf.mxu1 }
 0x18a   : > { %v3456_v26 = vadd.f32 %v3455_v9, %v3454_v18  ;;  %v3345_v27 = vpop.f32.mrf.mxu0 }
 0x18b   : > { %v2334_v30 = vadd.f32 %v2333_v29, %v2124_v21  ;;  %v2372_v31 = vmul.f32 %v2124_v21, %v2124_v21  ;;  %v3002_v34 = vpack.c.bf16 %v2124_v21, %v2121_v59  ;;  %v1968_v38 = vadd.f32 %v3344_v24, %v4017_v32  ;;  %v3457_v39 = vpop.f32.mrf.mxu1 }
 0x18c   : > { %v3346_v42 = vpop.f32.mrf.mxu0 }
 0x18d   : > { %v2403_v44 = vadd.f32 %v2402_v20, %v2372_v31  ;;  %3070 = vst [vmem:[%s4083_s20 + $0x10] sm:$0xff] %v3002_v34   ;;  %v2129_v17 = vadd.f32 %v3456_v26, %v1968_v38  ;;  %v3347_v46 = vadd.f32 %v3346_v42, %v3345_v27  ;;  %v3458_v47 = vpop.f32.mrf.mxu1 }
 0x18e   : > { %v3348_v48 = vpop.f32.mrf.mxu0  ;;  %v3459_v55 = vadd.f32 %v3458_v47, %v3457_v39 }
 0x18f   : > { %v2335_v49 = vadd.f32 %v2334_v30, %v2129_v17  ;;  %v2373_v51 = vmul.f32 %v2129_v17, %v2129_v17  ;;  %v1971_v54 = vadd.f32 %v3347_v46, %v4019_v41  ;;  %v3460_v57 = vpop.f32.mrf.mxu1 }
 0x190   : > { %v3349_v58 = vpop.f32.mrf.mxu0 }
 0x191   : > { %v2404_v60 = vadd.f32 %v2403_v44, %v2373_v51  ;;  %v2132_v61 = vadd.f32 %v3459_v55, %v1971_v54  ;;  %v3350_v2 = vadd.f32 %v3349_v58, %v3348_v48  ;;  %v3461_v32 = vpop.f32.mrf.mxu1 }
 0x192   : > { %v3462_v3 = vadd.f32 %v3461_v32, %v3460_v57  ;;  %v3351_v4 = vpop.f32.mrf.mxu0 }
 0x193   : > { %v2336_v59 = vadd.f32 %v2335_v49, %v2132_v61  ;;  %v2374_v5 = vmul.f32 %v2132_v61, %v2132_v61  ;;  %v3007_v7 = vpack.c.bf16 %v2132_v61, %v2129_v17  ;;  %v1976_v10 = vadd.f32 %v3350_v2, %v4025_v56  ;;  %v3463_v29 = vpop.f32.mrf.mxu1 }
 0x194   : > { %v3352_v12 = vpop.f32.mrf.mxu0 }
 0x195   : > { %v2405_v13 = vadd.f32 %v2404_v60, %v2374_v5  ;;  %3071 = vst [vmem:[%s4083_s20 + $0x18] sm:$0xff] %v3007_v7   ;;  %v2137_v41 = vadd.f32 %v3462_v3, %v1976_v10  ;;  %v3353_v15 = vadd.f32 %v3352_v12, %v3351_v4  ;;  %v3464_v18 = vpop.f32.mrf.mxu1 }
 0x196   : > { %v3354_v37 = vpop.f32.mrf.mxu0  ;;  %v3465_v9 = vadd.f32 %v3464_v18, %v3463_v29 }
 0x197   : > { %v2337_v20 = vadd.f32 %v2336_v59, %v2137_v41  ;;  %v2375_v21 = vmul.f32 %v2137_v41, %v2137_v41  ;;  %v1979_v24 = vadd.f32 %v3353_v15, %v4027_v1  ;;  %v3466_v26 = vpop.f32.mrf.mxu1 }
 0x198   : > { %v3355_v27 = vpop.f32.mrf.mxu0 }
 0x199   : > { %v2406_v30 = vadd.f32 %v2405_v13, %v2375_v21  ;;  %v2140_v31 = vadd.f32 %v3465_v9, %v1979_v24  ;;  %v3356_v34 = vadd.f32 %v3355_v27, %v3354_v37  ;;  %v3467_v56 = vpop.f32.mrf.mxu1 }
 0x19a   : > { %v3468_v38 = vadd.f32 %v3467_v56, %v3466_v26  ;;  %v3357_v39 = vpop.f32.mrf.mxu0 }
 0x19b   : > { %v2338_v42 = vadd.f32 %v2337_v20, %v2140_v31  ;;  %v2376_v44 = vmul.f32 %v2140_v31, %v2140_v31  ;;  %v3012_v17 = vpack.c.bf16 %v2140_v31, %v2137_v41  ;;  %v1984_v46 = vadd.f32 %v3356_v34, %v4033_v16  ;;  %v3469_v47 = vpop.f32.mrf.mxu1 }
 0x19c   : > { %v3358_v48 = vpop.f32.mrf.mxu0 }
 0x19d   : > { %v2407_v49 = vadd.f32 %v2406_v30, %v2376_v44  ;;  %3072 = vst [vmem:[%s4083_s20 + $0x20] sm:$0xff] %v3012_v17   ;;  %v2145_v1 = vadd.f32 %v3468_v38, %v1984_v46  ;;  %v3359_v51 = vadd.f32 %v3358_v48, %v3357_v39  ;;  %v3470_v54 = vpop.f32.mrf.mxu1 }
 0x19e   : > { %v3360_v55 = vpop.f32.mrf.mxu0  ;;  %v3471_v61 = vadd.f32 %v3470_v54, %v3469_v47 }
 0x19f   : > { %v2339_v57 = vadd.f32 %v2338_v42, %v2145_v1  ;;  %v2377_v58 = vmul.f32 %v2145_v1, %v2145_v1  ;;  %v1987_v60 = vadd.f32 %v3359_v51, %v4035_v25  ;;  %v3472_v2 = vpop.f32.mrf.mxu1 }
 0x1a0   : > { %v3361_v32 = vpop.f32.mrf.mxu0 }
 0x1a1   : > { %v2408_v3 = vadd.f32 %v2407_v49, %v2377_v58  ;;  %v2148_v4 = vadd.f32 %v3471_v61, %v1987_v60  ;;  %v3362_v59 = vadd.f32 %v3361_v32, %v3360_v55  ;;  %v3473_v16 = vpop.f32.mrf.mxu1 }
 0x1a2   : > { %v3474_v5 = vadd.f32 %v3473_v16, %v3472_v2  ;;  %v3363_v7 = vpop.f32.mrf.mxu0 }
 0x1a3   : > { %v2340_v10 = vadd.f32 %v2339_v57, %v2148_v4  ;;  %v2378_v29 = vmul.f32 %v2148_v4, %v2148_v4  ;;  %v3017_v12 = vpack.c.bf16 %v2148_v4, %v2145_v1  ;;  %v1992_v13 = vadd.f32 %v3362_v59, %v4037_v36  ;;  %v3475_v41 = vpop.f32.mrf.mxu1 }
 0x1a4   : > { %v3364_v15 = vpop.f32.mrf.mxu0 }
 0x1a5   : > { %v2409_v18 = vadd.f32 %v2408_v3, %v2378_v29  ;;  %3073 = vst [vmem:[%s4083_s20 + $0x28] sm:$0xff] %v3017_v12   ;;  %v2153_v25 = vadd.f32 %v3474_v5, %v1992_v13  ;;  %v3365_v37 = vadd.f32 %v3364_v15, %v3363_v7  ;;  %v3476_v20 = vpop.f32.mrf.mxu1 }
 0x1a6   : > { %v3366_v21 = vpop.f32.mrf.mxu0  ;;  %v3477_v27 = vadd.f32 %v3476_v20, %v3475_v41 }
 0x1a7   : > { %v2341_v24 = vadd.f32 %v2340_v10, %v2153_v25  ;;  %v2379_v9 = vmul.f32 %v2153_v25, %v2153_v25  ;;  %v1995_v26 = vadd.f32 %v3365_v37, %v4039_v45  ;;  %v3478_v30 = vpop.f32.mrf.mxu1 }
 0x1a8   : > { %v3367_v31 = vpop.f32.mrf.mxu0 }
 0x1a9   : > { %v2410_v34 = vadd.f32 %v2409_v18, %v2379_v9  ;;  %v2156_v56 = vadd.f32 %v3477_v27, %v1995_v26  ;;  %v3368_v38 = vadd.f32 %v3367_v31, %v3366_v21  ;;  %v3479_v36 = vpop.f32.mrf.mxu1 }
 0x1aa   : > { %v3480_v39 = vadd.f32 %v3479_v36, %v3478_v30  ;;  %v3369_v42 = vpop.f32.mrf.mxu0 }
 0x1ab   : > { %v2342_v44 = vadd.f32 %v2341_v24, %v2156_v56  ;;  %v2380_v17 = vmul.f32 %v2156_v56, %v2156_v56  ;;  %v3022_v46 = vpack.c.bf16 %v2156_v56, %v2153_v25  ;;  %v2000_v47 = vadd.f32 %v3368_v38, %v4041_v53  ;;  %v3481_v48 = vpop.f32.mrf.mxu1 }
 0x1ac   : > { %v3370_v49 = vpop.f32.mrf.mxu0 }
 0x1ad   : > { %v2411_v1 = vadd.f32 %v2410_v34, %v2380_v17  ;;  %3074 = vst [vmem:[%s4083_s20 + $0x30] sm:$0xff] %v3022_v46   ;;  %v2161_v45 = vadd.f32 %v3480_v39, %v2000_v47  ;;  %v3371_v51 = vadd.f32 %v3370_v49, %v3369_v42  ;;  %v3482_v54 = vpop.f32.mrf.mxu1 }
 0x1ae   : > { %v3372_v55 = vpop.f32.mrf.mxu0  ;;  %v3483_v61 = vadd.f32 %v3482_v54, %v3481_v48 }
 0x1af   : > { %v2343_v57 = vadd.f32 %v2342_v44, %v2161_v45  ;;  %v2381_v58 = vmul.f32 %v2161_v45, %v2161_v45  ;;  %v2003_v60 = vadd.f32 %v3371_v51, %v4043_v62  ;;  %v3484_v2 = vpop.f32.mrf.mxu1 }
 0x1b0   : > { %v3373_v32 = vpop.f32.mrf.mxu0 }
 0x1b1   : > { %v2412_v3 = vadd.f32 %v2411_v1, %v2381_v58  ;;  %v2164_v4 = vadd.f32 %v3483_v61, %v2003_v60  ;;  %v3374_v59 = vadd.f32 %v3373_v32, %v3372_v55  ;;  %v3485_v53 = vpop.f32.mrf.mxu1 }
 0x1b2   : > { %v3486_v16 = vadd.f32 %v3485_v53, %v3484_v2  ;;  %v3375_v5 = vpop.f32.mrf.mxu0 }
 0x1b3   : > { %v2344_v7 = vadd.f32 %v2343_v57, %v2164_v4  ;;  %v2382_v10 = vmul.f32 %v2164_v4, %v2164_v4  ;;  %v3027_v29 = vpack.c.bf16 %v2164_v4, %v2161_v45  ;;  %v2008_v12 = vadd.f32 %v3374_v59, %v4045_v6  ;;  %v3487_v13 = vpop.f32.mrf.mxu1 }
 0x1b4   : > { %v3376_v41 = vpop.f32.mrf.mxu0 }
 0x1b5   : > { %v2413_v15 = vadd.f32 %v2412_v3, %v2382_v10  ;;  %3075 = vst [vmem:[%s4083_s20 + $0x38] sm:$0xff] %v3027_v29   ;;  %v2169_v62 = vadd.f32 %v3486_v16, %v2008_v12  ;;  %v3377_v18 = vadd.f32 %v3376_v41, %v3375_v5  ;;  %v3488_v25 = vpop.f32.mrf.mxu1 }
 0x1b6   : > { %v3378_v37 = vpop.f32.mrf.mxu0  ;;  %v3489_v9 = vadd.f32 %v3488_v25, %v3487_v13 }
 0x1b7   : > { %v2345_v20 = vadd.f32 %v2344_v7, %v2169_v62  ;;  %v2383_v21 = vmul.f32 %v2169_v62, %v2169_v62  ;;  %v2011_v24 = vadd.f32 %v3377_v18, %v4047_v14  ;;  %v3490_v26 = vpop.f32.mrf.mxu1 }
 0x1b8   : > { %v3379_v27 = vpop.f32.mrf.mxu0 }
 0x1b9   : > { %v2414_v30 = vadd.f32 %v2413_v15, %v2383_v21  ;;  %v2172_v31 = vadd.f32 %v3489_v9, %v2011_v24  ;;  %v3380_v34 = vadd.f32 %v3379_v27, %v3378_v37  ;;  %v3491_v6 = vpop.f32.mrf.mxu1 }
 0x1ba   : > { %v3492_v56 = vadd.f32 %v3491_v6, %v3490_v26  ;;  %v3381_v38 = vpop.f32.mrf.mxu0 }
 0x1bb   : > { %v2346_v36 = vadd.f32 %v2345_v20, %v2172_v31  ;;  %v2384_v39 = vmul.f32 %v2172_v31, %v2172_v31  ;;  %v3032_v42 = vpack.c.bf16 %v2172_v31, %v2169_v62  ;;  %v2016_v44 = vadd.f32 %v3380_v34, %v4049_v23  ;;  %v3493_v17 = vpop.f32.mrf.mxu1 }
 0x1bc   : > { %v3382_v46 = vpop.f32.mrf.mxu0 }
 0x1bd   : > { %v2415_v47 = vadd.f32 %v2414_v30, %v2384_v39  ;;  %3076 = vst [vmem:[%s4083_s20 + $0x40] sm:$0xff] %v3032_v42   ;;  %v2177_v14 = vadd.f32 %v3492_v56, %v2016_v44  ;;  %v3383_v48 = vadd.f32 %v3382_v46, %v3381_v38  ;;  %v3494_v49 = vpop.f32.mrf.mxu1 }
 0x1be   : > { %v3384_v1 = vpop.f32.mrf.mxu0  ;;  %v3495_v55 = vadd.f32 %v3494_v49, %v3493_v17 }
 0x1bf   : > { %v2347_v45 = vadd.f32 %v2346_v36, %v2177_v14  ;;  %v2385_v51 = vmul.f32 %v2177_v14, %v2177_v14  ;;  %v2019_v54 = vadd.f32 %v3383_v48, %v4051_v33  ;;  %v3496_v57 = vpop.f32.mrf.mxu1 }
 0x1c0   : > { %v3385_v58 = vpop.f32.mrf.mxu0 }
 0x1c1   : > { %v2416_v60 = vadd.f32 %v2415_v47, %v2385_v51  ;;  %v2180_v61 = vadd.f32 %v3495_v55, %v2019_v54  ;;  %v3386_v2 = vadd.f32 %v3385_v58, %v3384_v1  ;;  %v3497_v23 = vpop.f32.mrf.mxu1 }
 0x1c2   : > { %v3498_v32 = vadd.f32 %v3497_v23, %v3496_v57  ;;  %v3387_v3 = vpop.f32.mrf.mxu0 }
 0x1c3   : > { %v2348_v4 = vadd.f32 %v2347_v45, %v2180_v61  ;;  %v2386_v59 = vmul.f32 %v2180_v61, %v2180_v61  ;;  %v3037_v53 = vpack.c.bf16 %v2180_v61, %v2177_v14  ;;  %v2024_v16 = vadd.f32 %v3386_v2, %v4053_v43  ;;  %v3499_v5 = vpop.f32.mrf.mxu1 }
 0x1c4   : > { %v3388_v7 = vpop.f32.mrf.mxu0 }
 0x1c5   : > { %v2417_v10 = vadd.f32 %v2416_v60, %v2386_v59  ;;  %3077 = vst [vmem:[%s4083_s20 + $0x48] sm:$0xff] %v3037_v53   ;;  %v2185_v33 = vadd.f32 %v3498_v32, %v2024_v16  ;;  %v3389_v29 = vadd.f32 %v3388_v7, %v3387_v3  ;;  %v3500_v12 = vpop.f32.mrf.mxu1 }
 0x1c6   : > { %v3390_v13 = vpop.f32.mrf.mxu0  ;;  %v3501_v18 = vadd.f32 %v3500_v12, %v3499_v5 }
 0x1c7   : > { %v2349_v41 = vadd.f32 %v2348_v4, %v2185_v33  ;;  %v2387_v15 = vmul.f32 %v2185_v33, %v2185_v33  ;;  %v2027_v62 = vadd.f32 %v3389_v29, %v4055_v52  ;;  %v3502_v25 = vpop.f32.mrf.mxu1 }
 0x1c8   : > { %v3391_v37 = vpop.f32.mrf.mxu0 }
 0x1c9   : > { %v2418_v20 = vadd.f32 %v2417_v10, %v2387_v15  ;;  %v2188_v21 = vadd.f32 %v3501_v18, %v2027_v62  ;;  %v3392_v24 = vadd.f32 %v3391_v37, %v3390_v13  ;;  %v3503_v43 = vpop.f32.mrf.mxu1 }
 0x1ca   : > { %v3504_v9 = vadd.f32 %v3503_v43, %v3502_v25  ;;  %v3393_v26 = vpop.f32.mrf.mxu0 }
 0x1cb   : > { %v2350_v27 = vadd.f32 %v2349_v41, %v2188_v21  ;;  %v2388_v30 = vmul.f32 %v2188_v21, %v2188_v21  ;;  %v3042_v31 = vpack.c.bf16 %v2188_v21, %v2185_v33  ;;  %v2032_v34 = vadd.f32 %v3392_v24, %v4057_v63  ;;  %v3505_v6 = vpop.f32.mrf.mxu1 }
 0x1cc   : > { %v3394_v56 = vpop.f32.mrf.mxu0 }
 0x1cd   : > { %v2419_v38 = vadd.f32 %v2418_v20, %v2388_v30  ;;  %3078 = vst [vmem:[%s4083_s20 + $0x50] sm:$0xff] %v3042_v31   ;;  %v2193_v52 = vadd.f32 %v3504_v9, %v2032_v34  ;;  %v3395_v36 = vadd.f32 %v3394_v56, %v3393_v26  ;;  %v3506_v39 = vpop.f32.mrf.mxu1 }
 0x1ce   : > { %v3396_v42 = vpop.f32.mrf.mxu0  ;;  %v3507_v47 = vadd.f32 %v3506_v39, %v3505_v6 }
 0x1cf   : > { %v2351_v44 = vadd.f32 %v2350_v27, %v2193_v52  ;;  %v2389_v17 = vmul.f32 %v2193_v52, %v2193_v52  ;;  %v2035_v46 = vadd.f32 %v3395_v36, %v4059_v8  ;;  %v3508_v14 = vpop.f32.mrf.mxu1 }
 0x1d0   : > { %v3397_v48 = vpop.f32.mrf.mxu0 }
 0x1d1   : > { %v2420_v49 = vadd.f32 %v2419_v38, %v2389_v17  ;;  %v2196_v1 = vadd.f32 %v3507_v47, %v2035_v46  ;;  %v3398_v45 = vadd.f32 %v3397_v48, %v3396_v42  ;;  %v3509_v63 = vpop.f32.mrf.mxu1 }
 0x1d2   : > { %v3510_v51 = vadd.f32 %v3509_v63, %v3508_v14  ;;  %v3399_v54 = vpop.f32.mrf.mxu0 }
 0x1d3   : > { %v2352_v55 = vadd.f32 %v2351_v44, %v2196_v1  ;;  %v2390_v57 = vmul.f32 %v2196_v1, %v2196_v1  ;;  %v3047_v58 = vpack.c.bf16 %v2196_v1, %v2193_v52  ;;  %v2040_v60 = vadd.f32 %v3398_v45, %v4061_v19  ;;  %v3511_v61 = vpop.f32.mrf.mxu1 }
 0x1d4   : > { %v3400_v2 = vpop.f32.mrf.mxu0 }
 0x1d5   : > { %v2421_v23 = vadd.f32 %v2420_v49, %v2390_v57  ;;  %3079 = vst [vmem:[%s4083_s20 + $0x58] sm:$0xff] %v3047_v58   ;;  %v2201_v8 = vadd.f32 %v3510_v51, %v2040_v60  ;;  %v3401_v32 = vadd.f32 %v3400_v2, %v3399_v54  ;;  %v3512_v3 = vpop.f32.mrf.mxu1 }
 0x1d6   : > { %v3402_v4 = vpop.f32.mrf.mxu0  ;;  %v3513_v5 = vadd.f32 %v3512_v3, %v3511_v61 }
 0x1d7   : > { %v2353_v59 = vadd.f32 %v2352_v55, %v2201_v8  ;;  %v2391_v53 = vmul.f32 %v2201_v8, %v2201_v8  ;;  %v2043_v16 = vadd.f32 %v3401_v32, %v4063_v28  ;;  %v3514_v7 = vpop.f32.mrf.mxu1 }
 0x1d8   : > { %v3403_v10 = vpop.f32.mrf.mxu0 }
 0x1d9   : > { %v2422_v33 = vadd.f32 %v2421_v23, %v2391_v53  ;;  %v2204_v29 = vadd.f32 %v3513_v5, %v2043_v16  ;;  %v3404_v12 = vadd.f32 %v3403_v10, %v3402_v4  ;;  %v3515_v19 = vpop.f32.mrf.mxu1 }
 0x1da   : > { %v3516_v13 = vadd.f32 %v3515_v19, %v3514_v7  ;;  %v3405_v41 = vpop.f32.mrf.mxu0 }
 0x1db   : > { %v2354_v15 = vadd.f32 %v2353_v59, %v2204_v29  ;;  %v2392_v62 = vmul.f32 %v2204_v29, %v2204_v29  ;;  %v3052_v18 = vpack.c.bf16 %v2204_v29, %v2201_v8  ;;  %v2048_v25 = vadd.f32 %v3404_v12, %v4065_v40  ;;  %v3517_v37 = vpop.f32.mrf.mxu1 }
 0x1dc   : > { %v3406_v20 = vpop.f32.mrf.mxu0 }
 0x1dd   : > { %v2423_v21 = vadd.f32 %v2422_v33, %v2392_v62  ;;  %3080 = vst [vmem:[%s4083_s20 + $0x60] sm:$0xff] %v3052_v18   ;;  %v2209_v28 = vadd.f32 %v3516_v13, %v2048_v25  ;;  %v3407_v24 = vadd.f32 %v3406_v20, %v3405_v41  ;;  %v3518_v43 = vpop.f32.mrf.mxu1 }
 0x1de   : > { %v3408_v9 = vpop.f32.mrf.mxu0  ;;  %v3519_v31 = vadd.f32 %v3518_v43, %v3517_v37 }
 0x1df   : > { %v2355_v26 = vadd.f32 %v2354_v15, %v2209_v28  ;;  %v2393_v27 = vmul.f32 %v2209_v28, %v2209_v28  ;;  %v2051_v30 = vadd.f32 %v3407_v24, %v4067_v50  ;;  %v3520_v34 = vpop.f32.mrf.mxu1 }
 0x1e0   : > { %v3409_v6 = vpop.f32.mrf.mxu0 }
 0x1e1   : > { %v2424_v56 = vadd.f32 %v2423_v21, %v2393_v27  ;;  %v2212_v38 = vadd.f32 %v3519_v31, %v2051_v30  ;;  %v3410_v52 = vadd.f32 %v3409_v6, %v3408_v9  ;;  %v3521_v40 = vpop.f32.mrf.mxu1  ;;  %v2436_v21 = vlaneseq }
 0x1e2   : > { %v3522_v36 = vadd.f32 %v3521_v40, %v3520_v34  ;;  %v3411_v39 = vpop.f32.mrf.mxu0 }
 0x1e3   : > { %v2356_v42 = vadd.f32 %v2355_v26, %v2212_v38  ;;  %v2394_v44 = vmul.f32 %v2212_v38, %v2212_v38  ;;  %v3057_v17 = vpack.c.bf16 %v2212_v38, %v2209_v28  ;;  %v2056_v46 = vadd.f32 %v3410_v52, %v4069_v0  ;;  %v3523_v47 = vpop.f32.mrf.mxu1 }
 0x1e4   : > { %v3412_v14 = vpop.f32.mrf.mxu0 }
 0x1e5   : > { %v2425_v48 = vadd.f32 %v2424_v56, %v2394_v44  ;;  %3081 = vst [vmem:[%s4083_s20 + $0x68] sm:$0xff] %v3057_v17   ;;  %v2217_v50 = vadd.f32 %v3522_v36, %v2056_v46  ;;  %v3413_v49 = vadd.f32 %v3412_v14, %v3411_v39  ;;  %v3524_v1 = vpop.f32.mrf.mxu1 }
 0x1e6   : > { %v3414_v45 = vpop.f32.mrf.mxu0  ;;  %v3525_v55 = vadd.f32 %v3524_v1, %v3523_v47 }
 0x1e7   : > { %v2357_v63 = vadd.f32 %v2356_v42, %v2217_v50  ;;  %v2395_v51 = vmul.f32 %v2217_v50, %v2217_v50  ;;  %v2059_v54 = vadd.f32 %v3413_v49, %v4071_v11  ;;  %v3526_v57 = vpop.f32.mrf.mxu1 }
 0x1e8   : > { %v3415_v58 = vpop.f32.mrf.mxu0 }
 0x1e9   : > { %v2426_v60 = vadd.f32 %v2425_v48, %v2395_v51  ;;  %v2220_v61 = vadd.f32 %v3525_v55, %v2059_v54  ;;  %v3416_v2 = vadd.f32 %v3415_v58, %v3414_v45  ;;  %v3527_v0 = vpop.f32.mrf.mxu1 }
 0x1ea   : > { %v3528_v23 = vadd.f32 %v3527_v0, %v3526_v57  ;;  %v3417_v8 = vpop.f32.mrf.mxu0 }
 0x1eb   : > { %v2358_v32 = vadd.f32 %v2357_v63, %v2220_v61  ;;  %v2396_v3 = vmul.f32 %v2220_v61, %v2220_v61  ;;  %v3062_v4 = vpack.c.bf16 %v2220_v61, %v2217_v50  ;;  %v2064_v59 = vadd.f32 %v3416_v2, %v4073_v22  ;;  %v3529_v53 = vpop.f32.mrf.mxu1 }
 0x1ec   : > { %v3418_v16 = vpop.f32.mrf.mxu0 }
 0x1ed   : > { %v2427_v5 = vadd.f32 %v2426_v60, %v2396_v3  ;;  %3082 = vst [vmem:[%s4083_s20 + $0x70] sm:$0xff] %v3062_v4   ;;  %v2225_v11 = vadd.f32 %v3528_v23, %v2064_v59  ;;  %v3419_v7 = vadd.f32 %v3418_v16, %v3417_v8  ;;  %v3530_v10 = vpop.f32.mrf.mxu1 }
 0x1ee   : > { %v3531_v19 = vadd.f32 %v3530_v10, %v3529_v53 }
 0x1ef   : > { %v2359_v33 = vadd.f32 %v2358_v32, %v2225_v11  ;;  %v2397_v29 = vmul.f32 %v2225_v11, %v2225_v11  ;;  %v2067_v12 = vadd.f32 %v3419_v7, %v4075_v35  ;;  %v2437_v35 = vshrl.u32 %v2436_v21, 7 }
 0x1f1   : > { %v2428_v13 = vadd.f32 %v2427_v5, %v2397_v29  ;;  %v2228_v41 = vadd.f32 %v3531_v19, %v2067_v12  ;;  %vm2438_vm0 = vcmp.lt.s32.totalorder %v2437_v35, 4 }
 0x1f3   : > { %v2360_v15 = vadd.f32 %v2359_v33, %v2228_v41  ;;  %v2398_v62 = vmul.f32 %v2228_v41, %v2228_v41  ;;  %v3067_v22 = vpack.c.bf16 %v2228_v41, %v2225_v11 }
 0x1f5   : > { %v2361_v18 = vrot.slane %v2360_v15, 4  ;;  %v2429_v25 = vadd.f32 %v2428_v13, %v2398_v62  ;;  %3083 = vst [vmem:[%s4083_s20 + $0x78] sm:$0xff] %v3067_v22  }
 0x1f7   : > { %v2362_v37 = vadd.f32 %v2361_v18, %v2360_v15  ;;  %v2430_v20 = vrot.slane %v2429_v25, 4 }
 0x1f9   : > { %v2363_v28 = vrot.slane %v2362_v37, 2  ;;  %v2431_v24 = vadd.f32 %v2430_v20, %v2429_v25 }
 0x1fb   : > { %v2364_v43 = vadd.f32 %v2363_v28, %v2362_v37  ;;  %v2432_v9 = vrot.slane %v2431_v24, 2 }
 0x1fd   : > { %v2365_v26 = vrot.slane %v2364_v43, 1  ;;  %v2433_v27 = vadd.f32 %v2432_v9, %v2431_v24 }
 0x1ff   : > { %v2434_v30 = vrot.slane %v2433_v27, 1  ;;  %v2366_v31 = vadd.f32 %v2365_v26, %v2364_v43 }
 0x201   : > { %v2435_v34 = vadd.f32 %v2434_v30, %v2433_v27 }
 0x203   : > { %v2439_v6 = vsel %vm2438_vm0, %v2366_v31, %v2435_v34 }
 0x204   : > { %2440 = vst [vmem:[%s237_s23] sm:$0xff] %v2439_v6 }
 0x205 PF: > { %s14_s14 = sadd.s32 1, %s3642_s14   ;;  %s4149_s12 = smov %s3638_s13 }
 0x206   : > { %p11_p6 = scmp.ge.s32.totalorder %s14_s14, 4   ;;  %s4150_s13 = smov %s4152_s15 }
 0x208   :  { %13 = sbr.rel (!%p11_p6) target bundleno = 2 (0x2), region = 81 }

// kernel: discriminator_forward.7
= control target key start
LH: loop header
LB: loop body
LE: loop exit
PB: predicated region body
PF: predicated region fallthrough
CT: control target
= control target key end

     0   :  { %s3538_s0 = inlined_call_operand.vmem [shape: bf16[128,2048], index: 0, kind: input, shape index: {}]   ;;  %s3539_s1 = inlined_call_operand.vmem [shape: bf16[2048,256], index: 1, kind: input, shape index: {}]   ;;  %s3540_s2 = inlined_call_operand.vmem [shape: f32[1,2048], index: 2, kind: input, shape index: {}]   ;;  %s3541_s3 = inlined_call_operand.vmem [shape: f32[1,2048], index: 3, kind: input, shape index: {}]   ;;  %s3542_s4 = inlined_call_operand.vmem [shape: bf16[128,256], index: 4, kind: output, shape index: {0}]   ;;  %s3543_s5 = inlined_call_operand.vmem [shape: f32[16,256], index: 5, kind: output, shape index: {1}]  }
   0x1   :  { %3545 = sst [smem:[#allocation5_spill]] %s3538_s0 }
   0x2   :  { %3546 = sst [smem:[#allocation6_spill]] %s3539_s1 }
   0x3   :  { %s2867_s18 = smov 0   ;;  %s2869_s19 = smov 0  }
   0x4   :  { %s2871_s20 = smov 0   ;;  %s2873_s21 = smov 0  }
   0x5   :  { %s2875_s22 = smov 0   ;;  %s2877_s23 = smov 0  }
   0x6   :  { %s2879_s24 = smov 0  }
   0x7 LB: > { %s25_s25 = sadd.s32 1, %s2826_s22  ;;  %s28_s26 = sadd.s32 1, %s2830_s23  ;;  %s2834_s24 = sphi %s2879_s24, %s16_s24   ;;  %s2830_s23 = sphi %s2877_s23, %s3556_s23   ;;  %s2826_s22 = sphi %s2875_s22, %s3555_s22   ;;  %s2822_s21 = sphi %s2873_s21, %s3554_s21   ;;  %s2818_s20 = sphi %s2871_s20, %s3553_s20   ;;  %s2814_s19 = sphi %s2869_s19, %s3552_s19   ;;  %s2810_s18 = sphi %s2867_s18, %s3551_s18  }
   0x8   : > { %p26_p0 = scmp.ge.s32.totalorder %s25_s25, 2  ;;  %p44_p1 = scmp.ne.s32.totalorder %s2814_s19, %s2810_s18 }
   0x9   : > { %p45_p2 = scmp.eq.s32.totalorder %s2834_s24, 0  ;;  %s37_s30 = sadd.s32 1, %s2814_s19 }
   0xa   : > { %s3558_s25 = smov (%p26_p0, %s25_s25), 0  ;;  %s3560_s26 = smov (!%p26_p0, %s28_s26), %s2830_s23 }
   0xb   : > { %p46_p3 = por %p45_p2, %p44_p1  ;;  %p30_p4 = scmp.ge.s32.totalorder %s3560_s26, 2 }
   0xc   : > { %s33_s27 = ssub.s32 %s2826_s22, %s3558_s25  ;;  %p2361_p6 = scmp.ge.s32.totalorder %s2834_s24, 4 }
   0xd   : > { %s3562_s26 = smov (%p30_p4, %s3560_s26), 0 }
   0xe   : > { %3547 = sst [smem:[#allocation4_spill]] %s3562_s26  ;;  %s32_s28 = ssub.s32 %s2830_s23, %s3562_s26 }
   0xf   : > { %s34_s29 = sor.u32 %s33_s27, %s32_s28  ;;  %200 = sbr.rel (%p2361_p6) target bundleno = 46 (0x2e), region = 16 }
  0x10   : > { %p35_p5 = scmp.eq.s32.totalorder %s34_s29, 0 }
  0x12   : > { %s2918_s6 = scalar_select %p35_p5, %s2814_s19, %s37_s30  }
  0x14   : > { %203 = sbr.rel (!%p46_p3) target bundleno = 46 (0x2e), region = 20  ;;  %s205_s7 = sand.u32 (%p46_p3), 1, %s2814_s19  }
  0x15   : > { %s2364_s8 = sshll.u32 (%p46_p3), %s2826_s22, 3  ;;  %s2362_s9 = sshll.u32 (%p46_p3), %s205_s7, 8 }
  0x16   : > { %s2519_s10 = sshll.u32 (%p46_p3), %s2830_s23, 7  ;;  %s3548_s0 = sld [smem:[#allocation5_spill]] (%p46_p3) }
  0x17   : > { %s211_s11 = sadd.s32 (%p46_p3), %s2519_s10, %s2364_s8  ;;  %s2932_s16 = scalar_lea.vmem (%p46_p3), [#allocation3], %s2362_s9 }
  0x18   : > { %s2366_s12 = sshll.u32 (%p46_p3), %s211_s11, 2 }
  0x1c   : > { %s2927_s15 = scalar_lea.vmem %s3548_s0, %s2366_s12 }
  0x1d   : > { %v226_v0 = vld [vmem:[%s2927_s15] sm:$0xff]  ;;  %v228_v1 = vld [vmem:[%s2927_s15 + $0x8] sm:$0xff]  ;;  %v230_v2 = vld [vmem:[%s2927_s15 + $0x10] sm:$0xff] }
  0x1e   : > { %227 = vst [vmem:[%s2932_s16] sm:$0xff] %v226_v0  ;;  %229 = vst [vmem:[%s2932_s16 + $0x8] sm:$0xff] %v228_v1  ;;  %v232_v3 = vld [vmem:[%s2927_s15 + $0x18] sm:$0xff]  ;;  %v234_v4 = vld [vmem:[%s2927_s15 + $0x40] sm:$0xff] }
  0x1f   : > { %231 = vst [vmem:[%s2932_s16 + $0x10] sm:$0xff] %v230_v2  ;;  %v236_v5 = vld [vmem:[%s2927_s15 + $0x48] sm:$0xff]  ;;  %233 = vst [vmem:[%s2932_s16 + $0x18] sm:$0xff] %v232_v3  ;;  %v238_v6 = vld [vmem:[%s2927_s15 + $0x50] sm:$0xff] }
  0x20   : > { %235 = vst [vmem:[%s2932_s16 + $0x20] sm:$0xff] %v234_v4  ;;  %237 = vst [vmem:[%s2932_s16 + $0x28] sm:$0xff] %v236_v5  ;;  %v240_v7 = vld [vmem:[%s2927_s15 + $0x58] sm:$0xff]  ;;  %v242_v8 = vld [vmem:[%s2927_s15 + $0x80] sm:$0xff] }
  0x21   : > { %239 = vst [vmem:[%s2932_s16 + $0x30] sm:$0xff] %v238_v6  ;;  %241 = vst [vmem:[%s2932_s16 + $0x38] sm:$0xff] %v240_v7  ;;  %v244_v9 = vld [vmem:[%s2927_s15 + $0x88] sm:$0xff]  ;;  %v246_v10 = vld [vmem:[%s2927_s15 + $0x90] sm:$0xff] }
  0x22   : > { %243 = vst [vmem:[%s2932_s16 + $0x40] sm:$0xff] %v242_v8  ;;  %v248_v11 = vld [vmem:[%s2927_s15 + $0x98] sm:$0xff]  ;;  %245 = vst [vmem:[%s2932_s16 + $0x48] sm:$0xff] %v244_v9  ;;  %v250_v12 = vld [vmem:[%s2927_s15 + $0xc0] sm:$0xff] }
  0x23   : > { %247 = vst [vmem:[%s2932_s16 + $0x50] sm:$0xff] %v246_v10  ;;  %249 = vst [vmem:[%s2932_s16 + $0x58] sm:$0xff] %v248_v11  ;;  %v252_v13 = vld [vmem:[%s2927_s15 + $0xc8] sm:$0xff]  ;;  %v254_v14 = vld [vmem:[%s2927_s15 + $0xd0] sm:$0xff] }
  0x24   : > { %251 = vst [vmem:[%s2932_s16 + $0x60] sm:$0xff] %v250_v12  ;;  %253 = vst [vmem:[%s2932_s16 + $0x68] sm:$0xff] %v252_v13  ;;  %v256_v15 = vld [vmem:[%s2927_s15 + $0xd8] sm:$0xff]  ;;  %v258_v16 = vld [vmem:[%s2927_s15 + $0x100] sm:$0xff] }
  0x25   : > { %255 = vst [vmem:[%s2932_s16 + $0x70] sm:$0xff] %v254_v14  ;;  %v260_v17 = vld [vmem:[%s2927_s15 + $0x108] sm:$0xff]  ;;  %257 = vst [vmem:[%s2932_s16 + $0x78] sm:$0xff] %v256_v15  ;;  %v262_v18 = vld [vmem:[%s2927_s15 + $0x110] sm:$0xff] }
  0x26   : > { %259 = vst [vmem:[%s2932_s16 + $0x80] sm:$0xff] %v258_v16  ;;  %261 = vst [vmem:[%s2932_s16 + $0x88] sm:$0xff] %v260_v17  ;;  %v264_v19 = vld [vmem:[%s2927_s15 + $0x118] sm:$0xff]  ;;  %v266_v20 = vld [vmem:[%s2927_s15 + $0x140] sm:$0xff] }
  0x27   : > { %263 = vst [vmem:[%s2932_s16 + $0x90] sm:$0xff] %v262_v18  ;;  %265 = vst [vmem:[%s2932_s16 + $0x98] sm:$0xff] %v264_v19  ;;  %v268_v21 = vld [vmem:[%s2927_s15 + $0x148] sm:$0xff]  ;;  %v270_v22 = vld [vmem:[%s2927_s15 + $0x150] sm:$0xff] }
  0x28   : > { %267 = vst [vmem:[%s2932_s16 + $0xa0] sm:$0xff] %v266_v20  ;;  %v272_v23 = vld [vmem:[%s2927_s15 + $0x158] sm:$0xff]  ;;  %269 = vst [vmem:[%s2932_s16 + $0xa8] sm:$0xff] %v268_v21  ;;  %v274_v24 = vld [vmem:[%s2927_s15 + $0x180] sm:$0xff] }
  0x29   : > { %271 = vst [vmem:[%s2932_s16 + $0xb0] sm:$0xff] %v270_v22  ;;  %273 = vst [vmem:[%s2932_s16 + $0xb8] sm:$0xff] %v272_v23  ;;  %v276_v25 = vld [vmem:[%s2927_s15 + $0x188] sm:$0xff]  ;;  %v278_v26 = vld [vmem:[%s2927_s15 + $0x190] sm:$0xff] }
  0x2a   : > { %275 = vst [vmem:[%s2932_s16 + $0xc0] sm:$0xff] %v274_v24  ;;  %277 = vst [vmem:[%s2932_s16 + $0xc8] sm:$0xff] %v276_v25  ;;  %v280_v27 = vld [vmem:[%s2927_s15 + $0x198] sm:$0xff]  ;;  %v282_v28 = vld [vmem:[%s2927_s15 + $0x1c0] sm:$0xff] }
  0x2b   : > { %279 = vst [vmem:[%s2932_s16 + $0xd0] sm:$0xff] %v278_v26  ;;  %v284_v29 = vld [vmem:[%s2927_s15 + $0x1c8] sm:$0xff]  ;;  %281 = vst [vmem:[%s2932_s16 + $0xd8] sm:$0xff] %v280_v27  ;;  %v286_v30 = vld [vmem:[%s2927_s15 + $0x1d0] sm:$0xff] }
  0x2c   : > { %283 = vst [vmem:[%s2932_s16 + $0xe0] sm:$0xff] %v282_v28  ;;  %285 = vst [vmem:[%s2932_s16 + $0xe8] sm:$0xff] %v284_v29  ;;  %v288_v31 = vld [vmem:[%s2927_s15 + $0x1d8] sm:$0xff] }
  0x2d   : > { %287 = vst [vmem:[%s2932_s16 + $0xf0] sm:$0xff] %v286_v30  ;;  %289 = vst [vmem:[%s2932_s16 + $0xf8] sm:$0xff] %v288_v31 }
  0x2e PF: > { %p2367_p7 = scmp.ge.s32.totalorder %s2834_s24, 1  ;;  %p320_p8 = scmp.lt.s32.totalorder %s2834_s24, 5 }
  0x30   : > { %p321_p9 = pnand %p2367_p7, %p320_p8 }
  0x31   : > { %s327_s17 = sand.u32 (!%p321_p9), 1, %s2810_s18   ;;  %s2369_s27 = sshll.u32 (!%p321_p9), %s2818_s20, 7 }
  0x32   : > { %324 = sbr.rel (%p321_p9) target bundleno = 474 (0x1da), region = 55  ;;  %s2368_s28 = sshll.u32 (!%p321_p9), %s327_s17, 8 }
  0x33   : > { %p377_p10 = scmp.lt.s32.totalorder (!%p321_p9), %s2369_s27, 255  ;;  %s2372_s29 = sshll.u32 (!%p321_p9), %s2818_s20, 3 }
  0x34   : > { %p384_p11 = scmp.lt.s32.totalorder (!%p321_p9), %s2372_s29, 15  ;;  %s2374_s30 = sshll.u32 (!%p321_p9), %s2822_s21, 3 }
  0x35   : > { %p394_p12 = scmp.lt.s32.totalorder (!%p321_p9), %s2374_s30, 15  ;;  %s3549_s1 = sld [smem:[#allocation6_spill]] (!%p321_p9) }
  0x36   : > { %p400_p13 = scmp.lt.s32.totalorder (!%p321_p9), %s2822_s21, 1  ;;  %s3028_s26 = scalar_lea.vmem (!%p321_p9), [#allocation3], %s2368_s28 }
  0x37   : > { %s3564_s27 = smov (!%p377_p10, %s2369_s27), 255  ;;  %s3566_s29 = smov (!%p384_p11, %s2372_s29), 15 }
  0x38   : > { %s2520_s7 = sshll.u32 %s3564_s27, 3  ;;  %s3568_s30 = smov (!%p394_p12, %s2374_s30), 15 }
  0x39   : > { %s386_s12 = scalar_lea.vmem %s3540_s2, %s3566_s29  ;;  %s391_s15 = scalar_lea.vmem %s3541_s3, %s3566_s29 }
  0x3a   : > { %s2521_s16 = sshll.u32 %s3568_s30, 3  ;;  %s3570_s21 = smov (!%p400_p13, %s2822_s21), 1 }
  0x3b   : > { %s3004_s10 = scalar_lea.vmem %s3549_s1, %s2520_s7  ;;  %s3020_s7 = scalar_lea.vmem %s3542_s4, %s2521_s16 }
  0x3c   : > { %s2522_s8 = sshll.u32 %s3570_s21, 4  ;;  %p2379_p0 = scmp.ne.s32.totalorder %s2818_s20, 0 }
  0x3d   : > { %s3026_s1 = scalar_lea.vmem %s3543_s5, %s2522_s8 }
  0x3e   : > { %408 = sbr.rel (%p2379_p0) target bundleno = 76 (0x4c), region = 63 }
  0x43   : > { %v2836_v32 = vmov 0.0  }
  0x44   : > { %409 = vst [vmem:[#allocation2 + $0x30] sm:$0xff] %v2836_v32  ;;  %410 = vst [vmem:[#allocation2] sm:$0xff] %v2836_v32 }
  0x45   : > { %411 = vst [vmem:[#allocation2 + $0x58] sm:$0xff] %v2836_v32  ;;  %412 = vst [vmem:[#allocation2 + $0x18] sm:$0xff] %v2836_v32 }
  0x46   : > { %413 = vst [vmem:[#allocation2 + $0x50] sm:$0xff] %v2836_v32  ;;  %414 = vst [vmem:[#allocation2 + $0x68] sm:$0xff] %v2836_v32 }
  0x47   : > { %415 = vst [vmem:[#allocation2 + $0x8] sm:$0xff] %v2836_v32  ;;  %416 = vst [vmem:[#allocation2 + $0x48] sm:$0xff] %v2836_v32 }
  0x48   : > { %417 = vst [vmem:[#allocation2 + $0x40] sm:$0xff] %v2836_v32  ;;  %418 = vst [vmem:[#allocation2 + $0x20] sm:$0xff] %v2836_v32 }
  0x49   : > { %419 = vst [vmem:[#allocation2 + $0x10] sm:$0xff] %v2836_v32  ;;  %420 = vst [vmem:[#allocation2 + $0x38] sm:$0xff] %v2836_v32 }
  0x4a   : > { %421 = vst [vmem:[#allocation2 + $0x60] sm:$0xff] %v2836_v32  ;;  %422 = vst [vmem:[#allocation2 + $0x70] sm:$0xff] %v2836_v32 }
  0x4b   : > { %423 = vst [vmem:[#allocation2 + $0x78] sm:$0xff] %v2836_v32  ;;  %424 = vst [vmem:[#allocation2 + $0x28] sm:$0xff] %v2836_v32 }
  0x4c PF: > { %v2588_v33 = vld [vmem:[%s3004_s10 + $0x74] ss:$8 sps:$4 sm:$0xff]   ;;  %v2592_v35 = vld [vmem:[%s3004_s10 + $0x70] ss:$8 sps:$4 sm:$0xff]   ;;  %v2594_v37 = vld [vmem:[%s3004_s10 + $0x64] ss:$8 sps:$4 sm:$0xff]   ;;  %v523_v6 = vlaneseq }
  0x4d   : > { %v2590_v34 = vld [vmem:[%s3004_s10 + $0x174] ss:$8 sps:$4 sm:$0xff]   ;;  %1741 = vmatprep.subr.bf16.mxu0 %v2588_v33  ;;  %v2593_v36 = vld [vmem:[%s3004_s10 + $0x170] ss:$8 sps:$4 sm:$0xff]   ;;  %v2596_v38 = vld [vmem:[%s3004_s10 + $0x164] ss:$8 sps:$4 sm:$0xff]  }
  0x4e   : > { %1814 = vmatprep.subr.bf16.mxu1 %v2590_v34  ;;  %1742 = vmatpush1.bf16.msra.mxu0 %v2592_v35  ;;  %v2598_v39 = vld [vmem:[%s3004_s10 + $0x60] ss:$8 sps:$4 sm:$0xff]   ;;  %v2600_v41 = vld [vmem:[%s3004_s10 + $0x54] ss:$8 sps:$4 sm:$0xff]   ;;  %v2604_v43 = vld [vmem:[%s3004_s10 + $0x50] ss:$8 sps:$4 sm:$0xff]  }
  0x4f   : > { %1815 = vmatpush1.bf16.msra.mxu1 %v2593_v36  ;;  %1743 = vmatprep.subr.bf16.mxu0 %v2594_v37  ;;  %v2599_v40 = vld [vmem:[%s3004_s10 + $0x160] ss:$8 sps:$4 sm:$0xff]   ;;  %v2602_v42 = vld [vmem:[%s3004_s10 + $0x154] ss:$8 sps:$4 sm:$0xff]   ;;  %v2605_v44 = vld [vmem:[%s3004_s10 + $0x150] ss:$8 sps:$4 sm:$0xff]  }
  0x50   : > { %1816 = vmatprep.subr.bf16.mxu1 %v2596_v38  ;;  %v2606_v45 = vld [vmem:[%s3004_s10 + $0x44] ss:$8 sps:$4 sm:$0xff]   ;;  %v2610_v47 = vld [vmem:[%s3004_s10 + $0x40] ss:$8 sps:$4 sm:$0xff]   ;;  %v2612_v49 = vld [vmem:[%s3004_s10 + $0x34] ss:$8 sps:$4 sm:$0xff]  }
  0x51   : > { %v2608_v46 = vld [vmem:[%s3004_s10 + $0x144] ss:$8 sps:$4 sm:$0xff]   ;;  %v2611_v48 = vld [vmem:[%s3004_s10 + $0x140] ss:$8 sps:$4 sm:$0xff]   ;;  %v2614_v50 = vld [vmem:[%s3004_s10 + $0x134] ss:$8 sps:$4 sm:$0xff]  }
  0x52   : > { %1744 = vmatpush1.bf16.msra.mxu0 %v2598_v39  ;;  %v2616_v51 = vld [vmem:[%s3004_s10 + $0x30] ss:$8 sps:$4 sm:$0xff]   ;;  %v2618_v53 = vld [vmem:[%s3004_s10 + $0x24] ss:$8 sps:$4 sm:$0xff]   ;;  %v2622_v55 = vld [vmem:[%s3004_s10 + $0x20] ss:$8 sps:$4 sm:$0xff]  }
  0x53   : > { %1817 = vmatpush1.bf16.msra.mxu1 %v2599_v40  ;;  %1745 = vmatprep.subr.bf16.mxu0 %v2600_v41  ;;  %v2617_v52 = vld [vmem:[%s3004_s10 + $0x130] ss:$8 sps:$4 sm:$0xff]   ;;  %v2620_v54 = vld [vmem:[%s3004_s10 + $0x124] ss:$8 sps:$4 sm:$0xff]   ;;  %v2623_v56 = vld [vmem:[%s3004_s10 + $0x120] ss:$8 sps:$4 sm:$0xff]  }
  0x54   : > { %1818 = vmatprep.subr.bf16.mxu1 %v2602_v42  ;;  %v2624_v57 = vld [vmem:[%s3004_s10 + $0x14] ss:$8 sps:$4 sm:$0xff]   ;;  %v2628_v59 = vld [vmem:[%s3004_s10 + $0x10] ss:$8 sps:$4 sm:$0xff]   ;;  %v2630_v61 = vld [vmem:[%s3004_s10 + $0x4] ss:$8 sps:$4 sm:$0xff]  }
  0x55   : > { %v2626_v58 = vld [vmem:[%s3004_s10 + $0x114] ss:$8 sps:$4 sm:$0xff]   ;;  %v2629_v60 = vld [vmem:[%s3004_s10 + $0x110] ss:$8 sps:$4 sm:$0xff]   ;;  %v2632_v62 = vld [vmem:[%s3004_s10 + $0x104] ss:$8 sps:$4 sm:$0xff]  }
  0x56   : > { %1746 = vmatpush1.bf16.msra.mxu0 %v2604_v43  ;;  %v2634_v63 = vld [vmem:[%s3004_s10] ss:$8 sps:$4 sm:$0xff]   ;;  %v2636_v1 = vld [vmem:[%s3004_s10 + $0xf4] ss:$8 sps:$4 sm:$0xff]   ;;  %v2640_v3 = vld [vmem:[%s3004_s10 + $0xf0] ss:$8 sps:$4 sm:$0xff]  }
  0x57   : > { %1819 = vmatpush1.bf16.msra.mxu1 %v2605_v44  ;;  %1747 = vmatprep.subr.bf16.mxu0 %v2606_v45  ;;  %v2635_v0 = vld [vmem:[%s3004_s10 + $0x100] ss:$8 sps:$4 sm:$0xff]   ;;  %v2638_v2 = vld [vmem:[%s3004_s10 + $0x1f4] ss:$8 sps:$4 sm:$0xff]   ;;  %v2641_v4 = vld [vmem:[%s3004_s10 + $0x1f0] ss:$8 sps:$4 sm:$0xff]  }
  0x58   : > { %1820 = vmatprep.subr.bf16.mxu1 %v2608_v46  ;;  %v2642_v5 = vld [vmem:[%s3004_s10 + $0xe4] ss:$8 sps:$4 sm:$0xff]   ;;  %v2646_v8 = vld [vmem:[%s3004_s10 + $0xe0] ss:$8 sps:$4 sm:$0xff]   ;;  %v2648_v10 = vld [vmem:[%s3004_s10 + $0xd4] ss:$8 sps:$4 sm:$0xff]  }
  0x59   : > { %v2644_v7 = vld [vmem:[%s3004_s10 + $0x1e4] ss:$8 sps:$4 sm:$0xff]   ;;  %v2647_v9 = vld [vmem:[%s3004_s10 + $0x1e0] ss:$8 sps:$4 sm:$0xff]   ;;  %v3072_v11 = vshrl.u32 %v523_v6, 7  ;;  %p2508_p1 = scmp.ne.s32.totalorder %s2818_s20, 1 }
  0x5a   : > { %1748 = vmatpush1.bf16.msra.mxu0 %v2610_v47  ;;  %v2650_v12 = vld [vmem:[%s3004_s10 + $0x1d4] ss:$8 sps:$4 sm:$0xff]   ;;  %v2652_v13 = vld [vmem:[%s3004_s10 + $0xd0] ss:$8 sps:$4 sm:$0xff]   ;;  %v2654_v15 = vld [vmem:[%s3004_s10 + $0xc4] ss:$8 sps:$4 sm:$0xff]  }
  0x5b   : > { %1821 = vmatpush1.bf16.msra.mxu1 %v2611_v48  ;;  %1749 = vmatprep.subr.bf16.mxu0 %v2612_v49  ;;  %v2653_v14 = vld [vmem:[%s3004_s10 + $0x1d0] ss:$8 sps:$4 sm:$0xff]   ;;  %v529_v16 = vsub.s32 1, %v3072_v11  ;;  %v2656_v17 = vld [vmem:[%s3004_s10 + $0x1c4] ss:$8 sps:$4 sm:$0xff]   ;;  %v537_v18 = vsub.s32 3, %v3072_v11 }
  0x5c   : > { %1822 = vmatprep.subr.bf16.mxu1 %v2614_v50  ;;  %v2658_v19 = vld [vmem:[%s3004_s10 + $0xc0] ss:$8 sps:$4 sm:$0xff]   ;;  %v525_v22 = vsub.s32 0, %v3072_v11  ;;  %v533_v27 = vsub.s32 2, %v3072_v11  ;;  %v541_v28 = vsub.s32 4, %v3072_v11  ;;  %v545_v29 = vsub.s32 5, %v3072_v11 }
  0x5d   : > { %v2659_v20 = vld [vmem:[%s3004_s10 + $0x1c0] ss:$8 sps:$4 sm:$0xff]   ;;  %v549_v35 = vsub.s32 6, %v3072_v11  ;;  %v2660_v36 = vld [vmem:[%s3004_s10 + $0xb4] ss:$8 sps:$4 sm:$0xff]  }
  0x5e   : > { %1750 = vmatpush1.bf16.msra.mxu0 %v2616_v51  ;;  %v425_v21 = vld [vmem:[%s3028_s26] sm:$0xff]  ;;  %v426_v33 = vld [vmem:[%s3028_s26 + $0x8] sm:$0xff]  ;;  %v2662_v37 = vld [vmem:[%s3004_s10 + $0x1b4] ss:$8 sps:$4 sm:$0xff]  }
  0x5f   : > { %1823 = vmatpush1.bf16.msra.mxu1 %v2617_v52  ;;  %1751 = vmatprep.subr.bf16.mxu0 %v2618_v53  ;;  %v429_v23 = vld [vmem:[%s3028_s26 + $0x20] sm:$0xff]  ;;  %v458_v24 = vunpack.c.h.bf16 %v425_v21  ;;  %v3111_v34 = vld [vmem:[%s3028_s26 + $0x28] sm:$0xff]  ;;  %v457_v38 = vunpack.c.l.bf16 %v425_v21  ;;  %v460_v40 = vunpack.c.h.bf16 %v426_v33  ;;  %v2664_v50 = vld [vmem:[%s3004_s10 + $0xb0] ss:$8 sps:$4 sm:$0xff]  }
  0x60   : > { %1824 = vmatprep.subr.bf16.mxu1 %v2620_v54  ;;  %v3091_v25 = vld [vmem:[%s386_s12] sm:$0xff]  ;;  %v466_v30 = vunpack.c.h.bf16 %v429_v23  ;;  %v465_v39 = vunpack.c.l.bf16 %v429_v23  ;;  %v468_v41 = vunpack.c.h.bf16 %v3111_v34  ;;  %v2665_v51 = vld [vmem:[%s3004_s10 + $0x1b0] ss:$8 sps:$4 sm:$0xff]   ;;  %v459_v54 = vunpack.c.l.bf16 %v426_v33  ;;  %v2672_v6 = vld [vmem:[%s3004_s10 + $0x94] ss:$8 sps:$4 sm:$0xff]  }
  0x61   : > { %v3098_v26 = vld [vmem:[%s391_s15] sm:$0xff]  ;;  %v3104_v31 = vrot.slane %v3091_v25, %v529_v16  ;;  %v3120_v44 = vrot.slane %v3091_v25, %v537_v18  ;;  %v3126_v46 = vrot.slane %v3091_v25, %v525_v22  ;;  %v3132_v48 = vrot.slane %v3091_v25, %v533_v27  ;;  %v2676_v21 = vld [vmem:[%s3004_s10 + $0x90] ss:$8 sps:$4 sm:$0xff]  }
  0x62   : > { %1752 = vmatpush1.bf16.msra.mxu0 %v2622_v55  ;;  %v3107_v32 = vrot.slane %v3098_v26, %v529_v16  ;;  %v3123_v45 = vrot.slane %v3098_v26, %v537_v18  ;;  %v3129_v47 = vrot.slane %v3098_v26, %v525_v22  ;;  %v3135_v49 = vrot.slane %v3098_v26, %v533_v27  ;;  %v2677_v22 = vld [vmem:[%s3004_s10 + $0x190] ss:$8 sps:$4 sm:$0xff]   ;;  %v2678_v27 = vld [vmem:[%s3004_s10 + $0x84] ss:$8 sps:$4 sm:$0xff]  }
  0x63   : > { %1825 = vmatpush1.bf16.msra.mxu1 %v2623_v56  ;;  %1753 = vmatprep.subr.bf16.mxu0 %v2624_v57  ;;  %v564_v42 = vmul.f32 %v3104_v31, %v458_v24  ;;  %v572_v43 = vmul.f32 %v3104_v31, %v466_v30  ;;  %v566_v55 = vmul.f32 %v3120_v44, %v460_v40  ;;  %v2666_v56 = vld [vmem:[%s3004_s10 + $0xa4] ss:$8 sps:$4 sm:$0xff]  }
  0x64   : > { %1826 = vmatprep.subr.bf16.mxu1 %v2626_v58  ;;  %v2668_v57 = vld [vmem:[%s3004_s10 + $0x1a4] ss:$8 sps:$4 sm:$0xff]   ;;  %v467_v58 = vunpack.c.l.bf16 %v3111_v34  ;;  %v3165_v24 = vrot.slane %v3091_v25, %v541_v28  ;;  %v3180_v40 = vrot.slane %v3098_v26, %v545_v29 }
  0x65   : > { %v670_v52 = vadd.f32 %v3107_v32, %v564_v42  ;;  %v678_v53 = vadd.f32 %v3107_v32, %v572_v43  ;;  %v2680_v30 = vld [vmem:[%s3004_s10 + $0x184] ss:$8 sps:$4 sm:$0xff]   ;;  %v3186_v43 = vrot.slane %v3091_v25, %v549_v35 }
  0x66   : > { %1754 = vmatpush1.bf16.msra.mxu0 %v2628_v59  ;;  %v574_v59 = vmul.f32 %v3120_v44, %v468_v41  ;;  %v2682_v41 = vld [vmem:[%s3004_s10 + $0x80] ss:$8 sps:$4 sm:$0xff]  }
  0x67   : > { %1827 = vmatpush1.bf16.msra.mxu1 %v2629_v60  ;;  %1755 = vmatprep.subr.bf16.mxu0 %v2630_v61  ;;  %v563_v60 = vmul.f32 %v3126_v46, %v457_v38  ;;  %v571_v61 = vmul.f32 %v3126_v46, %v465_v39  ;;  %vm734_vm0 = vcmp.gt.f32.partialorder %v670_v52, 0.0  ;;  %vm742_vm1 = vcmp.gt.f32.partialorder %v678_v53, 0.0 }
  0x68   : > { %1828 = vmatprep.subr.bf16.mxu1 %v2632_v62  ;;  %v2670_v62 = vld [vmem:[%s3004_s10 + $0xa0] ss:$8 sps:$4 sm:$0xff]   ;;  %v3175_v39 = vrot.slane %v3091_v25, %v545_v29 }
  0x6a   : > { %1756 = vmatpush1.bf16.msra.mxu0 %v2634_v63  ;;  %v798_v63 = vmul.f32 0.2, %v670_v52 }
  0x6b   : > { %1829 = vmatpush1.bf16.msra.mxu1 %v2635_v0  ;;  %1757 = vmatprep.subr.bf16.mxu0 %v2636_v1  ;;  %v806_v0 = vmul.f32 0.2, %v678_v53  ;;  %v2671_v1 = vld [vmem:[%s3004_s10 + $0x1a0] ss:$8 sps:$4 sm:$0xff]  }
  0x6c   : > { %1830 = vmatprep.subr.bf16.mxu1 %v2638_v2  ;;  %v672_v2 = vadd.f32 %v3123_v45, %v566_v55  ;;  %v2689_v55 = vld [vmem:[%s3004_s10 + $0x374] ss:$8 sps:$4 sm:$0xff]  }
  0x6e   : > { %1758 = vmatpush2.bf16.msra.mxu0 %v2640_v3  ;;  %v680_v3 = vadd.f32 %v3123_v45, %v574_v59  ;;  %vm736_vm2 = vcmp.gt.f32.partialorder %v672_v2, 0.0  ;;  %v2684_v59 = vld [vmem:[%s3004_s10 + $0x270] ss:$8 sps:$4 sm:$0xff]  }
  0x6f   : > { %1831 = vmatpush2.bf16.msra.mxu1 %v2641_v4  ;;  %1759 = vmatprep.subr.bf16.mxu0 %v2642_v5  ;;  %v669_v4 = vadd.f32 %v3129_v47, %v563_v60  ;;  %v677_v5 = vadd.f32 %v3129_v47, %v571_v61  ;;  %v2692_v60 = vld [vmem:[%s3004_s10 + $0x264] ss:$8 sps:$4 sm:$0xff]  }
  0x70   : > { %1832 = vmatprep.subr.bf16.mxu1 %v2644_v7  ;;  %v862_v7 = vsel %vm734_vm0, %v670_v52, %v798_v63  ;;  %vm744_vm3 = vcmp.gt.f32.partialorder %v680_v3, 0.0  ;;  %v2686_v52 = vld [vmem:[%s3004_s10 + $0x274] ss:$8 sps:$4 sm:$0xff]   ;;  %v2695_v61 = vld [vmem:[%s3004_s10 + $0x364] ss:$8 sps:$4 sm:$0xff]  }
  0x71   : > { %vm733_vm4 = vcmp.gt.f32.partialorder %v669_v4, 0.0  ;;  %vm741_vm5 = vcmp.gt.f32.partialorder %v677_v5, 0.0  ;;  %v797_v16 = vmul.f32 0.2, %v669_v4  ;;  %v805_v18 = vmul.f32 0.2, %v677_v5 }
  0x72   : > { %1760 = vmatpush2.bf16.msra.mxu0 %v2646_v8  ;;  %v870_v8 = vsel %vm742_vm1, %v678_v53, %v806_v0  ;;  %v2701_v63 = vld [vmem:[%s3004_s10 + $0x354] ss:$8 sps:$4 sm:$0xff]   ;;  %v2696_v0 = vld [vmem:[%s3004_s10 + $0x250] ss:$8 sps:$4 sm:$0xff]  }
  0x73   : > { %1833 = vmatpush2.bf16.msra.mxu1 %v2647_v9  ;;  %1761 = vmatprep.subr.bf16.mxu0 %v2648_v10  ;;  %v565_v9 = vmul.f32 %v3132_v48, %v459_v54  ;;  %v553_v10 = vsub.s32 7, %v3072_v11  ;;  %v861_v34 = vsel %vm733_vm4, %v669_v4, %v797_v16  ;;  %v3199_v54 = vrot.slane %v3098_v26, %v541_v28  ;;  %v2687_v28 = vld [vmem:[%s3004_s10 + $0x370] ss:$8 sps:$4 sm:$0xff]   ;;  %v437_v4 = vld [vmem:[%s3028_s26 + $0x60] sm:$0xff] }
  0x74   : > { %1834 = vmatprep.subr.bf16.mxu1 %v2650_v12  ;;  %v2674_v12 = vld [vmem:[%s3004_s10 + $0x194] ss:$8 sps:$4 sm:$0xff]  }
  0x75   : > { %v3194_v53 = vrot.slane %v3098_v26, %v553_v10 }
  0x76   : > { %1762 = vmatpush2.bf16.msra.mxu0 %v2652_v13  ;;  %v926_v13 = vpack.c.bf16 %v870_v8, %v862_v7  ;;  %v438_v7 = vld [vmem:[%s3028_s26 + $0x68] sm:$0xff] }
  0x77   : > { %1835 = vmatpush2.bf16.msra.mxu1 %v2653_v14  ;;  %1763 = vmatprep.subr.bf16.mxu0 %v2654_v15  ;;  %v800_v14 = vmul.f32 0.2, %v672_v2  ;;  %v808_v15 = vmul.f32 0.2, %v680_v3 }
  0x78   : > { %1836 = vmatprep.subr.bf16.mxu1 %v2656_v17  ;;  %1773 = vmatprep.mubr.bf16.mxu0 %v926_v13  ;;  %v484_v13 = vunpack.c.h.bf16 %v438_v7 }
  0x79   : > { %v864_v17 = vsel %vm736_vm2, %v672_v2, %v800_v14  ;;  %v872_v23 = vsel %vm744_vm3, %v680_v3, %v808_v15  ;;  %v2704_v2 = vld [vmem:[%s3004_s10 + $0x244] ss:$8 sps:$4 sm:$0xff]   ;;  %v481_v14 = vunpack.c.l.bf16 %v437_v4 }
  0x7a   : > { %1764 = vmatpush2.bf16.msra.mxu0 %v2658_v19  ;;  %v573_v19 = vmul.f32 %v3132_v48, %v467_v58  ;;  %v928_v33 = vpack.c.bf16 %v872_v23, %v864_v17  ;;  %v433_v3 = vld [vmem:[%s3028_s26 + $0x40] sm:$0xff] }
  0x7b   : > { %1837 = vmatpush2.bf16.msra.mxu1 %v2659_v20  ;;  %1765 = vmatprep.subr.bf16.mxu0 %v2660_v36  ;;  %v671_v20 = vadd.f32 %v3135_v49, %v565_v9  ;;  %v473_v8 = vunpack.c.l.bf16 %v433_v3  ;;  %v2707_v9 = vld [vmem:[%s3004_s10 + $0x344] ss:$8 sps:$4 sm:$0xff]   ;;  %v2705_v23 = vld [vmem:[%s3004_s10 + $0x340] ss:$8 sps:$4 sm:$0xff]  }
  0x7c   : > { %1838 = vmatprep.subr.bf16.mxu1 %v2662_v37  ;;  %v679_v36 = vadd.f32 %v3135_v49, %v573_v19  ;;  %v869_v37 = vsel %vm741_vm5, %v677_v5, %v805_v18  ;;  %1846 = vmatprep.mubr.bf16.mxu1 %v928_v33  ;;  %v474_v5 = vunpack.c.h.bf16 %v433_v3  ;;  %v2702_v18 = vld [vmem:[%s3004_s10 + $0x240] ss:$8 sps:$4 sm:$0xff]  }
  0x7d   : > { %vm735_vm6 = vcmp.gt.f32.partialorder %v671_v20, 0.0  ;;  %v799_v38 = vmul.f32 0.2, %v671_v20  ;;  %v579_v16 = vmul.f32 %v3126_v46, %v473_v8 }
  0x7e   : > { %1766 = vmatpush2.bf16.msra.mxu0 %v2664_v50  ;;  %vm743_vm7 = vcmp.gt.f32.partialorder %v679_v36, 0.0  ;;  %v807_v42 = vmul.f32 0.2, %v679_v36  ;;  %v3189_v50 = vrot.slane %v3091_v25, %v553_v10  ;;  %v482_v10 = vunpack.c.h.bf16 %v437_v4 }
  0x7f   : > { %1839 = vmatpush2.bf16.msra.mxu1 %v2665_v51  ;;  %1767 = vmatprep.subr.bf16.mxu0 %v2666_v56  ;;  %v2683_v51 = vld [vmem:[%s3004_s10 + $0x180] ss:$8 sps:$4 sm:$0xff]   ;;  %v863_v29 = vsel %vm735_vm6, %v671_v20, %v799_v38  ;;  %v3205_v56 = vrot.slane %v3098_v26, %v549_v35  ;;  %v580_v15 = vmul.f32 %v3104_v31, %v474_v5 }
  0x80   : > { %1840 = vmatprep.subr.bf16.mxu1 %v2668_v57  ;;  %v871_v25 = vsel %vm743_vm7, %v679_v36, %v807_v42  ;;  %v925_v57 = vpack.c.bf16 %v869_v37, %v861_v34  ;;  %v2690_v26 = vld [vmem:[%s3004_s10 + $0x260] ss:$8 sps:$4 sm:$0xff]   ;;  %v588_v19 = vmul.f32 %v3104_v31, %v482_v10  ;;  %v685_v33 = vadd.f32 %v3129_v47, %v579_v16  ;;  %v2713_v36 = vld [vmem:[%s3004_s10 + $0x334] ss:$8 sps:$4 sm:$0xff]  }
  0x81   : > { %v927_v58 = vpack.c.bf16 %v871_v25, %v863_v29  ;;  %v2693_v35 = vld [vmem:[%s3004_s10 + $0x360] ss:$8 sps:$4 sm:$0xff]   ;;  %v483_v42 = vunpack.c.l.bf16 %v438_v7  ;;  %v2711_v29 = vld [vmem:[%s3004_s10 + $0x330] ss:$8 sps:$4 sm:$0xff]  }
  0x82   : > { %1768 = vmatpush2.bf16.msra.mxu0 %v2670_v62  ;;  %v2698_v62 = vld [vmem:[%s3004_s10 + $0x254] ss:$8 sps:$4 sm:$0xff]   ;;  %v694_v37 = vadd.f32 %v3107_v32, %v588_v19  ;;  %vm749_vm9 = vcmp.gt.f32.partialorder %v685_v33, 0.0  ;;  %v3253_v7 = vld [vmem:[%s3028_s26 + $0x88] sm:$0xff] }
  0x83   : > { %1841 = vmatpush2.bf16.msra.mxu1 %v2671_v1  ;;  %1769 = vmatprep.subr.bf16.mxu0 %v2672_v6  ;;  %v2699_v1 = vld [vmem:[%s3004_s10 + $0x350] ss:$8 sps:$4 sm:$0xff]   ;;  %v434_v6 = vld [vmem:[%s3028_s26 + $0x48] sm:$0xff] }
  0x84   : > { %1842 = vmatprep.subr.bf16.mxu1 %v2674_v12  ;;  %v476_v12 = vunpack.c.h.bf16 %v434_v6  ;;  %v475_v17 = vunpack.c.l.bf16 %v434_v6  ;;  %vm758_vm10 = vcmp.gt.f32.partialorder %v694_v37, 0.0 }
  0x86   : > { %1770 = vmatpush2.bf16.msra.mxu0 %v2676_v21  ;;  %v582_v20 = vmul.f32 %v3120_v44, %v476_v12  ;;  %v590_v21 = vmul.f32 %v3120_v44, %v484_v13  ;;  %v581_v34 = vmul.f32 %v3132_v48, %v475_v17  ;;  %v3259_v13 = vld [vmem:[%s3028_s26 + $0xa8] sm:$0xff] }
  0x87   : > { %1843 = vmatpush2.bf16.msra.mxu1 %v2677_v22  ;;  %1771 = vmatprep.subr.bf16.mxu0 %v2678_v27  ;;  %v587_v22 = vmul.f32 %v3126_v46, %v481_v14  ;;  %v2710_v27 = vld [vmem:[%s3004_s10 + $0x234] ss:$8 sps:$4 sm:$0xff]  }
  0x88   : > { %1844 = vmatprep.subr.bf16.mxu1 %v2680_v30  ;;  %v686_v30 = vadd.f32 %v3107_v32, %v580_v15  ;;  %v688_v38 = vadd.f32 %v3123_v45, %v582_v20  ;;  %v687_v6 = vadd.f32 %v3135_v49, %v581_v34  ;;  %v2722_v14 = vld [vmem:[%s3004_s10 + $0x214] ss:$8 sps:$4 sm:$0xff]  }
  0x89   : > { %v693_v25 = vadd.f32 %v3129_v47, %v587_v22 }
  0x8a   : > { %1772 = vmatpush2.bf16.msra.mxu0 %v2682_v41  ;;  %v696_v41 = vadd.f32 %v3123_v45, %v590_v21  ;;  %vm750_vm8 = vcmp.gt.f32.partialorder %v686_v30, 0.0  ;;  %vm752_vm11 = vcmp.gt.f32.partialorder %v688_v38, 0.0  ;;  %vm751_vm14 = vcmp.gt.f32.partialorder %v687_v6, 0.0 }
  0x8b   : > { %1845 = vmatpush2.bf16.msra.mxu1 %v2683_v51  ;;  %1887 = vmatprep.subr.bf16.mxu0 %v2686_v52  ;;  %v2708_v51 = vld [vmem:[%s3004_s10 + $0x230] ss:$8 sps:$4 sm:$0xff]   ;;  %v814_v52 = vmul.f32 0.2, %v686_v30  ;;  %vm757_vm13 = vcmp.gt.f32.partialorder %v693_v25, 0.0  ;;  %v492_v21 = vunpack.c.h.bf16 %v3253_v7 }
  0x8c   : > { %1960 = vmatprep.subr.bf16.mxu1 %v2689_v55  ;;  %v2716_v55 = vld [vmem:[%s3004_s10 + $0x224] ss:$8 sps:$4 sm:$0xff]   ;;  %vm760_vm12 = vcmp.gt.f32.partialorder %v696_v41, 0.0  ;;  %v815_v16 = vmul.f32 0.2, %v687_v6 }
  0x8d   : > { %1774 = vmatmul.mubr.bf16.vlgmr.msra.gmra.mxu0 %v925_v57  ;;  %v2719_v57 = vld [vmem:[%s3004_s10 + $0x324] ss:$8 sps:$4 sm:$0xff]  }
  0x8e   : > { %1847 = vmatmul.mubr.bf16.vlgmr.msra.gmra.mxu1 %v927_v58  ;;  %1888 = vmatpush1.bf16.msra.mxu0 %v2684_v59  ;;  %v822_v58 = vmul.f32 0.2, %v694_v37  ;;  %v878_v59 = vsel %vm750_vm8, %v686_v30, %v814_v52  ;;  %v879_v22 = vsel %vm751_vm14, %v687_v6, %v815_v16  ;;  %v2737_v6 = vld [vmem:[%s3004_s10 + $0x3f4] ss:$8 sps:$4 sm:$0xff]   ;;  %v3295_v16 = vld [vmem:[%s3028_s26 + $0xc8] sm:$0xff] }
  0x8f   : > { %1961 = vmatpush1.bf16.msra.mxu1 %v2687_v28  ;;  %1889 = vmatprep.subr.bf16.mxu0 %v2692_v60  ;;  %v816_v28 = vmul.f32 0.2, %v688_v38  ;;  %v824_v60 = vmul.f32 0.2, %v696_v41 }
  0x90   : > { %1962 = vmatprep.subr.bf16.mxu1 %v2695_v61  ;;  %v886_v61 = vsel %vm758_vm10, %v694_v37, %v822_v58 }
  0x91   : > { %v934_v3 = vpack.c.bf16 %v886_v61, %v878_v59  ;;  %v880_v4 = vsel %vm752_vm11, %v688_v38, %v816_v28  ;;  %v888_v5 = vsel %vm760_vm12, %v696_v41, %v824_v60  ;;  %v2720_v38 = vld [vmem:[%s3004_s10 + $0x210] ss:$8 sps:$4 sm:$0xff]   ;;  %v499_v28 = vunpack.c.l.bf16 %v3259_v13  ;;  %v2726_v60 = vld [vmem:[%s3004_s10 + $0x200] ss:$8 sps:$4 sm:$0xff]  }
  0x92   : > { %1890 = vmatpush1.bf16.msra.mxu0 %v2690_v26  ;;  %v813_v26 = vmul.f32 0.2, %v685_v33  ;;  %v936_v8 = vpack.c.bf16 %v888_v5, %v880_v4  ;;  %v2723_v41 = vld [vmem:[%s3004_s10 + $0x310] ss:$8 sps:$4 sm:$0xff]   ;;  %v2729_v61 = vld [vmem:[%s3004_s10 + $0x300] ss:$8 sps:$4 sm:$0xff]  }
  0x93   : > { %1963 = vmatpush1.bf16.msra.mxu1 %v2693_v35  ;;  %1891 = vmatprep.subr.bf16.mxu0 %v2698_v62  ;;  %v821_v35 = vmul.f32 0.2, %v693_v25  ;;  %v589_v62 = vmul.f32 %v3132_v48, %v483_v42  ;;  %v2728_v42 = vld [vmem:[%s3004_s10 + $0x204] ss:$8 sps:$4 sm:$0xff]  }
  0x94   : > { %1964 = vmatprep.subr.bf16.mxu1 %v2701_v63  ;;  %v441_v63 = vld [vmem:[%s3028_s26 + $0x80] sm:$0xff]  ;;  %1783 = vmatprep.mubr.bf16.mxu0 %v934_v3 }
  0x95   : > { %v885_v10 = vsel %vm757_vm13, %v693_v25, %v821_v35  ;;  %v695_v12 = vadd.f32 %v3135_v49, %v589_v62  ;;  %v490_v17 = vunpack.c.h.bf16 %v441_v63  ;;  %1856 = vmatprep.mubr.bf16.mxu1 %v936_v8  ;;  %v489_v30 = vunpack.c.l.bf16 %v441_v63  ;;  %v3284_v63 = vld [vmem:[%s3028_s26 + $0xc0] sm:$0xff] }
  0x96   : > { %1892 = vmatpush1.bf16.msra.mxu0 %v2696_v0  ;;  %v445_v0 = vld [vmem:[%s3028_s26 + $0xa0] sm:$0xff]  ;;  %v491_v25 = vunpack.c.l.bf16 %v3253_v7 }
  0x97   : > { %1965 = vmatpush1.bf16.msra.mxu1 %v2699_v1  ;;  %1893 = vmatprep.subr.bf16.mxu0 %v2704_v2  ;;  %v2714_v1 = vld [vmem:[%s3004_s10 + $0x220] ss:$8 sps:$4 sm:$0xff]   ;;  %vm759_vm15 = vcmp.gt.f32.partialorder %v695_v12, 0.0  ;;  %v823_v19 = vmul.f32 0.2, %v695_v12  ;;  %v498_v20 = vunpack.c.h.bf16 %v445_v0  ;;  %v497_v37 = vunpack.c.l.bf16 %v445_v0 }
  0x98   : > { %1966 = vmatprep.subr.bf16.mxu1 %v2707_v9  ;;  %v2717_v2 = vld [vmem:[%s3004_s10 + $0x320] ss:$8 sps:$4 sm:$0xff]   ;;  %v877_v9 = vsel %vm749_vm9, %v685_v33, %v813_v26  ;;  %v595_v59 = vmul.f32 %v3126_v46, %v489_v30  ;;  %v605_v30 = vmul.f32 %v3132_v48, %v499_v28 }
  0x99   : > { %v933_v15 = vpack.c.bf16 %v885_v10, %v877_v9  ;;  %v887_v33 = vsel %vm759_vm15, %v695_v12, %v823_v19  ;;  %v604_v34 = vmul.f32 %v3104_v31, %v498_v20  ;;  %v603_v62 = vmul.f32 %v3126_v46, %v497_v37  ;;  %v3291_v10 = vld [vmem:[%s3028_s26 + $0xe0] sm:$0xff] }
  0x9a   : > { %1894 = vmatpush1.bf16.msra.mxu0 %v2702_v18  ;;  %v2725_v18 = vld [vmem:[%s3004_s10 + $0x314] ss:$8 sps:$4 sm:$0xff]   ;;  %v701_v5 = vadd.f32 %v3129_v47, %v595_v59  ;;  %v506_v12 = vunpack.c.h.bf16 %v3284_v63 }
  0x9b   : > { %1967 = vmatpush1.bf16.msra.mxu1 %v2705_v23  ;;  %1895 = vmatprep.subr.bf16.mxu0 %v2710_v27  ;;  %v596_v23 = vmul.f32 %v3104_v31, %v490_v17  ;;  %v500_v27 = vunpack.c.h.bf16 %v3259_v13  ;;  %v709_v9 = vadd.f32 %v3129_v47, %v603_v62  ;;  %v3298_v17 = vld [vmem:[%s3028_s26 + $0xe8] sm:$0xff] }
  0x9c   : > { %1968 = vmatprep.subr.bf16.mxu1 %v2713_v36  ;;  %1784 = vmatmul.mubr.bf16.gmra.mxu0 %v933_v15  ;;  %v598_v36 = vmul.f32 %v3120_v44, %v492_v21  ;;  %vm765_vm4 = vcmp.gt.f32.partialorder %v701_v5, 0.0  ;;  %v829_v15 = vmul.f32 0.2, %v701_v5  ;;  %v597_v21 = vmul.f32 %v3132_v48, %v491_v25 }
  0x9d   : > { %v606_v52 = vmul.f32 %v3120_v44, %v500_v27  ;;  %vm773_vm5 = vcmp.gt.f32.partialorder %v709_v9, 0.0  ;;  %v837_v20 = vmul.f32 0.2, %v709_v9 }
  0x9e   : > { %1896 = vmatpush1.bf16.msra.mxu0 %v2708_v51  ;;  %v935_v51 = vpack.c.bf16 %v887_v33, %v879_v22  ;;  %v704_v58 = vadd.f32 %v3123_v45, %v598_v36  ;;  %v2735_v22 = vld [vmem:[%s3004_s10 + $0x3f0] ss:$8 sps:$4 sm:$0xff]   ;;  %v893_v27 = vsel %vm765_vm4, %v701_v5, %v829_v15  ;;  %v514_v33 = vunpack.c.h.bf16 %v3291_v10  ;;  %v2743_v36 = vld [vmem:[%s3004_s10 + $0x3e4] ss:$8 sps:$4 sm:$0xff]  }
  0x9f   : > { %1969 = vmatpush1.bf16.msra.mxu1 %v2711_v29  ;;  %1897 = vmatprep.subr.bf16.mxu0 %v2716_v55  ;;  %v702_v29 = vadd.f32 %v3107_v32, %v596_v23  ;;  %v2731_v55 = vld [vmem:[%s3004_s10 + $0x304] ss:$8 sps:$4 sm:$0xff]   ;;  %v712_v35 = vadd.f32 %v3123_v45, %v606_v52  ;;  %v901_v37 = vsel %vm773_vm5, %v709_v9, %v837_v20  ;;  %v431_v20 = vld [vmem:[%s3028_s26 + $0x30] sm:$0xff] }
  0xa0   : > { %1970 = vmatprep.subr.bf16.mxu1 %v2719_v57  ;;  %v710_v57 = vadd.f32 %v3107_v32, %v604_v34  ;;  %1857 = vmatmul.mubr.bf16.gmra.mxu1 %v935_v51  ;;  %vm768_vm2 = vcmp.gt.f32.partialorder %v704_v58, 0.0  ;;  %v2740_v23 = vld [vmem:[%s3004_s10 + $0x2e4] ss:$8 sps:$4 sm:$0xff]   ;;  %v612_v34 = vmul.f32 %v3104_v31, %v506_v12  ;;  %v2738_v51 = vld [vmem:[%s3004_s10 + $0x2e0] ss:$8 sps:$4 sm:$0xff]   ;;  %v711_v52 = vadd.f32 %v3135_v49, %v605_v30 }
  0xa1   : > { %vm766_vm0 = vcmp.gt.f32.partialorder %v702_v29, 0.0  ;;  %v830_v26 = vmul.f32 0.2, %v702_v29  ;;  %vm776_vm3 = vcmp.gt.f32.partialorder %v712_v35, 0.0  ;;  %v840_v4 = vmul.f32 0.2, %v712_v35 }
  0xa2   : > { %1898 = vmatpush1.bf16.msra.mxu0 %v2714_v1  ;;  %vm774_vm1 = vcmp.gt.f32.partialorder %v710_v57, 0.0  ;;  %v838_v0 = vmul.f32 0.2, %v710_v57  ;;  %v832_v1 = vmul.f32 0.2, %v704_v58  ;;  %v620_v25 = vmul.f32 %v3104_v31, %v514_v33 }
  0xa3   : > { %1971 = vmatpush1.bf16.msra.mxu1 %v2717_v2  ;;  %1899 = vmatprep.subr.bf16.mxu0 %v2722_v14  ;;  %v2734_v2 = vld [vmem:[%s3004_s10 + $0x2f4] ss:$8 sps:$4 sm:$0xff]   ;;  %v894_v3 = vsel %vm766_vm0, %v702_v29, %v830_v26  ;;  %v904_v14 = vsel %vm776_vm3, %v712_v35, %v840_v4  ;;  %v941_v29 = vpack.c.bf16 %v901_v37, %v893_v27  ;;  %vm775_vm7 = vcmp.gt.f32.partialorder %v711_v52, 0.0 }
  0xa4   : > { %1972 = vmatprep.subr.bf16.mxu1 %v2725_v18  ;;  %v902_v7 = vsel %vm774_vm1, %v710_v57, %v838_v0  ;;  %v896_v8 = vsel %vm768_vm2, %v704_v58, %v832_v1  ;;  %v2732_v18 = vld [vmem:[%s3004_s10 + $0x2f0] ss:$8 sps:$4 sm:$0xff]   ;;  %v2741_v57 = vld [vmem:[%s3004_s10 + $0x3e0] ss:$8 sps:$4 sm:$0xff]   ;;  %v718_v59 = vadd.f32 %v3107_v32, %v612_v34  ;;  %v726_v26 = vadd.f32 %v3107_v32, %v620_v25  ;;  %v2749_v35 = vld [vmem:[%s3004_s10 + $0x3d4] ss:$8 sps:$4 sm:$0xff]  }
  0xa5   : > { %v942_v13 = vpack.c.bf16 %v902_v7, %v894_v3  ;;  %v944_v19 = vpack.c.bf16 %v904_v14, %v896_v8  ;;  %v2744_v32 = vld [vmem:[%s3004_s10 + $0x2d0] ss:$8 sps:$4 sm:$0xff]   ;;  %v513_v12 = vunpack.c.l.bf16 %v3291_v10  ;;  %v515_v10 = vunpack.c.l.bf16 %v3298_v17  ;;  %v2758_v37 = vld [vmem:[%s3004_s10 + $0x2b4] ss:$8 sps:$4 sm:$0xff]  }
  0xa6   : > { %1900 = vmatpush1.bf16.msra.mxu0 %v2720_v38  ;;  %v703_v38 = vadd.f32 %v3135_v49, %v597_v21  ;;  %vm782_vm8 = vcmp.gt.f32.partialorder %v718_v59, 0.0  ;;  %vm790_vm9 = vcmp.gt.f32.partialorder %v726_v26, 0.0  ;;  %v2747_v7 = vld [vmem:[%s3004_s10 + $0x3d0] ss:$8 sps:$4 sm:$0xff]  }
  0xa7   : > { %1973 = vmatpush1.bf16.msra.mxu1 %v2723_v41  ;;  %1901 = vmatprep.subr.bf16.mxu0 %v2728_v42  ;;  %v508_v41 = vunpack.c.h.bf16 %v3295_v16  ;;  %v516_v42 = vunpack.c.h.bf16 %v3298_v17  ;;  %v469_v17 = vunpack.c.l.bf16 %v431_v20 }
  0xa8   : > { %1974 = vmatprep.subr.bf16.mxu1 %v2731_v55  ;;  %1793 = vmatprep.mubr.bf16.mxu0 %v942_v13  ;;  %v505_v55 = vunpack.c.l.bf16 %v3284_v63  ;;  %vm767_vm6 = vcmp.gt.f32.partialorder %v703_v38, 0.0  ;;  %v831_v58 = vmul.f32 0.2, %v703_v38  ;;  %v846_v63 = vmul.f32 0.2, %v718_v59 }
  0xa9   : > { %1866 = vmatprep.mubr.bf16.mxu1 %v944_v19  ;;  %v614_v28 = vmul.f32 %v3120_v44, %v508_v41  ;;  %v622_v31 = vmul.f32 %v3120_v44, %v516_v42  ;;  %1794 = vmatmul.mubr.bf16.gmra.mxu0 %v941_v29  ;;  %v2755_v13 = vld [vmem:[%s3004_s10 + $0x3c4] ss:$8 sps:$4 sm:$0xff]   ;;  %v507_v19 = vunpack.c.l.bf16 %v3295_v16  ;;  %v2750_v16 = vld [vmem:[%s3004_s10 + $0x2c0] ss:$8 sps:$4 sm:$0xff]   ;;  %v470_v41 = vunpack.c.h.bf16 %v431_v20  ;;  %v2761_v42 = vld [vmem:[%s3004_s10 + $0x3b4] ss:$8 sps:$4 sm:$0xff]  }
  0xaa   : > { %1902 = vmatpush1.bf16.msra.mxu0 %v2726_v60  ;;  %v2746_v60 = vld [vmem:[%s3004_s10 + $0x2d4] ss:$8 sps:$4 sm:$0xff]   ;;  %v895_v62 = vsel %vm767_vm6, %v703_v38, %v831_v58  ;;  %v910_v4 = vsel %vm782_vm8, %v718_v59, %v846_v63  ;;  %v2764_v63 = vld [vmem:[%s3004_s10 + $0x2a4] ss:$8 sps:$4 sm:$0xff]  }
  0xab   : > { %1975 = vmatpush1.bf16.msra.mxu1 %v2729_v61  ;;  %1903 = vmatprep.subr.bf16.mxu0 %v2734_v2  ;;  %v839_v61 = vmul.f32 0.2, %v711_v52  ;;  %v720_v0 = vadd.f32 %v3123_v45, %v614_v28  ;;  %v854_v2 = vmul.f32 0.2, %v726_v26  ;;  %v728_v3 = vadd.f32 %v3123_v45, %v622_v31  ;;  %v2752_v45 = vld [vmem:[%s3004_s10 + $0x2c4] ss:$8 sps:$4 sm:$0xff]  }
  0xac   : > { %1976 = vmatprep.subr.bf16.mxu1 %v2737_v6  ;;  %v427_v6 = vld [vmem:[%s3028_s26 + $0x10] sm:$0xff]  ;;  %v613_v33 = vmul.f32 %v3132_v48, %v507_v19  ;;  %v575_v28 = vmul.f32 %v3165_v24, %v469_v17 }
  0xad   : > { %v903_v1 = vsel %vm775_vm7, %v711_v52, %v839_v61  ;;  %vm784_vm10 = vcmp.gt.f32.partialorder %v720_v0, 0.0  ;;  %v848_v5 = vmul.f32 0.2, %v720_v0  ;;  %v918_v8 = vsel %vm790_vm9, %v726_v26, %v854_v2  ;;  %v2759_v61 = vld [vmem:[%s3004_s10 + $0x3b0] ss:$8 sps:$4 sm:$0xff]  }
  0xae   : > { %1904 = vmatpush2.bf16.msra.mxu0 %v2732_v18  ;;  %v943_v44 = vpack.c.bf16 %v903_v1, %v895_v62  ;;  %vm792_vm11 = vcmp.gt.f32.partialorder %v728_v3, 0.0  ;;  %v856_v9 = vmul.f32 0.2, %v728_v3  ;;  %v950_v14 = vpack.c.bf16 %v918_v8, %v910_v4 }
  0xaf   : > { %1977 = vmatpush2.bf16.msra.mxu1 %v2735_v22  ;;  %1905 = vmatprep.subr.bf16.mxu0 %v2740_v23  ;;  %v912_v15 = vsel %vm784_vm10, %v720_v0, %v848_v5  ;;  %v611_v18 = vmul.f32 %v3126_v46, %v505_v55  ;;  %v619_v22 = vmul.f32 %v3126_v46, %v513_v12  ;;  %v461_v23 = vunpack.c.l.bf16 %v427_v6  ;;  %v428_v55 = vld [vmem:[%s3028_s26 + $0x18] sm:$0xff]  ;;  %v3358_v5 = vld [vmem:[%s3028_s26 + $0x50] sm:$0xff]  ;;  %v2765_v12 = vld [vmem:[%s3004_s10 + $0x3a0] ss:$8 sps:$4 sm:$0xff]  }
  0xb0   : > { %1978 = vmatprep.subr.bf16.mxu1 %v2743_v36  ;;  %1867 = vmatmul.mubr.bf16.gmra.mxu1 %v943_v44  ;;  %v920_v21 = vsel %vm792_vm11, %v728_v3, %v856_v9  ;;  %v462_v34 = vunpack.c.h.bf16 %v427_v6  ;;  %v2753_v36 = vld [vmem:[%s3004_s10 + $0x3c0] ss:$8 sps:$4 sm:$0xff]   ;;  %v621_v46 = vmul.f32 %v3132_v48, %v515_v10  ;;  %v719_v29 = vadd.f32 %v3135_v49, %v613_v33  ;;  %v2767_v3 = vld [vmem:[%s3004_s10 + $0x3a4] ss:$8 sps:$4 sm:$0xff]   ;;  %v2768_v10 = vld [vmem:[%s3004_s10 + $0x290] ss:$8 sps:$4 sm:$0xff]  }
  0xb1   : > { %1803 = vmatprep.mubr.bf16.mxu0 %v950_v14  ;;  %v952_v27 = vpack.c.bf16 %v920_v21, %v912_v15  ;;  %v717_v30 = vadd.f32 %v3129_v47, %v611_v18  ;;  %v725_v38 = vadd.f32 %v3129_v47, %v619_v22  ;;  %v567_v52 = vmul.f32 %v3165_v24, %v461_v23  ;;  %v2770_v15 = vld [vmem:[%s3004_s10 + $0x294] ss:$8 sps:$4 sm:$0xff]   ;;  %v2771_v23 = vld [vmem:[%s3004_s10 + $0x390] ss:$8 sps:$4 sm:$0xff]  }
  0xb2   : > { %1906 = vmatpush2.bf16.msra.mxu0 %v2738_v51  ;;  %v727_v25 = vadd.f32 %v3135_v49, %v621_v46  ;;  %v568_v48 = vmul.f32 %v3175_v39, %v462_v34  ;;  %vm783_vm14 = vcmp.gt.f32.partialorder %v719_v29, 0.0  ;;  %v847_v59 = vmul.f32 0.2, %v719_v29  ;;  %v2773_v18 = vld [vmem:[%s3004_s10 + $0x394] ss:$8 sps:$4 sm:$0xff]  }
  0xb3   : > { %1979 = vmatpush2.bf16.msra.mxu1 %v2741_v57  ;;  %1907 = vmatprep.subr.bf16.mxu0 %v2746_v60  ;;  %vm781_vm12 = vcmp.gt.f32.partialorder %v717_v30, 0.0  ;;  %v845_v51 = vmul.f32 0.2, %v717_v30  ;;  %vm789_vm13 = vcmp.gt.f32.partialorder %v725_v38, 0.0  ;;  %v853_v47 = vmul.f32 0.2, %v725_v38 }
  0xb4   : > { %1980 = vmatprep.subr.bf16.mxu1 %v2749_v35  ;;  %1876 = vmatprep.mubr.bf16.mxu1 %v952_v27  ;;  %v2756_v57 = vld [vmem:[%s3004_s10 + $0x2b0] ss:$8 sps:$4 sm:$0xff]   ;;  %vm791_vm15 = vcmp.gt.f32.partialorder %v727_v25, 0.0  ;;  %v855_v31 = vmul.f32 0.2, %v727_v25  ;;  %v576_v49 = vmul.f32 %v3175_v39, %v470_v41  ;;  %v911_v62 = vsel %vm783_vm14, %v719_v29, %v847_v59 }
  0xb5   : > { %v909_v58 = vsel %vm781_vm12, %v717_v30, %v845_v51  ;;  %v432_v60 = vld [vmem:[%s3028_s26 + $0x38] sm:$0xff]  ;;  %v917_v26 = vsel %vm789_vm13, %v725_v38, %v853_v47  ;;  %v674_v0 = vadd.f32 %v3180_v40, %v568_v48  ;;  %v463_v1 = vunpack.c.l.bf16 %v428_v55  ;;  %v439_v41 = vld [vmem:[%s3028_s26 + $0x70] sm:$0xff] }
  0xb6   : > { %1908 = vmatpush2.bf16.msra.mxu0 %v2744_v32  ;;  %v949_v35 = vpack.c.bf16 %v917_v26, %v909_v58  ;;  %v919_v2 = vsel %vm791_vm15, %v727_v25, %v855_v31  ;;  %v682_v32 = vadd.f32 %v3180_v40, %v576_v49  ;;  %v464_v44 = vunpack.c.h.bf16 %v428_v55  ;;  %v3381_v51 = vld [vmem:[%s3028_s26 + $0x58] sm:$0xff] }
  0xb7   : > { %1981 = vmatpush2.bf16.msra.mxu1 %v2747_v7  ;;  %1909 = vmatprep.subr.bf16.mxu0 %v2752_v45  ;;  %v471_v4 = vunpack.c.l.bf16 %v432_v60  ;;  %v951_v6 = vpack.c.bf16 %v919_v2, %v911_v62  ;;  %v2762_v7 = vld [vmem:[%s3004_s10 + $0x2a0] ss:$8 sps:$4 sm:$0xff]   ;;  %vm738_vm0 = vcmp.gt.f32.partialorder %v674_v0, 0.0  ;;  %v802_v8 = vmul.f32 0.2, %v674_v0  ;;  %v3384_v55 = vld [vmem:[%s3028_s26 + $0x78] sm:$0xff] }
  0xb8   : > { %1982 = vmatprep.subr.bf16.mxu1 %v2755_v13  ;;  %1804 = vmatmul.mubr.bf16.gmra.mxu0 %v949_v35  ;;  %v472_v9 = vunpack.c.h.bf16 %v432_v60  ;;  %vm746_vm1 = vcmp.gt.f32.partialorder %v682_v32, 0.0  ;;  %v810_v45 = vmul.f32 0.2, %v682_v32  ;;  %v569_v13 = vmul.f32 %v3186_v43, %v463_v1  ;;  %v2774_v60 = vld [vmem:[%s3004_s10 + $0x280] ss:$8 sps:$4 sm:$0xff]  }
  0xb9   : > { %v570_v14 = vmul.f32 %v3189_v50, %v464_v44  ;;  %1877 = vmatmul.mubr.bf16.gmra.mxu1 %v951_v6  ;;  %v866_v19 = vsel %vm738_vm0, %v674_v0, %v802_v8  ;;  %v577_v20 = vmul.f32 %v3186_v43, %v471_v4  ;;  %v478_v22 = vunpack.c.h.bf16 %v3358_v5 }
  0xba   : > { %1910 = vmatpush2.bf16.msra.mxu0 %v2750_v16  ;;  %v578_v21 = vmul.f32 %v3189_v50, %v472_v9  ;;  %v874_v27 = vsel %vm746_vm1, %v682_v32, %v810_v45  ;;  %v673_v33 = vadd.f32 %v3199_v54, %v567_v52  ;;  %v681_v34 = vadd.f32 %v3199_v54, %v575_v28  ;;  %v2776_v16 = vld [vmem:[%s3004_s10 + $0x284] ss:$8 sps:$4 sm:$0xff]  }
  0xbb   : > { %1983 = vmatpush2.bf16.msra.mxu1 %v2753_v36  ;;  %1911 = vmatprep.subr.bf16.mxu0 %v2758_v37  ;;  %v676_v30 = vadd.f32 %v3194_v53, %v570_v14  ;;  %v2779_v36 = vld [vmem:[%s3004_s10 + $0x384] ss:$8 sps:$4 sm:$0xff]   ;;  %v930_v37 = vpack.c.bf16 %v874_v27, %v866_v19  ;;  %v675_v46 = vadd.f32 %v3205_v56, %v569_v13  ;;  %v486_v28 = vunpack.c.h.bf16 %v439_v41 }
  0xbc   : > { %1984 = vmatprep.subr.bf16.mxu1 %v2761_v42  ;;  %v684_v38 = vadd.f32 %v3194_v53, %v578_v21  ;;  %v683_v17 = vadd.f32 %v3205_v56, %v577_v20  ;;  %vm737_vm3 = vcmp.gt.f32.partialorder %v673_v33, 0.0  ;;  %vm745_vm4 = vcmp.gt.f32.partialorder %v681_v34, 0.0 }
  0xbd   : > { %vm740_vm2 = vcmp.gt.f32.partialorder %v676_v30, 0.0  ;;  %v804_v42 = vmul.f32 0.2, %v676_v30  ;;  %v801_v52 = vmul.f32 0.2, %v673_v33  ;;  %vm739_vm6 = vcmp.gt.f32.partialorder %v675_v46, 0.0  ;;  %1919 = vmatprep.mubr.bf16.mxu0 %v930_v37 }
  0xbe   : > { %1912 = vmatpush2.bf16.msra.mxu0 %v2756_v57  ;;  %vm748_vm5 = vcmp.gt.f32.partialorder %v684_v38, 0.0  ;;  %v812_v29 = vmul.f32 0.2, %v684_v38  ;;  %v809_v25 = vmul.f32 0.2, %v681_v34  ;;  %vm747_vm7 = vcmp.gt.f32.partialorder %v683_v17, 0.0 }
  0xbf   : > { %1985 = vmatpush2.bf16.msra.mxu1 %v2759_v61  ;;  %1913 = vmatprep.subr.bf16.mxu0 %v2764_v63  ;;  %v868_v47 = vsel %vm740_vm2, %v676_v30, %v804_v42  ;;  %v803_v48 = vmul.f32 0.2, %v675_v46  ;;  %v865_v58 = vsel %vm737_vm3, %v673_v33, %v801_v52  ;;  %v811_v59 = vmul.f32 0.2, %v683_v17  ;;  %v2777_v61 = vld [vmem:[%s3004_s10 + $0x380] ss:$8 sps:$4 sm:$0xff]  }
  0xc0   : > { %1986 = vmatprep.subr.bf16.mxu1 %v2767_v3  ;;  %v876_v57 = vsel %vm748_vm5, %v684_v38, %v812_v29  ;;  %v873_v31 = vsel %vm745_vm4, %v681_v34, %v809_v25  ;;  %v480_v35 = vunpack.c.h.bf16 %v3381_v51  ;;  %v584_v0 = vmul.f32 %v3175_v39, %v478_v22  ;;  %v443_v33 = vld [vmem:[%s3028_s26 + $0x90] sm:$0xff]  ;;  %v444_v38 = vld [vmem:[%s3028_s26 + $0x98] sm:$0xff] }
  0xc1   : > { %v932_v26 = vpack.c.bf16 %v876_v57, %v868_v47  ;;  %v867_v49 = vsel %vm739_vm6, %v675_v46, %v803_v48  ;;  %v929_v62 = vpack.c.bf16 %v873_v31, %v865_v58  ;;  %v875_v63 = vsel %vm747_vm7, %v683_v17, %v811_v59  ;;  %v447_v34 = vld [vmem:[%s3028_s26 + $0xb0] sm:$0xff]  ;;  %v3414_v46 = vld [vmem:[%s3028_s26 + $0xb8] sm:$0xff] }
  0xc2   : > { %1914 = vmatpush2.bf16.msra.mxu0 %v2762_v7  ;;  %v488_v1 = vunpack.c.h.bf16 %v3384_v55  ;;  %v931_v2 = vpack.c.bf16 %v875_v63, %v867_v49  ;;  %v592_v3 = vmul.f32 %v3175_v39, %v486_v28  ;;  %v586_v32 = vmul.f32 %v3189_v50, %v480_v35 }
  0xc3   : > { %1987 = vmatpush2.bf16.msra.mxu1 %v2765_v12  ;;  %1915 = vmatprep.subr.bf16.mxu0 %v2770_v15  ;;  %v477_v44 = vunpack.c.l.bf16 %v3358_v5  ;;  %v690_v4 = vadd.f32 %v3180_v40, %v584_v0  ;;  %v485_v7 = vunpack.c.l.bf16 %v439_v41  ;;  %v479_v8 = vunpack.c.l.bf16 %v3381_v51 }
  0xc4   : > { %1988 = vmatprep.subr.bf16.mxu1 %v2773_v18  ;;  %1992 = vmatprep.mubr.bf16.mxu1 %v932_v26  ;;  %v594_v6 = vmul.f32 %v3189_v50, %v488_v1  ;;  %v698_v9 = vadd.f32 %v3180_v40, %v592_v3  ;;  %v692_v12 = vadd.f32 %v3194_v53, %v586_v32  ;;  %v487_v13 = vunpack.c.l.bf16 %v3384_v55 }
  0xc5   : > { %v583_v45 = vmul.f32 %v3165_v24, %v477_v44  ;;  %vm754_vm8 = vcmp.gt.f32.partialorder %v690_v4, 0.0  ;;  %v818_v14 = vmul.f32 0.2, %v690_v4  ;;  %v591_v15 = vmul.f32 %v3165_v24, %v485_v7 }
  0xc6   : > { %1916 = vmatpush2.bf16.msra.mxu0 %v2768_v10  ;;  %v700_v5 = vadd.f32 %v3194_v53, %v594_v6  ;;  %vm762_vm9 = vcmp.gt.f32.partialorder %v698_v9, 0.0  ;;  %v826_v18 = vmul.f32 0.2, %v698_v9  ;;  %vm756_vm10 = vcmp.gt.f32.partialorder %v692_v12, 0.0 }
  0xc7   : > { %1989 = vmatpush2.bf16.msra.mxu1 %v2771_v23  ;;  %1917 = vmatprep.subr.bf16.mxu0 %v2776_v16  ;;  %v820_v19 = vmul.f32 0.2, %v692_v12  ;;  %v882_v20 = vsel %vm754_vm8, %v690_v4, %v818_v14  ;;  %v689_v22 = vadd.f32 %v3199_v54, %v583_v45  ;;  %v697_v27 = vadd.f32 %v3199_v54, %v591_v15  ;;  %v455_v15 = vld [vmem:[%s3028_s26 + $0xf0] sm:$0xff] }
  0xc8   : > { %1990 = vmatprep.subr.bf16.mxu1 %v2779_v36  ;;  %vm764_vm11 = vcmp.gt.f32.partialorder %v700_v5, 0.0  ;;  %v828_v21 = vmul.f32 0.2, %v700_v5  ;;  %v890_v10 = vsel %vm762_vm9, %v698_v9, %v826_v18  ;;  %v585_v30 = vmul.f32 %v3186_v43, %v479_v8 }
  0xc9   : > { %v884_v23 = vsel %vm756_vm10, %v692_v12, %v820_v19  ;;  %v938_v16 = vpack.c.bf16 %v890_v10, %v882_v20  ;;  %vm753_vm12 = vcmp.gt.f32.partialorder %v689_v22, 0.0  ;;  %v817_v37 = vmul.f32 0.2, %v689_v22  ;;  %v451_v12 = vld [vmem:[%s3028_s26 + $0xd0] sm:$0xff] }
  0xca   : > { %1918 = vmatpush2.bf16.msra.mxu0 %v2774_v60  ;;  %v892_v36 = vsel %vm764_vm11, %v700_v5, %v828_v21  ;;  %vm761_vm13 = vcmp.gt.f32.partialorder %v697_v27, 0.0  ;;  %v825_v41 = vmul.f32 0.2, %v697_v27  ;;  %v593_v42 = vmul.f32 %v3186_v43, %v487_v13 }
  0xcb   : > { %1991 = vmatpush2.bf16.msra.mxu1 %v2777_v61  ;;  %v940_v17 = vpack.c.bf16 %v892_v36, %v884_v23  ;;  %v881_v51 = vsel %vm753_vm12, %v689_v22, %v817_v37  ;;  %v691_v29 = vadd.f32 %v3205_v56, %v585_v30  ;;  %v494_v52 = vunpack.c.h.bf16 %v443_v33  ;;  %v452_v30 = vld [vmem:[%s3028_s26 + $0xd8] sm:$0xff] }
  0xcc   : > { %v502_v47 = vunpack.c.h.bf16 %v447_v34  ;;  %v889_v25 = vsel %vm761_vm13, %v697_v27, %v825_v41  ;;  %v699_v48 = vadd.f32 %v3205_v56, %v593_v42  ;;  %v496_v55 = vunpack.c.h.bf16 %v444_v38  ;;  %v456_v42 = vld [vmem:[%s3028_s26 + $0xf8] sm:$0xff] }
  0xcd   : > { %1920 = vmatmul.mubr.bf16.vlgmr.msra.gmra.mxu0 %v929_v62  ;;  %v504_v57 = vunpack.c.h.bf16 %v3414_v46  ;;  %v937_v58 = vpack.c.bf16 %v889_v25, %v881_v51  ;;  %vm755_vm14 = vcmp.gt.f32.partialorder %v691_v29, 0.0  ;;  %v819_v59 = vmul.f32 0.2, %v691_v29 }
  0xce   : > { %1993 = vmatmul.mubr.bf16.vlgmr.msra.gmra.mxu1 %v931_v2  ;;  %1929 = vmatprep.mubr.bf16.mxu0 %v938_v16  ;;  %v600_v28 = vmul.f32 %v3175_v39, %v494_v52  ;;  %vm763_vm15 = vcmp.gt.f32.partialorder %v699_v48, 0.0  ;;  %v827_v60 = vmul.f32 0.2, %v699_v48  ;;  %v608_v61 = vmul.f32 %v3175_v39, %v502_v47 }
  0xcf   : > { %2002 = vmatprep.mubr.bf16.mxu1 %v940_v17  ;;  %v602_v26 = vmul.f32 %v3189_v50, %v496_v55  ;;  %v883_v31 = vsel %vm755_vm14, %v691_v29, %v819_v59  ;;  %v610_v35 = vmul.f32 %v3189_v50, %v504_v57  ;;  %v493_v62 = vunpack.c.l.bf16 %v443_v33 }
  0xd0   : > { %v706_v49 = vadd.f32 %v3180_v40, %v600_v28  ;;  %v891_v63 = vsel %vm763_vm15, %v699_v48, %v827_v60  ;;  %v714_v0 = vadd.f32 %v3180_v40, %v608_v61  ;;  %v501_v2 = vunpack.c.l.bf16 %v447_v34 }
  0xd1   : > { %v708_v1 = vadd.f32 %v3194_v53, %v602_v26  ;;  %v939_v3 = vpack.c.bf16 %v891_v63, %v883_v31  ;;  %v716_v44 = vadd.f32 %v3194_v53, %v610_v35  ;;  %v599_v9 = vmul.f32 %v3165_v24, %v493_v62 }
  0xd2   : > { %vm770_vm0 = vcmp.gt.f32.partialorder %v706_v49, 0.0  ;;  %v834_v32 = vmul.f32 0.2, %v706_v49  ;;  %vm778_vm1 = vcmp.gt.f32.partialorder %v714_v0, 0.0  ;;  %v842_v4 = vmul.f32 0.2, %v714_v0 }
  0xd3   : > { %vm772_vm2 = vcmp.gt.f32.partialorder %v708_v1, 0.0  ;;  %v836_v6 = vmul.f32 0.2, %v708_v1  ;;  %vm780_vm3 = vcmp.gt.f32.partialorder %v716_v44, 0.0  ;;  %v844_v8 = vmul.f32 0.2, %v716_v44 }
  0xd4   : > { %v898_v7 = vsel %vm770_vm0, %v706_v49, %v834_v32  ;;  %v906_v45 = vsel %vm778_vm1, %v714_v0, %v842_v4  ;;  %v607_v14 = vmul.f32 %v3165_v24, %v501_v2  ;;  %v495_v5 = vunpack.c.l.bf16 %v444_v38 }
  0xd5   : > { %1930 = vmatmul.mubr.bf16.gmra.mxu0 %v937_v58  ;;  %v900_v13 = vsel %vm772_vm2, %v708_v1, %v836_v6  ;;  %v946_v18 = vpack.c.bf16 %v906_v45, %v898_v7  ;;  %v908_v19 = vsel %vm780_vm3, %v716_v44, %v844_v8  ;;  %v705_v20 = vadd.f32 %v3199_v54, %v599_v9 }
  0xd6   : > { %2003 = vmatmul.mubr.bf16.gmra.mxu1 %v939_v3  ;;  %v503_v21 = vunpack.c.l.bf16 %v3414_v46  ;;  %v948_v22 = vpack.c.bf16 %v908_v19, %v900_v13  ;;  %v713_v10 = vadd.f32 %v3199_v54, %v607_v14  ;;  %v601_v23 = vmul.f32 %v3186_v43, %v495_v5 }
  0xd7   : > { %v510_v27 = vunpack.c.h.bf16 %v451_v12  ;;  %1939 = vmatprep.mubr.bf16.mxu0 %v946_v18  ;;  %vm769_vm4 = vcmp.gt.f32.partialorder %v705_v20, 0.0  ;;  %v833_v33 = vmul.f32 0.2, %v705_v20  ;;  %v518_v16 = vunpack.c.h.bf16 %v455_v15 }
  0xd8   : > { %v609_v34 = vmul.f32 %v3186_v43, %v503_v21  ;;  %2012 = vmatprep.mubr.bf16.mxu1 %v948_v22  ;;  %vm777_vm5 = vcmp.gt.f32.partialorder %v713_v10, 0.0  ;;  %v841_v36 = vmul.f32 0.2, %v713_v10  ;;  %v707_v37 = vadd.f32 %v3205_v56, %v601_v23 }
  0xd9   : > { %v616_v38 = vmul.f32 %v3175_v39, %v510_v27  ;;  %v897_v46 = vsel %vm769_vm4, %v705_v20, %v833_v33  ;;  %v624_v41 = vmul.f32 %v3175_v39, %v518_v16  ;;  %v512_v51 = vunpack.c.h.bf16 %v452_v30 }
  0xda   : > { %v715_v17 = vadd.f32 %v3205_v56, %v609_v34  ;;  %v905_v29 = vsel %vm777_vm5, %v713_v10, %v841_v36  ;;  %vm771_vm6 = vcmp.gt.f32.partialorder %v707_v37, 0.0  ;;  %v835_v52 = vmul.f32 0.2, %v707_v37 }
  0xdb   : > { %v722_v47 = vadd.f32 %v3180_v40, %v616_v38  ;;  %v945_v25 = vpack.c.bf16 %v905_v29, %v897_v46  ;;  %v730_v55 = vadd.f32 %v3180_v40, %v624_v41  ;;  %v520_v59 = vunpack.c.h.bf16 %v456_v42 }
  0xdc   : > { %vm779_vm7 = vcmp.gt.f32.partialorder %v715_v17, 0.0  ;;  %v843_v48 = vmul.f32 0.2, %v715_v17  ;;  %v899_v57 = vsel %vm771_vm6, %v707_v37, %v835_v52  ;;  %v618_v60 = vmul.f32 %v3189_v50, %v512_v51 }
  0xdd   : > { %vm786_vm8 = vcmp.gt.f32.partialorder %v722_v47, 0.0  ;;  %v850_v58 = vmul.f32 0.2, %v722_v47  ;;  %1940 = vmatmul.mubr.bf16.gmra.mxu0 %v945_v25  ;;  %vm794_vm9 = vcmp.gt.f32.partialorder %v730_v55, 0.0  ;;  %v858_v39 = vmul.f32 0.2, %v730_v55 }
  0xde   : > { %v907_v28 = vsel %vm779_vm7, %v715_v17, %v843_v48  ;;  %v626_v31 = vmul.f32 %v3189_v50, %v520_v59  ;;  %v509_v49 = vunpack.c.l.bf16 %v451_v12  ;;  %v724_v62 = vadd.f32 %v3194_v53, %v618_v60 }
  0xdf   : > { %v947_v61 = vpack.c.bf16 %v907_v28, %v899_v57  ;;  %v914_v26 = vsel %vm786_vm8, %v722_v47, %v850_v58  ;;  %v922_v35 = vsel %vm794_vm9, %v730_v55, %v858_v39  ;;  %v517_v63 = vunpack.c.l.bf16 %v455_v15 }
  0xe0   : > { %v511_v40 = vunpack.c.l.bf16 %v452_v30  ;;  %v954_v0 = vpack.c.bf16 %v922_v35, %v914_v26  ;;  %v732_v1 = vadd.f32 %v3194_v53, %v626_v31  ;;  %v615_v2 = vmul.f32 %v3165_v24, %v509_v49 }
  0xe1   : > { %2013 = vmatmul.mubr.bf16.gmra.mxu1 %v947_v61  ;;  %v519_v3 = vunpack.c.l.bf16 %v456_v42  ;;  %vm788_vm10 = vcmp.gt.f32.partialorder %v724_v62, 0.0  ;;  %v852_v32 = vmul.f32 0.2, %v724_v62  ;;  %v623_v44 = vmul.f32 %v3165_v24, %v517_v63 }
  0xe2   : > { %v617_v4 = vmul.f32 %v3186_v43, %v511_v40  ;;  %1949 = vmatprep.mubr.bf16.mxu0 %v954_v0  ;;  %vm796_vm11 = vcmp.gt.f32.partialorder %v732_v1, 0.0  ;;  %v860_v50 = vmul.f32 0.2, %v732_v1  ;;  %v721_v6 = vadd.f32 %v3199_v54, %v615_v2  ;;  %v957_v0 = vld [vmem:[#allocation2 + $0x30] sm:$0xff] }
  0xe3   : > { %v625_v7 = vmul.f32 %v3186_v43, %v519_v3  ;;  %v916_v8 = vsel %vm788_vm10, %v724_v62, %v852_v32  ;;  %v729_v9 = vadd.f32 %v3199_v54, %v623_v44 }
  0xe4   : > { %v723_v53 = vadd.f32 %v3205_v56, %v617_v4  ;;  %v924_v12 = vsel %vm796_vm11, %v732_v1, %v860_v50  ;;  %vm785_vm12 = vcmp.gt.f32.partialorder %v721_v6, 0.0  ;;  %v849_v45 = vmul.f32 0.2, %v721_v6  ;;  %v958_v4 = vld [vmem:[#allocation2] sm:$0xff] }
  0xe5   : > { %v731_v13 = vadd.f32 %v3205_v56, %v625_v7  ;;  %v956_v24 = vpack.c.bf16 %v924_v12, %v916_v8  ;;  %vm793_vm13 = vcmp.gt.f32.partialorder %v729_v9, 0.0  ;;  %v857_v14 = vmul.f32 0.2, %v729_v9  ;;  %v959_v12 = vld [vmem:[#allocation2 + $0x58] sm:$0xff] }
  0xe6   : > { %vm787_vm14 = vcmp.gt.f32.partialorder %v723_v53, 0.0  ;;  %v913_v5 = vsel %vm785_vm12, %v721_v6, %v849_v45  ;;  %v851_v15 = vmul.f32 0.2, %v723_v53 }
  0xe7   : > { %vm795_vm15 = vcmp.gt.f32.partialorder %v731_v13, 0.0  ;;  %v859_v18 = vmul.f32 0.2, %v731_v13  ;;  %2022 = vmatprep.mubr.bf16.mxu1 %v956_v24  ;;  %v921_v43 = vsel %vm793_vm13, %v729_v9, %v857_v14 }
  0xe8   : > { %v953_v19 = vpack.c.bf16 %v921_v43, %v913_v5  ;;  %v915_v20 = vsel %vm787_vm14, %v723_v53, %v851_v15  ;;  %v960_v15 = vld [vmem:[#allocation2 + $0x18] sm:$0xff] }
  0xe9   : > { %v923_v54 = vsel %vm795_vm15, %v731_v13, %v859_v18 }
  0xea   : > { %v955_v21 = vpack.c.bf16 %v923_v54, %v915_v20  ;;  %1950 = vmatmul.mubr.bf16.gmra.mxu0 %v953_v19 }
  0xec   : > { %2023 = vmatmul.mubr.bf16.gmra.mxu1 %v955_v21 }
 0x14d   : > { %v1775_v22 = vpop.f32.mrf.mxu0 }
 0x14e   : > { %v1848_v10 = vpop.f32.mrf.mxu1 }
 0x14f   : > { %v1777_v23 = vpop.f32.mrf.mxu0  ;;  %v1849_v49 = vadd.f32 %v1848_v10, %v1775_v22 }
 0x150   : > { %v1850_v56 = vpop.f32.mrf.mxu1 }
 0x151   : > { %v1779_v27 = vpop.f32.mrf.mxu0  ;;  %v1851_v63 = vadd.f32 %v1850_v56, %v1777_v23 }
 0x152   : > { %v1852_v30 = vpop.f32.mrf.mxu1 }
 0x153   : > { %v1781_v33 = vpop.f32.mrf.mxu0  ;;  %v1853_v3 = vadd.f32 %v1852_v30, %v1779_v27  ;;  %v961_v27 = vld [vmem:[#allocation2 + $0x50] sm:$0xff] }
 0x154   : > { %v1854_v16 = vpop.f32.mrf.mxu1 }
 0x155   : > { %v1855_v7 = vadd.f32 %v1854_v16, %v1781_v33 }
 0x15c   : > { %v1785_v34 = vpop.f32.mrf.mxu0 }
 0x15e   : > { %v1787_v37 = vpop.f32.mrf.mxu0 }
 0x160   : > { %v1858_v36 = vpop.f32.mrf.mxu1  ;;  %v1789_v46 = vpop.f32.mrf.mxu0 }
 0x161   : > { %v1859_v13 = vadd.f32 %v1858_v36, %v1785_v34 }
 0x162   : > { %v1860_v38 = vpop.f32.mrf.mxu1  ;;  %v1791_v41 = vpop.f32.mrf.mxu0 }
 0x163   : > { %v1861_v19 = vadd.f32 %v1860_v38, %v1787_v37 }
 0x164   : > { %v1862_v17 = vpop.f32.mrf.mxu1 }
 0x165   : > { %v1863_v10 = vadd.f32 %v1862_v17, %v1789_v46 }
 0x166   : > { %v1864_v42 = vpop.f32.mrf.mxu1 }
 0x167   : > { %v1865_v34 = vadd.f32 %v1864_v42, %v1791_v41 }
 0x169   : > { %v3457_v51 = vpop.f32.mrf.mxu0 }
 0x16b   : > { %v3459_v29 = vpop.f32.mrf.mxu0 }
 0x16d   : > { %v3465_v25 = vpop.f32.mrf.mxu0 }
 0x16f   : > { %v3469_v55 = vpop.f32.mrf.mxu0 }
 0x170   : > { %v3461_v52 = vpop.f32.mrf.mxu1 }
 0x171   : > { %v1869_v41 = vadd.f32 %v3461_v52, %v3457_v51  ;;  %v966_v52 = vld [vmem:[#allocation2 + $0x20] sm:$0xff] }
 0x172   : > { %v3463_v47 = vpop.f32.mrf.mxu1 }
 0x174   : > { %v3467_v48 = vpop.f32.mrf.mxu1 }
 0x176   : > { %v3471_v57 = vpop.f32.mrf.mxu1 }
 0x177   : > { %v1875_v51 = vadd.f32 %v3471_v57, %v3469_v55 }
 0x178   : > { %v3473_v58 = vpop.f32.mrf.mxu0 }
 0x179   : > { %v3475_v59 = vpop.f32.mrf.mxu1 }
 0x17a   : > { %v3477_v28 = vpop.f32.mrf.mxu0  ;;  %v1879_v55 = vadd.f32 %v3475_v59, %v3473_v58 }
 0x17b   : > { %v3479_v39 = vpop.f32.mrf.mxu1 }
 0x17c   : > { %v3481_v60 = vpop.f32.mrf.mxu0 }
 0x17d   : > { %v3483_v61 = vpop.f32.mrf.mxu1 }
 0x17e   : > { %v3485_v26 = vpop.f32.mrf.mxu0 }
 0x17f   : > { %v3487_v31 = vpop.f32.mrf.mxu1 }
 0x180   : > { %v1885_v58 = vadd.f32 %v3487_v31, %v3485_v26 }
 0x18d   : > { %v1921_v35 = vpop.f32.mrf.mxu0 }
 0x18e   : > { %v1994_v62 = vpop.f32.mrf.mxu1  ;;  %v1922_v40 = vadd.f32 %v1921_v35, %v1849_v49  ;;  %v962_v49 = vld [vmem:[#allocation2 + $0x68] sm:$0xff] }
 0x18f   : > { %v1923_v1 = vpop.f32.mrf.mxu0 }
 0x190   : > { %v1996_v2 = vpop.f32.mrf.mxu1  ;;  %v1995_v32 = vadd.f32 %v1994_v62, %v1922_v40  ;;  %v1924_v44 = vadd.f32 %v1923_v1, %v1851_v63  ;;  %v963_v40 = vld [vmem:[#allocation2 + $0x8] sm:$0xff] }
 0x191   : > { %v1925_v50 = vpop.f32.mrf.mxu0  ;;  %v964_v1 = vld [vmem:[#allocation2 + $0x48] sm:$0xff] }
 0x192   : > { %v1998_v6 = vpop.f32.mrf.mxu1  ;;  %v2033_v8 = vadd.f32 %v1995_v32, %v957_v0  ;;  %v1997_v9 = vadd.f32 %v1996_v2, %v1924_v44  ;;  %v1926_v53 = vadd.f32 %v1925_v50, %v1853_v3 }
 0x193   : > { %v1927_v45 = vpop.f32.mrf.mxu0 }
 0x194   : > { %2049 = vst [vmem:[#allocation2 + $0x30] sm:$0xff] %v2033_v8  ;;  %v2034_v24 = vadd.f32 %v1997_v9, %v958_v4  ;;  %v1999_v14 = vadd.f32 %v1998_v6, %v1926_v53  ;;  %v1928_v5 = vadd.f32 %v1927_v45, %v1855_v7  ;;  %v2000_v18 = vpop.f32.mrf.mxu1  ;;  %v1871_v4 = vadd.f32 %v3463_v47, %v3459_v29  ;;  %v965_v8 = vld [vmem:[#allocation2 + $0x40] sm:$0xff]  ;;  %v967_v47 = vld [vmem:[#allocation2 + $0x10] sm:$0xff] }
 0x195   : > { %v1931_v43 = vpop.f32.mrf.mxu0  ;;  %v1873_v7 = vadd.f32 %v3467_v48, %v3465_v25  ;;  %v968_v48 = vld [vmem:[#allocation2 + $0x38] sm:$0xff] }
 0x196   : > { %2050 = vst [vmem:[#allocation2] sm:$0xff] %v2034_v24  ;;  %v2035_v20 = vadd.f32 %v1999_v14, %v959_v12  ;;  %v2001_v54 = vadd.f32 %v2000_v18, %v1928_v5  ;;  %v1932_v21 = vadd.f32 %v1931_v43, %v1859_v13  ;;  %v2004_v30 = vpop.f32.mrf.mxu1 }
 0x197   : > { %v1933_v22 = vpop.f32.mrf.mxu0 }
 0x198   : > { %2051 = vst [vmem:[#allocation2 + $0x58] sm:$0xff] %v2035_v20  ;;  %v2036_v23 = vadd.f32 %v2001_v54, %v960_v15  ;;  %v1934_v56 = vadd.f32 %v1933_v22, %v1861_v19  ;;  %v2005_v16 = vadd.f32 %v2004_v30, %v1932_v21  ;;  %v2006_v35 = vpop.f32.mrf.mxu1  ;;  %v1881_v22 = vadd.f32 %v3479_v39, %v3477_v28  ;;  %v971_v39 = vld [vmem:[#allocation2 + $0x78] sm:$0xff] }
 0x199   : > { %v1935_v33 = vpop.f32.mrf.mxu0  ;;  %v1883_v30 = vadd.f32 %v3483_v61, %v3481_v60 }
 0x19a   : > { %2052 = vst [vmem:[#allocation2 + $0x18] sm:$0xff] %v2036_v23  ;;  %v1936_v36 = vadd.f32 %v1935_v33, %v1863_v10  ;;  %v2037_v37 = vadd.f32 %v2005_v16, %v961_v27  ;;  %v2007_v38 = vadd.f32 %v2006_v35, %v1934_v56  ;;  %v2008_v0 = vpop.f32.mrf.mxu1  ;;  %v969_v56 = vld [vmem:[#allocation2 + $0x60] sm:$0xff] }
 0x19b   : > { %v1937_v62 = vpop.f32.mrf.mxu0 }
 0x19c   : > { %v1938_v63 = vadd.f32 %v1937_v62, %v1865_v34  ;;  %2053 = vst [vmem:[#allocation2 + $0x50] sm:$0xff] %v2037_v37  ;;  %v2038_v46 = vadd.f32 %v2007_v38, %v962_v49  ;;  %v2009_v17 = vadd.f32 %v2008_v0, %v1936_v36  ;;  %v2010_v2 = vpop.f32.mrf.mxu1  ;;  %v970_v36 = vld [vmem:[#allocation2 + $0x70] sm:$0xff]  ;;  %v972_v0 = vld [vmem:[#allocation2 + $0x28] sm:$0xff] }
 0x19d   : > { %v1941_v44 = vpop.f32.mrf.mxu0 }
 0x19e   : > { %2054 = vst [vmem:[#allocation2 + $0x68] sm:$0xff] %v2038_v46  ;;  %v2039_v3 = vadd.f32 %v2009_v17, %v963_v40  ;;  %v2011_v32 = vadd.f32 %v2010_v2, %v1938_v63  ;;  %v1942_v50 = vadd.f32 %v1941_v44, %v1869_v41 }
 0x19f   : > { %v1943_v6 = vpop.f32.mrf.mxu0 }
 0x1a0   : > { %2055 = vst [vmem:[#allocation2 + $0x8] sm:$0xff] %v2039_v3  ;;  %v2040_v42 = vadd.f32 %v2011_v32, %v964_v1  ;;  %v1944_v53 = vadd.f32 %v1943_v6, %v1871_v4 }
 0x1a1   : > { %v2014_v9 = vpop.f32.mrf.mxu1  ;;  %v1945_v45 = vpop.f32.mrf.mxu0 }
 0x1a2   : > { %2056 = vst [vmem:[#allocation2 + $0x48] sm:$0xff] %v2040_v42  ;;  %v2015_v12 = vadd.f32 %v2014_v9, %v1942_v50  ;;  %v1946_v24 = vadd.f32 %v1945_v45, %v1873_v7 }
 0x1a3   : > { %v2016_v13 = vpop.f32.mrf.mxu1  ;;  %v1947_v29 = vpop.f32.mrf.mxu0 }
 0x1a4   : > { %v2041_v14 = vadd.f32 %v2015_v12, %v965_v8  ;;  %v2017_v5 = vadd.f32 %v2016_v13, %v1944_v53  ;;  %v1948_v18 = vadd.f32 %v1947_v29, %v1875_v51 }
 0x1a5   : > { %v2018_v15 = vpop.f32.mrf.mxu1 }
 0x1a6   : > { %2057 = vst [vmem:[#allocation2 + $0x40] sm:$0xff] %v2041_v14  ;;  %v2042_v43 = vadd.f32 %v2017_v5, %v966_v52  ;;  %v2019_v25 = vadd.f32 %v2018_v15, %v1946_v24 }
 0x1a7   : > { %v2020_v19 = vpop.f32.mrf.mxu1 }
 0x1a8   : > { %2058 = vst [vmem:[#allocation2 + $0x20] sm:$0xff] %v2042_v43  ;;  %v2043_v20 = vadd.f32 %v2019_v25, %v967_v47  ;;  %v2021_v54 = vadd.f32 %v2020_v19, %v1948_v18 }
 0x1aa   : > { %2059 = vst [vmem:[#allocation2 + $0x10] sm:$0xff] %v2043_v20  ;;  %v2044_v57 = vadd.f32 %v2021_v54, %v968_v48  ;;  %v1951_v21 = vpop.f32.mrf.mxu0 }
 0x1ab   : > { %v1952_v10 = vadd.f32 %v1951_v21, %v1879_v55 }
 0x1ac   : > { %2060 = vst [vmem:[#allocation2 + $0x38] sm:$0xff] %v2044_v57  ;;  %v2024_v23 = vpop.f32.mrf.mxu1  ;;  %v1953_v27 = vpop.f32.mrf.mxu0 }
 0x1ad   : > { %v2025_v33 = vadd.f32 %v2024_v23, %v1952_v10  ;;  %v1954_v34 = vadd.f32 %v1953_v27, %v1881_v22 }
 0x1ae   : > { %v2026_v16 = vpop.f32.mrf.mxu1  ;;  %v1955_v49 = vpop.f32.mrf.mxu0 }
 0x1af   : > { %v2045_v59 = vadd.f32 %v2025_v33, %v969_v56  ;;  %v2027_v35 = vadd.f32 %v2026_v16, %v1954_v34  ;;  %v1956_v62 = vadd.f32 %v1955_v49, %v1883_v30 }
 0x1b0   : > { %v2028_v28 = vpop.f32.mrf.mxu1  ;;  %v1957_v37 = vpop.f32.mrf.mxu0 }
 0x1b1   : > { %2061 = vst [vmem:[#allocation2 + $0x60] sm:$0xff] %v2045_v59  ;;  %v2046_v38 = vadd.f32 %v2027_v35, %v970_v36  ;;  %v2029_v63 = vadd.f32 %v2028_v28, %v1956_v62  ;;  %v1958_v40 = vadd.f32 %v1957_v37, %v1885_v58 }
 0x1b2   : > { %v2030_v60 = vpop.f32.mrf.mxu1 }
 0x1b3   : > { %2062 = vst [vmem:[#allocation2 + $0x70] sm:$0xff] %v2046_v38  ;;  %v2047_v61 = vadd.f32 %v2029_v63, %v971_v39  ;;  %v2031_v46 = vadd.f32 %v2030_v60, %v1958_v40  ;;  %2068 = sbr.rel (%p2508_p1) target bundleno = 474 (0x1da), region = 67 }
 0x1b5   : > { %2063 = vst [vmem:[#allocation2 + $0x78] sm:$0xff] %v2047_v61  ;;  %v2048_v17 = vadd.f32 %v2031_v46, %v972_v0 }
 0x1b7   : > { %2064 = vst [vmem:[#allocation2 + $0x28] sm:$0xff] %v2048_v17 }
 0x1b8   : > { %v2069_v26 = vld [vmem:[#allocation2 + $0x30] sm:$0xff]  ;;  %v2071_v31 = vld [vmem:[#allocation2 + $0x58] sm:$0xff]  ;;  %v2075_v2 = vld [vmem:[#allocation2 + $0x8] sm:$0xff]  ;;  %vm2155_vm0 = vcmp.lt.s32.totalorder %v3072_v11, 4 }
 0x1b9   : > { %v2073_v1 = vld [vmem:[#allocation2 + $0x50] sm:$0xff]  ;;  %v2077_v3 = vld [vmem:[#allocation2 + $0x40] sm:$0xff]  ;;  %v2085_v41 = vadd.f32 %v2071_v31, %v2069_v26  ;;  %v2111_v42 = vmul.f32 %v2069_v26, %v2069_v26  ;;  %v2113_v44 = vmul.f32 %v2071_v31, %v2071_v31  ;;  %v2117_v9 = vmul.f32 %v2075_v2, %v2075_v2  ;;  %v2072_v45 = vld [vmem:[#allocation2 + $0x18] sm:$0xff] }
 0x1ba   : > { %v2079_v32 = vld [vmem:[#allocation2 + $0x10] sm:$0xff]  ;;  %v2115_v4 = vmul.f32 %v2073_v1, %v2073_v1  ;;  %v2081_v50 = vld [vmem:[#allocation2 + $0x60] sm:$0xff]  ;;  %v2119_v53 = vmul.f32 %v2077_v3, %v2077_v3  ;;  %v2074_v51 = vld [vmem:[#allocation2 + $0x68] sm:$0xff]  ;;  %v2114_v29 = vmul.f32 %v2072_v45, %v2072_v45  ;;  %v2524_v23 = vpack.c.bf16 %v2072_v45, %v2071_v31 }
 0x1bb   : > { %v2070_v7 = vld [vmem:[#allocation2] sm:$0xff]  ;;  %v2086_v8 = vadd.f32 %v2085_v41, %v2073_v1  ;;  %v2127_v12 = vadd.f32 %v2113_v44, %v2111_v42  ;;  %v2076_v52 = vld [vmem:[#allocation2 + $0x48] sm:$0xff]  ;;  %v2121_v13 = vmul.f32 %v2079_v32, %v2079_v32  ;;  %v2123_v15 = vmul.f32 %v2081_v50, %v2081_v50  ;;  %v2080_v22 = vld [vmem:[#allocation2 + $0x38] sm:$0xff] }
 0x1bc   : > { %v2083_v6 = vld [vmem:[#allocation2 + $0x78] sm:$0xff]  ;;  %v2078_v24 = vld [vmem:[#allocation2 + $0x20] sm:$0xff]  ;;  %v2098_v14 = vadd.f32 %v2072_v45, %v2070_v7  ;;  %v2112_v5 = vmul.f32 %v2070_v7, %v2070_v7  ;;  %v2116_v43 = vmul.f32 %v2074_v51, %v2074_v51  ;;  %v2118_v19 = vmul.f32 %v2076_v52, %v2076_v52  ;;  %v2082_v34 = vld [vmem:[#allocation2 + $0x70] sm:$0xff]  ;;  %2209 = vst [vmem:[%s3020_s7 + $0x8] sm:$0xff] %v2524_v23 }
 0x1bd   : > { %v2087_v47 = vadd.f32 %v2086_v8, %v2075_v2  ;;  %v2128_v18 = vadd.f32 %v2127_v12, %v2115_v4  ;;  %v2125_v25 = vmul.f32 %v2083_v6, %v2083_v6  ;;  %v2120_v20 = vmul.f32 %v2078_v24, %v2078_v24 }
 0x1be   : > { %v2099_v48 = vadd.f32 %v2098_v14, %v2074_v51  ;;  %v2140_v57 = vadd.f32 %v2114_v29, %v2112_v5  ;;  %v2523_v21 = vpack.c.bf16 %v2070_v7, %v2069_v26  ;;  %v2525_v56 = vpack.c.bf16 %v2074_v51, %v2073_v1  ;;  %v2084_v16 = vld [vmem:[#allocation2 + $0x28] sm:$0xff] }
 0x1bf   : > { %v2088_v54 = vadd.f32 %v2087_v47, %v2077_v3  ;;  %v2129_v55 = vadd.f32 %v2128_v18, %v2117_v9  ;;  %v2526_v27 = vpack.c.bf16 %v2076_v52, %v2075_v2  ;;  %v2527_v49 = vpack.c.bf16 %v2078_v24, %v2077_v3 }
 0x1c0   : > { %v2100_v10 = vadd.f32 %v2099_v48, %v2076_v52  ;;  %v2141_v36 = vadd.f32 %v2140_v57, %v2116_v43  ;;  %2208 = vst [vmem:[%s3020_s7] sm:$0xff] %v2523_v21  ;;  %2210 = vst [vmem:[%s3020_s7 + $0x10] sm:$0xff] %v2525_v56  ;;  %v2528_v59 = vpack.c.bf16 %v2080_v22, %v2079_v32 }
 0x1c1   : > { %v2089_v30 = vadd.f32 %v2088_v54, %v2079_v32  ;;  %v2130_v33 = vadd.f32 %v2129_v55, %v2119_v53  ;;  %2211 = vst [vmem:[%s3020_s7 + $0x18] sm:$0xff] %v2526_v27  ;;  %v2529_v35 = vpack.c.bf16 %v2082_v34, %v2081_v50  ;;  %v2530_v62 = vpack.c.bf16 %v2084_v16, %v2083_v6 }
 0x1c2   : > { %v2101_v58 = vadd.f32 %v2100_v10, %v2078_v24  ;;  %v2122_v37 = vmul.f32 %v2080_v22, %v2080_v22  ;;  %v2142_v38 = vadd.f32 %v2141_v36, %v2118_v19  ;;  %2212 = vst [vmem:[%s3020_s7 + $0x20] sm:$0xff] %v2527_v49  ;;  %2213 = vst [vmem:[%s3020_s7 + $0x28] sm:$0xff] %v2528_v59 }
 0x1c3   : > { %v2090_v28 = vadd.f32 %v2089_v30, %v2081_v50  ;;  %v2131_v39 = vadd.f32 %v2130_v33, %v2121_v13  ;;  %2214 = vst [vmem:[%s3020_s7 + $0x30] sm:$0xff] %v2529_v35  ;;  %2215 = vst [vmem:[%s3020_s7 + $0x38] sm:$0xff] %v2530_v62  ;;  %v2124_v60 = vmul.f32 %v2082_v34, %v2082_v34 }
 0x1c4   : > { %v2102_v63 = vadd.f32 %v2101_v58, %v2080_v22  ;;  %v2143_v61 = vadd.f32 %v2142_v38, %v2120_v20  ;;  %v2126_v31 = vmul.f32 %v2084_v16, %v2084_v16 }
 0x1c5   : > { %v2091_v40 = vadd.f32 %v2090_v28, %v2083_v6  ;;  %v2132_v0 = vadd.f32 %v2131_v39, %v2123_v15 }
 0x1c6   : > { %v2103_v46 = vadd.f32 %v2102_v63, %v2082_v34  ;;  %v2144_v1 = vadd.f32 %v2143_v61, %v2122_v37 }
 0x1c7   : > { %v2092_v17 = vrot.slane %v2091_v40, 4  ;;  %v2133_v26 = vadd.f32 %v2132_v0, %v2125_v25 }
 0x1c8   : > { %v2104_v2 = vadd.f32 %v2103_v46, %v2084_v16  ;;  %v2145_v41 = vadd.f32 %v2144_v1, %v2124_v60 }
 0x1c9   : > { %v2093_v3 = vadd.f32 %v2092_v17, %v2091_v40  ;;  %v2134_v32 = vrot.slane %v2133_v26, 4 }
 0x1ca   : > { %v2105_v42 = vrot.slane %v2104_v2, 4  ;;  %v2146_v50 = vadd.f32 %v2145_v41, %v2126_v31 }
 0x1cb   : > { %v2094_v44 = vrot.slane %v2093_v3, 2  ;;  %v2135_v4 = vadd.f32 %v2134_v32, %v2133_v26 }
 0x1cc   : > { %v2106_v7 = vadd.f32 %v2105_v42, %v2104_v2  ;;  %v2147_v6 = vrot.slane %v2146_v50, 4 }
 0x1cd   : > { %v2095_v8 = vadd.f32 %v2094_v44, %v2093_v3  ;;  %v2136_v9 = vrot.slane %v2135_v4, 2 }
 0x1ce   : > { %v2107_v53 = vrot.slane %v2106_v7, 2  ;;  %v2148_v51 = vadd.f32 %v2147_v6, %v2146_v50 }
 0x1cf   : > { %v2096_v12 = vrot.slane %v2095_v8, 1  ;;  %v2137_v45 = vadd.f32 %v2136_v9, %v2135_v4 }
 0x1d0   : > { %v2108_v52 = vadd.f32 %v2107_v53, %v2106_v7  ;;  %v2149_v14 = vrot.slane %v2148_v51, 2 }
 0x1d1   : > { %v2097_v13 = vadd.f32 %v2096_v12, %v2095_v8  ;;  %v2138_v24 = vrot.slane %v2137_v45, 1 }
 0x1d2   : > { %v2109_v5 = vrot.slane %v2108_v52, 1  ;;  %v2150_v47 = vadd.f32 %v2149_v14, %v2148_v51 }
 0x1d3   : > { %v2139_v29 = vadd.f32 %v2138_v24, %v2137_v45 }
 0x1d4   : > { %v2110_v18 = vadd.f32 %v2109_v5, %v2108_v52  ;;  %v2151_v43 = vrot.slane %v2150_v47, 1 }
 0x1d5   : > { %v2156_v15 = vsel %vm2155_vm0, %v2097_v13, %v2139_v29 }
 0x1d6   : > { %2158 = vst [vmem:[%s3026_s1] sm:$0xff] %v2156_v15  ;;  %v2152_v25 = vadd.f32 %v2151_v43, %v2150_v47 }
 0x1d8   : > { %v2157_v48 = vsel %vm2155_vm0, %v2110_v18, %v2152_v25 }
 0x1d9   : > { %2159 = vst [vmem:[%s3026_s1 + $0x8] sm:$0xff] %v2157_v48 }
 0x1da PF: > { %s16_s24 = sadd.s32 1, %s2834_s24   ;;  %s3550_s26 = sld [smem:[#allocation4_spill]] }
 0x1db   : > { %p13_p2 = scmp.ge.s32.totalorder %s16_s24, 6   ;;  %s3551_s18 = smov %s2814_s19 }
 0x1dc   : > { %s3552_s19 = smov %s2918_s6  ;;  %s3553_s20 = smov %s2826_s22 }
 0x1dd   : > { %s3554_s21 = smov %s2830_s23  ;;  %s3555_s22 = smov %s3558_s25 }
 0x1de   :  { %15 = sbr.rel (!%p13_p2) target bundleno = 7 (0x7), region = 123 }
 0x1e0   : > { %s3556_s23 = smov %s3550_s26 }

// kernel: discriminator_forward.8
= control target key start
LH: loop header
LB: loop body
LE: loop exit
PB: predicated region body
PF: predicated region fallthrough
CT: control target
= control target key end

     0   :  { %s4065_s0 = inlined_call_operand.vmem [shape: bf16[32,4096], index: 0, kind: input, shape index: {}]   ;;  %s4066_s1 = inlined_call_operand.vmem [shape: bf16[4096,512], index: 1, kind: input, shape index: {}]   ;;  %s4067_s2 = inlined_call_operand.vmem [shape: f32[1,4096], index: 2, kind: input, shape index: {}]   ;;  %s4068_s3 = inlined_call_operand.vmem [shape: f32[1,4096], index: 3, kind: input, shape index: {}]   ;;  %s4069_s4 = inlined_call_operand.vmem [shape: bf16[32,512], index: 4, kind: output, shape index: {0}]   ;;  %s4070_s5 = inlined_call_operand.vmem [shape: f32[16,512], index: 5, kind: output, shape index: {1}]  }
   0x1   :  { %4072 = sst [smem:[#allocation5_spill]] %s4065_s0 }
   0x2   :  { %4073 = sst [smem:[#allocation6_spill]] %s4066_s1 }
   0x3   :  { %s3547_s18 = smov 0   ;;  %s3549_s19 = smov 0  }
   0x4   :  { %s3551_s20 = smov 0   ;;  %s3553_s21 = smov 0  }
   0x5   :  { %s3555_s22 = smov 0   ;;  %s3557_s23 = smov 0  }
   0x6   :  { %s3559_s24 = smov 0  }
   0x7 LB: > { %s25_s25 = sadd.s32 1, %s3506_s22  ;;  %s28_s26 = sadd.s32 1, %s3510_s23  ;;  %s3514_s24 = sphi %s3559_s24, %s16_s24   ;;  %s3510_s23 = sphi %s3557_s23, %s4083_s23   ;;  %s3506_s22 = sphi %s3555_s22, %s4082_s22   ;;  %s3502_s21 = sphi %s3553_s21, %s4081_s21   ;;  %s3498_s20 = sphi %s3551_s20, %s4080_s20   ;;  %s3494_s19 = sphi %s3549_s19, %s4079_s19   ;;  %s3490_s18 = sphi %s3547_s18, %s4078_s18  }
   0x8   : > { %p26_p0 = scmp.ge.s32.totalorder %s25_s25, 4  ;;  %p44_p1 = scmp.ne.s32.totalorder %s3494_s19, %s3490_s18 }
   0x9   : > { %p45_p2 = scmp.eq.s32.totalorder %s3514_s24, 0  ;;  %s37_s30 = sadd.s32 1, %s3494_s19 }
   0xa   : > { %s4085_s25 = smov (%p26_p0, %s25_s25), 0  ;;  %s4087_s26 = smov (!%p26_p0, %s28_s26), %s3510_s23 }
   0xb   : > { %p46_p3 = por %p45_p2, %p44_p1  ;;  %p30_p4 = scmp.ge.s32.totalorder %s4087_s26, 2 }
   0xc   : > { %s33_s27 = ssub.s32 %s3506_s22, %s4085_s25  ;;  %p2729_p6 = scmp.ge.s32.totalorder %s3514_s24, 8 }
   0xd   : > { %s4089_s26 = smov (%p30_p4, %s4087_s26), 0 }
   0xe   : > { %4074 = sst [smem:[#allocation4_spill]] %s4089_s26  ;;  %s32_s28 = ssub.s32 %s3510_s23, %s4089_s26 }
   0xf   : > { %s34_s29 = sor.u32 %s33_s27, %s32_s28  ;;  %200 = sbr.rel (%p2729_p6) target bundleno = 34 (0x22), region = 16 }
  0x10   : > { %p35_p5 = scmp.eq.s32.totalorder %s34_s29, 0 }
  0x12   : > { %s3598_s6 = scalar_select %p35_p5, %s3494_s19, %s37_s30  }
  0x14   : > { %203 = sbr.rel (!%p46_p3) target bundleno = 34 (0x22), region = 20  ;;  %s205_s7 = sand.u32 (%p46_p3), 1, %s3494_s19  }
  0x15   : > { %s2732_s8 = sshll.u32 (%p46_p3), %s3506_s22, 3  ;;  %s2730_s9 = sshll.u32 (%p46_p3), %s205_s7, 6 }
  0x16   : > { %s3011_s10 = sshll.u32 (%p46_p3), %s3510_s23, 6  ;;  %s4075_s0 = sld [smem:[#allocation5_spill]] (%p46_p3) }
  0x17   : > { %s211_s11 = sadd.s32 (%p46_p3), %s3011_s10, %s2732_s8  ;;  %s207_s16 = scalar_lea.vmem (%p46_p3), [#allocation3], %s2730_s9 }
  0x18   : > { %s2734_s12 = sshll.u32 (%p46_p3), %s211_s11, 2 }
  0x1c   : > { %s213_s15 = scalar_lea.vmem %s4075_s0, %s2734_s12 }
  0x1d   : > { %v226_v0 = vld [vmem:[%s213_s15] sm:$0xff]  ;;  %v228_v1 = vld [vmem:[%s213_s15 + $0x8] sm:$0xff]  ;;  %v230_v2 = vld [vmem:[%s213_s15 + $0x10] sm:$0xff] }
  0x1e   : > { %227 = vst [vmem:[%s207_s16] sm:$0xff] %v226_v0  ;;  %229 = vst [vmem:[%s207_s16 + $0x8] sm:$0xff] %v228_v1  ;;  %v232_v3 = vld [vmem:[%s213_s15 + $0x18] sm:$0xff]  ;;  %v234_v4 = vld [vmem:[%s213_s15 + $0x80] sm:$0xff] }
  0x1f   : > { %231 = vst [vmem:[%s207_s16 + $0x10] sm:$0xff] %v230_v2  ;;  %v236_v5 = vld [vmem:[%s213_s15 + $0x88] sm:$0xff]  ;;  %233 = vst [vmem:[%s207_s16 + $0x18] sm:$0xff] %v232_v3  ;;  %v238_v6 = vld [vmem:[%s213_s15 + $0x90] sm:$0xff] }
  0x20   : > { %235 = vst [vmem:[%s207_s16 + $0x20] sm:$0xff] %v234_v4  ;;  %237 = vst [vmem:[%s207_s16 + $0x28] sm:$0xff] %v236_v5  ;;  %v240_v7 = vld [vmem:[%s213_s15 + $0x98] sm:$0xff] }
  0x21   : > { %239 = vst [vmem:[%s207_s16 + $0x30] sm:$0xff] %v238_v6  ;;  %241 = vst [vmem:[%s207_s16 + $0x38] sm:$0xff] %v240_v7 }
  0x22 PF: > { %p2735_p7 = scmp.ge.s32.totalorder %s3514_s24, 1  ;;  %p272_p8 = scmp.lt.s32.totalorder %s3514_s24, 9 }
  0x24   : > { %p273_p9 = pnand %p2735_p7, %p272_p8 }
  0x25   : > { %s279_s17 = sand.u32 (!%p273_p9), 1, %s3490_s18   ;;  %s2737_s27 = sshll.u32 (!%p273_p9), %s3498_s20, 7 }
  0x26   : > { %276 = sbr.rel (%p273_p9) target bundleno = 548 (0x224), region = 55  ;;  %s2736_s28 = sshll.u32 (!%p273_p9), %s279_s17, 6 }
  0x27   : > { %p329_p10 = scmp.lt.s32.totalorder (!%p273_p9), %s2737_s27, 511  ;;  %s2740_s29 = sshll.u32 (!%p273_p9), %s3498_s20, 3 }
  0x28   : > { %p336_p11 = scmp.lt.s32.totalorder (!%p273_p9), %s2740_s29, 31  ;;  %s2742_s30 = sshll.u32 (!%p273_p9), %s3502_s21, 1 }
  0x29   : > { %p346_p12 = scmp.lt.s32.totalorder (!%p273_p9), %s2742_s30, 3  ;;  %s4076_s1 = sld [smem:[#allocation6_spill]] (!%p273_p9) }
  0x2a   : > { %p352_p13 = scmp.lt.s32.totalorder (!%p273_p9), %s3502_s21, 1  ;;  %s3640_s26 = scalar_lea.vmem (!%p273_p9), [#allocation3], %s2736_s28 }
  0x2b   : > { %s4091_s27 = smov (!%p329_p10, %s2737_s27), 511  ;;  %s4093_s29 = smov (!%p336_p11, %s2740_s29), 31 }
  0x2c   : > { %s3012_s7 = sshll.u32 %s4091_s27, 4  ;;  %s4095_s30 = smov (!%p346_p12, %s2742_s30), 3 }
  0x2d   : > { %s338_s12 = scalar_lea.vmem %s4067_s2, %s4093_s29  ;;  %s343_s15 = scalar_lea.vmem %s4068_s3, %s4093_s29 }
  0x2e   : > { %s3013_s16 = sshll.u32 %s4095_s30, 4  ;;  %s4097_s21 = smov (!%p352_p13, %s3502_s21), 1 }
  0x2f   : > { %s3616_s10 = scalar_lea.vmem %s4076_s1, %s3012_s7  ;;  %s3632_s7 = scalar_lea.vmem %s4069_s4, %s3013_s16 }
  0x30   : > { %s3014_s8 = sshll.u32 %s4097_s21, 5  ;;  %p2747_p0 = scmp.ne.s32.totalorder %s3498_s20, 0 }
  0x31   : > { %s3638_s1 = scalar_lea.vmem %s4070_s5, %s3014_s8 }
  0x32   : > { %360 = sbr.rel (%p2747_p0) target bundleno = 60 (0x3c), region = 63 }
  0x37   : > { %v3516_v8 = vmov 0.0  }
  0x38   : > { %361 = vst [vmem:[#allocation2 + $0x30] sm:$0xff] %v3516_v8  ;;  %362 = vst [vmem:[#allocation2] sm:$0xff] %v3516_v8 }
  0x39   : > { %363 = vst [vmem:[#allocation2 + $0x18] sm:$0xff] %v3516_v8  ;;  %364 = vst [vmem:[#allocation2 + $0x10] sm:$0xff] %v3516_v8 }
  0x3a   : > { %365 = vst [vmem:[#allocation2 + $0x8] sm:$0xff] %v3516_v8  ;;  %366 = vst [vmem:[#allocation2 + $0x20] sm:$0xff] %v3516_v8 }
  0x3b   : > { %367 = vst [vmem:[#allocation2 + $0x28] sm:$0xff] %v3516_v8  ;;  %368 = vst [vmem:[#allocation2 + $0x38] sm:$0xff] %v3516_v8 }
  0x3c PF: > { %v3076_v9 = vld [vmem:[%s3616_s10 + $0xe4] ss:$16 sps:$4 sm:$0xff]   ;;  %v3080_v11 = vld [vmem:[%s3616_s10 + $0xe0] ss:$16 sps:$4 sm:$0xff]   ;;  %v395_v46 = vlaneseq  ;;  %v370_v7 = vld [vmem:[%s3640_s26 + $0x8] sm:$0xff]  ;;  %p3004_p1 = scmp.ne.s32.totalorder %s3498_s20, 3 }
  0x3d   : > { %v3078_v10 = vld [vmem:[%s3616_s10 + $0x2e4] ss:$16 sps:$4 sm:$0xff]   ;;  %2109 = vmatprep.subr.bf16.mxu0 %v3076_v9  ;;  %v3081_v12 = vld [vmem:[%s3616_s10 + $0x2e0] ss:$16 sps:$4 sm:$0xff]   ;;  %v3717_v8 = vld [vmem:[%s3640_s26 + $0x28] sm:$0xff] }
  0x3e   : > { %2152 = vmatprep.subr.bf16.mxu1 %v3078_v10  ;;  %v3082_v13 = vld [vmem:[%s3616_s10 + $0xc4] ss:$16 sps:$4 sm:$0xff]   ;;  %2110 = vmatpush1.bf16.msra.mxu0 %v3080_v11  ;;  %v3086_v15 = vld [vmem:[%s3616_s10 + $0xc0] ss:$16 sps:$4 sm:$0xff]   ;;  %v3684_v51 = vshrl.u32 %v395_v46, 7 }
  0x3f   : > { %2153 = vmatpush1.bf16.msra.mxu1 %v3081_v12  ;;  %v3084_v14 = vld [vmem:[%s3616_s10 + $0x2c4] ss:$16 sps:$4 sm:$0xff]   ;;  %2111 = vmatprep.subr.bf16.mxu0 %v3082_v13  ;;  %v3087_v16 = vld [vmem:[%s3616_s10 + $0x2c0] ss:$16 sps:$4 sm:$0xff]   ;;  %v380_v13 = vunpack.c.h.bf16 %v370_v7 }
  0x40   : > { %2154 = vmatprep.subr.bf16.mxu1 %v3084_v14  ;;  %v3088_v17 = vld [vmem:[%s3616_s10 + $0xa4] ss:$16 sps:$4 sm:$0xff]   ;;  %v3092_v19 = vld [vmem:[%s3616_s10 + $0xa0] ss:$16 sps:$4 sm:$0xff]   ;;  %v401_v56 = vsub.s32 1, %v3684_v51  ;;  %v409_v61 = vsub.s32 3, %v3684_v51  ;;  %v388_v14 = vunpack.c.h.bf16 %v3717_v8 }
  0x41   : > { %v3090_v18 = vld [vmem:[%s3616_s10 + $0x2a4] ss:$16 sps:$4 sm:$0xff]   ;;  %v3093_v20 = vld [vmem:[%s3616_s10 + $0x2a0] ss:$16 sps:$4 sm:$0xff]   ;;  %v397_v2 = vsub.s32 0, %v3684_v51  ;;  %v405_v3 = vsub.s32 2, %v3684_v51 }
  0x42   : > { %2112 = vmatpush1.bf16.msra.mxu0 %v3086_v15  ;;  %v3094_v21 = vld [vmem:[%s3616_s10 + $0x84] ss:$16 sps:$4 sm:$0xff]   ;;  %v3098_v23 = vld [vmem:[%s3616_s10 + $0x80] ss:$16 sps:$4 sm:$0xff]  }
  0x43   : > { %2155 = vmatpush1.bf16.msra.mxu1 %v3087_v16  ;;  %2113 = vmatprep.subr.bf16.mxu0 %v3088_v17  ;;  %v3096_v22 = vld [vmem:[%s3616_s10 + $0x284] ss:$16 sps:$4 sm:$0xff]   ;;  %v3099_v24 = vld [vmem:[%s3616_s10 + $0x280] ss:$16 sps:$4 sm:$0xff]  }
  0x44   : > { %2156 = vmatprep.subr.bf16.mxu1 %v3090_v18  ;;  %v3100_v25 = vld [vmem:[%s3616_s10 + $0x64] ss:$16 sps:$4 sm:$0xff]   ;;  %v3104_v27 = vld [vmem:[%s3616_s10 + $0x60] ss:$16 sps:$4 sm:$0xff]  }
  0x45   : > { %v3102_v26 = vld [vmem:[%s3616_s10 + $0x264] ss:$16 sps:$4 sm:$0xff]   ;;  %v3105_v28 = vld [vmem:[%s3616_s10 + $0x260] ss:$16 sps:$4 sm:$0xff]  }
  0x46   : > { %2114 = vmatpush1.bf16.msra.mxu0 %v3092_v19  ;;  %v3106_v29 = vld [vmem:[%s3616_s10 + $0x44] ss:$16 sps:$4 sm:$0xff]   ;;  %v3110_v31 = vld [vmem:[%s3616_s10 + $0x40] ss:$16 sps:$4 sm:$0xff]  }
  0x47   : > { %2157 = vmatpush1.bf16.msra.mxu1 %v3093_v20  ;;  %2115 = vmatprep.subr.bf16.mxu0 %v3094_v21  ;;  %v3108_v30 = vld [vmem:[%s3616_s10 + $0x244] ss:$16 sps:$4 sm:$0xff]   ;;  %v3111_v32 = vld [vmem:[%s3616_s10 + $0x240] ss:$16 sps:$4 sm:$0xff]  }
  0x48   : > { %2158 = vmatprep.subr.bf16.mxu1 %v3096_v22  ;;  %v3112_v33 = vld [vmem:[%s3616_s10 + $0x24] ss:$16 sps:$4 sm:$0xff]   ;;  %v3116_v35 = vld [vmem:[%s3616_s10 + $0x20] ss:$16 sps:$4 sm:$0xff]  }
  0x49   : > { %v3114_v34 = vld [vmem:[%s3616_s10 + $0x224] ss:$16 sps:$4 sm:$0xff]   ;;  %v3117_v36 = vld [vmem:[%s3616_s10 + $0x220] ss:$16 sps:$4 sm:$0xff]  }
  0x4a   : > { %2116 = vmatpush1.bf16.msra.mxu0 %v3098_v23  ;;  %v3118_v37 = vld [vmem:[%s3616_s10 + $0x4] ss:$16 sps:$4 sm:$0xff]   ;;  %v3122_v39 = vld [vmem:[%s3616_s10] ss:$16 sps:$4 sm:$0xff]  }
  0x4b   : > { %2159 = vmatpush1.bf16.msra.mxu1 %v3099_v24  ;;  %2117 = vmatprep.subr.bf16.mxu0 %v3100_v25  ;;  %v3120_v38 = vld [vmem:[%s3616_s10 + $0x204] ss:$16 sps:$4 sm:$0xff]   ;;  %v3123_v40 = vld [vmem:[%s3616_s10 + $0x200] ss:$16 sps:$4 sm:$0xff]  }
  0x4c   : > { %2160 = vmatprep.subr.bf16.mxu1 %v3102_v26  ;;  %v3124_v41 = vld [vmem:[%s3616_s10 + $0x1e4] ss:$16 sps:$4 sm:$0xff]   ;;  %v3128_v43 = vld [vmem:[%s3616_s10 + $0x1e0] ss:$16 sps:$4 sm:$0xff]  }
  0x4d   : > { %v3126_v42 = vld [vmem:[%s3616_s10 + $0x3e4] ss:$16 sps:$4 sm:$0xff]   ;;  %v3129_v44 = vld [vmem:[%s3616_s10 + $0x3e0] ss:$16 sps:$4 sm:$0xff]  }
  0x4e   : > { %2118 = vmatpush1.bf16.msra.mxu0 %v3104_v27  ;;  %v3130_v45 = vld [vmem:[%s3616_s10 + $0x1c4] ss:$16 sps:$4 sm:$0xff]   ;;  %v3134_v48 = vld [vmem:[%s3616_s10 + $0x1c0] ss:$16 sps:$4 sm:$0xff]   ;;  %v379_v27 = vunpack.c.l.bf16 %v370_v7 }
  0x4f   : > { %2161 = vmatpush1.bf16.msra.mxu1 %v3105_v28  ;;  %2119 = vmatprep.subr.bf16.mxu0 %v3106_v29  ;;  %v3132_v47 = vld [vmem:[%s3616_s10 + $0x3c4] ss:$16 sps:$4 sm:$0xff]   ;;  %v3135_v49 = vld [vmem:[%s3616_s10 + $0x3c0] ss:$16 sps:$4 sm:$0xff]  }
  0x50   : > { %2162 = vmatprep.subr.bf16.mxu1 %v3108_v30  ;;  %v3136_v50 = vld [vmem:[%s3616_s10 + $0x1a4] ss:$16 sps:$4 sm:$0xff]   ;;  %v3140_v53 = vld [vmem:[%s3616_s10 + $0x1a0] ss:$16 sps:$4 sm:$0xff]  }
  0x51   : > { %v3138_v52 = vld [vmem:[%s3616_s10 + $0x3a4] ss:$16 sps:$4 sm:$0xff]   ;;  %v3141_v54 = vld [vmem:[%s3616_s10 + $0x3a0] ss:$16 sps:$4 sm:$0xff]  }
  0x52   : > { %2120 = vmatpush1.bf16.msra.mxu0 %v3110_v31  ;;  %v3142_v55 = vld [vmem:[%s3616_s10 + $0x184] ss:$16 sps:$4 sm:$0xff]   ;;  %v3146_v58 = vld [vmem:[%s3616_s10 + $0x180] ss:$16 sps:$4 sm:$0xff]   ;;  %v387_v31 = vunpack.c.l.bf16 %v3717_v8 }
  0x53   : > { %2163 = vmatpush1.bf16.msra.mxu1 %v3111_v32  ;;  %2121 = vmatprep.subr.bf16.mxu0 %v3112_v33  ;;  %v3144_v57 = vld [vmem:[%s3616_s10 + $0x384] ss:$16 sps:$4 sm:$0xff]   ;;  %v3147_v59 = vld [vmem:[%s3616_s10 + $0x380] ss:$16 sps:$4 sm:$0xff]  }
  0x54   : > { %2164 = vmatprep.subr.bf16.mxu1 %v3114_v34  ;;  %v369_v60 = vld [vmem:[%s3640_s26] sm:$0xff] }
  0x55   : > { %v373_v62 = vld [vmem:[%s3640_s26 + $0x20] sm:$0xff]  ;;  %v378_v63 = vunpack.c.h.bf16 %v369_v60  ;;  %v377_v11 = vunpack.c.l.bf16 %v369_v60 }
  0x56   : > { %2122 = vmatpush1.bf16.msra.mxu0 %v3116_v35  ;;  %v3702_v0 = vld [vmem:[%s338_s12] sm:$0xff]  ;;  %v386_v4 = vunpack.c.h.bf16 %v373_v62  ;;  %v385_v12 = vunpack.c.l.bf16 %v373_v62 }
  0x57   : > { %2165 = vmatpush1.bf16.msra.mxu1 %v3117_v36  ;;  %2123 = vmatprep.subr.bf16.mxu0 %v3118_v37  ;;  %v3709_v1 = vld [vmem:[%s343_s15] sm:$0xff]  ;;  %v402_v5 = vrot.slane %v3702_v0, %v401_v56  ;;  %v410_v17 = vrot.slane %v3702_v0, %v409_v61  ;;  %v398_v19 = vrot.slane %v3702_v0, %v397_v2 }
  0x58   : > { %2166 = vmatprep.subr.bf16.mxu1 %v3120_v38  ;;  %v460_v6 = vrot.slane %v3709_v1, %v401_v56  ;;  %v3148_v9 = vld [vmem:[%s3616_s10 + $0x164] ss:$16 sps:$4 sm:$0xff]   ;;  %v468_v18 = vrot.slane %v3709_v1, %v409_v61  ;;  %v456_v20 = vrot.slane %v3709_v1, %v397_v2  ;;  %v406_v21 = vrot.slane %v3702_v0, %v405_v3  ;;  %v3152_v23 = vld [vmem:[%s3616_s10 + $0x160] ss:$16 sps:$4 sm:$0xff]  }
  0x59   : > { %v3150_v10 = vld [vmem:[%s3616_s10 + $0x364] ss:$16 sps:$4 sm:$0xff]   ;;  %v436_v15 = vmul.f32 %v402_v5, %v378_v63  ;;  %v444_v16 = vmul.f32 %v402_v5, %v386_v4  ;;  %v464_v22 = vrot.slane %v3709_v1, %v405_v3  ;;  %v3153_v24 = vld [vmem:[%s3616_s10 + $0x360] ss:$16 sps:$4 sm:$0xff]   ;;  %v438_v28 = vmul.f32 %v410_v17, %v380_v13 }
  0x5a   : > { %2124 = vmatpush1.bf16.msra.mxu0 %v3122_v39  ;;  %v3154_v29 = vld [vmem:[%s3616_s10 + $0x144] ss:$16 sps:$4 sm:$0xff]   ;;  %v446_v32 = vmul.f32 %v410_v17, %v388_v14  ;;  %v435_v33 = vmul.f32 %v398_v19, %v377_v11  ;;  %v443_v34 = vmul.f32 %v398_v19, %v385_v12  ;;  %v3158_v35 = vld [vmem:[%s3616_s10 + $0x140] ss:$16 sps:$4 sm:$0xff]   ;;  %v437_v46 = vmul.f32 %v406_v21, %v379_v27 }
  0x5b   : > { %2167 = vmatpush1.bf16.msra.mxu1 %v3123_v40  ;;  %2125 = vmatprep.subr.bf16.mxu0 %v3124_v41  ;;  %v494_v25 = vadd.f32 %v460_v6, %v436_v15  ;;  %v502_v26 = vadd.f32 %v460_v6, %v444_v16  ;;  %v3156_v30 = vld [vmem:[%s3616_s10 + $0x344] ss:$16 sps:$4 sm:$0xff]   ;;  %v3159_v38 = vld [vmem:[%s3616_s10 + $0x340] ss:$16 sps:$4 sm:$0xff]   ;;  %v496_v39 = vadd.f32 %v468_v18, %v438_v28 }
  0x5c   : > { %2168 = vmatprep.subr.bf16.mxu1 %v3126_v42  ;;  %v504_v40 = vadd.f32 %v468_v18, %v446_v32  ;;  %v493_v41 = vadd.f32 %v456_v20, %v435_v33  ;;  %v501_v42 = vadd.f32 %v456_v20, %v443_v34  ;;  %v3165_v60 = vld [vmem:[%s3616_s10 + $0x320] ss:$16 sps:$4 sm:$0xff]   ;;  %v3166_v62 = vld [vmem:[%s3616_s10 + $0x104] ss:$16 sps:$4 sm:$0xff]  }
  0x5d   : > { %vm510_vm0 = vcmp.gt.f32.partialorder %v494_v25, 0.0  ;;  %vm518_vm1 = vcmp.gt.f32.partialorder %v502_v26, 0.0  ;;  %v526_v36 = vmul.f32 0.2, %v494_v25  ;;  %v534_v37 = vmul.f32 0.2, %v502_v26 }
  0x5e   : > { %2126 = vmatpush2.bf16.msra.mxu0 %v3128_v43  ;;  %v3160_v43 = vld [vmem:[%s3616_s10 + $0x124] ss:$16 sps:$4 sm:$0xff]   ;;  %vm512_vm2 = vcmp.gt.f32.partialorder %v496_v39, 0.0  ;;  %vm520_vm3 = vcmp.gt.f32.partialorder %v504_v40, 0.0  ;;  %vm509_vm4 = vcmp.gt.f32.partialorder %v493_v41, 0.0  ;;  %vm517_vm5 = vcmp.gt.f32.partialorder %v501_v42, 0.0 }
  0x5f   : > { %2169 = vmatpush2.bf16.msra.mxu1 %v3129_v44  ;;  %2127 = vmatprep.subr.bf16.mxu0 %v3130_v45  ;;  %v542_v44 = vsel %vm510_vm0, %v494_v25, %v526_v36  ;;  %v550_v45 = vsel %vm518_vm1, %v502_v26, %v534_v37  ;;  %v533_v56 = vmul.f32 0.2, %v501_v42  ;;  %v3168_v63 = vld [vmem:[%s3616_s10 + $0x304] ss:$16 sps:$4 sm:$0xff]   ;;  %v3170_v6 = vld [vmem:[%s3616_s10 + $0x100] ss:$16 sps:$4 sm:$0xff]  }
  0x60   : > { %2170 = vmatprep.subr.bf16.mxu1 %v3132_v47  ;;  %v413_v47 = vsub.s32 4, %v3684_v51  ;;  %v3174_v12 = vld [vmem:[%s3616_s10 + $0x4e4] ss:$16 sps:$4 sm:$0xff]   ;;  %v3172_v20 = vld [vmem:[%s3616_s10 + $0x4e0] ss:$16 sps:$4 sm:$0xff]  }
  0x61   : > { %v549_v7 = vsel %vm517_vm5, %v501_v42, %v533_v56  ;;  %v3177_v16 = vld [vmem:[%s3616_s10 + $0x6e4] ss:$16 sps:$4 sm:$0xff]   ;;  %v3181_v25 = vld [vmem:[%s3616_s10 + $0x6c0] ss:$16 sps:$4 sm:$0xff]  }
  0x62   : > { %2128 = vmatpush2.bf16.msra.mxu0 %v3134_v48  ;;  %v3162_v48 = vld [vmem:[%s3616_s10 + $0x324] ss:$16 sps:$4 sm:$0xff]   ;;  %v3757_v13 = vrot.slane %v3709_v1, %v413_v47  ;;  %v3184_v28 = vld [vmem:[%s3616_s10 + $0x4a0] ss:$16 sps:$4 sm:$0xff]  }
  0x63   : > { %2171 = vmatpush2.bf16.msra.mxu1 %v3135_v49  ;;  %2129 = vmatprep.subr.bf16.mxu0 %v3136_v50  ;;  %v3738_v49 = vpack.c.bf16 %v550_v45, %v542_v44  ;;  %v528_v50 = vmul.f32 0.2, %v496_v39  ;;  %v3186_v26 = vld [vmem:[%s3616_s10 + $0x4a4] ss:$16 sps:$4 sm:$0xff]   ;;  %v3190_v32 = vld [vmem:[%s3616_s10 + $0x480] ss:$16 sps:$4 sm:$0xff]  }
  0x64   : > { %2172 = vmatprep.subr.bf16.mxu1 %v3138_v52  ;;  %v536_v52 = vmul.f32 0.2, %v504_v40  ;;  %v3189_v27 = vld [vmem:[%s3616_s10 + $0x6a4] ss:$16 sps:$4 sm:$0xff]   ;;  %v3193_v33 = vld [vmem:[%s3616_s10 + $0x680] ss:$16 sps:$4 sm:$0xff]  }
  0x65   : > { %2141 = vmatprep.mubr.bf16.mxu0 %v3738_v49  ;;  %v3198_v34 = vld [vmem:[%s3616_s10 + $0x464] ss:$16 sps:$4 sm:$0xff]   ;;  %v3196_v36 = vld [vmem:[%s3616_s10 + $0x460] ss:$16 sps:$4 sm:$0xff]   ;;  %v417_v44 = vsub.s32 5, %v3684_v51  ;;  %v425_v45 = vsub.s32 7, %v3684_v51 }
  0x66   : > { %2130 = vmatpush2.bf16.msra.mxu0 %v3140_v53  ;;  %v525_v53 = vmul.f32 0.2, %v493_v41  ;;  %v552_v61 = vsel %vm520_vm3, %v504_v40, %v536_v52  ;;  %v3199_v37 = vld [vmem:[%s3616_s10 + $0x660] ss:$16 sps:$4 sm:$0xff]   ;;  %v3210_v42 = vld [vmem:[%s3616_s10 + $0x424] ss:$16 sps:$4 sm:$0xff]  }
  0x67   : > { %2173 = vmatpush2.bf16.msra.mxu1 %v3141_v54  ;;  %2131 = vmatprep.subr.bf16.mxu0 %v3142_v55  ;;  %v421_v54 = vsub.s32 6, %v3684_v51  ;;  %v544_v55 = vsel %vm512_vm2, %v496_v39, %v528_v50  ;;  %v3207_v39 = vld [vmem:[%s3616_s10 + $0x644] ss:$16 sps:$4 sm:$0xff]   ;;  %v3202_v40 = vld [vmem:[%s3616_s10 + $0x440] ss:$16 sps:$4 sm:$0xff]   ;;  %v418_v52 = vrot.slane %v3702_v0, %v417_v44  ;;  %v476_v56 = vrot.slane %v3709_v1, %v417_v44 }
  0x68   : > { %2174 = vmatprep.subr.bf16.mxu1 %v3144_v57  ;;  %v445_v57 = vmul.f32 %v406_v21, %v387_v31  ;;  %v3746_v2 = vpack.c.bf16 %v552_v61, %v544_v55  ;;  %v541_v4 = vsel %vm509_vm4, %v493_v41, %v525_v53  ;;  %v3175_v21 = vld [vmem:[%s3616_s10 + $0x6e0] ss:$16 sps:$4 sm:$0xff]   ;;  %v3195_v31 = vld [vmem:[%s3616_s10 + $0x684] ss:$16 sps:$4 sm:$0xff]  }
  0x69   : > { %v3760_v14 = vrot.slane %v3702_v0, %v421_v54  ;;  %v3764_v17 = vrot.slane %v3709_v1, %v421_v54  ;;  %v3766_v18 = vpack.c.bf16 %v549_v7, %v541_v4  ;;  %v3205_v41 = vld [vmem:[%s3616_s10 + $0x640] ss:$16 sps:$4 sm:$0xff]   ;;  %v3219_v50 = vld [vmem:[%s3616_s10 + $0x604] ss:$16 sps:$4 sm:$0xff]  }
  0x6a   : > { %2132 = vmatpush2.bf16.msra.mxu0 %v3146_v58  ;;  %v495_v58 = vadd.f32 %v464_v22, %v437_v46  ;;  %v503_v3 = vadd.f32 %v464_v22, %v445_v57  ;;  %2184 = vmatprep.mubr.bf16.mxu1 %v3746_v2  ;;  %v3180_v22 = vld [vmem:[%s3616_s10 + $0x4c4] ss:$16 sps:$4 sm:$0xff]   ;;  %v3208_v46 = vld [vmem:[%s3616_s10 + $0x420] ss:$16 sps:$4 sm:$0xff]   ;;  %v426_v57 = vrot.slane %v3702_v0, %v425_v45 }
  0x6b   : > { %2175 = vmatpush2.bf16.msra.mxu1 %v3147_v59  ;;  %2133 = vmatprep.subr.bf16.mxu0 %v3148_v9  ;;  %v3164_v59 = vld [vmem:[%s3616_s10 + $0x120] ss:$16 sps:$4 sm:$0xff]   ;;  %v3752_v9 = vrot.slane %v3702_v0, %v413_v47  ;;  %v3225_v0 = vld [vmem:[%s3616_s10 + $0x7e4] ss:$16 sps:$4 sm:$0xff]  }
  0x6c   : > { %2176 = vmatprep.subr.bf16.mxu1 %v3150_v10  ;;  %vm511_vm6 = vcmp.gt.f32.partialorder %v495_v58, 0.0  ;;  %v527_v5 = vmul.f32 0.2, %v495_v58  ;;  %vm519_vm7 = vcmp.gt.f32.partialorder %v503_v3, 0.0  ;;  %v535_v8 = vmul.f32 0.2, %v503_v3 }
  0x6d   : > { %v3171_v10 = vld [vmem:[%s3616_s10 + $0x300] ss:$16 sps:$4 sm:$0xff]  }
  0x6e   : > { %2134 = vmatpush2.bf16.msra.mxu0 %v3152_v23  ;;  %v543_v11 = vsel %vm511_vm6, %v495_v58, %v527_v5  ;;  %v551_v15 = vsel %vm519_vm7, %v503_v3, %v535_v8  ;;  %v3183_v23 = vld [vmem:[%s3616_s10 + $0x6c4] ss:$16 sps:$4 sm:$0xff]   ;;  %v3211_v47 = vld [vmem:[%s3616_s10 + $0x620] ss:$16 sps:$4 sm:$0xff]   ;;  %v484_v58 = vrot.slane %v3709_v1, %v425_v45  ;;  %v376_v3 = vld [vmem:[%s3640_s26 + $0x38] sm:$0xff] }
  0x6f   : > { %2177 = vmatpush2.bf16.msra.mxu1 %v3153_v24  ;;  %2135 = vmatprep.subr.bf16.mxu0 %v3154_v29  ;;  %v3768_v19 = vpack.c.bf16 %v551_v15, %v543_v11  ;;  %v3178_v24 = vld [vmem:[%s3616_s10 + $0x4c0] ss:$16 sps:$4 sm:$0xff]   ;;  %v3222_v5 = vld [vmem:[%s3616_s10 + $0x5e4] ss:$16 sps:$4 sm:$0xff]   ;;  %v391_v8 = vunpack.c.l.bf16 %v376_v3 }
  0x70   : > { %2178 = vmatprep.subr.bf16.mxu1 %v3156_v30  ;;  %v3187_v29 = vld [vmem:[%s3616_s10 + $0x6a0] ss:$16 sps:$4 sm:$0xff]   ;;  %v3192_v30 = vld [vmem:[%s3616_s10 + $0x484] ss:$16 sps:$4 sm:$0xff]  }
  0x71   : > { %v3214_v53 = vld [vmem:[%s3616_s10 + $0x400] ss:$16 sps:$4 sm:$0xff]  }
  0x72   : > { %2136 = vmatpush2.bf16.msra.mxu0 %v3158_v35  ;;  %v3201_v35 = vld [vmem:[%s3616_s10 + $0x664] ss:$16 sps:$4 sm:$0xff]   ;;  %v3217_v4 = vld [vmem:[%s3616_s10 + $0x600] ss:$16 sps:$4 sm:$0xff]  }
  0x73   : > { %2179 = vmatpush2.bf16.msra.mxu1 %v3159_v38  ;;  %2137 = vmatprep.subr.bf16.mxu0 %v3160_v43  ;;  %v3204_v38 = vld [vmem:[%s3616_s10 + $0x444] ss:$16 sps:$4 sm:$0xff]  }
  0x74   : > { %2180 = vmatprep.subr.bf16.mxu1 %v3162_v48  ;;  %v3213_v43 = vld [vmem:[%s3616_s10 + $0x624] ss:$16 sps:$4 sm:$0xff]  }
  0x75   : > { %v3216_v48 = vld [vmem:[%s3616_s10 + $0x404] ss:$16 sps:$4 sm:$0xff]  }
  0x76   : > { %2138 = vmatpush2.bf16.msra.mxu0 %v3164_v59  ;;  %v371_v54 = vld [vmem:[%s3640_s26 + $0x10] sm:$0xff] }
  0x77   : > { %2181 = vmatpush2.bf16.msra.mxu1 %v3165_v60  ;;  %2139 = vmatprep.subr.bf16.mxu0 %v3166_v62  ;;  %v375_v55 = vld [vmem:[%s3640_s26 + $0x30] sm:$0xff]  ;;  %v381_v59 = vunpack.c.l.bf16 %v371_v54  ;;  %v382_v60 = vunpack.c.h.bf16 %v371_v54 }
  0x78   : > { %2182 = vmatprep.subr.bf16.mxu1 %v3168_v63  ;;  %v389_v61 = vunpack.c.l.bf16 %v375_v55  ;;  %v390_v62 = vunpack.c.h.bf16 %v375_v55  ;;  %v372_v63 = vld [vmem:[%s3640_s26 + $0x18] sm:$0xff] }
  0x79   : > { %v384_v7 = vunpack.c.h.bf16 %v372_v63  ;;  %v440_v1 = vmul.f32 %v418_v52, %v382_v60  ;;  %v3238_v60 = vld [vmem:[%s3616_s10 + $0x580] ss:$16 sps:$4 sm:$0xff]  }
  0x7a   : > { %2140 = vmatpush2.bf16.msra.mxu0 %v3170_v6  ;;  %v383_v6 = vunpack.c.l.bf16 %v372_v63  ;;  %v448_v11 = vmul.f32 %v418_v52, %v390_v62  ;;  %v3235_v52 = vld [vmem:[%s3616_s10 + $0x7a0] ss:$16 sps:$4 sm:$0xff]   ;;  %v3246_v63 = vld [vmem:[%s3616_s10 + $0x564] ss:$16 sps:$4 sm:$0xff]  }
  0x7b   : > { %2183 = vmatpush2.bf16.msra.mxu1 %v3171_v10  ;;  %2195 = vmatprep.subr.bf16.mxu0 %v3174_v12  ;;  %v392_v10 = vunpack.c.h.bf16 %v376_v3  ;;  %v439_v12 = vmul.f32 %v3752_v9, %v381_v59  ;;  %v442_v15 = vmul.f32 %v426_v57, %v384_v7  ;;  %v3249_v3 = vld [vmem:[%s3616_s10 + $0x764] ss:$16 sps:$4 sm:$0xff]  }
  0x7c   : > { %2238 = vmatprep.subr.bf16.mxu1 %v3177_v16  ;;  %v3255_v7 = vld [vmem:[%s3616_s10 + $0x744] ss:$16 sps:$4 sm:$0xff]  }
  0x7d   : > { %2142 = vmatmul.mubr.bf16.vlgmr.msra.gmra.mxu0 %v3766_v18  ;;  %v450_v16 = vmul.f32 %v426_v57, %v392_v10  ;;  %v3243_v57 = vld [vmem:[%s3616_s10 + $0x784] ss:$16 sps:$4 sm:$0xff]   ;;  %v3253_v10 = vld [vmem:[%s3616_s10 + $0x740] ss:$16 sps:$4 sm:$0xff]  }
  0x7e   : > { %2185 = vmatmul.mubr.bf16.vlgmr.msra.gmra.mxu1 %v3768_v19  ;;  %2196 = vmatpush1.bf16.msra.mxu0 %v3172_v20  ;;  %v447_v20 = vmul.f32 %v3752_v9, %v389_v61  ;;  %v3241_v61 = vld [vmem:[%s3616_s10 + $0x780] ss:$16 sps:$4 sm:$0xff]  }
  0x7f   : > { %2239 = vmatpush1.bf16.msra.mxu1 %v3175_v21  ;;  %2197 = vmatprep.subr.bf16.mxu0 %v3180_v22  ;;  %v441_v21 = vmul.f32 %v3760_v14, %v383_v6  ;;  %v3220_v22 = vld [vmem:[%s3616_s10 + $0x5e0] ss:$16 sps:$4 sm:$0xff]   ;;  %v3252_v6 = vld [vmem:[%s3616_s10 + $0x544] ss:$16 sps:$4 sm:$0xff]  }
  0x80   : > { %2240 = vmatprep.subr.bf16.mxu1 %v3183_v23  ;;  %v3223_v23 = vld [vmem:[%s3616_s10 + $0x7e0] ss:$16 sps:$4 sm:$0xff]  }
  0x82   : > { %2198 = vmatpush1.bf16.msra.mxu0 %v3178_v24  ;;  %v498_v24 = vadd.f32 %v476_v56, %v440_v1  ;;  %v3261_v1 = vld [vmem:[%s3616_s10 + $0x724] ss:$16 sps:$4 sm:$0xff]  }
  0x83   : > { %2241 = vmatpush1.bf16.msra.mxu1 %v3181_v25  ;;  %2199 = vmatprep.subr.bf16.mxu0 %v3186_v26  ;;  %v506_v25 = vadd.f32 %v476_v56, %v448_v11  ;;  %v497_v26 = vadd.f32 %v3757_v13, %v439_v12  ;;  %v3256_v11 = vld [vmem:[%s3616_s10 + $0x520] ss:$16 sps:$4 sm:$0xff]  }
  0x84   : > { %2242 = vmatprep.subr.bf16.mxu1 %v3189_v27  ;;  %v449_v27 = vmul.f32 %v3760_v14, %v391_v8  ;;  %vm514_vm8 = vcmp.gt.f32.partialorder %v498_v24, 0.0  ;;  %v530_v9 = vmul.f32 0.2, %v498_v24  ;;  %v3250_v8 = vld [vmem:[%s3616_s10 + $0x540] ss:$16 sps:$4 sm:$0xff]  }
  0x85   : > { %vm522_vm9 = vcmp.gt.f32.partialorder %v506_v25, 0.0  ;;  %vm513_vm12 = vcmp.gt.f32.partialorder %v497_v26, 0.0  ;;  %v3259_v12 = vld [vmem:[%s3616_s10 + $0x720] ss:$16 sps:$4 sm:$0xff]  }
  0x86   : > { %2200 = vmatpush1.bf16.msra.mxu0 %v3184_v28  ;;  %v3228_v28 = vld [vmem:[%s3616_s10 + $0x5c4] ss:$16 sps:$4 sm:$0xff]  }
  0x87   : > { %2243 = vmatpush1.bf16.msra.mxu1 %v3187_v29  ;;  %2201 = vmatprep.subr.bf16.mxu0 %v3192_v30  ;;  %v3231_v29 = vld [vmem:[%s3616_s10 + $0x7c4] ss:$16 sps:$4 sm:$0xff]   ;;  %v500_v30 = vadd.f32 %v484_v58, %v442_v15 }
  0x88   : > { %2244 = vmatprep.subr.bf16.mxu1 %v3195_v31  ;;  %v508_v31 = vadd.f32 %v484_v58, %v450_v16  ;;  %v3264_v15 = vld [vmem:[%s3616_s10 + $0x504] ss:$16 sps:$4 sm:$0xff]  }
  0x89   : > { %vm516_vm10 = vcmp.gt.f32.partialorder %v500_v30, 0.0  ;;  %v3267_v16 = vld [vmem:[%s3616_s10 + $0x704] ss:$16 sps:$4 sm:$0xff]  }
  0x8a   : > { %2202 = vmatpush1.bf16.msra.mxu0 %v3190_v32  ;;  %v505_v32 = vadd.f32 %v3757_v13, %v447_v20  ;;  %vm524_vm11 = vcmp.gt.f32.partialorder %v508_v31, 0.0  ;;  %v540_v14 = vmul.f32 0.2, %v508_v31  ;;  %v3229_v13 = vld [vmem:[%s3616_s10 + $0x7c0] ss:$16 sps:$4 sm:$0xff]  }
  0x8b   : > { %2245 = vmatpush1.bf16.msra.mxu1 %v3193_v33  ;;  %2203 = vmatprep.subr.bf16.mxu0 %v3198_v34  ;;  %v538_v33 = vmul.f32 0.2, %v506_v25  ;;  %v532_v34 = vmul.f32 0.2, %v500_v30  ;;  %v3262_v20 = vld [vmem:[%s3616_s10 + $0x500] ss:$16 sps:$4 sm:$0xff]  }
  0x8c   : > { %2246 = vmatprep.subr.bf16.mxu1 %v3201_v35  ;;  %v3226_v35 = vld [vmem:[%s3616_s10 + $0x5c0] ss:$16 sps:$4 sm:$0xff]   ;;  %vm521_vm13 = vcmp.gt.f32.partialorder %v505_v32, 0.0  ;;  %v537_v45 = vmul.f32 0.2, %v505_v32 }
  0x8e   : > { %2204 = vmatpush1.bf16.msra.mxu0 %v3196_v36  ;;  %v546_v36 = vsel %vm514_vm8, %v498_v24, %v530_v9  ;;  %v3268_v24 = vld [vmem:[%s3616_s10 + $0xe8] ss:$16 sps:$4 sm:$0xff]  }
  0x8f   : > { %2247 = vmatpush1.bf16.msra.mxu1 %v3199_v37  ;;  %2205 = vmatprep.subr.bf16.mxu0 %v3204_v38  ;;  %v554_v37 = vsel %vm522_vm9, %v506_v25, %v538_v33  ;;  %v3271_v25 = vld [vmem:[%s3616_s10 + $0x2e8] ss:$16 sps:$4 sm:$0xff]   ;;  %v3288_v33 = vld [vmem:[%s3616_s10 + $0x8c] ss:$16 sps:$4 sm:$0xff]  }
  0x90   : > { %2248 = vmatprep.subr.bf16.mxu1 %v3207_v39  ;;  %v3826_v38 = vpack.c.bf16 %v554_v37, %v546_v36  ;;  %v548_v39 = vsel %vm516_vm10, %v500_v30, %v532_v34  ;;  %v3282_v30 = vld [vmem:[%s3616_s10 + $0xac] ss:$16 sps:$4 sm:$0xff]   ;;  %v3283_v9 = vld [vmem:[%s3616_s10 + $0x2a8] ss:$16 sps:$4 sm:$0xff]  }
  0x91   : > { %v3291_v34 = vld [vmem:[%s3616_s10 + $0x28c] ss:$16 sps:$4 sm:$0xff]   ;;  %v3292_v36 = vld [vmem:[%s3616_s10 + $0x68] ss:$16 sps:$4 sm:$0xff]  }
  0x92   : > { %2206 = vmatpush1.bf16.msra.mxu0 %v3202_v40  ;;  %v556_v40 = vsel %vm524_vm11, %v508_v31, %v540_v14  ;;  %2227 = vmatprep.mubr.bf16.mxu0 %v3826_v38  ;;  %v3285_v31 = vld [vmem:[%s3616_s10 + $0x2ac] ss:$16 sps:$4 sm:$0xff]   ;;  %v3286_v14 = vld [vmem:[%s3616_s10 + $0x88] ss:$16 sps:$4 sm:$0xff]  }
  0x93   : > { %2249 = vmatpush1.bf16.msra.mxu1 %v3205_v41  ;;  %2207 = vmatprep.subr.bf16.mxu0 %v3210_v42  ;;  %v529_v41 = vmul.f32 0.2, %v497_v26  ;;  %v3234_v42 = vld [vmem:[%s3616_s10 + $0x5a4] ss:$16 sps:$4 sm:$0xff]   ;;  %v3830_v44 = vpack.c.bf16 %v556_v40, %v548_v39  ;;  %v3295_v37 = vld [vmem:[%s3616_s10 + $0x268] ss:$16 sps:$4 sm:$0xff]  }
  0x94   : > { %2250 = vmatprep.subr.bf16.mxu1 %v3213_v43  ;;  %v3237_v43 = vld [vmem:[%s3616_s10 + $0x7a4] ss:$16 sps:$4 sm:$0xff]   ;;  %v3303_v39 = vld [vmem:[%s3616_s10 + $0x24c] ss:$16 sps:$4 sm:$0xff]   ;;  %v3298_v40 = vld [vmem:[%s3616_s10 + $0x48] ss:$16 sps:$4 sm:$0xff]  }
  0x95   : > { %2270 = vmatprep.mubr.bf16.mxu1 %v3830_v44 }
  0x96   : > { %2208 = vmatpush1.bf16.msra.mxu0 %v3208_v46  ;;  %v499_v46 = vadd.f32 %v3764_v17, %v441_v21  ;;  %v3265_v21 = vld [vmem:[%s3616_s10 + $0x700] ss:$16 sps:$4 sm:$0xff]  }
  0x97   : > { %2251 = vmatpush1.bf16.msra.mxu1 %v3211_v47  ;;  %2209 = vmatprep.subr.bf16.mxu0 %v3216_v48  ;;  %v507_v47 = vadd.f32 %v3764_v17, %v449_v27  ;;  %v3232_v48 = vld [vmem:[%s3616_s10 + $0x5a0] ss:$16 sps:$4 sm:$0xff]   ;;  %v3240_v17 = vld [vmem:[%s3616_s10 + $0x584] ss:$16 sps:$4 sm:$0xff]   ;;  %v3279_v27 = vld [vmem:[%s3616_s10 + $0x2cc] ss:$16 sps:$4 sm:$0xff]  }
  0x98   : > { %2252 = vmatprep.subr.bf16.mxu1 %v3219_v50  ;;  %v545_v50 = vsel %vm513_vm12, %v497_v26, %v529_v41  ;;  %vm515_vm14 = vcmp.gt.f32.partialorder %v499_v46, 0.0  ;;  %v531_v54 = vmul.f32 0.2, %v499_v46  ;;  %v3276_v26 = vld [vmem:[%s3616_s10 + $0xcc] ss:$16 sps:$4 sm:$0xff]  }
  0x99   : > { %vm523_vm15 = vcmp.gt.f32.partialorder %v507_v47, 0.0  ;;  %v539_v56 = vmul.f32 0.2, %v507_v47  ;;  %v3301_v41 = vld [vmem:[%s3616_s10 + $0x248] ss:$16 sps:$4 sm:$0xff]  }
  0x9a   : > { %2210 = vmatpush1.bf16.msra.mxu0 %v3214_v53  ;;  %v553_v53 = vsel %vm521_vm13, %v505_v32, %v537_v45  ;;  %v547_v58 = vsel %vm515_vm14, %v499_v46, %v531_v54  ;;  %v3280_v32 = vld [vmem:[%s3616_s10 + $0xa8] ss:$16 sps:$4 sm:$0xff]   ;;  %v3321_v54 = vld [vmem:[%s3616_s10 + $0x3ec] ss:$16 sps:$4 sm:$0xff]  }
  0x9b   : > { %2253 = vmatpush1.bf16.msra.mxu1 %v3217_v4  ;;  %2211 = vmatprep.subr.bf16.mxu0 %v3222_v5  ;;  %v3841_v55 = vpack.c.bf16 %v553_v53, %v545_v50  ;;  %v555_v59 = vsel %vm523_vm15, %v507_v47, %v539_v56  ;;  %v3244_v4 = vld [vmem:[%s3616_s10 + $0x560] ss:$16 sps:$4 sm:$0xff]   ;;  %v3304_v45 = vld [vmem:[%s3616_s10 + $0x28] ss:$16 sps:$4 sm:$0xff]   ;;  %v3312_v47 = vld [vmem:[%s3616_s10 + $0xc] ss:$16 sps:$4 sm:$0xff]  }
  0x9c   : > { %2254 = vmatprep.subr.bf16.mxu1 %v3225_v0  ;;  %v3846_v62 = vpack.c.bf16 %v555_v59, %v547_v58  ;;  %v3247_v5 = vld [vmem:[%s3616_s10 + $0x760] ss:$16 sps:$4 sm:$0xff]   ;;  %v3258_v0 = vld [vmem:[%s3616_s10 + $0x524] ss:$16 sps:$4 sm:$0xff]   ;;  %v3307_v46 = vld [vmem:[%s3616_s10 + $0x228] ss:$16 sps:$4 sm:$0xff]  }
  0x9d   : > { %v3310_v50 = vld [vmem:[%s3616_s10 + $0x8] ss:$16 sps:$4 sm:$0xff]   ;;  %v3318_v53 = vld [vmem:[%s3616_s10 + $0x1ec] ss:$16 sps:$4 sm:$0xff]  }
  0x9e   : > { %2212 = vmatpush2.bf16.msra.mxu0 %v3220_v22  ;;  %v3270_v22 = vld [vmem:[%s3616_s10 + $0xec] ss:$16 sps:$4 sm:$0xff]   ;;  %v3319_v56 = vld [vmem:[%s3616_s10 + $0x3e8] ss:$16 sps:$4 sm:$0xff]  }
  0x9f   : > { %2255 = vmatpush2.bf16.msra.mxu1 %v3223_v23  ;;  %2213 = vmatprep.subr.bf16.mxu0 %v3228_v28  ;;  %v3273_v23 = vld [vmem:[%s3616_s10 + $0x2ec] ss:$16 sps:$4 sm:$0xff]   ;;  %v3274_v28 = vld [vmem:[%s3616_s10 + $0xc8] ss:$16 sps:$4 sm:$0xff]  }
  0xa0   : > { %2256 = vmatprep.subr.bf16.mxu1 %v3231_v29  ;;  %v3277_v29 = vld [vmem:[%s3616_s10 + $0x2c8] ss:$16 sps:$4 sm:$0xff]   ;;  %v3327_v58 = vld [vmem:[%s3616_s10 + $0x3cc] ss:$16 sps:$4 sm:$0xff]  }
  0xa1   : > { %v3322_v59 = vld [vmem:[%s3616_s10 + $0x1c8] ss:$16 sps:$4 sm:$0xff]  }
  0xa2   : > { %2214 = vmatpush2.bf16.msra.mxu0 %v3226_v35  ;;  %v3289_v35 = vld [vmem:[%s3616_s10 + $0x288] ss:$16 sps:$4 sm:$0xff]  }
  0xa3   : > { %2257 = vmatpush2.bf16.msra.mxu1 %v3229_v13  ;;  %2215 = vmatprep.subr.bf16.mxu0 %v3234_v42  ;;  %v3300_v13 = vld [vmem:[%s3616_s10 + $0x4c] ss:$16 sps:$4 sm:$0xff]  }
  0xa4   : > { %2258 = vmatprep.subr.bf16.mxu1 %v3237_v43  ;;  %v3306_v42 = vld [vmem:[%s3616_s10 + $0x2c] ss:$16 sps:$4 sm:$0xff]  }
  0xa5   : > { %v3309_v43 = vld [vmem:[%s3616_s10 + $0x22c] ss:$16 sps:$4 sm:$0xff]  }
  0xa6   : > { %2216 = vmatpush2.bf16.msra.mxu0 %v3232_v48  ;;  %v3315_v48 = vld [vmem:[%s3616_s10 + $0x20c] ss:$16 sps:$4 sm:$0xff]  }
  0xa7   : > { %2259 = vmatpush2.bf16.msra.mxu1 %v3235_v52  ;;  %2217 = vmatprep.subr.bf16.mxu0 %v3240_v17  ;;  %v3313_v52 = vld [vmem:[%s3616_s10 + $0x208] ss:$16 sps:$4 sm:$0xff]  }
  0xa8   : > { %2260 = vmatprep.subr.bf16.mxu1 %v3243_v57  ;;  %v3316_v17 = vld [vmem:[%s3616_s10 + $0x1e8] ss:$16 sps:$4 sm:$0xff]   ;;  %v3324_v57 = vld [vmem:[%s3616_s10 + $0x1cc] ss:$16 sps:$4 sm:$0xff]  }
  0xaa   : > { %2218 = vmatpush2.bf16.msra.mxu0 %v3238_v60  ;;  %v3325_v60 = vld [vmem:[%s3616_s10 + $0x3c8] ss:$16 sps:$4 sm:$0xff]  }
  0xab   : > { %2261 = vmatpush2.bf16.msra.mxu1 %v3241_v61  ;;  %2219 = vmatprep.subr.bf16.mxu0 %v3246_v63  ;;  %v3330_v61 = vld [vmem:[%s3616_s10 + $0x1ac] ss:$16 sps:$4 sm:$0xff]  }
  0xac   : > { %2262 = vmatprep.subr.bf16.mxu1 %v3249_v3  ;;  %v3333_v63 = vld [vmem:[%s3616_s10 + $0x3ac] ss:$16 sps:$4 sm:$0xff]   ;;  %v3328_v3 = vld [vmem:[%s3616_s10 + $0x1a8] ss:$16 sps:$4 sm:$0xff]  }
  0xae   : > { %2220 = vmatpush2.bf16.msra.mxu0 %v3244_v4  ;;  %v3331_v4 = vld [vmem:[%s3616_s10 + $0x3a8] ss:$16 sps:$4 sm:$0xff]  }
  0xaf   : > { %2263 = vmatpush2.bf16.msra.mxu1 %v3247_v5  ;;  %2221 = vmatprep.subr.bf16.mxu0 %v3252_v6  ;;  %v3336_v5 = vld [vmem:[%s3616_s10 + $0x18c] ss:$16 sps:$4 sm:$0xff]  }
  0xb0   : > { %2264 = vmatprep.subr.bf16.mxu1 %v3255_v7  ;;  %v3339_v6 = vld [vmem:[%s3616_s10 + $0x38c] ss:$16 sps:$4 sm:$0xff]   ;;  %v3334_v7 = vld [vmem:[%s3616_s10 + $0x188] ss:$16 sps:$4 sm:$0xff]  }
  0xb2   : > { %2222 = vmatpush2.bf16.msra.mxu0 %v3250_v8  ;;  %v3337_v8 = vld [vmem:[%s3616_s10 + $0x388] ss:$16 sps:$4 sm:$0xff]  }
  0xb3   : > { %2265 = vmatpush2.bf16.msra.mxu1 %v3253_v10  ;;  %2223 = vmatprep.subr.bf16.mxu0 %v3258_v0  ;;  %v3342_v10 = vld [vmem:[%s3616_s10 + $0x16c] ss:$16 sps:$4 sm:$0xff]  }
  0xb4   : > { %2266 = vmatprep.subr.bf16.mxu1 %v3261_v1  ;;  %v3345_v0 = vld [vmem:[%s3616_s10 + $0x36c] ss:$16 sps:$4 sm:$0xff]   ;;  %v3340_v1 = vld [vmem:[%s3616_s10 + $0x168] ss:$16 sps:$4 sm:$0xff]  }
  0xb6   : > { %2224 = vmatpush2.bf16.msra.mxu0 %v3256_v11  ;;  %v3343_v11 = vld [vmem:[%s3616_s10 + $0x368] ss:$16 sps:$4 sm:$0xff]  }
  0xb7   : > { %2267 = vmatpush2.bf16.msra.mxu1 %v3259_v12  ;;  %2225 = vmatprep.subr.bf16.mxu0 %v3264_v15  ;;  %v3348_v12 = vld [vmem:[%s3616_s10 + $0x14c] ss:$16 sps:$4 sm:$0xff]  }
  0xb8   : > { %2268 = vmatprep.subr.bf16.mxu1 %v3267_v16  ;;  %v3351_v15 = vld [vmem:[%s3616_s10 + $0x34c] ss:$16 sps:$4 sm:$0xff]   ;;  %v3346_v16 = vld [vmem:[%s3616_s10 + $0x148] ss:$16 sps:$4 sm:$0xff]  }
  0xba   : > { %2226 = vmatpush2.bf16.msra.mxu0 %v3262_v20  ;;  %v3349_v20 = vld [vmem:[%s3616_s10 + $0x348] ss:$16 sps:$4 sm:$0xff]  }
  0xbb   : > { %2269 = vmatpush2.bf16.msra.mxu1 %v3265_v21  ;;  %2281 = vmatprep.subr.bf16.mxu0 %v3270_v22  ;;  %v3354_v21 = vld [vmem:[%s3616_s10 + $0x12c] ss:$16 sps:$4 sm:$0xff]  }
  0xbc   : > { %2324 = vmatprep.subr.bf16.mxu1 %v3273_v23  ;;  %v3357_v22 = vld [vmem:[%s3616_s10 + $0x32c] ss:$16 sps:$4 sm:$0xff]   ;;  %v3352_v23 = vld [vmem:[%s3616_s10 + $0x128] ss:$16 sps:$4 sm:$0xff]  }
  0xbd   : > { %2228 = vmatmul.mubr.bf16.vlgmr.msra.gmra.mxu0 %v3841_v55 }
  0xbe   : > { %2271 = vmatmul.mubr.bf16.vlgmr.msra.gmra.mxu1 %v3846_v62  ;;  %2282 = vmatpush1.bf16.msra.mxu0 %v3268_v24  ;;  %v3355_v24 = vld [vmem:[%s3616_s10 + $0x328] ss:$16 sps:$4 sm:$0xff]  }
  0xbf   : > { %2325 = vmatpush1.bf16.msra.mxu1 %v3271_v25  ;;  %2283 = vmatprep.subr.bf16.mxu0 %v3276_v26  ;;  %v3360_v25 = vld [vmem:[%s3616_s10 + $0x10c] ss:$16 sps:$4 sm:$0xff]  }
  0xc0   : > { %2326 = vmatprep.subr.bf16.mxu1 %v3279_v27  ;;  %2313 = vmatprep.mubr.bf16.mxu0 %v3738_v49  ;;  %v3294_v49 = vld [vmem:[%s3616_s10 + $0x6c] ss:$16 sps:$4 sm:$0xff]   ;;  %v3358_v27 = vld [vmem:[%s3616_s10 + $0x108] ss:$16 sps:$4 sm:$0xff]  }
  0xc1   : > { %2356 = vmatprep.mubr.bf16.mxu1 %v3746_v2  ;;  %v3297_v2 = vld [vmem:[%s3616_s10 + $0x26c] ss:$16 sps:$4 sm:$0xff]  }
  0xc2   : > { %2284 = vmatpush1.bf16.msra.mxu0 %v3274_v28  ;;  %v3363_v26 = vld [vmem:[%s3616_s10 + $0x30c] ss:$16 sps:$4 sm:$0xff]   ;;  %v3361_v28 = vld [vmem:[%s3616_s10 + $0x308] ss:$16 sps:$4 sm:$0xff]  }
  0xc3   : > { %2327 = vmatpush1.bf16.msra.mxu1 %v3277_v29  ;;  %2285 = vmatprep.subr.bf16.mxu0 %v3282_v30  ;;  %v3366_v29 = vld [vmem:[%s3616_s10 + $0x4ec] ss:$16 sps:$4 sm:$0xff]  }
  0xc4   : > { %2328 = vmatprep.subr.bf16.mxu1 %v3285_v31  ;;  %v3369_v30 = vld [vmem:[%s3616_s10 + $0x6ec] ss:$16 sps:$4 sm:$0xff]   ;;  %v3364_v31 = vld [vmem:[%s3616_s10 + $0x4e8] ss:$16 sps:$4 sm:$0xff]  }
  0xc6   : > { %2286 = vmatpush1.bf16.msra.mxu0 %v3280_v32  ;;  %v3367_v32 = vld [vmem:[%s3616_s10 + $0x6e8] ss:$16 sps:$4 sm:$0xff]  }
  0xc7   : > { %2329 = vmatpush1.bf16.msra.mxu1 %v3283_v9  ;;  %2287 = vmatprep.subr.bf16.mxu0 %v3288_v33  ;;  %v3372_v9 = vld [vmem:[%s3616_s10 + $0x4cc] ss:$16 sps:$4 sm:$0xff]  }
  0xc8   : > { %2330 = vmatprep.subr.bf16.mxu1 %v3291_v34  ;;  %v3375_v33 = vld [vmem:[%s3616_s10 + $0x6cc] ss:$16 sps:$4 sm:$0xff]   ;;  %v3370_v34 = vld [vmem:[%s3616_s10 + $0x4c8] ss:$16 sps:$4 sm:$0xff]  }
  0xca   : > { %2288 = vmatpush1.bf16.msra.mxu0 %v3286_v14  ;;  %v3373_v14 = vld [vmem:[%s3616_s10 + $0x6c8] ss:$16 sps:$4 sm:$0xff]  }
  0xcb   : > { %2331 = vmatpush1.bf16.msra.mxu1 %v3289_v35  ;;  %2289 = vmatprep.subr.bf16.mxu0 %v3294_v49  ;;  %v3378_v35 = vld [vmem:[%s3616_s10 + $0x4ac] ss:$16 sps:$4 sm:$0xff]  }
  0xcc   : > { %2332 = vmatprep.subr.bf16.mxu1 %v3297_v2  ;;  %v3381_v49 = vld [vmem:[%s3616_s10 + $0x6ac] ss:$16 sps:$4 sm:$0xff]  }
  0xcd   : > { %v3384_v2 = vld [vmem:[%s3616_s10 + $0x48c] ss:$16 sps:$4 sm:$0xff]  }
  0xce   : > { %2290 = vmatpush1.bf16.msra.mxu0 %v3292_v36  ;;  %v3387_v36 = vld [vmem:[%s3616_s10 + $0x68c] ss:$16 sps:$4 sm:$0xff]  }
  0xcf   : > { %2333 = vmatpush1.bf16.msra.mxu1 %v3295_v37  ;;  %2291 = vmatprep.subr.bf16.mxu0 %v3300_v13  ;;  %v3382_v37 = vld [vmem:[%s3616_s10 + $0x488] ss:$16 sps:$4 sm:$0xff]   ;;  %v3393_v13 = vld [vmem:[%s3616_s10 + $0x66c] ss:$16 sps:$4 sm:$0xff]  }
  0xd0   : > { %2334 = vmatprep.subr.bf16.mxu1 %v3303_v39  ;;  %v3388_v39 = vld [vmem:[%s3616_s10 + $0x468] ss:$16 sps:$4 sm:$0xff]  }
  0xd2   : > { %2292 = vmatpush1.bf16.msra.mxu0 %v3298_v40  ;;  %v3391_v40 = vld [vmem:[%s3616_s10 + $0x668] ss:$16 sps:$4 sm:$0xff]  }
  0xd3   : > { %2335 = vmatpush1.bf16.msra.mxu1 %v3301_v41  ;;  %2293 = vmatprep.subr.bf16.mxu0 %v3306_v42  ;;  %v3396_v41 = vld [vmem:[%s3616_s10 + $0x44c] ss:$16 sps:$4 sm:$0xff]  }
  0xd4   : > { %2336 = vmatprep.subr.bf16.mxu1 %v3309_v43  ;;  %v3399_v42 = vld [vmem:[%s3616_s10 + $0x64c] ss:$16 sps:$4 sm:$0xff]   ;;  %v3394_v43 = vld [vmem:[%s3616_s10 + $0x448] ss:$16 sps:$4 sm:$0xff]  }
  0xd6   : > { %2294 = vmatpush1.bf16.msra.mxu0 %v3304_v45  ;;  %v3397_v45 = vld [vmem:[%s3616_s10 + $0x648] ss:$16 sps:$4 sm:$0xff]  }
  0xd7   : > { %2337 = vmatpush1.bf16.msra.mxu1 %v3307_v46  ;;  %2295 = vmatprep.subr.bf16.mxu0 %v3312_v47  ;;  %v3402_v46 = vld [vmem:[%s3616_s10 + $0x42c] ss:$16 sps:$4 sm:$0xff]  }
  0xd8   : > { %2338 = vmatprep.subr.bf16.mxu1 %v3315_v48  ;;  %v3405_v47 = vld [vmem:[%s3616_s10 + $0x62c] ss:$16 sps:$4 sm:$0xff]   ;;  %v3400_v48 = vld [vmem:[%s3616_s10 + $0x428] ss:$16 sps:$4 sm:$0xff]  }
  0xda   : > { %2296 = vmatpush1.bf16.msra.mxu0 %v3310_v50  ;;  %v3403_v50 = vld [vmem:[%s3616_s10 + $0x628] ss:$16 sps:$4 sm:$0xff]  }
  0xdb   : > { %2339 = vmatpush1.bf16.msra.mxu1 %v3313_v52  ;;  %2297 = vmatprep.subr.bf16.mxu0 %v3318_v53  ;;  %v3408_v52 = vld [vmem:[%s3616_s10 + $0x40c] ss:$16 sps:$4 sm:$0xff]  }
  0xdc   : > { %2340 = vmatprep.subr.bf16.mxu1 %v3321_v54  ;;  %v3411_v53 = vld [vmem:[%s3616_s10 + $0x60c] ss:$16 sps:$4 sm:$0xff]   ;;  %v3406_v54 = vld [vmem:[%s3616_s10 + $0x408] ss:$16 sps:$4 sm:$0xff]  }
  0xde   : > { %2298 = vmatpush2.bf16.msra.mxu0 %v3316_v17  ;;  %v3409_v17 = vld [vmem:[%s3616_s10 + $0x608] ss:$16 sps:$4 sm:$0xff]  }
  0xdf   : > { %2341 = vmatpush2.bf16.msra.mxu1 %v3319_v56  ;;  %2299 = vmatprep.subr.bf16.mxu0 %v3324_v57  ;;  %v3414_v56 = vld [vmem:[%s3616_s10 + $0x5ec] ss:$16 sps:$4 sm:$0xff]  }
  0xe0   : > { %2342 = vmatprep.subr.bf16.mxu1 %v3327_v58  ;;  %v3417_v57 = vld [vmem:[%s3616_s10 + $0x7ec] ss:$16 sps:$4 sm:$0xff]   ;;  %v3412_v58 = vld [vmem:[%s3616_s10 + $0x5e8] ss:$16 sps:$4 sm:$0xff]  }
  0xe2   : > { %2300 = vmatpush2.bf16.msra.mxu0 %v3322_v59  ;;  %v3415_v59 = vld [vmem:[%s3616_s10 + $0x7e8] ss:$16 sps:$4 sm:$0xff]  }
  0xe3   : > { %2343 = vmatpush2.bf16.msra.mxu1 %v3325_v60  ;;  %2301 = vmatprep.subr.bf16.mxu0 %v3330_v61  ;;  %v3420_v60 = vld [vmem:[%s3616_s10 + $0x5cc] ss:$16 sps:$4 sm:$0xff]  }
  0xe4   : > { %2344 = vmatprep.subr.bf16.mxu1 %v3333_v63  ;;  %v3423_v61 = vld [vmem:[%s3616_s10 + $0x7cc] ss:$16 sps:$4 sm:$0xff]   ;;  %v3418_v63 = vld [vmem:[%s3616_s10 + $0x5c8] ss:$16 sps:$4 sm:$0xff]  }
  0xe6   : > { %2302 = vmatpush2.bf16.msra.mxu0 %v3328_v3  ;;  %v3421_v3 = vld [vmem:[%s3616_s10 + $0x7c8] ss:$16 sps:$4 sm:$0xff]  }
  0xe7   : > { %2345 = vmatpush2.bf16.msra.mxu1 %v3331_v4  ;;  %2303 = vmatprep.subr.bf16.mxu0 %v3336_v5  ;;  %v3426_v4 = vld [vmem:[%s3616_s10 + $0x5ac] ss:$16 sps:$4 sm:$0xff]  }
  0xe8   : > { %2346 = vmatprep.subr.bf16.mxu1 %v3339_v6  ;;  %v3429_v5 = vld [vmem:[%s3616_s10 + $0x7ac] ss:$16 sps:$4 sm:$0xff]   ;;  %v3424_v6 = vld [vmem:[%s3616_s10 + $0x5a8] ss:$16 sps:$4 sm:$0xff]  }
  0xea   : > { %2304 = vmatpush2.bf16.msra.mxu0 %v3334_v7  ;;  %v3427_v7 = vld [vmem:[%s3616_s10 + $0x7a8] ss:$16 sps:$4 sm:$0xff]  }
  0xeb   : > { %2347 = vmatpush2.bf16.msra.mxu1 %v3337_v8  ;;  %2305 = vmatprep.subr.bf16.mxu0 %v3342_v10  ;;  %v3432_v8 = vld [vmem:[%s3616_s10 + $0x58c] ss:$16 sps:$4 sm:$0xff]  }
  0xec   : > { %2348 = vmatprep.subr.bf16.mxu1 %v3345_v0  ;;  %v3435_v10 = vld [vmem:[%s3616_s10 + $0x78c] ss:$16 sps:$4 sm:$0xff]   ;;  %v3430_v0 = vld [vmem:[%s3616_s10 + $0x588] ss:$16 sps:$4 sm:$0xff]  }
  0xee   : > { %2306 = vmatpush2.bf16.msra.mxu0 %v3340_v1  ;;  %v3433_v1 = vld [vmem:[%s3616_s10 + $0x788] ss:$16 sps:$4 sm:$0xff]  }
  0xef   : > { %2349 = vmatpush2.bf16.msra.mxu1 %v3343_v11  ;;  %2307 = vmatprep.subr.bf16.mxu0 %v3348_v12  ;;  %v3438_v11 = vld [vmem:[%s3616_s10 + $0x56c] ss:$16 sps:$4 sm:$0xff]  }
  0xf0   : > { %2350 = vmatprep.subr.bf16.mxu1 %v3351_v15  ;;  %v3441_v12 = vld [vmem:[%s3616_s10 + $0x76c] ss:$16 sps:$4 sm:$0xff]   ;;  %v3436_v15 = vld [vmem:[%s3616_s10 + $0x568] ss:$16 sps:$4 sm:$0xff]  }
  0xf2   : > { %2308 = vmatpush2.bf16.msra.mxu0 %v3346_v16  ;;  %v3439_v16 = vld [vmem:[%s3616_s10 + $0x768] ss:$16 sps:$4 sm:$0xff]  }
  0xf3   : > { %2351 = vmatpush2.bf16.msra.mxu1 %v3349_v20  ;;  %2309 = vmatprep.subr.bf16.mxu0 %v3354_v21  ;;  %v3444_v20 = vld [vmem:[%s3616_s10 + $0x54c] ss:$16 sps:$4 sm:$0xff]  }
  0xf4   : > { %2352 = vmatprep.subr.bf16.mxu1 %v3357_v22  ;;  %v3447_v21 = vld [vmem:[%s3616_s10 + $0x74c] ss:$16 sps:$4 sm:$0xff]   ;;  %v3442_v22 = vld [vmem:[%s3616_s10 + $0x548] ss:$16 sps:$4 sm:$0xff]  }
  0xf6   : > { %2310 = vmatpush2.bf16.msra.mxu0 %v3352_v23  ;;  %v3445_v23 = vld [vmem:[%s3616_s10 + $0x748] ss:$16 sps:$4 sm:$0xff]  }
  0xf7   : > { %2353 = vmatpush2.bf16.msra.mxu1 %v3355_v24  ;;  %2311 = vmatprep.subr.bf16.mxu0 %v3360_v25  ;;  %v3450_v24 = vld [vmem:[%s3616_s10 + $0x52c] ss:$16 sps:$4 sm:$0xff]  }
  0xf8   : > { %2354 = vmatprep.subr.bf16.mxu1 %v3363_v26  ;;  %v3453_v25 = vld [vmem:[%s3616_s10 + $0x72c] ss:$16 sps:$4 sm:$0xff]   ;;  %v3448_v26 = vld [vmem:[%s3616_s10 + $0x528] ss:$16 sps:$4 sm:$0xff]  }
  0xfa   : > { %2312 = vmatpush2.bf16.msra.mxu0 %v3358_v27  ;;  %v3451_v27 = vld [vmem:[%s3616_s10 + $0x728] ss:$16 sps:$4 sm:$0xff]  }
  0xfb   : > { %2355 = vmatpush2.bf16.msra.mxu1 %v3361_v28  ;;  %2367 = vmatprep.subr.bf16.mxu0 %v3366_v29  ;;  %v3456_v28 = vld [vmem:[%s3616_s10 + $0x50c] ss:$16 sps:$4 sm:$0xff]  }
  0xfc   : > { %2410 = vmatprep.subr.bf16.mxu1 %v3369_v30  ;;  %v3459_v29 = vld [vmem:[%s3616_s10 + $0x70c] ss:$16 sps:$4 sm:$0xff]   ;;  %v3454_v30 = vld [vmem:[%s3616_s10 + $0x508] ss:$16 sps:$4 sm:$0xff]  }
  0xfd   : > { %2314 = vmatmul.mubr.bf16.vlgmr.msra.gmra.mxu0 %v3766_v18  ;;  %v3376_v18 = vld [vmem:[%s3616_s10 + $0x4a8] ss:$16 sps:$4 sm:$0xff]  }
  0xfe   : > { %2357 = vmatmul.mubr.bf16.vlgmr.msra.gmra.mxu1 %v3768_v19  ;;  %2368 = vmatpush1.bf16.msra.mxu0 %v3364_v31  ;;  %v3379_v19 = vld [vmem:[%s3616_s10 + $0x6a8] ss:$16 sps:$4 sm:$0xff]  }
  0xff   : > { %2411 = vmatpush1.bf16.msra.mxu1 %v3367_v32  ;;  %2369 = vmatprep.subr.bf16.mxu0 %v3372_v9  ;;  %v3457_v31 = vld [vmem:[%s3616_s10 + $0x708] ss:$16 sps:$4 sm:$0xff]  }
 0x100   : > { %2412 = vmatprep.subr.bf16.mxu1 %v3375_v33  ;;  %2399 = vmatprep.mubr.bf16.mxu0 %v3826_v38  ;;  %v3385_v38 = vld [vmem:[%s3616_s10 + $0x688] ss:$16 sps:$4 sm:$0xff]  }
 0x101   : > { %2442 = vmatprep.mubr.bf16.mxu1 %v3830_v44  ;;  %v3390_v44 = vld [vmem:[%s3616_s10 + $0x46c] ss:$16 sps:$4 sm:$0xff]  }
 0x102   : > { %2370 = vmatpush1.bf16.msra.mxu0 %v3370_v34 }
 0x103   : > { %2413 = vmatpush1.bf16.msra.mxu1 %v3373_v14  ;;  %2371 = vmatprep.subr.bf16.mxu0 %v3378_v35 }
 0x104   : > { %2414 = vmatprep.subr.bf16.mxu1 %v3381_v49 }
 0x106   : > { %2372 = vmatpush1.bf16.msra.mxu0 %v3376_v18 }
 0x107   : > { %2415 = vmatpush1.bf16.msra.mxu1 %v3379_v19  ;;  %2373 = vmatprep.subr.bf16.mxu0 %v3384_v2 }
 0x108   : > { %2416 = vmatprep.subr.bf16.mxu1 %v3387_v36 }
 0x10a   : > { %2374 = vmatpush1.bf16.msra.mxu0 %v3382_v37 }
 0x10b   : > { %2417 = vmatpush1.bf16.msra.mxu1 %v3385_v38  ;;  %2375 = vmatprep.subr.bf16.mxu0 %v3390_v44  ;;  %v565_v44 = vld [vmem:[#allocation2 + $0x30] sm:$0xff] }
 0x10c   : > { %2418 = vmatprep.subr.bf16.mxu1 %v3393_v13 }
 0x10e   : > { %2376 = vmatpush1.bf16.msra.mxu0 %v3388_v39 }
 0x10f   : > { %2419 = vmatpush1.bf16.msra.mxu1 %v3391_v40  ;;  %2377 = vmatprep.subr.bf16.mxu0 %v3396_v41 }
 0x110   : > { %2420 = vmatprep.subr.bf16.mxu1 %v3399_v42 }
 0x112   : > { %2378 = vmatpush1.bf16.msra.mxu0 %v3394_v43 }
 0x113   : > { %2421 = vmatpush1.bf16.msra.mxu1 %v3397_v45  ;;  %2379 = vmatprep.subr.bf16.mxu0 %v3402_v46 }
 0x114   : > { %2422 = vmatprep.subr.bf16.mxu1 %v3405_v47 }
 0x116   : > { %2380 = vmatpush1.bf16.msra.mxu0 %v3400_v48 }
 0x117   : > { %2423 = vmatpush1.bf16.msra.mxu1 %v3403_v50  ;;  %2381 = vmatprep.subr.bf16.mxu0 %v3408_v52  ;;  %v569_v50 = vld [vmem:[#allocation2 + $0x8] sm:$0xff] }
 0x118   : > { %2424 = vmatprep.subr.bf16.mxu1 %v3411_v53 }
 0x11a   : > { %2382 = vmatpush1.bf16.msra.mxu0 %v3406_v54 }
 0x11b   : > { %2425 = vmatpush1.bf16.msra.mxu1 %v3409_v17  ;;  %2383 = vmatprep.subr.bf16.mxu0 %v3414_v56  ;;  %v570_v56 = vld [vmem:[#allocation2 + $0x20] sm:$0xff] }
 0x11c   : > { %2426 = vmatprep.subr.bf16.mxu1 %v3417_v57 }
 0x11e   : > { %2384 = vmatpush2.bf16.msra.mxu0 %v3412_v58 }
 0x11f   : > { %2427 = vmatpush2.bf16.msra.mxu1 %v3415_v59  ;;  %2385 = vmatprep.subr.bf16.mxu0 %v3420_v60 }
 0x120   : > { %2428 = vmatprep.subr.bf16.mxu1 %v3423_v61 }
 0x122   : > { %2386 = vmatpush2.bf16.msra.mxu0 %v3418_v63 }
 0x123   : > { %2429 = vmatpush2.bf16.msra.mxu1 %v3421_v3  ;;  %2387 = vmatprep.subr.bf16.mxu0 %v3426_v4 }
 0x124   : > { %2430 = vmatprep.subr.bf16.mxu1 %v3429_v5 }
 0x126   : > { %2388 = vmatpush2.bf16.msra.mxu0 %v3424_v6 }
 0x127   : > { %2431 = vmatpush2.bf16.msra.mxu1 %v3427_v7  ;;  %2389 = vmatprep.subr.bf16.mxu0 %v3432_v8 }
 0x128   : > { %2432 = vmatprep.subr.bf16.mxu1 %v3435_v10 }
 0x12a   : > { %2390 = vmatpush2.bf16.msra.mxu0 %v3430_v0 }
 0x12b   : > { %2433 = vmatpush2.bf16.msra.mxu1 %v3433_v1  ;;  %2391 = vmatprep.subr.bf16.mxu0 %v3438_v11 }
 0x12c   : > { %2434 = vmatprep.subr.bf16.mxu1 %v3441_v12 }
 0x12e   : > { %2392 = vmatpush2.bf16.msra.mxu0 %v3436_v15  ;;  %v567_v15 = vld [vmem:[#allocation2 + $0x18] sm:$0xff] }
 0x12f   : > { %2435 = vmatpush2.bf16.msra.mxu1 %v3439_v16  ;;  %2393 = vmatprep.subr.bf16.mxu0 %v3444_v20 }
 0x130   : > { %2436 = vmatprep.subr.bf16.mxu1 %v3447_v21 }
 0x132   : > { %2394 = vmatpush2.bf16.msra.mxu0 %v3442_v22 }
 0x133   : > { %2437 = vmatpush2.bf16.msra.mxu1 %v3445_v23  ;;  %2395 = vmatprep.subr.bf16.mxu0 %v3450_v24  ;;  %v568_v24 = vld [vmem:[#allocation2 + $0x10] sm:$0xff] }
 0x134   : > { %2438 = vmatprep.subr.bf16.mxu1 %v3453_v25 }
 0x136   : > { %2396 = vmatpush2.bf16.msra.mxu0 %v3448_v26 }
 0x137   : > { %2439 = vmatpush2.bf16.msra.mxu1 %v3451_v27  ;;  %2397 = vmatprep.subr.bf16.mxu0 %v3456_v28 }
 0x138   : > { %2440 = vmatprep.subr.bf16.mxu1 %v3459_v29 }
 0x13a   : > { %2398 = vmatpush2.bf16.msra.mxu0 %v3454_v30 }
 0x13b   : > { %2441 = vmatpush2.bf16.msra.mxu1 %v3457_v31  ;;  %v571_v31 = vld [vmem:[#allocation2 + $0x28] sm:$0xff] }
 0x13d   : > { %2400 = vmatmul.mubr.bf16.vlgmr.msra.gmra.mxu0 %v3841_v55  ;;  %v2143_v32 = vpop.f32.mrf.mxu0 }
 0x13e   : > { %2443 = vmatmul.mubr.bf16.vlgmr.msra.gmra.mxu1 %v3846_v62  ;;  %v2186_v9 = vpop.f32.mrf.mxu1  ;;  %v566_v62 = vld [vmem:[#allocation2] sm:$0xff] }
 0x13f   : > { %v2145_v33 = vpop.f32.mrf.mxu0  ;;  %v2187_v19 = vadd.f32 %v2186_v9, %v2143_v32 }
 0x140   : > { %v2188_v34 = vpop.f32.mrf.mxu1 }
 0x141   : > { %v2147_v14 = vpop.f32.mrf.mxu0  ;;  %v2189_v37 = vadd.f32 %v2188_v34, %v2145_v33 }
 0x142   : > { %v2190_v35 = vpop.f32.mrf.mxu1 }
 0x143   : > { %v2149_v49 = vpop.f32.mrf.mxu0  ;;  %v2191_v40 = vadd.f32 %v2190_v35, %v2147_v14  ;;  %v572_v14 = vld [vmem:[#allocation2 + $0x38] sm:$0xff] }
 0x144   : > { %v2192_v18 = vpop.f32.mrf.mxu1 }
 0x145   : > { %v2193_v45 = vadd.f32 %v2192_v18, %v2149_v49 }
 0x17d   : > { %v2229_v2 = vpop.f32.mrf.mxu0 }
 0x17e   : > { %v2272_v36 = vpop.f32.mrf.mxu1  ;;  %v2230_v38 = vadd.f32 %v2229_v2, %v2187_v19 }
 0x17f   : > { %v2231_v13 = vpop.f32.mrf.mxu0 }
 0x180   : > { %v2274_v39 = vpop.f32.mrf.mxu1  ;;  %v2273_v55 = vadd.f32 %v2272_v36, %v2230_v38  ;;  %v2232_v41 = vadd.f32 %v2231_v13, %v2189_v37 }
 0x181   : > { %v2233_v42 = vpop.f32.mrf.mxu0 }
 0x182   : > { %v2276_v43 = vpop.f32.mrf.mxu1  ;;  %v2453_v46 = vadd.f32 %v2273_v55, %v565_v44  ;;  %v2275_v47 = vadd.f32 %v2274_v39, %v2232_v41  ;;  %v2234_v48 = vadd.f32 %v2233_v42, %v2191_v40 }
 0x183   : > { %v2235_v52 = vpop.f32.mrf.mxu0 }
 0x184   : > { %2461 = vst [vmem:[#allocation2 + $0x30] sm:$0xff] %v2453_v46  ;;  %v2454_v53 = vadd.f32 %v2275_v47, %v566_v62  ;;  %v2277_v54 = vadd.f32 %v2276_v43, %v2234_v48  ;;  %v2236_v17 = vadd.f32 %v2235_v52, %v2193_v45  ;;  %v2278_v57 = vpop.f32.mrf.mxu1 }
 0x186   : > { %2462 = vst [vmem:[#allocation2] sm:$0xff] %v2454_v53  ;;  %v2457_v58 = vadd.f32 %v2277_v54, %v569_v50  ;;  %v2279_v59 = vadd.f32 %v2278_v57, %v2236_v17 }
 0x188   : > { %2465 = vst [vmem:[#allocation2 + $0x8] sm:$0xff] %v2457_v58  ;;  %v2458_v60 = vadd.f32 %v2279_v59, %v570_v56 }
 0x18a   : > { %2466 = vst [vmem:[#allocation2 + $0x20] sm:$0xff] %v2458_v60 }
 0x1bd   : > { %v2315_v61 = vpop.f32.mrf.mxu0 }
 0x1be   : > { %v2358_v63 = vpop.f32.mrf.mxu1 }
 0x1bf   : > { %v2317_v3 = vpop.f32.mrf.mxu0  ;;  %v2359_v10 = vadd.f32 %v2358_v63, %v2315_v61 }
 0x1c0   : > { %v2360_v4 = vpop.f32.mrf.mxu1 }
 0x1c1   : > { %v2319_v5 = vpop.f32.mrf.mxu0  ;;  %v2361_v11 = vadd.f32 %v2360_v4, %v2317_v3 }
 0x1c2   : > { %v2362_v6 = vpop.f32.mrf.mxu1 }
 0x1c3   : > { %v2321_v7 = vpop.f32.mrf.mxu0  ;;  %v2363_v21 = vadd.f32 %v2362_v6, %v2319_v5 }
 0x1c4   : > { %v2364_v8 = vpop.f32.mrf.mxu1 }
 0x1c5   : > { %v2365_v27 = vadd.f32 %v2364_v8, %v2321_v7 }
 0x1fd   : > { %v2401_v0 = vpop.f32.mrf.mxu0 }
 0x1fe   : > { %v2444_v1 = vpop.f32.mrf.mxu1  ;;  %v2402_v12 = vadd.f32 %v2401_v0, %v2359_v10 }
 0x1ff   : > { %v2403_v16 = vpop.f32.mrf.mxu0 }
 0x200   : > { %v2446_v20 = vpop.f32.mrf.mxu1  ;;  %v2445_v22 = vadd.f32 %v2444_v1, %v2402_v12  ;;  %v2404_v23 = vadd.f32 %v2403_v16, %v2361_v11 }
 0x201   : > { %v2405_v25 = vpop.f32.mrf.mxu0 }
 0x202   : > { %v2448_v26 = vpop.f32.mrf.mxu1  ;;  %v2455_v28 = vadd.f32 %v2445_v22, %v567_v15  ;;  %v2447_v29 = vadd.f32 %v2446_v20, %v2404_v23  ;;  %v2406_v30 = vadd.f32 %v2405_v25, %v2363_v21 }
 0x203   : > { %v2407_v32 = vpop.f32.mrf.mxu0 }
 0x204   : > { %2463 = vst [vmem:[#allocation2 + $0x18] sm:$0xff] %v2455_v28  ;;  %v2456_v9 = vadd.f32 %v2447_v29, %v568_v24  ;;  %v2449_v33 = vadd.f32 %v2448_v26, %v2406_v30  ;;  %v2408_v34 = vadd.f32 %v2407_v32, %v2365_v27  ;;  %v2450_v35 = vpop.f32.mrf.mxu1 }
 0x206   : > { %2464 = vst [vmem:[#allocation2 + $0x10] sm:$0xff] %v2456_v9  ;;  %v2459_v49 = vadd.f32 %v2449_v33, %v571_v31  ;;  %v2451_v18 = vadd.f32 %v2450_v35, %v2408_v34  ;;  %2472 = sbr.rel (%p3004_p1) target bundleno = 548 (0x224), region = 67 }
 0x208   : > { %2467 = vst [vmem:[#allocation2 + $0x28] sm:$0xff] %v2459_v49  ;;  %v2460_v19 = vadd.f32 %v2451_v18, %v572_v14 }
 0x20a   : > { %2468 = vst [vmem:[#allocation2 + $0x38] sm:$0xff] %v2460_v19 }
 0x20b   : > { %v2473_v2 = vld [vmem:[#allocation2 + $0x30] sm:$0xff]  ;;  %v2474_v36 = vld [vmem:[#allocation2] sm:$0xff]  ;;  %v4003_v37 = vld [vmem:[#allocation2 + $0x8] sm:$0xff]  ;;  %vm2547_vm0 = vcmp.lt.s32.totalorder %v3684_v51, 4 }
 0x20c   : > { %v4005_v38 = vld [vmem:[#allocation2 + $0x20] sm:$0xff]  ;;  %v2481_v44 = vadd.f32 %v4003_v37, %v2473_v2  ;;  %v2509_v13 = vmul.f32 %v2473_v2, %v2473_v2  ;;  %v2510_v39 = vmul.f32 %v2474_v36, %v2474_v36  ;;  %v2513_v40 = vmul.f32 %v4003_v37, %v4003_v37  ;;  %v2475_v55 = vld [vmem:[#allocation2 + $0x18] sm:$0xff] }
 0x20d   : > { %v2476_v41 = vld [vmem:[#allocation2 + $0x10] sm:$0xff]  ;;  %v2488_v62 = vadd.f32 %v4005_v38, %v2474_v36  ;;  %v2514_v42 = vmul.f32 %v4005_v38, %v4005_v38  ;;  %v3015_v43 = vpack.c.bf16 %v2474_v36, %v2473_v2  ;;  %v2511_v47 = vmul.f32 %v2475_v55, %v2475_v55 }
 0x20e   : > { %v2482_v48 = vrot.slane %v2481_v44, 4  ;;  %v2517_v50 = vadd.f32 %v2513_v40, %v2509_v13  ;;  %v2512_v56 = vmul.f32 %v2476_v41, %v2476_v41  ;;  %v3016_v8 = vpack.c.bf16 %v2476_v41, %v2475_v55 }
 0x20f   : > { %v4013_v45 = vld [vmem:[#allocation2 + $0x28] sm:$0xff]  ;;  %v2489_v54 = vrot.slane %v2488_v62, 4  ;;  %v2524_v17 = vadd.f32 %v2514_v42, %v2510_v39  ;;  %2580 = vst [vmem:[%s3632_s7] sm:$0xff] %v3015_v43  ;;  %v3017_v13 = vpack.c.bf16 %v4005_v38, %v4003_v37 }
 0x210   : > { %v2495_v52 = vadd.f32 %v4013_v45, %v2475_v55  ;;  %v2515_v57 = vmul.f32 %v4013_v45, %v4013_v45  ;;  %v2483_v58 = vadd.f32 %v2482_v48, %v2481_v44  ;;  %v2518_v59 = vrot.slane %v2517_v50, 4  ;;  %2581 = vst [vmem:[%s3632_s7 + $0x8] sm:$0xff] %v3016_v8 }
 0x211   : > { %v4015_v46 = vld [vmem:[#allocation2 + $0x38] sm:$0xff]  ;;  %v2490_v63 = vadd.f32 %v2489_v54, %v2488_v62  ;;  %v2525_v3 = vrot.slane %v2524_v17, 4  ;;  %2582 = vst [vmem:[%s3632_s7 + $0x10] sm:$0xff] %v3017_v13 }
 0x212   : > { %v2502_v53 = vadd.f32 %v4015_v46, %v2476_v41  ;;  %v2496_v60 = vrot.slane %v2495_v52, 4  ;;  %v2516_v4 = vmul.f32 %v4015_v46, %v4015_v46  ;;  %v2531_v5 = vadd.f32 %v2515_v57, %v2511_v47 }
 0x213   : > { %v2484_v10 = vrot.slane %v2483_v58, 2  ;;  %v2519_v11 = vadd.f32 %v2518_v59, %v2517_v50  ;;  %v2491_v12 = vrot.slane %v2490_v63, 2  ;;  %v2526_v16 = vadd.f32 %v2525_v3, %v2524_v17 }
 0x214   : > { %v2503_v61 = vrot.slane %v2502_v53, 4  ;;  %v2497_v6 = vadd.f32 %v2496_v60, %v2495_v52  ;;  %v2532_v0 = vrot.slane %v2531_v5, 4  ;;  %v2538_v1 = vadd.f32 %v2516_v4, %v2512_v56 }
 0x215   : > { %v2485_v15 = vadd.f32 %v2484_v10, %v2483_v58  ;;  %v2520_v23 = vrot.slane %v2519_v11, 2  ;;  %v2492_v24 = vadd.f32 %v2491_v12, %v2490_v63  ;;  %v2527_v27 = vrot.slane %v2526_v16, 2 }
 0x216   : > { %v2504_v7 = vadd.f32 %v2503_v61, %v2502_v53  ;;  %v2498_v20 = vrot.slane %v2497_v6, 2  ;;  %v2539_v22 = vrot.slane %v2538_v1, 4  ;;  %v2533_v25 = vadd.f32 %v2532_v0, %v2531_v5 }
 0x217   : > { %v2486_v26 = vrot.slane %v2485_v15, 1  ;;  %v2521_v30 = vadd.f32 %v2520_v23, %v2519_v11  ;;  %v2493_v31 = vrot.slane %v2492_v24, 1  ;;  %v2528_v34 = vadd.f32 %v2527_v27, %v2526_v16 }
 0x218   : > { %v2505_v21 = vrot.slane %v2504_v7, 2  ;;  %v2499_v28 = vadd.f32 %v2498_v20, %v2497_v6  ;;  %v2534_v32 = vrot.slane %v2533_v25, 2  ;;  %v2540_v9 = vadd.f32 %v2539_v22, %v2538_v1 }
 0x219   : > { %v2487_v33 = vadd.f32 %v2486_v26, %v2485_v15  ;;  %v2522_v35 = vrot.slane %v2521_v30, 1  ;;  %v2494_v2 = vadd.f32 %v2493_v31, %v2492_v24  ;;  %v2529_v36 = vrot.slane %v2528_v34, 1 }
 0x21a   : > { %v2506_v29 = vadd.f32 %v2505_v21, %v2504_v7  ;;  %v2500_v14 = vrot.slane %v2499_v28, 1  ;;  %v2535_v49 = vadd.f32 %v2534_v32, %v2533_v25  ;;  %v2541_v19 = vrot.slane %v2540_v9, 2 }
 0x21b   : > { %v2523_v39 = vadd.f32 %v2522_v35, %v2521_v30  ;;  %v3018_v41 = vpack.c.bf16 %v4015_v46, %v4013_v45  ;;  %v2530_v62 = vadd.f32 %v2529_v36, %v2528_v34 }
 0x21c   : > { %v2507_v18 = vrot.slane %v2506_v29, 1  ;;  %v2501_v44 = vadd.f32 %v2500_v14, %v2499_v28  ;;  %v2536_v40 = vrot.slane %v2535_v49, 1  ;;  %v2542_v55 = vadd.f32 %v2541_v19, %v2540_v9 }
 0x21d   : > { %v2548_v42 = vsel %vm2547_vm0, %v2487_v33, %v2523_v39  ;;  %2583 = vst [vmem:[%s3632_s7 + $0x18] sm:$0xff] %v3018_v41  ;;  %v2549_v37 = vsel %vm2547_vm0, %v2494_v2, %v2530_v62 }
 0x21e   : > { %v2537_v43 = vadd.f32 %v2536_v40, %v2535_v49  ;;  %v2508_v47 = vadd.f32 %v2507_v18, %v2506_v29  ;;  %v2543_v48 = vrot.slane %v2542_v55, 1  ;;  %2552 = vst [vmem:[%s3638_s1] sm:$0xff] %v2548_v42  ;;  %2553 = vst [vmem:[%s3638_s1 + $0x8] sm:$0xff] %v2549_v37 }
 0x220   : > { %v2550_v38 = vsel %vm2547_vm0, %v2501_v44, %v2537_v43  ;;  %v2544_v50 = vadd.f32 %v2543_v48, %v2542_v55 }
 0x221   : > { %2554 = vst [vmem:[%s3638_s1 + $0x10] sm:$0xff] %v2550_v38 }
 0x222   : > { %v2551_v45 = vsel %vm2547_vm0, %v2508_v47, %v2544_v50 }
 0x223   : > { %2555 = vst [vmem:[%s3638_s1 + $0x18] sm:$0xff] %v2551_v45 }
 0x224 PF: > { %s16_s24 = sadd.s32 1, %s3514_s24   ;;  %s4077_s26 = sld [smem:[#allocation4_spill]] }
 0x225   : > { %p13_p2 = scmp.ge.s32.totalorder %s16_s24, 10   ;;  %s4078_s18 = smov %s3494_s19 }
 0x226   : > { %s4079_s19 = smov %s3598_s6  ;;  %s4080_s20 = smov %s3506_s22 }
 0x227   : > { %s4081_s21 = smov %s3510_s23  ;;  %s4082_s22 = smov %s4085_s25 }
 0x228   :  { %15 = sbr.rel (!%p13_p2) target bundleno = 7 (0x7), region = 123 }
 0x22a   : > { %s4083_s23 = smov %s4077_s26 }

// kernel: discriminator_forward.9
= control target key start
LH: loop header
LB: loop body
LE: loop exit
PB: predicated region body
PF: predicated region fallthrough
CT: control target
= control target key end

     0   :  { %v67_v20 = vlaneseq  ;;  %v8909_v28 = vmov 1983009808   ;;  %s10948_s3 = inlined_call_operand.vmem [shape: bf16[8192,64], index: 3, kind: input, shape index: {}]   ;;  %s10949_s1 = inlined_call_operand.vmem [shape: f32[1,8192], index: 1, kind: input, shape index: {}]   ;;  %s10950_s2 = inlined_call_operand.vmem [shape: f32[1,8192], index: 2, kind: input, shape index: {}]   ;;  %s10951_s0 = inlined_call_operand.vmem [shape: bf16[2,8192], index: 0, kind: input, shape index: {}]   ;;  %s10952_s4 = inlined_call_operand.vmem [shape: f32[1,64], index: 4, kind: input, shape index: {}]   ;;  %s10953_s5 = inlined_call_operand.vmem [shape: bf16[64,128], index: 5, kind: input, shape index: {}]   ;;  %s10954_s6 = inlined_call_operand.vmem [shape: f32[1,128], index: 6, kind: input, shape index: {}]   ;;  %s10955_s7 = inlined_call_operand.vmem [shape: f32[2,128], index: 7, kind: output, shape index: {}]  }
   0x1   :  { %v8389_v0 = vld [vmem:[%s10948_s3 + $0x78] sm:$0xff]   ;;  %v8393_v4 = vld [vmem:[%s10948_s3 + $0x70] sm:$0xff]   ;;  %v8397_v8 = vld [vmem:[%s10948_s3 + $0x68] sm:$0xff]   ;;  %v326_v29 = vunpack.c.l.s4 %v8909_v28 }
   0x2   :  { %v8390_v1 = vld [vmem:[%s10948_s3 + $0xf8] sm:$0xff]   ;;  %7665 = vmatprep.subr.bf16.mxu0 %v8389_v0  ;;  %v8394_v5 = vld [vmem:[%s10948_s3 + $0xf0] sm:$0xff]   ;;  %v8398_v9 = vld [vmem:[%s10948_s3 + $0xe8] sm:$0xff]   ;;  %v68_v25 = vshrl.u32 %v67_v20, 7 }
   0x3   :  { %v8391_v2 = vld [vmem:[%s10948_s3 + $0x38] sm:$0xff]   ;;  %7687 = vmatprep.subr.bf16.mxu1 %v8390_v1  ;;  %v8395_v6 = vld [vmem:[%s10948_s3 + $0x30] sm:$0xff]   ;;  %v8399_v10 = vld [vmem:[%s10948_s3 + $0x28] sm:$0xff]   ;;  %v327_v37 = vunpack.c.0.s8 %v326_v29 }
   0x4   :  { %v8392_v3 = vld [vmem:[%s10948_s3 + $0xb8] sm:$0xff]   ;;  %7666 = vmatpush3.bf16.msra.mxu0 %v8391_v2  ;;  %v8396_v7 = vld [vmem:[%s10948_s3 + $0xb0] sm:$0xff]   ;;  %v8400_v11 = vld [vmem:[%s10948_s3 + $0xa8] sm:$0xff]   ;;  %v9036_v32 = vsub.s32 0, %v68_v25  ;;  %v9041_v34 = vsub.s32 1, %v68_v25  ;;  %v9046_v36 = vsub.s32 2, %v68_v25 }
   0x5   :  { %7688 = vmatpush3.bf16.msra.mxu1 %v8392_v3  ;;  %7667 = vmatprep.subr.bf16.mxu0 %v8393_v4  ;;  %v8401_v12 = vld [vmem:[%s10948_s3 + $0x60] sm:$0xff]   ;;  %v8405_v16 = vld [vmem:[%s10948_s3 + $0x58] sm:$0xff]   ;;  %v8409_v21 = vld [vmem:[%s10948_s3 + $0x50] sm:$0xff]   ;;  %v9051_v39 = vsub.s32 3, %v68_v25  ;;  %v9064_v45 = vsub.s32 %v327_v37, %v68_v25  ;;  %v9069_v47 = vsub.s32 4, %v68_v25  ;;  %v9083_v57 = vsub.s32 5, %v68_v25 }
   0x6   :  { %7689 = vmatprep.subr.bf16.mxu1 %v8394_v5  ;;  %v8402_v13 = vld [vmem:[%s10948_s3 + $0xe0] sm:$0xff]   ;;  %v8406_v17 = vld [vmem:[%s10948_s3 + $0xd8] sm:$0xff]   ;;  %v8410_v22 = vld [vmem:[%s10948_s3 + $0xd0] sm:$0xff]   ;;  %v9085_v60 = vsub.s32 6, %v68_v25  ;;  %v9087_v61 = vsub.s32 7, %v68_v25 }
   0x7   :  { %v8403_v14 = vld [vmem:[%s10948_s3 + $0x20] sm:$0xff]   ;;  %v8407_v18 = vld [vmem:[%s10948_s3 + $0x18] sm:$0xff]   ;;  %v8411_v23 = vld [vmem:[%s10948_s3 + $0x10] sm:$0xff]  }
   0x8   :  { %7668 = vmatpush3.bf16.msra.mxu0 %v8395_v6  ;;  %v8404_v15 = vld [vmem:[%s10948_s3 + $0xa0] sm:$0xff]   ;;  %v8408_v19 = vld [vmem:[%s10948_s3 + $0x98] sm:$0xff]   ;;  %v8412_v24 = vld [vmem:[%s10948_s3 + $0x90] sm:$0xff]  }
   0x9   :  { %7690 = vmatpush3.bf16.msra.mxu1 %v8396_v7  ;;  %7669 = vmatprep.subr.bf16.mxu0 %v8397_v8  ;;  %v8413_v26 = vld [vmem:[%s10948_s3 + $0x48] sm:$0xff]   ;;  %v8417_v33 = vld [vmem:[%s10948_s3 + $0x40] sm:$0xff]   ;;  %v8421_v46 = vld [vmem:[%s10948_s3 + $0x178] sm:$0xff]  }
   0xa   :  { %7691 = vmatprep.subr.bf16.mxu1 %v8398_v9  ;;  %v8414_v27 = vld [vmem:[%s10948_s3 + $0xc8] sm:$0xff]   ;;  %v8418_v35 = vld [vmem:[%s10948_s3 + $0xc0] sm:$0xff]   ;;  %v8422_v52 = vld [vmem:[%s10948_s3 + $0x1f8] sm:$0xff]  }
   0xb   :  { %v8415_v30 = vld [vmem:[%s10948_s3 + $0x8] sm:$0xff]   ;;  %v8419_v38 = vld [vmem:[%s10948_s3] sm:$0xff]  }
   0xc   :  { %7670 = vmatpush3.bf16.msra.mxu0 %v8399_v10  ;;  %v8416_v31 = vld [vmem:[%s10948_s3 + $0x88] sm:$0xff]   ;;  %v8420_v40 = vld [vmem:[%s10948_s3 + $0x80] sm:$0xff]  }
   0xd   :  { %7692 = vmatpush3.bf16.msra.mxu1 %v8400_v11  ;;  %7671 = vmatprep.subr.bf16.mxu0 %v8401_v12  ;;  %v51_v41 = vld [vmem:[%s10949_s1] sm:$0xff] }
   0xe   :  { %7693 = vmatprep.subr.bf16.mxu1 %v8402_v13  ;;  %v627_v42 = vld [vmem:[%s10950_s2] sm:$0xff]  ;;  %v70_v43 = vrot.slane %v51_v41, %v9036_v32  ;;  %v74_v44 = vrot.slane %v51_v41, %v9041_v34  ;;  %v78_v48 = vrot.slane %v51_v41, %v9046_v36  ;;  %v82_v49 = vrot.slane %v51_v41, %v9051_v39 }
   0xf   :  { %v646_v50 = vrot.slane %v627_v42, %v9036_v32  ;;  %v650_v51 = vrot.slane %v627_v42, %v9041_v34  ;;  %v27_v53 = vld [vmem:[%s10951_s0] sm:$0xff]  ;;  %v654_v55 = vrot.slane %v627_v42, %v9046_v36  ;;  %v658_v56 = vrot.slane %v627_v42, %v9051_v39 }
  0x10   :  { %7672 = vmatpush3.bf16.msra.mxu0 %v8403_v14  ;;  %v323_v54 = vcombine.low %v70_v43, %v74_v44  ;;  %v324_v58 = vcombine.low %v78_v48, %v82_v49  ;;  %v35_v0 = vunpack.c.l.bf16 %v27_v53  ;;  %v86_v4 = vrot.slane %v51_v41, %v9069_v47  ;;  %v8426_v44 = vld [vmem:[%s10948_s3 + $0x1f0] sm:$0xff]  }
  0x11   :  { %7694 = vmatpush3.bf16.msra.mxu1 %v8404_v15  ;;  %7673 = vmatprep.subr.bf16.mxu0 %v8405_v16  ;;  %v899_v59 = vcombine.low %v646_v50, %v650_v51  ;;  %v900_v63 = vcombine.low %v654_v55, %v658_v56  ;;  %v90_v5 = vrot.slane %v51_v41, %v9083_v57  ;;  %v8428_v50 = vld [vmem:[%s10948_s3 + $0x1b0] sm:$0xff]   ;;  %v8429_v51 = vld [vmem:[%s10948_s3 + $0x168] sm:$0xff]   ;;  %v8433_v56 = vld [vmem:[%s10948_s3 + $0x160] sm:$0xff]  }
  0x12   :  { %7695 = vmatprep.subr.bf16.mxu1 %v8406_v17  ;;  %v331_v62 = vrot.slane %v323_v54, %v9064_v45  ;;  %v338_v1 = vrot.slane %v324_v58, %v9064_v45  ;;  %v94_v7 = vrot.slane %v51_v41, %v9085_v60  ;;  %v98_v8 = vrot.slane %v51_v41, %v9087_v61  ;;  %v8432_v55 = vld [vmem:[%s10948_s3 + $0x1a8] sm:$0xff]   ;;  %v8434_v58 = vld [vmem:[%s10948_s3 + $0x1e0] sm:$0xff]  }
  0x13   :  { %v907_v2 = vrot.slane %v899_v59, %v9064_v45  ;;  %v914_v3 = vrot.slane %v900_v63, %v9064_v45  ;;  %v340_v11 = vcombine.low %v86_v4, %v90_v5  ;;  %v662_v12 = vrot.slane %v627_v42, %v9069_v47  ;;  %v8435_v59 = vld [vmem:[%s10948_s3 + $0x120] sm:$0xff]   ;;  %v8437_v63 = vld [vmem:[%s10948_s3 + $0x158] sm:$0xff]  }
  0x14   :  { %7674 = vmatpush3.bf16.msra.mxu0 %v8407_v18  ;;  %v339_v6 = vcombine.low %v331_v62, %v338_v1  ;;  %v666_v13 = vrot.slane %v627_v42, %v9083_v57  ;;  %v341_v15 = vcombine.low %v94_v7, %v98_v8  ;;  %v670_v16 = vrot.slane %v627_v42, %v9085_v60  ;;  %v8436_v62 = vld [vmem:[%s10948_s3 + $0x1a0] sm:$0xff]   ;;  %v8438_v1 = vld [vmem:[%s10948_s3 + $0x1d8] sm:$0xff]   ;;  %v8441_v7 = vld [vmem:[%s10948_s3 + $0x150] sm:$0xff]  }
  0x15   :  { %7696 = vmatpush3.bf16.msra.mxu1 %v8408_v19  ;;  %7675 = vmatprep.subr.bf16.mxu0 %v8409_v21  ;;  %v915_v9 = vcombine.low %v907_v2, %v914_v3  ;;  %v674_v17 = vrot.slane %v627_v42, %v9087_v61  ;;  %v348_v19 = vrot.slane %v340_v11, %v9064_v45  ;;  %v8425_v42 = vld [vmem:[%s10948_s3 + $0x170] sm:$0xff]   ;;  %v8439_v3 = vld [vmem:[%s10948_s3 + $0x118] sm:$0xff]  }
  0x16   :  { %7697 = vmatprep.subr.bf16.mxu1 %v8410_v22  ;;  %v611_v10 = vmul.f32 %v339_v6, %v35_v0  ;;  %v355_v21 = vrot.slane %v341_v15, %v9064_v45  ;;  %v916_v22 = vcombine.low %v662_v12, %v666_v13  ;;  %v8440_v6 = vld [vmem:[%s10948_s3 + $0x198] sm:$0xff]   ;;  %v8443_v11 = vld [vmem:[%s10948_s3 + $0x110] sm:$0xff]   ;;  %v8445_v15 = vld [vmem:[%s10948_s3 + $0x148] sm:$0xff]  }
  0x18   :  { %7676 = vmatpush3.bf16.msra.mxu0 %v8411_v23  ;;  %v1187_v14 = vadd.f32 %v915_v9, %v611_v10  ;;  %v917_v23 = vcombine.low %v670_v16, %v674_v17  ;;  %v8442_v10 = vld [vmem:[%s10948_s3 + $0x1d0] sm:$0xff]   ;;  %v8446_v17 = vld [vmem:[%s10948_s3 + $0x1c8] sm:$0xff]  }
  0x19   :  { %7698 = vmatpush3.bf16.msra.mxu1 %v8412_v24  ;;  %7677 = vmatprep.subr.bf16.mxu0 %v8413_v26  ;;  %v36_v26 = vunpack.c.h.bf16 %v27_v53  ;;  %v8431_v53 = vld [vmem:[%s10948_s3 + $0x128] sm:$0xff]  }
  0x1a   :  { %7699 = vmatprep.subr.bf16.mxu1 %v8414_v27  ;;  %vm1203_vm0 = vcmp.gt.f32.partialorder %v1187_v14, 0.0  ;;  %v1219_v18 = vmul.f32 0.2, %v1187_v14 }
  0x1c   :  { %7678 = vmatpush3.bf16.msra.mxu0 %v8415_v30  ;;  %v1235_v20 = vsel %vm1203_vm0, %v1187_v14, %v1219_v18  ;;  %v8423_v30 = vld [vmem:[%s10948_s3 + $0x138] sm:$0xff]   ;;  %v8444_v14 = vld [vmem:[%s10948_s3 + $0x190] sm:$0xff]   ;;  %v8447_v18 = vld [vmem:[%s10948_s3 + $0x108] sm:$0xff]   ;;  %vm8911_vm0 = vmmov 0  }
  0x1d   :  { %7700 = vmatpush3.bf16.msra.mxu1 %v8416_v31  ;;  %7679 = vmatprep.subr.bf16.mxu0 %v8417_v33  ;;  %v1274_v24 = vrot.slane %v1235_v20, %v9064_v45  ;;  %v1267_v25 = vcombine.high %v1235_v20, %v1235_v20  ;;  %v356_v31 = vcombine.low %v348_v19, %v355_v21  ;;  %v8448_v19 = vld [vmem:[%s10948_s3 + $0x188] sm:$0xff]   ;;  %v8449_v20 = vld [vmem:[%s10948_s3 + $0x140] sm:$0xff]  }
  0x1e   :  { %7701 = vmatprep.subr.bf16.mxu1 %v8418_v35  ;;  %v924_v33 = vrot.slane %v916_v22, %v9064_v45  ;;  %v931_v35 = vrot.slane %v917_v23, %v9064_v45  ;;  %v8450_v21 = vld [vmem:[%s10948_s3 + $0x1c0] sm:$0xff]  }
  0x1f   :  { %v1282_v27 = vcombine.high %v1274_v24, %v1274_v24  ;;  %v1281_v28 = vrot.slane %v1267_v25, %v9064_v45  ;;  %v1603_v29 = vpack.c.bf16 %v1274_v24, %v1274_v24  ;;  %v612_v48 = vmul.f32 %v356_v31, %v36_v26  ;;  %v8451_v22 = vld [vmem:[%s10948_s3 + $0x100] sm:$0xff]   ;;  %v8453_v24 = vld [vmem:[%s10948_s3 + $0x278] sm:$0xff]   ;;  %v8458_v31 = vld [vmem:[%s10948_s3 + $0x2f0] sm:$0xff]  }
  0x20   :  { %7680 = vmatpush3.bf16.msra.mxu0 %v8419_v38  ;;  %v932_v49 = vcombine.low %v924_v33, %v931_v35  ;;  %v8452_v23 = vld [vmem:[%s10948_s3 + $0x180] sm:$0xff]   ;;  %v8454_v25 = vld [vmem:[%s10948_s3 + $0x2f8] sm:$0xff]   ;;  %v8459_v33 = vld [vmem:[%s10948_s3 + $0x230] sm:$0xff]  }
  0x21   :  { %7702 = vmatpush3.bf16.msra.mxu1 %v8420_v40  ;;  %7709 = vmatprep.subr.bf16.mxu0 %v8421_v46  ;;  %v1604_v37 = vpack.c.bf16 %v1282_v27, %v1282_v27  ;;  %v1283_v38 = vcombine.high %v1281_v28, %v1281_v28  ;;  %v8424_v40 = vld [vmem:[%s10948_s3 + $0x1b8] sm:$0xff]   ;;  %v1605_v41 = vpack.c.bf16 %v1281_v28, %v1281_v28  ;;  %v8427_v46 = vld [vmem:[%s10948_s3 + $0x130] sm:$0xff]  }
  0x22   :  { %7731 = vmatprep.subr.bf16.mxu1 %v8422_v52  ;;  %v8430_v52 = vld [vmem:[%s10948_s3 + $0x1e8] sm:$0xff]   ;;  %v1188_v54 = vadd.f32 %v932_v49, %v612_v48  ;;  %v8455_v27 = vld [vmem:[%s10948_s3 + $0x238] sm:$0xff]   ;;  %v8460_v35 = vld [vmem:[%s10948_s3 + $0x2b0] sm:$0xff]  }
  0x23   :  { %5802 = vmatprep.mubr.bf16.mxu0 %v1604_v37  ;;  %v1606_v43 = vpack.c.bf16 %v1283_v38, %v1283_v38  ;;  %v8456_v28 = vld [vmem:[%s10948_s3 + $0x2b8] sm:$0xff]   ;;  %v8461_v37 = vld [vmem:[%s10948_s3 + $0x268] sm:$0xff]  }
  0x24   :  { %5803 = vmatmul.mubr.bf16.vlgmr.msra.gmra.mxu0 %v1603_v29  ;;  %vm1204_vm1 = vcmp.gt.f32.partialorder %v1188_v54, 0.0  ;;  %v1220_v0 = vmul.f32 0.2, %v1188_v54  ;;  %v8462_v38 = vld [vmem:[%s10948_s3 + $0x2e8] sm:$0xff]   ;;  %v8469_v48 = vld [vmem:[%s10948_s3 + $0x258] sm:$0xff]  }
  0x25   :  { %5842 = vmatprep.mubr.bf16.mxu1 %v1606_v43  ;;  %7710 = vmatpush3.bf16.msra.mxu0 %v8423_v30  ;;  %v8457_v30 = vld [vmem:[%s10948_s3 + $0x270] sm:$0xff]   ;;  %v8466_v43 = vld [vmem:[%s10948_s3 + $0x2e0] sm:$0xff]   ;;  %v52_v49 = vld [vmem:[%s10949_s1 + $0x8] sm:$0xff] }
  0x26   :  { %5843 = vmatmul.mubr.bf16.vlgmr.msra.gmra.mxu1 %v1605_v41  ;;  %7711 = vmatprep.subr.bf16.mxu0 %v8425_v42  ;;  %v1236_v2 = vsel %vm1204_vm1, %v1188_v54, %v1220_v0  ;;  %v8464_v41 = vld [vmem:[%s10948_s3 + $0x2a8] sm:$0xff]   ;;  %v8465_v42 = vld [vmem:[%s10948_s3 + $0x260] sm:$0xff]   ;;  %v8470_v54 = vld [vmem:[%s10948_s3 + $0x2d8] sm:$0xff]   ;;  %vm7090_vm1 = vcmask 523264  }
  0x27   :  { %7732 = vmatpush3.bf16.msra.mxu1 %v8424_v40  ;;  %v1291_v4 = vrot.slane %v1236_v2, %v9064_v45  ;;  %v1284_v5 = vcombine.high %v1236_v2, %v1236_v2  ;;  %v8463_v40 = vld [vmem:[%s10948_s3 + $0x228] sm:$0xff]  }
  0x28   :  { %7733 = vmatprep.subr.bf16.mxu1 %v8426_v44  ;;  %v8467_v44 = vld [vmem:[%s10948_s3 + $0x220] sm:$0xff]  }
  0x29   :  { %7712 = vmatpush3.bf16.msra.mxu0 %v8427_v46  ;;  %v1299_v8 = vcombine.high %v1291_v4, %v1291_v4  ;;  %v1298_v9 = vrot.slane %v1284_v5, %v9064_v45  ;;  %v1607_v26 = vpack.c.bf16 %v1291_v4, %v1291_v4  ;;  %v8468_v46 = vld [vmem:[%s10948_s3 + $0x2a0] sm:$0xff]   ;;  %v8473_v4 = vld [vmem:[%s10948_s3 + $0x250] sm:$0xff]  }
  0x2a   :  { %7713 = vmatprep.subr.bf16.mxu0 %v8429_v51  ;;  %v106_v51 = vrot.slane %v52_v49, %v9041_v34 }
  0x2b   :  { %7734 = vmatpush3.bf16.msra.mxu1 %v8428_v50  ;;  %v1608_v12 = vpack.c.bf16 %v1299_v8, %v1299_v8  ;;  %v1300_v13 = vcombine.high %v1298_v9, %v1298_v9  ;;  %v1609_v29 = vpack.c.bf16 %v1298_v9, %v1298_v9  ;;  %v102_v50 = vrot.slane %v52_v49, %v9036_v32 }
  0x2c   :  { %7735 = vmatprep.subr.bf16.mxu1 %v8430_v52  ;;  %v110_v52 = vrot.slane %v52_v49, %v9046_v36 }
  0x2d   :  { %7714 = vmatpush3.bf16.msra.mxu0 %v8431_v53  ;;  %5882 = vmatprep.mubr.bf16.mxu0 %v1608_v12  ;;  %v1610_v16 = vpack.c.bf16 %v1300_v13, %v1300_v13  ;;  %v9259_v53 = vld [vmem:[%s10950_s2 + $0x8] sm:$0xff]  ;;  %v118_v13 = vrot.slane %v52_v49, %v9069_v47 }
  0x2e   :  { %7715 = vmatprep.subr.bf16.mxu0 %v8433_v56  ;;  %v678_v56 = vrot.slane %v9259_v53, %v9036_v32  ;;  %v690_v0 = vrot.slane %v9259_v53, %v9051_v39 }
  0x2f   :  { %7736 = vmatpush3.bf16.msra.mxu1 %v8432_v55  ;;  %5922 = vmatprep.mubr.bf16.mxu1 %v1610_v16  ;;  %v114_v55 = vrot.slane %v52_v49, %v9051_v39 }
  0x30   :  { %7737 = vmatprep.subr.bf16.mxu1 %v8434_v58  ;;  %v682_v58 = vrot.slane %v9259_v53, %v9041_v34 }
  0x31   :  { %7716 = vmatpush3.bf16.msra.mxu0 %v8435_v59  ;;  %v686_v59 = vrot.slane %v9259_v53, %v9046_v36  ;;  %v358_v2 = vcombine.low %v110_v52, %v114_v55 }
  0x32   :  { %7717 = vmatprep.subr.bf16.mxu0 %v8437_v63  ;;  %v357_v63 = vcombine.low %v102_v50, %v106_v51  ;;  %v8485_v50 = vld [vmem:[%s10948_s3 + $0x378] sm:$0xff]   ;;  %v8484_v51 = vld [vmem:[%s10948_s3 + $0x280] sm:$0xff]  }
  0x33   :  { %7738 = vmatpush3.bf16.msra.mxu1 %v8436_v62  ;;  %v9274_v62 = vld [vmem:[%s10951_s0 + $0x8] sm:$0xff]  ;;  %v372_v9 = vrot.slane %v358_v2, %v9064_v45 }
  0x34   :  { %7739 = vmatprep.subr.bf16.mxu1 %v8438_v1  ;;  %v8471_v1 = vld [vmem:[%s10948_s3 + $0x218] sm:$0xff]   ;;  %v365_v5 = vrot.slane %v357_v63, %v9064_v45  ;;  %v37_v8 = vunpack.c.l.bf16 %v9274_v62  ;;  %v38_v55 = vunpack.c.h.bf16 %v9274_v62 }
  0x35   :  { %7718 = vmatpush3.bf16.msra.mxu0 %v8439_v3  ;;  %v933_v3 = vcombine.low %v678_v56, %v682_v58  ;;  %v8487_v58 = vld [vmem:[%s10948_s3 + $0x338] sm:$0xff]  }
  0x36   :  { %7719 = vmatprep.subr.bf16.mxu0 %v8441_v7  ;;  %v8472_v7 = vld [vmem:[%s10948_s3 + $0x298] sm:$0xff]   ;;  %v373_v16 = vcombine.low %v365_v5, %v372_v9 }
  0x37   :  { %7740 = vmatpush3.bf16.msra.mxu1 %v8440_v6  ;;  %v934_v6 = vcombine.low %v686_v59, %v690_v0 }
  0x38   :  { %7741 = vmatprep.subr.bf16.mxu1 %v8442_v10  ;;  %v941_v10 = vrot.slane %v933_v3, %v9064_v45  ;;  %v8488_v3 = vld [vmem:[%s10948_s3 + $0x3b8] sm:$0xff]  }
  0x39   :  { %7720 = vmatpush3.bf16.msra.mxu0 %v8443_v11  ;;  %v8474_v11 = vld [vmem:[%s10948_s3 + $0x2d0] sm:$0xff]   ;;  %v948_v12 = vrot.slane %v934_v6, %v9064_v45 }
  0x3a   :  { %7721 = vmatprep.subr.bf16.mxu0 %v8445_v15  ;;  %v8475_v15 = vld [vmem:[%s10948_s3 + $0x210] sm:$0xff]  }
  0x3b   :  { %7742 = vmatpush3.bf16.msra.mxu1 %v8444_v14  ;;  %v122_v14 = vrot.slane %v52_v49, %v9083_v57  ;;  %v8490_v6 = vld [vmem:[%s10948_s3 + $0x3f0] sm:$0xff]  }
  0x3c   :  { %7743 = vmatprep.subr.bf16.mxu1 %v8446_v17  ;;  %v126_v17 = vrot.slane %v52_v49, %v9085_v60 }
  0x3d   :  { %7722 = vmatpush3.bf16.msra.mxu0 %v8447_v18  ;;  %v130_v18 = vrot.slane %v52_v49, %v9087_v61 }
  0x3e   :  { %7723 = vmatprep.subr.bf16.mxu0 %v8449_v20  ;;  %v949_v20 = vcombine.low %v941_v10, %v948_v12  ;;  %v8492_v10 = vld [vmem:[%s10948_s3 + $0x3b0] sm:$0xff]   ;;  %v8494_v12 = vld [vmem:[%s10948_s3 + $0x3e8] sm:$0xff]  }
  0x3f   :  { %7744 = vmatpush3.bf16.msra.mxu1 %v8448_v19  ;;  %v8477_v19 = vld [vmem:[%s10948_s3 + $0x248] sm:$0xff]  }
  0x40   :  { %7745 = vmatprep.subr.bf16.mxu1 %v8450_v21  ;;  %v8476_v21 = vld [vmem:[%s10948_s3 + $0x290] sm:$0xff]  }
  0x41   :  { %7724 = vmatpush3.bf16.msra.mxu0 %v8451_v22  ;;  %v613_v22 = vmul.f32 %v373_v16, %v37_v8  ;;  %v8497_v16 = vld [vmem:[%s10948_s3 + $0x360] sm:$0xff]  }
  0x42   :  { %7753 = vmatprep.subr.bf16.mxu0 %v8453_v24  ;;  %v374_v24 = vcombine.low %v118_v13, %v122_v14  ;;  %v8495_v13 = vld [vmem:[%s10948_s3 + $0x328] sm:$0xff]  }
  0x43   :  { %7746 = vmatpush3.bf16.msra.mxu1 %v8452_v23  ;;  %v8478_v23 = vld [vmem:[%s10948_s3 + $0x2c8] sm:$0xff]  }
  0x44   :  { %5883 = vmatmul.mubr.bf16.vlgmr.msra.gmra.mxu0 %v1607_v26  ;;  %7775 = vmatprep.subr.bf16.mxu1 %v8454_v25  ;;  %v694_v25 = vrot.slane %v9259_v53, %v9069_v47  ;;  %v698_v26 = vrot.slane %v9259_v53, %v9083_v57 }
  0x45   :  { %7754 = vmatpush3.bf16.msra.mxu0 %v8455_v27  ;;  %v8479_v27 = vld [vmem:[%s10948_s3 + $0x208] sm:$0xff]  }
  0x46   :  { %5923 = vmatmul.mubr.bf16.vlgmr.msra.gmra.mxu1 %v1609_v29  ;;  %7755 = vmatprep.subr.bf16.mxu0 %v8457_v30  ;;  %v375_v29 = vcombine.low %v126_v17, %v130_v18  ;;  %v702_v30 = vrot.slane %v9259_v53, %v9085_v60  ;;  %v8498_v17 = vld [vmem:[%s10948_s3 + $0x3e0] sm:$0xff]  }
  0x47   :  { %7776 = vmatpush3.bf16.msra.mxu1 %v8456_v28  ;;  %v1189_v28 = vadd.f32 %v949_v20, %v613_v22  ;;  %v8499_v18 = vld [vmem:[%s10948_s3 + $0x320] sm:$0xff]   ;;  %v8501_v20 = vld [vmem:[%s10948_s3 + $0x358] sm:$0xff]  }
  0x48   :  { %7777 = vmatprep.subr.bf16.mxu1 %v8458_v31  ;;  %v706_v31 = vrot.slane %v9259_v53, %v9087_v61  ;;  %v8502_v22 = vld [vmem:[%s10948_s3 + $0x3d8] sm:$0xff]  }
  0x49   :  { %7756 = vmatpush3.bf16.msra.mxu0 %v8459_v33  ;;  %v8481_v33 = vld [vmem:[%s10948_s3 + $0x240] sm:$0xff]   ;;  %vm1205_vm2 = vcmp.gt.f32.partialorder %v1189_v28, 0.0 }
  0x4a   :  { %7757 = vmatprep.subr.bf16.mxu0 %v8461_v37  ;;  %v1221_v37 = vmul.f32 0.2, %v1189_v28 }
  0x4b   :  { %7778 = vmatpush3.bf16.msra.mxu1 %v8460_v35  ;;  %v8480_v35 = vld [vmem:[%s10948_s3 + $0x288] sm:$0xff]  }
  0x4c   :  { %7779 = vmatprep.subr.bf16.mxu1 %v8462_v38  ;;  %v8482_v38 = vld [vmem:[%s10948_s3 + $0x2c0] sm:$0xff]  }
  0x4d   :  { %7758 = vmatpush3.bf16.msra.mxu0 %v8463_v40  ;;  %v382_v40 = vrot.slane %v374_v24, %v9064_v45  ;;  %v8503_v24 = vld [vmem:[%s10948_s3 + $0x318] sm:$0xff]  }
  0x4e   :  { %7759 = vmatprep.subr.bf16.mxu0 %v8465_v42  ;;  %v1237_v42 = vsel %vm1205_vm2, %v1189_v28, %v1221_v37  ;;  %v8505_v28 = vld [vmem:[%s10948_s3 + $0x350] sm:$0xff]  }
  0x4f   :  { %7780 = vmatpush3.bf16.msra.mxu1 %v8464_v41  ;;  %v8483_v41 = vld [vmem:[%s10948_s3 + $0x200] sm:$0xff]   ;;  %v1301_v49 = vcombine.high %v1237_v42, %v1237_v42 }
  0x50   :  { %7781 = vmatprep.subr.bf16.mxu1 %v8466_v43  ;;  %v389_v43 = vrot.slane %v375_v29, %v9064_v45 }
  0x51   :  { %7760 = vmatpush3.bf16.msra.mxu0 %v8467_v44  ;;  %v950_v44 = vcombine.low %v694_v25, %v698_v26  ;;  %v1315_v53 = vrot.slane %v1301_v49, %v9064_v45  ;;  %v8515_v49 = vld [vmem:[%s10948_s3 + $0x300] sm:$0xff]  }
  0x52   :  { %7761 = vmatprep.subr.bf16.mxu0 %v8469_v48  ;;  %v1308_v48 = vrot.slane %v1237_v42, %v9064_v45  ;;  %v390_v59 = vcombine.low %v382_v40, %v389_v43  ;;  %v8509_v40 = vld [vmem:[%s10948_s3 + $0x348] sm:$0xff]  }
  0x53   :  { %7782 = vmatpush3.bf16.msra.mxu1 %v8468_v46  ;;  %v951_v46 = vcombine.low %v702_v30, %v706_v31  ;;  %v958_v63 = vrot.slane %v950_v44, %v9064_v45  ;;  %v1317_v2 = vcombine.high %v1315_v53, %v1315_v53  ;;  %v1613_v62 = vpack.c.bf16 %v1315_v53, %v1315_v53  ;;  %v8506_v31 = vld [vmem:[%s10948_s3 + $0x3d0] sm:$0xff]   ;;  %v8510_v42 = vld [vmem:[%s10948_s3 + $0x3c8] sm:$0xff]  }
  0x54   :  { %7783 = vmatprep.subr.bf16.mxu1 %v8470_v54  ;;  %v1316_v52 = vcombine.high %v1308_v48, %v1308_v48  ;;  %v8486_v54 = vld [vmem:[%s10948_s3 + $0x3f8] sm:$0xff]   ;;  %v1611_v56 = vpack.c.bf16 %v1308_v48, %v1308_v48  ;;  %v614_v8 = vmul.f32 %v390_v59, %v38_v55  ;;  %v8511_v43 = vld [vmem:[%s10948_s3 + $0x308] sm:$0xff]   ;;  %v8514_v48 = vld [vmem:[%s10948_s3 + $0x3c0] sm:$0xff]  }
  0x55   :  { %7762 = vmatpush3.bf16.msra.mxu0 %v8471_v1  ;;  %v965_v0 = vrot.slane %v951_v46, %v9064_v45  ;;  %v1614_v5 = vpack.c.bf16 %v1317_v2, %v1317_v2  ;;  %v8512_v44 = vld [vmem:[%s10948_s3 + $0x388] sm:$0xff]   ;;  %v8513_v46 = vld [vmem:[%s10948_s3 + $0x340] sm:$0xff]   ;;  %v8520_v55 = vld [vmem:[%s10948_s3 + $0x4b8] sm:$0xff]  }
  0x56   :  { %7763 = vmatprep.subr.bf16.mxu0 %v8473_v4  ;;  %v1612_v1 = vpack.c.bf16 %v1316_v52, %v1316_v52  ;;  %v8489_v4 = vld [vmem:[%s10948_s3 + $0x370] sm:$0xff]   ;;  %v8518_v52 = vld [vmem:[%s10948_s3 + $0x4f8] sm:$0xff]   ;;  %v8526_v2 = vld [vmem:[%s10948_s3 + $0x4e8] sm:$0xff]  }
  0x57   :  { %7784 = vmatpush3.bf16.msra.mxu1 %v8472_v7  ;;  %v8491_v7 = vld [vmem:[%s10948_s3 + $0x330] sm:$0xff]   ;;  %v966_v9 = vcombine.low %v958_v63, %v965_v0  ;;  %6002 = vmatprep.mubr.bf16.mxu1 %v1614_v5  ;;  %v8530_v5 = vld [vmem:[%s10948_s3 + $0x4e0] sm:$0xff]  }
  0x58   :  { %7785 = vmatprep.subr.bf16.mxu1 %v8474_v11  ;;  %5962 = vmatprep.mubr.bf16.mxu0 %v1612_v1  ;;  %v8493_v11 = vld [vmem:[%s10948_s3 + $0x368] sm:$0xff]   ;;  %v8522_v59 = vld [vmem:[%s10948_s3 + $0x4f0] sm:$0xff]  }
  0x59   :  { %7764 = vmatpush3.bf16.msra.mxu0 %v8475_v15  ;;  %v1190_v14 = vadd.f32 %v966_v9, %v614_v8  ;;  %v8496_v15 = vld [vmem:[%s10948_s3 + $0x3a8] sm:$0xff]   ;;  %v8523_v63 = vld [vmem:[%s10948_s3 + $0x430] sm:$0xff]   ;;  %v8533_v8 = vld [vmem:[%s10948_s3 + $0x458] sm:$0xff]  }
  0x5a   :  { %7765 = vmatprep.subr.bf16.mxu0 %v8477_v19  ;;  %v8500_v19 = vld [vmem:[%s10948_s3 + $0x3a0] sm:$0xff]   ;;  %v8524_v0 = vld [vmem:[%s10948_s3 + $0x4b0] sm:$0xff]   ;;  %v8525_v1 = vld [vmem:[%s10948_s3 + $0x468] sm:$0xff]  }
  0x5b   :  { %7786 = vmatpush3.bf16.msra.mxu1 %v8476_v21  ;;  %vm1206_vm3 = vcmp.gt.f32.partialorder %v1190_v14, 0.0  ;;  %v1222_v21 = vmul.f32 0.2, %v1190_v14  ;;  %v53_v9 = vld [vmem:[%s10949_s1 + $0x10] sm:$0xff] }
  0x5c   :  { %7787 = vmatprep.subr.bf16.mxu1 %v8478_v23 }
  0x5d   :  { %7766 = vmatpush3.bf16.msra.mxu0 %v8479_v27  ;;  %v1238_v23 = vsel %vm1206_vm3, %v1190_v14, %v1222_v21  ;;  %v8504_v27 = vld [vmem:[%s10948_s3 + $0x398] sm:$0xff]   ;;  %v142_v14 = vrot.slane %v53_v9, %v9046_v36 }
  0x5e   :  { %7767 = vmatprep.subr.bf16.mxu0 %v8481_v33  ;;  %v1325_v25 = vrot.slane %v1238_v23, %v9064_v45  ;;  %v1318_v26 = vcombine.high %v1238_v23, %v1238_v23  ;;  %v8507_v33 = vld [vmem:[%s10948_s3 + $0x310] sm:$0xff]   ;;  %v8535_v21 = vld [vmem:[%s10948_s3 + $0x418] sm:$0xff]  }
  0x5f   :  { %7788 = vmatpush3.bf16.msra.mxu1 %v8480_v35 }
  0x60   :  { %7789 = vmatprep.subr.bf16.mxu1 %v8482_v38  ;;  %v1333_v29 = vcombine.high %v1325_v25, %v1325_v25  ;;  %v1332_v30 = vrot.slane %v1318_v26, %v9064_v45  ;;  %v8508_v38 = vld [vmem:[%s10948_s3 + $0x390] sm:$0xff]   ;;  %v1615_v53 = vpack.c.bf16 %v1325_v25, %v1325_v25 }
  0x61   :  { %7768 = vmatpush3.bf16.msra.mxu0 %v8483_v41 }
  0x62   :  { %7797 = vmatprep.subr.bf16.mxu0 %v8485_v50  ;;  %v1616_v35 = vpack.c.bf16 %v1333_v29, %v1333_v29  ;;  %v1334_v37 = vcombine.high %v1332_v30, %v1332_v30  ;;  %v8516_v50 = vld [vmem:[%s10948_s3 + $0x380] sm:$0xff]  }
  0x63   :  { %7790 = vmatpush3.bf16.msra.mxu1 %v8484_v51  ;;  %v8517_v51 = vld [vmem:[%s10948_s3 + $0x478] sm:$0xff]  }
  0x64   :  { %7819 = vmatprep.subr.bf16.mxu1 %v8486_v54  ;;  %5963 = vmatmul.mubr.bf16.vlgmr.msra.gmra.mxu0 %v1611_v56  ;;  %v1618_v41 = vpack.c.bf16 %v1334_v37, %v1334_v37  ;;  %v8519_v54 = vld [vmem:[%s10948_s3 + $0x438] sm:$0xff]   ;;  %v1617_v56 = vpack.c.bf16 %v1332_v30, %v1332_v30  ;;  %v150_v37 = vrot.slane %v53_v9, %v9069_v47 }
  0x65   :  { %7798 = vmatpush3.bf16.msra.mxu0 %v8487_v58  ;;  %6042 = vmatprep.mubr.bf16.mxu0 %v1616_v35  ;;  %v8521_v58 = vld [vmem:[%s10948_s3 + $0x470] sm:$0xff]  }
  0x66   :  { %6003 = vmatmul.mubr.bf16.vlgmr.msra.gmra.mxu1 %v1613_v62  ;;  %7799 = vmatprep.subr.bf16.mxu0 %v8489_v4  ;;  %v8528_v62 = vld [vmem:[%s10948_s3 + $0x4a8] sm:$0xff]   ;;  %v8529_v4 = vld [vmem:[%s10948_s3 + $0x460] sm:$0xff]  }
  0x67   :  { %7820 = vmatpush3.bf16.msra.mxu1 %v8488_v3  ;;  %6082 = vmatprep.mubr.bf16.mxu1 %v1618_v41  ;;  %v8527_v3 = vld [vmem:[%s10948_s3 + $0x428] sm:$0xff]   ;;  %v154_v41 = vrot.slane %v53_v9, %v9083_v57 }
  0x68   :  { %7821 = vmatprep.subr.bf16.mxu1 %v8490_v6  ;;  %v8531_v6 = vld [vmem:[%s10948_s3 + $0x420] sm:$0xff]  }
  0x69   :  { %7800 = vmatpush3.bf16.msra.mxu0 %v8491_v7  ;;  %v8532_v7 = vld [vmem:[%s10948_s3 + $0x4a0] sm:$0xff]  }
  0x6a   :  { %7801 = vmatprep.subr.bf16.mxu0 %v8493_v11  ;;  %v8534_v11 = vld [vmem:[%s10948_s3 + $0x4d8] sm:$0xff]  }
  0x6b   :  { %7822 = vmatpush3.bf16.msra.mxu1 %v8492_v10  ;;  %v9499_v10 = vld [vmem:[%s10950_s2 + $0x10] sm:$0xff] }
  0x6c   :  { %7823 = vmatprep.subr.bf16.mxu1 %v8494_v12  ;;  %v134_v12 = vrot.slane %v53_v9, %v9036_v32 }
  0x6d   :  { %7802 = vmatpush3.bf16.msra.mxu0 %v8495_v13  ;;  %v138_v13 = vrot.slane %v53_v9, %v9041_v34 }
  0x6e   :  { %7803 = vmatprep.subr.bf16.mxu0 %v8497_v16  ;;  %v9511_v16 = vld [vmem:[%s10951_s0 + $0x10] sm:$0xff] }
  0x6f   :  { %7824 = vmatpush3.bf16.msra.mxu1 %v8496_v15  ;;  %v146_v15 = vrot.slane %v53_v9, %v9051_v39 }
  0x70   :  { %7825 = vmatprep.subr.bf16.mxu1 %v8498_v17  ;;  %v710_v17 = vrot.slane %v9499_v10, %v9036_v32 }
  0x71   :  { %7804 = vmatpush3.bf16.msra.mxu0 %v8499_v18  ;;  %v714_v18 = vrot.slane %v9499_v10, %v9041_v34  ;;  %v392_v23 = vcombine.low %v142_v14, %v146_v15  ;;  %v8550_v14 = vld [vmem:[%s10948_s3 + $0x5f8] sm:$0xff]  }
  0x72   :  { %7805 = vmatprep.subr.bf16.mxu0 %v8501_v20  ;;  %v722_v20 = vrot.slane %v9499_v10, %v9051_v39 }
  0x73   :  { %7826 = vmatpush3.bf16.msra.mxu1 %v8500_v19  ;;  %v718_v19 = vrot.slane %v9499_v10, %v9046_v36  ;;  %v967_v25 = vcombine.low %v710_v17, %v714_v18  ;;  %v406_v30 = vrot.slane %v392_v23, %v9064_v45  ;;  %v8551_v17 = vld [vmem:[%s10948_s3 + $0x538] sm:$0xff]   ;;  %v40_v18 = vunpack.c.h.bf16 %v9511_v16 }
  0x74   :  { %7827 = vmatprep.subr.bf16.mxu1 %v8502_v22  ;;  %v391_v22 = vcombine.low %v134_v12, %v138_v13 }
  0x75   :  { %7806 = vmatpush3.bf16.msra.mxu0 %v8503_v24  ;;  %v8537_v24 = vld [vmem:[%s10948_s3 + $0x450] sm:$0xff]   ;;  %v968_v26 = vcombine.low %v718_v19, %v722_v20 }
  0x76   :  { %7807 = vmatprep.subr.bf16.mxu0 %v8505_v28  ;;  %v39_v28 = vunpack.c.l.bf16 %v9511_v16  ;;  %v399_v29 = vrot.slane %v391_v22, %v9064_v45  ;;  %v8552_v22 = vld [vmem:[%s10948_s3 + $0x5b8] sm:$0xff]  }
  0x77   :  { %7828 = vmatpush3.bf16.msra.mxu1 %v8504_v27  ;;  %v8536_v27 = vld [vmem:[%s10948_s3 + $0x498] sm:$0xff]   ;;  %v982_v35 = vrot.slane %v968_v26, %v9064_v45  ;;  %v8553_v26 = vld [vmem:[%s10948_s3 + $0x570] sm:$0xff]  }
  0x78   :  { %7829 = vmatprep.subr.bf16.mxu1 %v8506_v31  ;;  %v8538_v31 = vld [vmem:[%s10948_s3 + $0x4d0] sm:$0xff]  }
  0x79   :  { %7808 = vmatpush3.bf16.msra.mxu0 %v8507_v33  ;;  %v975_v33 = vrot.slane %v967_v25, %v9064_v45 }
  0x7a   :  { %7809 = vmatprep.subr.bf16.mxu0 %v8509_v40  ;;  %v407_v40 = vcombine.low %v399_v29, %v406_v30  ;;  %v8556_v29 = vld [vmem:[%s10948_s3 + $0x5b0] sm:$0xff]  }
  0x7b   :  { %7830 = vmatpush3.bf16.msra.mxu1 %v8508_v38  ;;  %v8539_v38 = vld [vmem:[%s10948_s3 + $0x410] sm:$0xff]  }
  0x7c   :  { %7831 = vmatprep.subr.bf16.mxu1 %v8510_v42  ;;  %v158_v42 = vrot.slane %v53_v9, %v9085_v60 }
  0x7d   :  { %7810 = vmatpush3.bf16.msra.mxu0 %v8511_v43  ;;  %v162_v43 = vrot.slane %v53_v9, %v9087_v61 }
  0x7e   :  { %7811 = vmatprep.subr.bf16.mxu0 %v8513_v46  ;;  %v983_v46 = vcombine.low %v975_v33, %v982_v35  ;;  %v8557_v33 = vld [vmem:[%s10948_s3 + $0x568] sm:$0xff]  }
  0x7f   :  { %7832 = vmatpush3.bf16.msra.mxu1 %v8512_v44  ;;  %v8541_v44 = vld [vmem:[%s10948_s3 + $0x448] sm:$0xff]  }
  0x80   :  { %7833 = vmatprep.subr.bf16.mxu1 %v8514_v48  ;;  %v8540_v48 = vld [vmem:[%s10948_s3 + $0x490] sm:$0xff]   ;;  %v8558_v35 = vld [vmem:[%s10948_s3 + $0x5e8] sm:$0xff]  }
  0x81   :  { %7812 = vmatpush3.bf16.msra.mxu0 %v8515_v49  ;;  %v615_v49 = vmul.f32 %v407_v40, %v39_v28  ;;  %v8555_v28 = vld [vmem:[%s10948_s3 + $0x530] sm:$0xff]  }
  0x82   :  { %7841 = vmatprep.subr.bf16.mxu0 %v8517_v51  ;;  %v8543_v51 = vld [vmem:[%s10948_s3 + $0x408] sm:$0xff]  }
  0x83   :  { %7834 = vmatpush3.bf16.msra.mxu1 %v8516_v50  ;;  %v8542_v50 = vld [vmem:[%s10948_s3 + $0x4c8] sm:$0xff]  }
  0x84   :  { %6043 = vmatmul.mubr.bf16.vlgmr.msra.gmra.mxu0 %v1615_v53  ;;  %7863 = vmatprep.subr.bf16.mxu1 %v8518_v52  ;;  %v1191_v52 = vadd.f32 %v983_v46, %v615_v49  ;;  %v408_v53 = vcombine.low %v150_v37, %v154_v41  ;;  %v8559_v37 = vld [vmem:[%s10948_s3 + $0x528] sm:$0xff]   ;;  %v8561_v41 = vld [vmem:[%s10948_s3 + $0x560] sm:$0xff]   ;;  %v8565_v46 = vld [vmem:[%s10948_s3 + $0x558] sm:$0xff]  }
  0x85   :  { %7842 = vmatpush3.bf16.msra.mxu0 %v8519_v54  ;;  %v409_v54 = vcombine.low %v158_v42, %v162_v43  ;;  %v8562_v42 = vld [vmem:[%s10948_s3 + $0x5e0] sm:$0xff]   ;;  %v8566_v49 = vld [vmem:[%s10948_s3 + $0x5d8] sm:$0xff]  }
  0x86   :  { %6083 = vmatmul.mubr.bf16.vlgmr.msra.gmra.mxu1 %v1617_v56  ;;  %7843 = vmatprep.subr.bf16.mxu0 %v8521_v58  ;;  %v726_v56 = vrot.slane %v9499_v10, %v9069_v47  ;;  %v730_v58 = vrot.slane %v9499_v10, %v9083_v57  ;;  %vm1207_vm4 = vcmp.gt.f32.partialorder %v1191_v52, 0.0  ;;  %v8563_v43 = vld [vmem:[%s10948_s3 + $0x520] sm:$0xff]  }
  0x87   :  { %7864 = vmatpush3.bf16.msra.mxu1 %v8520_v55  ;;  %v8545_v55 = vld [vmem:[%s10948_s3 + $0x440] sm:$0xff]  }
  0x88   :  { %7865 = vmatprep.subr.bf16.mxu1 %v8522_v59  ;;  %v734_v59 = vrot.slane %v9499_v10, %v9085_v60  ;;  %v984_v9 = vcombine.low %v726_v56, %v730_v58  ;;  %v8570_v56 = vld [vmem:[%s10948_s3 + $0x5d0] sm:$0xff]  }
  0x89   :  { %7844 = vmatpush3.bf16.msra.mxu0 %v8523_v63  ;;  %v738_v63 = vrot.slane %v9499_v10, %v9087_v61 }
  0x8a   :  { %7845 = vmatprep.subr.bf16.mxu0 %v8525_v1  ;;  %v1223_v1 = vmul.f32 0.2, %v1191_v52  ;;  %v992_v23 = vrot.slane %v984_v9, %v9064_v45  ;;  %v8579_v9 = vld [vmem:[%s10948_s3 + $0x500] sm:$0xff]  }
  0x8b   :  { %7866 = vmatpush3.bf16.msra.mxu1 %v8524_v0  ;;  %v8544_v0 = vld [vmem:[%s10948_s3 + $0x488] sm:$0xff]   ;;  %v985_v10 = vcombine.low %v734_v59, %v738_v63  ;;  %v8571_v63 = vld [vmem:[%s10948_s3 + $0x510] sm:$0xff]  }
  0x8c   :  { %7867 = vmatprep.subr.bf16.mxu1 %v8526_v2  ;;  %v8546_v2 = vld [vmem:[%s10948_s3 + $0x4c0] sm:$0xff]  }
  0x8d   :  { %7846 = vmatpush3.bf16.msra.mxu0 %v8527_v3  ;;  %v8547_v3 = vld [vmem:[%s10948_s3 + $0x400] sm:$0xff]  }
  0x8e   :  { %7847 = vmatprep.subr.bf16.mxu0 %v8529_v4  ;;  %v416_v4 = vrot.slane %v408_v53, %v9064_v45 }
  0x8f   :  { %7868 = vmatpush3.bf16.msra.mxu1 %v8528_v62  ;;  %v1239_v62 = vsel %vm1207_vm4, %v1191_v52, %v1223_v1  ;;  %v8568_v52 = vld [vmem:[%s10948_s3 + $0x598] sm:$0xff]  }
  0x90   :  { %7869 = vmatprep.subr.bf16.mxu1 %v8530_v5  ;;  %v423_v5 = vrot.slane %v409_v54, %v9064_v45 }
  0x91   :  { %7848 = vmatpush3.bf16.msra.mxu0 %v8531_v6  ;;  %v1342_v6 = vrot.slane %v1239_v62, %v9064_v45 }
  0x92   :  { %7849 = vmatprep.subr.bf16.mxu0 %v8533_v8  ;;  %v8549_v8 = vld [vmem:[%s10948_s3 + $0x578] sm:$0xff]   ;;  %v424_v19 = vcombine.low %v416_v4, %v423_v5  ;;  %v8575_v5 = vld [vmem:[%s10948_s3 + $0x508] sm:$0xff]  }
  0x93   :  { %7870 = vmatpush3.bf16.msra.mxu1 %v8532_v7  ;;  %v1335_v7 = vcombine.high %v1239_v62, %v1239_v62  ;;  %v1350_v12 = vcombine.high %v1342_v6, %v1342_v6  ;;  %v1619_v15 = vpack.c.bf16 %v1342_v6, %v1342_v6  ;;  %v8574_v62 = vld [vmem:[%s10948_s3 + $0x5c8] sm:$0xff]  }
  0x94   :  { %7871 = vmatprep.subr.bf16.mxu1 %v8534_v11  ;;  %v8548_v11 = vld [vmem:[%s10948_s3 + $0x480] sm:$0xff]   ;;  %v616_v30 = vmul.f32 %v424_v19, %v40_v18  ;;  %v8576_v6 = vld [vmem:[%s10948_s3 + $0x588] sm:$0xff]   ;;  %v8585_v18 = vld [vmem:[%s10948_s3 + $0x670] sm:$0xff]  }
  0x95   :  { %7850 = vmatpush3.bf16.msra.mxu0 %v8535_v21  ;;  %v1349_v13 = vrot.slane %v1335_v7, %v9064_v45  ;;  %v1620_v20 = vpack.c.bf16 %v1350_v12, %v1350_v12  ;;  %v8577_v7 = vld [vmem:[%s10948_s3 + $0x540] sm:$0xff]   ;;  %v8582_v12 = vld [vmem:[%s10948_s3 + $0x6f8] sm:$0xff]   ;;  %v8586_v19 = vld [vmem:[%s10948_s3 + $0x6f0] sm:$0xff]  }
  0x96   :  { %7851 = vmatprep.subr.bf16.mxu0 %v8537_v24  ;;  %v999_v24 = vrot.slane %v985_v10, %v9064_v45  ;;  %v8580_v10 = vld [vmem:[%s10948_s3 + $0x580] sm:$0xff]  }
  0x97   :  { %7872 = vmatpush3.bf16.msra.mxu1 %v8536_v27  ;;  %v1351_v21 = vcombine.high %v1349_v13, %v1349_v13  ;;  %v1621_v25 = vpack.c.bf16 %v1349_v13, %v1349_v13  ;;  %6122 = vmatprep.mubr.bf16.mxu0 %v1620_v20  ;;  %v8554_v27 = vld [vmem:[%s10948_s3 + $0x5f0] sm:$0xff]  }
  0x98   :  { %7873 = vmatprep.subr.bf16.mxu1 %v8538_v31  ;;  %v1000_v31 = vcombine.low %v992_v23, %v999_v24  ;;  %v8587_v20 = vld [vmem:[%s10948_s3 + $0x630] sm:$0xff]   ;;  %v8590_v23 = vld [vmem:[%s10948_s3 + $0x6e8] sm:$0xff]  }
  0x99   :  { %7852 = vmatpush3.bf16.msra.mxu0 %v8539_v38  ;;  %v1622_v16 = vpack.c.bf16 %v1351_v21, %v1351_v21  ;;  %v8560_v38 = vld [vmem:[%s10948_s3 + $0x5a8] sm:$0xff]   ;;  %v8588_v21 = vld [vmem:[%s10948_s3 + $0x6b0] sm:$0xff]  }
  0x9a   :  { %7853 = vmatprep.subr.bf16.mxu0 %v8541_v44  ;;  %v1192_v40 = vadd.f32 %v1000_v31, %v616_v30  ;;  %v8564_v44 = vld [vmem:[%s10948_s3 + $0x5a0] sm:$0xff]   ;;  %v8591_v24 = vld [vmem:[%s10948_s3 + $0x628] sm:$0xff]   ;;  %v8598_v30 = vld [vmem:[%s10948_s3 + $0x6d8] sm:$0xff]  }
  0x9b   :  { %7874 = vmatpush3.bf16.msra.mxu1 %v8540_v48  ;;  %6162 = vmatprep.mubr.bf16.mxu1 %v1622_v16  ;;  %v8594_v16 = vld [vmem:[%s10948_s3 + $0x6e0] sm:$0xff]   ;;  %v54_v31 = vld [vmem:[%s10949_s1 + $0x18] sm:$0xff] }
  0x9c   :  { %7875 = vmatprep.subr.bf16.mxu1 %v8542_v50  ;;  %vm1208_vm5 = vcmp.gt.f32.partialorder %v1192_v40, 0.0  ;;  %v1224_v48 = vmul.f32 0.2, %v1192_v40  ;;  %v8567_v50 = vld [vmem:[%s10948_s3 + $0x518] sm:$0xff]  }
  0x9d   :  { %7854 = vmatpush3.bf16.msra.mxu0 %v8543_v51 }
  0x9e   :  { %7855 = vmatprep.subr.bf16.mxu0 %v8545_v55  ;;  %v1240_v51 = vsel %vm1208_vm5, %v1192_v40, %v1224_v48  ;;  %v8569_v55 = vld [vmem:[%s10948_s3 + $0x550] sm:$0xff]   ;;  %v8599_v40 = vld [vmem:[%s10948_s3 + $0x618] sm:$0xff]  }
  0x9f   :  { %7876 = vmatpush3.bf16.msra.mxu1 %v8544_v0  ;;  %v1359_v53 = vrot.slane %v1240_v51, %v9064_v45  ;;  %v1352_v54 = vcombine.high %v1240_v51, %v1240_v51  ;;  %v8572_v0 = vld [vmem:[%s10948_s3 + $0x590] sm:$0xff]  }
  0xa0   :  { %7877 = vmatprep.subr.bf16.mxu1 %v8546_v2 }
  0xa1   :  { %7856 = vmatpush3.bf16.msra.mxu0 %v8547_v3  ;;  %v1367_v58 = vcombine.high %v1359_v53, %v1359_v53  ;;  %v1366_v59 = vrot.slane %v1352_v54, %v9064_v45  ;;  %v8573_v3 = vld [vmem:[%s10948_s3 + $0x548] sm:$0xff]   ;;  %v1623_v13 = vpack.c.bf16 %v1359_v53, %v1359_v53  ;;  %v8600_v53 = vld [vmem:[%s10948_s3 + $0x698] sm:$0xff]  }
  0xa2   :  { %7885 = vmatprep.subr.bf16.mxu0 %v8549_v8  ;;  %v8578_v8 = vld [vmem:[%s10948_s3 + $0x5c0] sm:$0xff]  }
  0xa3   :  { %7878 = vmatpush3.bf16.msra.mxu1 %v8548_v11  ;;  %v1624_v1 = vpack.c.bf16 %v1367_v58, %v1367_v58  ;;  %v1368_v2 = vcombine.high %v1366_v59, %v1366_v59  ;;  %v8581_v11 = vld [vmem:[%s10948_s3 + $0x678] sm:$0xff]  }
  0xa4   :  { %7907 = vmatprep.subr.bf16.mxu1 %v8550_v14  ;;  %6123 = vmatmul.mubr.bf16.vlgmr.msra.gmra.mxu0 %v1619_v15  ;;  %v8583_v14 = vld [vmem:[%s10948_s3 + $0x638] sm:$0xff]  }
  0xa5   :  { %7886 = vmatpush3.bf16.msra.mxu0 %v8551_v17  ;;  %6202 = vmatprep.mubr.bf16.mxu0 %v1624_v1  ;;  %v1626_v4 = vpack.c.bf16 %v1368_v2, %v1368_v2  ;;  %v8584_v15 = vld [vmem:[%s10948_s3 + $0x6b8] sm:$0xff]   ;;  %v1625_v17 = vpack.c.bf16 %v1366_v59, %v1366_v59  ;;  %v182_v2 = vrot.slane %v54_v31, %v9069_v47 }
  0xa6   :  { %6163 = vmatmul.mubr.bf16.vlgmr.msra.gmra.mxu1 %v1621_v25  ;;  %7887 = vmatprep.subr.bf16.mxu0 %v8553_v26  ;;  %v8592_v25 = vld [vmem:[%s10948_s3 + $0x6a8] sm:$0xff]   ;;  %v8593_v26 = vld [vmem:[%s10948_s3 + $0x660] sm:$0xff]  }
  0xa7   :  { %7908 = vmatpush3.bf16.msra.mxu1 %v8552_v22  ;;  %6242 = vmatprep.mubr.bf16.mxu1 %v1626_v4  ;;  %v8589_v22 = vld [vmem:[%s10948_s3 + $0x668] sm:$0xff]   ;;  %v186_v4 = vrot.slane %v54_v31, %v9083_v57 }
  0xa8   :  { %7909 = vmatprep.subr.bf16.mxu1 %v8554_v27  ;;  %v8595_v27 = vld [vmem:[%s10948_s3 + $0x620] sm:$0xff]  }
  0xa9   :  { %7888 = vmatpush3.bf16.msra.mxu0 %v8555_v28  ;;  %v8596_v28 = vld [vmem:[%s10948_s3 + $0x6a0] sm:$0xff]  }
  0xaa   :  { %7889 = vmatprep.subr.bf16.mxu0 %v8557_v33  ;;  %v166_v33 = vrot.slane %v54_v31, %v9036_v32 }
  0xab   :  { %7910 = vmatpush3.bf16.msra.mxu1 %v8556_v29  ;;  %v8597_v29 = vld [vmem:[%s10948_s3 + $0x658] sm:$0xff]  }
  0xac   :  { %7911 = vmatprep.subr.bf16.mxu1 %v8558_v35  ;;  %v170_v35 = vrot.slane %v54_v31, %v9041_v34 }
  0xad   :  { %7890 = vmatpush3.bf16.msra.mxu0 %v8559_v37  ;;  %v174_v37 = vrot.slane %v54_v31, %v9046_v36 }
  0xae   :  { %7891 = vmatprep.subr.bf16.mxu0 %v8561_v41  ;;  %v178_v41 = vrot.slane %v54_v31, %v9051_v39  ;;  %v425_v48 = vcombine.low %v166_v33, %v170_v35  ;;  %v8614_v35 = vld [vmem:[%s10948_s3 + $0x7f8] sm:$0xff]  }
  0xaf   :  { %7912 = vmatpush3.bf16.msra.mxu1 %v8560_v38  ;;  %v9748_v38 = vld [vmem:[%s10950_s2 + $0x18] sm:$0xff] }
  0xb0   :  { %7913 = vmatprep.subr.bf16.mxu1 %v8562_v42  ;;  %v742_v42 = vrot.slane %v9748_v38, %v9036_v32  ;;  %v426_v51 = vcombine.low %v174_v37, %v178_v41  ;;  %v433_v54 = vrot.slane %v425_v48, %v9064_v45 }
  0xb1   :  { %7892 = vmatpush3.bf16.msra.mxu0 %v8563_v43  ;;  %v746_v43 = vrot.slane %v9748_v38, %v9041_v34 }
  0xb2   :  { %7893 = vmatprep.subr.bf16.mxu0 %v8565_v46  ;;  %v9763_v46 = vld [vmem:[%s10951_s0 + $0x18] sm:$0xff]  ;;  %v440_v59 = vrot.slane %v426_v51, %v9064_v45  ;;  %v7145_v51 = vld [vmem:[%s10952_s4] ss:$0 sm:$0xff] }
  0xb3   :  { %7914 = vmatpush3.bf16.msra.mxu1 %v8564_v44  ;;  %v750_v44 = vrot.slane %v9748_v38, %v9046_v36  ;;  %v41_v58 = vunpack.c.l.bf16 %v9763_v46 }
  0xb4   :  { %7915 = vmatprep.subr.bf16.mxu1 %v8566_v49  ;;  %v754_v49 = vrot.slane %v9748_v38, %v9051_v39 }
  0xb5   :  { %7894 = vmatpush3.bf16.msra.mxu0 %v8567_v50  ;;  %v8601_v50 = vld [vmem:[%s10948_s3 + $0x650] sm:$0xff]  }
  0xb6   :  { %7895 = vmatprep.subr.bf16.mxu0 %v8569_v55  ;;  %v1002_v55 = vcombine.low %v750_v44, %v754_v49 }
  0xb7   :  { %7916 = vmatpush3.bf16.msra.mxu1 %v8568_v52  ;;  %v1001_v52 = vcombine.low %v742_v42, %v746_v43  ;;  %v8615_v42 = vld [vmem:[%s10948_s3 + $0x738] sm:$0xff]   ;;  %v42_v43 = vunpack.c.h.bf16 %v9763_v46 }
  0xb8   :  { %7917 = vmatprep.subr.bf16.mxu1 %v8570_v56  ;;  %v8602_v56 = vld [vmem:[%s10948_s3 + $0x6d0] sm:$0xff]   ;;  %v1016_v1 = vrot.slane %v1002_v55, %v9064_v45 }
  0xb9   :  { %7896 = vmatpush3.bf16.msra.mxu0 %v8571_v63  ;;  %v1009_v63 = vrot.slane %v1001_v52, %v9064_v45 }
  0xba   :  { %7897 = vmatprep.subr.bf16.mxu0 %v8573_v3  ;;  %v8605_v3 = vld [vmem:[%s10948_s3 + $0x648] sm:$0xff]  }
  0xbb   :  { %7918 = vmatpush3.bf16.msra.mxu1 %v8572_v0  ;;  %v8603_v0 = vld [vmem:[%s10948_s3 + $0x610] sm:$0xff]  }
  0xbc   :  { %7919 = vmatprep.subr.bf16.mxu1 %v8574_v62  ;;  %v441_v62 = vcombine.low %v433_v54, %v440_v59 }
  0xbd   :  { %7898 = vmatpush3.bf16.msra.mxu0 %v8575_v5  ;;  %v190_v5 = vrot.slane %v54_v31, %v9085_v60 }
  0xbe   :  { %7899 = vmatprep.subr.bf16.mxu0 %v8577_v7  ;;  %v8604_v7 = vld [vmem:[%s10948_s3 + $0x690] sm:$0xff]  }
  0xbf   :  { %7920 = vmatpush3.bf16.msra.mxu1 %v8576_v6  ;;  %v194_v6 = vrot.slane %v54_v31, %v9087_v61 }
  0xc0   :  { %7921 = vmatprep.subr.bf16.mxu1 %v8578_v8  ;;  %v1017_v8 = vcombine.low %v1009_v63, %v1016_v1  ;;  %v8618_v63 = vld [vmem:[%s10948_s3 + $0x7f0] sm:$0xff]  }
  0xc1   :  { %7900 = vmatpush3.bf16.msra.mxu0 %v8579_v9  ;;  %v8606_v9 = vld [vmem:[%s10948_s3 + $0x6c8] sm:$0xff]  }
  0xc2   :  { %7929 = vmatprep.subr.bf16.mxu0 %v8581_v11  ;;  %v8607_v11 = vld [vmem:[%s10948_s3 + $0x608] sm:$0xff]  }
  0xc3   :  { %7922 = vmatpush3.bf16.msra.mxu1 %v8580_v10  ;;  %v617_v10 = vmul.f32 %v441_v62, %v41_v58 }
  0xc4   :  { %6203 = vmatmul.mubr.bf16.vlgmr.msra.gmra.mxu0 %v1623_v13  ;;  %7951 = vmatprep.subr.bf16.mxu1 %v8582_v12  ;;  %v8609_v12 = vld [vmem:[%s10948_s3 + $0x640] sm:$0xff]  }
  0xc5   :  { %7930 = vmatpush3.bf16.msra.mxu0 %v8583_v14  ;;  %v1193_v13 = vadd.f32 %v1017_v8, %v617_v10  ;;  %v442_v14 = vcombine.low %v182_v2, %v186_v4  ;;  %v8619_v2 = vld [vmem:[%s10948_s3 + $0x730] sm:$0xff]  }
  0xc6   :  { %6243 = vmatmul.mubr.bf16.vlgmr.msra.gmra.mxu1 %v1625_v17  ;;  %7931 = vmatprep.subr.bf16.mxu0 %v8585_v18  ;;  %v8608_v17 = vld [vmem:[%s10948_s3 + $0x688] sm:$0xff]   ;;  %v758_v18 = vrot.slane %v9748_v38, %v9069_v47 }
  0xc7   :  { %7952 = vmatpush3.bf16.msra.mxu1 %v8584_v15  ;;  %v443_v15 = vcombine.low %v190_v5, %v194_v6  ;;  %vm1209_vm6 = vcmp.gt.f32.partialorder %v1193_v13, 0.0  ;;  %v8620_v5 = vld [vmem:[%s10948_s3 + $0x7b0] sm:$0xff]  }
  0xc8   :  { %7953 = vmatprep.subr.bf16.mxu1 %v8586_v19  ;;  %v762_v19 = vrot.slane %v9748_v38, %v9083_v57 }
  0xc9   :  { %7932 = vmatpush3.bf16.msra.mxu0 %v8587_v20  ;;  %v766_v20 = vrot.slane %v9748_v38, %v9085_v60 }
  0xca   :  { %7933 = vmatprep.subr.bf16.mxu0 %v8589_v22  ;;  %v8610_v22 = vld [vmem:[%s10948_s3 + $0x6c0] sm:$0xff]   ;;  %v1018_v31 = vcombine.low %v758_v18, %v762_v19 }
  0xcb   :  { %7954 = vmatpush3.bf16.msra.mxu1 %v8588_v21  ;;  %v770_v21 = vrot.slane %v9748_v38, %v9087_v61  ;;  %v8626_v18 = vld [vmem:[%s10948_s3 + $0x7e0] sm:$0xff]  }
  0xcc   :  { %7955 = vmatprep.subr.bf16.mxu1 %v8590_v23  ;;  %v1225_v23 = vmul.f32 0.2, %v1193_v13  ;;  %v1026_v52 = vrot.slane %v1018_v31, %v9064_v45  ;;  %v8627_v19 = vld [vmem:[%s10948_s3 + $0x720] sm:$0xff]  }
  0xcd   :  { %7934 = vmatpush3.bf16.msra.mxu0 %v8591_v24  ;;  %v8611_v24 = vld [vmem:[%s10948_s3 + $0x600] sm:$0xff]   ;;  %v1019_v33 = vcombine.low %v766_v20, %v770_v21  ;;  %v8629_v21 = vld [vmem:[%s10948_s3 + $0x758] sm:$0xff]  }
  0xce   :  { %7935 = vmatprep.subr.bf16.mxu0 %v8593_v26  ;;  %v8613_v26 = vld [vmem:[%s10948_s3 + $0x778] sm:$0xff]   ;;  %v8628_v20 = vld [vmem:[%s10948_s3 + $0x7a0] sm:$0xff]  }
  0xcf   :  { %7956 = vmatpush3.bf16.msra.mxu1 %v8592_v25  ;;  %v1241_v25 = vsel %vm1209_vm6, %v1193_v13, %v1225_v23  ;;  %v8623_v13 = vld [vmem:[%s10948_s3 + $0x728] sm:$0xff]   ;;  %v8630_v23 = vld [vmem:[%s10948_s3 + $0x7d8] sm:$0xff]  }
  0xd0   :  { %7957 = vmatprep.subr.bf16.mxu1 %v8594_v16  ;;  %v450_v16 = vrot.slane %v442_v14, %v9064_v45  ;;  %v8624_v14 = vld [vmem:[%s10948_s3 + $0x7a8] sm:$0xff]  }
  0xd1   :  { %7936 = vmatpush3.bf16.msra.mxu0 %v8595_v27  ;;  %v457_v27 = vrot.slane %v443_v15, %v9064_v45 }
  0xd2   :  { %7937 = vmatprep.subr.bf16.mxu0 %v8597_v29  ;;  %v1376_v29 = vrot.slane %v1241_v25, %v9064_v45 }
  0xd3   :  { %7958 = vmatpush3.bf16.msra.mxu1 %v8596_v28  ;;  %v8612_v28 = vld [vmem:[%s10948_s3 + $0x680] sm:$0xff]   ;;  %v458_v44 = vcombine.low %v450_v16, %v457_v27 }
  0xd4   :  { %7959 = vmatprep.subr.bf16.mxu1 %v8598_v30  ;;  %v1369_v30 = vcombine.high %v1241_v25, %v1241_v25  ;;  %v1384_v37 = vcombine.high %v1376_v29, %v1376_v29  ;;  %v1627_v41 = vpack.c.bf16 %v1376_v29, %v1376_v29  ;;  %v8634_v29 = vld [vmem:[%s10948_s3 + $0x7d0] sm:$0xff]  }
  0xd5   :  { %7938 = vmatpush3.bf16.msra.mxu0 %v8599_v40 }
  0xd6   :  { %7939 = vmatprep.subr.bf16.mxu0 %v8601_v50  ;;  %v1383_v38 = vrot.slane %v1369_v30, %v9064_v45  ;;  %v1628_v48 = vpack.c.bf16 %v1384_v37, %v1384_v37  ;;  %v8616_v50 = vld [vmem:[%s10948_s3 + $0x7b8] sm:$0xff]  }
  0xd7   :  { %7960 = vmatpush3.bf16.msra.mxu1 %v8600_v53  ;;  %v1033_v53 = vrot.slane %v1019_v33, %v9064_v45  ;;  %v8635_v33 = vld [vmem:[%s10948_s3 + $0x710] sm:$0xff]  }
  0xd8   :  { %7961 = vmatprep.subr.bf16.mxu1 %v8602_v56  ;;  %v1385_v49 = vcombine.high %v1383_v38, %v1383_v38  ;;  %v1629_v55 = vpack.c.bf16 %v1383_v38, %v1383_v38  ;;  %v8617_v56 = vld [vmem:[%s10948_s3 + $0x770] sm:$0xff]   ;;  %6282 = vmatprep.mubr.bf16.mxu0 %v1628_v48  ;;  %v8641_v48 = vld [vmem:[%s10948_s3 + $0x740] sm:$0xff]  }
  0xd9   :  { %7940 = vmatpush3.bf16.msra.mxu0 %v8603_v0  ;;  %v1034_v6 = vcombine.low %v1026_v52, %v1033_v53  ;;  %v8645_v52 = vld [vmem:[%s10948_s3 + $0x878] sm:$0xff]  }
  0xda   :  { %7941 = vmatprep.subr.bf16.mxu0 %v8605_v3  ;;  %v1630_v58 = vpack.c.bf16 %v1385_v49, %v1385_v49  ;;  %v618_v3 = vmul.f32 %v458_v44, %v42_v43  ;;  %v8639_v43 = vld [vmem:[%s10948_s3 + $0x708] sm:$0xff]   ;;  %v8642_v49 = vld [vmem:[%s10948_s3 + $0x7c0] sm:$0xff]   ;;  %v8646_v53 = vld [vmem:[%s10948_s3 + $0x8f8] sm:$0xff]  }
  0xdb   :  { %7962 = vmatpush3.bf16.msra.mxu1 %v8604_v7  ;;  %v8640_v44 = vld [vmem:[%s10948_s3 + $0x788] sm:$0xff]  }
  0xdc   :  { %7963 = vmatprep.subr.bf16.mxu1 %v8606_v9  ;;  %6322 = vmatprep.mubr.bf16.mxu1 %v1630_v58  ;;  %v8621_v9 = vld [vmem:[%s10948_s3 + $0x768] sm:$0xff]   ;;  %v1194_v15 = vadd.f32 %v1034_v6, %v618_v3 }
  0xdd   :  { %7942 = vmatpush3.bf16.msra.mxu0 %v8607_v11  ;;  %v8622_v11 = vld [vmem:[%s10948_s3 + $0x7e8] sm:$0xff]  }
  0xde   :  { %7943 = vmatprep.subr.bf16.mxu0 %v8609_v12  ;;  %vm1210_vm7 = vcmp.gt.f32.partialorder %v1194_v15, 0.0 }
  0xdf   :  { %7964 = vmatpush3.bf16.msra.mxu1 %v8608_v17  ;;  %v8625_v17 = vld [vmem:[%s10948_s3 + $0x760] sm:$0xff]  }
  0xe0   :  { %7965 = vmatprep.subr.bf16.mxu1 %v8610_v22  ;;  %v1226_v22 = vmul.f32 0.2, %v1194_v15 }
  0xe1   :  { %7944 = vmatpush3.bf16.msra.mxu0 %v8611_v24  ;;  %v8631_v24 = vld [vmem:[%s10948_s3 + $0x718] sm:$0xff]  }
  0xe2   :  { %7973 = vmatprep.subr.bf16.mxu0 %v8613_v26  ;;  %v1242_v25 = vsel %vm1210_vm7, %v1194_v15, %v1226_v22  ;;  %v8632_v26 = vld [vmem:[%s10948_s3 + $0x798] sm:$0xff]   ;;  %v8656_v15 = vld [vmem:[%s10948_s3 + $0x8a8] sm:$0xff]  }
  0xe3   :  { %7966 = vmatpush3.bf16.msra.mxu1 %v8612_v28  ;;  %v1393_v16 = vrot.slane %v1242_v25, %v9064_v45  ;;  %v1386_v27 = vcombine.high %v1242_v25, %v1242_v25  ;;  %v8633_v28 = vld [vmem:[%s10948_s3 + $0x750] sm:$0xff]   ;;  %v8662_v22 = vld [vmem:[%s10948_s3 + $0x8d8] sm:$0xff]  }
  0xe4   :  { %v7681_v40 = vpop.f32.mrf.mxu0  ;;  %7995 = vmatprep.subr.bf16.mxu1 %v8614_v35  ;;  %6283 = vmatmul.mubr.bf16.vlgmr.msra.gmra.mxu0 %v1627_v41  ;;  %v8636_v35 = vld [vmem:[%s10948_s3 + $0x790] sm:$0xff]   ;;  %v8638_v41 = vld [vmem:[%s10948_s3 + $0x7c8] sm:$0xff]  }
  0xe5   :  { %7974 = vmatpush3.bf16.msra.mxu0 %v8615_v42  ;;  %v1401_v30 = vcombine.high %v1393_v16, %v1393_v16  ;;  %v1400_v31 = vrot.slane %v1386_v27, %v9064_v45  ;;  %v8663_v27 = vld [vmem:[%s10948_s3 + $0x818] sm:$0xff]  }
  0xe6   :  { %v7703_v54 = vpop.f32.mrf.mxu1  ;;  %v7682_v46 = vpop.f32.mrf.mxu0  ;;  %6323 = vmatmul.mubr.bf16.vlgmr.msra.gmra.mxu1 %v1629_v55  ;;  %7975 = vmatprep.subr.bf16.mxu0 %v8617_v56  ;;  %v1631_v55 = vpack.c.bf16 %v1393_v16, %v1393_v16  ;;  %v8648_v56 = vld [vmem:[%s10948_s3 + $0x8b8] sm:$0xff]   ;;  %v9999_v16 = vld [vmem:[%s10950_s2 + $0x20] sm:$0xff] }
  0xe7   :  { %v7683_v59 = vadd.f32 %v7682_v46, %v7681_v40  ;;  %7996 = vmatpush3.bf16.msra.mxu1 %v8616_v50  ;;  %v1632_v37 = vpack.c.bf16 %v1401_v30, %v1401_v30  ;;  %v1402_v38 = vcombine.high %v1400_v31, %v1400_v31  ;;  %v8637_v40 = vld [vmem:[%s10948_s3 + $0x748] sm:$0xff]   ;;  %v8643_v50 = vld [vmem:[%s10948_s3 + $0x700] sm:$0xff]   ;;  %v8647_v46 = vld [vmem:[%s10948_s3 + $0x838] sm:$0xff]   ;;  %v778_v30 = vrot.slane %v9999_v16, %v9041_v34 }
  0xe8   :  { %v7704_v0 = vpop.f32.mrf.mxu1  ;;  %v7684_v1 = vpop.f32.mrf.mxu0  ;;  %7997 = vmatprep.subr.bf16.mxu1 %v8618_v63 }
  0xe9   :  { %v5805_v62 = vadd.f32 %v7683_v59, %v7145_v51  ;;  %v7705_v4 = vadd.f32 %v7704_v0, %v7703_v54  ;;  %7976 = vmatpush3.bf16.msra.mxu0 %v8619_v2  ;;  %6362 = vmatprep.mubr.bf16.mxu0 %v1632_v37  ;;  %v1634_v42 = vpack.c.bf16 %v1402_v38, %v1402_v38  ;;  %v8644_v51 = vld [vmem:[%s10948_s3 + $0x780] sm:$0xff]   ;;  %v8649_v0 = vld [vmem:[%s10948_s3 + $0x870] sm:$0xff]  }
  0xea   :  { %v7706_v7 = vpop.f32.mrf.mxu1  ;;  %v7685_v8 = vpop.f32.mrf.mxu0  ;;  %7977 = vmatprep.subr.bf16.mxu0 %v8621_v9  ;;  %v1633_v59 = vpack.c.bf16 %v1400_v31, %v1400_v31  ;;  %v8650_v2 = vld [vmem:[%s10948_s3 + $0x8f0] sm:$0xff]   ;;  %v782_v31 = vrot.slane %v9999_v16, %v9046_v36  ;;  %v786_v37 = vrot.slane %v9999_v16, %v9051_v39 }
  0xeb   :  { %v9860_v10 = vadd.f32 %v7705_v4, %v5805_v62  ;;  %7998 = vmatpush3.bf16.msra.mxu1 %v8620_v5  ;;  %6402 = vmatprep.mubr.bf16.mxu1 %v1634_v42  ;;  %v8651_v4 = vld [vmem:[%s10948_s3 + $0x830] sm:$0xff]   ;;  %v8664_v42 = vld [vmem:[%s10948_s3 + $0x898] sm:$0xff]  }
  0xec   :  { %v7707_v12 = vpop.f32.mrf.mxu1  ;;  %7999 = vmatprep.subr.bf16.mxu1 %v8622_v11  ;;  %v8652_v7 = vld [vmem:[%s10948_s3 + $0x8b0] sm:$0xff]   ;;  %v8653_v11 = vld [vmem:[%s10948_s3 + $0x868] sm:$0xff]  }
  0xed   :  { %7978 = vmatpush3.bf16.msra.mxu0 %v8623_v13  ;;  %v8665_v38 = vld [vmem:[%s10948_s3 + $0x850] sm:$0xff]  }
  0xee   :  { %7979 = vmatprep.subr.bf16.mxu0 %v8625_v17  ;;  %v8657_v17 = vld [vmem:[%s10948_s3 + $0x860] sm:$0xff]  }
  0xef   :  { %8000 = vmatpush3.bf16.msra.mxu1 %v8624_v14  ;;  %v8655_v14 = vld [vmem:[%s10948_s3 + $0x828] sm:$0xff]  }
  0xf0   :  { %8001 = vmatprep.subr.bf16.mxu1 %v8626_v18  ;;  %v8658_v18 = vld [vmem:[%s10948_s3 + $0x8e0] sm:$0xff]  }
  0xf1   :  { %7980 = vmatpush3.bf16.msra.mxu0 %v8627_v19  ;;  %v8659_v19 = vld [vmem:[%s10948_s3 + $0x820] sm:$0xff]  }
  0xf2   :  { %7981 = vmatprep.subr.bf16.mxu0 %v8629_v21  ;;  %v8661_v21 = vld [vmem:[%s10948_s3 + $0x858] sm:$0xff]  }
  0xf3   :  { %8002 = vmatpush3.bf16.msra.mxu1 %v8628_v20  ;;  %v8660_v20 = vld [vmem:[%s10948_s3 + $0x8a0] sm:$0xff]  }
  0xf4   :  { %8003 = vmatprep.subr.bf16.mxu1 %v8630_v23  ;;  %v55_v23 = vld [vmem:[%s10949_s1 + $0x20] sm:$0xff] }
  0xf5   :  { %7982 = vmatpush3.bf16.msra.mxu0 %v8631_v24  ;;  %v198_v24 = vrot.slane %v55_v23, %v9036_v32  ;;  %v202_v25 = vrot.slane %v55_v23, %v9041_v34 }
  0xf6   :  { %7983 = vmatprep.subr.bf16.mxu0 %v8633_v28  ;;  %v210_v28 = vrot.slane %v55_v23, %v9051_v39 }
  0xf7   :  { %8004 = vmatpush3.bf16.msra.mxu1 %v8632_v26  ;;  %v206_v26 = vrot.slane %v55_v23, %v9046_v36 }
  0xf8   :  { %8005 = vmatprep.subr.bf16.mxu1 %v8634_v29  ;;  %v774_v29 = vrot.slane %v9999_v16, %v9036_v32 }
  0xf9   :  { %7984 = vmatpush3.bf16.msra.mxu0 %v8635_v33  ;;  %v10014_v33 = vld [vmem:[%s10951_s0 + $0x20] sm:$0xff] }
  0xfa   :  { %7985 = vmatprep.subr.bf16.mxu0 %v8637_v40  ;;  %v460_v40 = vcombine.low %v206_v26, %v210_v28  ;;  %v8678_v26 = vld [vmem:[%s10948_s3 + $0x9f8] sm:$0xff]  }
  0xfb   :  { %8006 = vmatpush3.bf16.msra.mxu1 %v8636_v35  ;;  %v459_v35 = vcombine.low %v198_v24, %v202_v25 }
  0xfc   :  { %8007 = vmatprep.subr.bf16.mxu1 %v8638_v41  ;;  %v1035_v41 = vcombine.low %v774_v29, %v778_v30  ;;  %v44_v29 = vunpack.c.h.bf16 %v10014_v33 }
  0xfd   :  { %7986 = vmatpush3.bf16.msra.mxu0 %v8639_v43  ;;  %v467_v43 = vrot.slane %v459_v35, %v9064_v45 }
  0xfe   :  { %7987 = vmatprep.subr.bf16.mxu0 %v8641_v48  ;;  %v8666_v48 = vld [vmem:[%s10948_s3 + $0x8d0] sm:$0xff]  }
  0xff   :  { %8008 = vmatpush3.bf16.msra.mxu1 %v8640_v44  ;;  %v1036_v44 = vcombine.low %v782_v31, %v786_v37  ;;  %v8679_v31 = vld [vmem:[%s10948_s3 + $0x938] sm:$0xff]  }
 0x100   :  { %8009 = vmatprep.subr.bf16.mxu1 %v8642_v49  ;;  %v43_v49 = vunpack.c.l.bf16 %v10014_v33 }
 0x101   :  { %7988 = vmatpush3.bf16.msra.mxu0 %v8643_v50  ;;  %v474_v50 = vrot.slane %v460_v40, %v9064_v45 }
 0x102   :  { %8017 = vmatprep.subr.bf16.mxu0 %v8645_v52  ;;  %v8667_v52 = vld [vmem:[%s10948_s3 + $0x810] sm:$0xff]  }
 0x103   :  { %8010 = vmatpush3.bf16.msra.mxu1 %v8644_v51  ;;  %v1043_v51 = vrot.slane %v1035_v41, %v9064_v45 }
 0x104   :  { %v7725_v54 = vpop.f32.mrf.mxu0  ;;  %6363 = vmatmul.mubr.bf16.vlgmr.msra.gmra.mxu0 %v1631_v55  ;;  %8039 = vmatprep.subr.bf16.mxu1 %v8646_v53  ;;  %v1050_v53 = vrot.slane %v1036_v44, %v9064_v45  ;;  %v218_v55 = vrot.slane %v55_v23, %v9083_v57 }
 0x105   :  { %8018 = vmatpush3.bf16.msra.mxu0 %v8647_v46  ;;  %v8669_v46 = vld [vmem:[%s10948_s3 + $0x848] sm:$0xff]  }
 0x106   :  { %v7747_v58 = vpop.f32.mrf.mxu1  ;;  %v7726_v63 = vpop.f32.mrf.mxu0  ;;  %6403 = vmatmul.mubr.bf16.vlgmr.msra.gmra.mxu1 %v1633_v59  ;;  %8019 = vmatprep.subr.bf16.mxu0 %v8649_v0  ;;  %v226_v59 = vrot.slane %v55_v23, %v9087_v61  ;;  %v1051_v0 = vcombine.low %v1043_v51, %v1050_v53  ;;  %v8682_v53 = vld [vmem:[%s10948_s3 + $0x9f0] sm:$0xff]  }
 0x107   :  { %v7727_v1 = vadd.f32 %v7726_v63, %v7725_v54  ;;  %8040 = vmatpush3.bf16.msra.mxu1 %v8648_v56  ;;  %v214_v54 = vrot.slane %v55_v23, %v9069_v47  ;;  %v475_v56 = vcombine.low %v467_v43, %v474_v50  ;;  %v8668_v63 = vld [vmem:[%s10948_s3 + $0x890] sm:$0xff]   ;;  %v8680_v43 = vld [vmem:[%s10948_s3 + $0x9b8] sm:$0xff]  }
 0x108   :  { %v7748_v3 = vpop.f32.mrf.mxu1  ;;  %v7728_v62 = vpop.f32.mrf.mxu0  ;;  %8041 = vmatprep.subr.bf16.mxu1 %v8650_v2 }
 0x109   :  { %v5885_v5 = vadd.f32 %v7727_v1, %v9860_v10  ;;  %v7749_v6 = vadd.f32 %v7748_v3, %v7747_v58  ;;  %v8654_v10 = vld [vmem:[%s10948_s3 + $0x8e8] sm:$0xff]   ;;  %8020 = vmatpush3.bf16.msra.mxu0 %v8651_v4  ;;  %v222_v58 = vrot.slane %v55_v23, %v9085_v60  ;;  %v619_v2 = vmul.f32 %v475_v56, %v43_v49  ;;  %v8676_v23 = vld [vmem:[%s10948_s3 + $0x880] sm:$0xff]   ;;  %v8681_v49 = vld [vmem:[%s10948_s3 + $0x970] sm:$0xff]  }
 0x10a   :  { %v7750_v8 = vpop.f32.mrf.mxu1  ;;  %v7729_v9 = vpop.f32.mrf.mxu0  ;;  %8021 = vmatprep.subr.bf16.mxu0 %v8653_v11  ;;  %v8670_v1 = vld [vmem:[%s10948_s3 + $0x8c8] sm:$0xff]   ;;  %v476_v62 = vcombine.low %v214_v54, %v218_v55  ;;  %v790_v4 = vrot.slane %v9999_v16, %v9069_v47  ;;  %v802_v11 = vrot.slane %v9999_v16, %v9087_v61 }
 0x10b   :  { %v9961_v12 = vadd.f32 %v7749_v6, %v5885_v5  ;;  %8042 = vmatpush3.bf16.msra.mxu1 %v8652_v7  ;;  %v8671_v3 = vld [vmem:[%s10948_s3 + $0x808] sm:$0xff]   ;;  %v794_v5 = vrot.slane %v9999_v16, %v9083_v57  ;;  %v8673_v6 = vld [vmem:[%s10948_s3 + $0x840] sm:$0xff]   ;;  %v1195_v7 = vadd.f32 %v1051_v0, %v619_v2  ;;  %v477_v8 = vcombine.low %v222_v58, %v226_v59 }
 0x10c   :  { %v7751_v13 = vpop.f32.mrf.mxu1  ;;  %8043 = vmatprep.subr.bf16.mxu1 %v8654_v10  ;;  %v798_v9 = vrot.slane %v9999_v16, %v9085_v60  ;;  %v8672_v10 = vld [vmem:[%s10948_s3 + $0x888] sm:$0xff]  }
 0x10d   :  { %8022 = vmatpush3.bf16.msra.mxu0 %v8655_v14  ;;  %v8674_v13 = vld [vmem:[%s10948_s3 + $0x8c0] sm:$0xff]   ;;  %vm1211_vm8 = vcmp.gt.f32.partialorder %v1195_v7, 0.0  ;;  %v1227_v14 = vmul.f32 0.2, %v1195_v7 }
 0x10e   :  { %8023 = vmatprep.subr.bf16.mxu0 %v8657_v17  ;;  %v484_v17 = vrot.slane %v476_v62, %v9064_v45  ;;  %v8687_v62 = vld [vmem:[%s10948_s3 + $0x928] sm:$0xff]  }
 0x10f   :  { %8044 = vmatpush3.bf16.msra.mxu1 %v8656_v15  ;;  %v8675_v15 = vld [vmem:[%s10948_s3 + $0x800] sm:$0xff]  }
 0x110   :  { %8045 = vmatprep.subr.bf16.mxu1 %v8658_v18  ;;  %v1243_v18 = vsel %vm1211_vm8, %v1195_v7, %v1227_v14  ;;  %v8690_v7 = vld [vmem:[%s10948_s3 + $0x9e0] sm:$0xff]  }
 0x111   :  { %8024 = vmatpush3.bf16.msra.mxu0 %v8659_v19  ;;  %v8677_v19 = vld [vmem:[%s10948_s3 + $0x978] sm:$0xff]   ;;  %v1410_v24 = vrot.slane %v1243_v18, %v9064_v45  ;;  %v1403_v25 = vcombine.high %v1243_v18, %v1243_v18 }
 0x112   :  { %8025 = vmatprep.subr.bf16.mxu0 %v8661_v21  ;;  %v1052_v21 = vcombine.low %v790_v4, %v794_v5  ;;  %v8688_v5 = vld [vmem:[%s10948_s3 + $0x9a8] sm:$0xff]  }
 0x113   :  { %8046 = vmatpush3.bf16.msra.mxu1 %v8660_v20  ;;  %v491_v20 = vrot.slane %v477_v8, %v9064_v45  ;;  %v1418_v16 = vcombine.high %v1410_v24, %v1410_v24  ;;  %v1635_v30 = vpack.c.bf16 %v1410_v24, %v1410_v24  ;;  %v8691_v8 = vld [vmem:[%s10948_s3 + $0x920] sm:$0xff]   ;;  %v8699_v24 = vld [vmem:[%s10948_s3 + $0x910] sm:$0xff]  }
 0x114   :  { %8047 = vmatprep.subr.bf16.mxu1 %v8662_v22  ;;  %v1053_v22 = vcombine.low %v798_v9, %v802_v11  ;;  %v1060_v37 = vrot.slane %v1052_v21, %v9064_v45  ;;  %v8692_v9 = vld [vmem:[%s10948_s3 + $0x9a0] sm:$0xff]   ;;  %v8693_v11 = vld [vmem:[%s10948_s3 + $0x958] sm:$0xff]  }
 0x115   :  { %8026 = vmatpush3.bf16.msra.mxu0 %v8663_v27  ;;  %v1417_v27 = vrot.slane %v1403_v25, %v9064_v45  ;;  %v492_v35 = vcombine.low %v484_v17, %v491_v20  ;;  %v1636_v40 = vpack.c.bf16 %v1418_v16, %v1418_v16  ;;  %v8697_v20 = vld [vmem:[%s10948_s3 + $0x950] sm:$0xff]  }
 0x116   :  { %8027 = vmatprep.subr.bf16.mxu0 %v8665_v38  ;;  %v1067_v38 = vrot.slane %v1053_v22, %v9064_v45  ;;  %v8700_v16 = vld [vmem:[%s10948_s3 + $0x990] sm:$0xff]  }
 0x117   :  { %8048 = vmatpush3.bf16.msra.mxu1 %v8664_v42  ;;  %v1419_v41 = vcombine.high %v1417_v27, %v1417_v27  ;;  %v1637_v44 = vpack.c.bf16 %v1417_v27, %v1417_v27  ;;  %6442 = vmatprep.mubr.bf16.mxu0 %v1636_v40  ;;  %v620_v56 = vmul.f32 %v492_v35, %v44_v29  ;;  %v8701_v27 = vld [vmem:[%s10948_s3 + $0x948] sm:$0xff]   ;;  %v8705_v35 = vld [vmem:[%s10948_s3 + $0x940] sm:$0xff]  }
 0x118   :  { %8049 = vmatprep.subr.bf16.mxu1 %v8666_v48  ;;  %v1068_v58 = vcombine.low %v1060_v37, %v1067_v38  ;;  %v8702_v29 = vld [vmem:[%s10948_s3 + $0x9c8] sm:$0xff]   ;;  %v8706_v37 = vld [vmem:[%s10948_s3 + $0x9c0] sm:$0xff]  }
 0x119   :  { %8028 = vmatpush3.bf16.msra.mxu0 %v8667_v52  ;;  %v1638_v50 = vpack.c.bf16 %v1419_v41, %v1419_v41  ;;  %v8707_v38 = vld [vmem:[%s10948_s3 + $0x900] sm:$0xff]   ;;  %v8709_v41 = vld [vmem:[%s10948_s3 + $0xa78] sm:$0xff]  }
 0x11a   :  { %8029 = vmatprep.subr.bf16.mxu0 %v8669_v46  ;;  %v8683_v46 = vld [vmem:[%s10948_s3 + $0x930] sm:$0xff]   ;;  %v1196_v4 = vadd.f32 %v1068_v58, %v620_v56  ;;  %v8708_v40 = vld [vmem:[%s10948_s3 + $0x980] sm:$0xff]  }
 0x11b   :  { %8050 = vmatpush3.bf16.msra.mxu1 %v8668_v63  ;;  %6482 = vmatprep.mubr.bf16.mxu1 %v1638_v50  ;;  %v8684_v63 = vld [vmem:[%s10948_s3 + $0x9b0] sm:$0xff]  }
 0x11c   :  { %8051 = vmatprep.subr.bf16.mxu1 %v8670_v1  ;;  %vm1212_vm9 = vcmp.gt.f32.partialorder %v1196_v4, 0.0 }
 0x11d   :  { %8030 = vmatpush3.bf16.msra.mxu0 %v8671_v3  ;;  %v8686_v3 = vld [vmem:[%s10948_s3 + $0x9e8] sm:$0xff]  }
 0x11e   :  { %8031 = vmatprep.subr.bf16.mxu0 %v8673_v6  ;;  %v8689_v6 = vld [vmem:[%s10948_s3 + $0x960] sm:$0xff]  }
 0x11f   :  { %8052 = vmatpush3.bf16.msra.mxu1 %v8672_v10  ;;  %v1228_v10 = vmul.f32 0.2, %v1196_v4 }
 0x120   :  { %8053 = vmatprep.subr.bf16.mxu1 %v8674_v13  ;;  %v8694_v13 = vld [vmem:[%s10948_s3 + $0x9d8] sm:$0xff]  }
 0x121   :  { %8032 = vmatpush3.bf16.msra.mxu0 %v8675_v15  ;;  %v1244_v14 = vsel %vm1212_vm9, %v1196_v4, %v1228_v10  ;;  %v8695_v15 = vld [vmem:[%s10948_s3 + $0x918] sm:$0xff]   ;;  %v8719_v4 = vld [vmem:[%s10948_s3 + $0xa28] sm:$0xff]  }
 0x122   :  { %8061 = vmatprep.subr.bf16.mxu0 %v8677_v19  ;;  %v1427_v17 = vrot.slane %v1244_v14, %v9064_v45  ;;  %v1420_v18 = vcombine.high %v1244_v14, %v1244_v14  ;;  %v8696_v19 = vld [vmem:[%s10948_s3 + $0x998] sm:$0xff]   ;;  %v56_v10 = vld [vmem:[%s10949_s1 + $0x28] sm:$0xff] }
 0x123   :  { %8054 = vmatpush3.bf16.msra.mxu1 %v8676_v23  ;;  %v8698_v23 = vld [vmem:[%s10948_s3 + $0x9d0] sm:$0xff]   ;;  %v8726_v14 = vld [vmem:[%s10948_s3 + $0xad8] sm:$0xff]  }
 0x124   :  { %v7769_v28 = vpop.f32.mrf.mxu0  ;;  %8083 = vmatprep.subr.bf16.mxu1 %v8678_v26  ;;  %6443 = vmatmul.mubr.bf16.vlgmr.msra.gmra.mxu0 %v1635_v30  ;;  %v1435_v21 = vcombine.high %v1427_v17, %v1427_v17  ;;  %v1434_v22 = vrot.slane %v1420_v18, %v9064_v45  ;;  %v8703_v30 = vld [vmem:[%s10948_s3 + $0x908] sm:$0xff]   ;;  %v238_v18 = vrot.slane %v56_v10, %v9046_v36 }
 0x125   :  { %8062 = vmatpush3.bf16.msra.mxu0 %v8679_v31  ;;  %v8704_v31 = vld [vmem:[%s10948_s3 + $0x988] sm:$0xff]  }
 0x126   :  { %v7791_v42 = vpop.f32.mrf.mxu1  ;;  %v7770_v33 = vpop.f32.mrf.mxu0  ;;  %6483 = vmatmul.mubr.bf16.vlgmr.msra.gmra.mxu1 %v1637_v44  ;;  %8063 = vmatprep.subr.bf16.mxu0 %v8681_v49  ;;  %v1640_v25 = vpack.c.bf16 %v1435_v21, %v1435_v21  ;;  %v1436_v26 = vcombine.high %v1434_v22, %v1434_v22  ;;  %v8711_v44 = vld [vmem:[%s10948_s3 + $0xa38] sm:$0xff]  }
 0x127   :  { %v7771_v48 = vadd.f32 %v7770_v33, %v7769_v28  ;;  %8084 = vmatpush3.bf16.msra.mxu1 %v8680_v43  ;;  %v8710_v43 = vld [vmem:[%s10948_s3 + $0xaf8] sm:$0xff]   ;;  %v1639_v33 = vpack.c.bf16 %v1427_v17, %v1427_v17  ;;  %v234_v17 = vrot.slane %v56_v10, %v9041_v34 }
 0x128   :  { %v7792_v51 = vpop.f32.mrf.mxu1  ;;  %v7772_v52 = vpop.f32.mrf.mxu0  ;;  %8085 = vmatprep.subr.bf16.mxu1 %v8682_v53  ;;  %6522 = vmatprep.mubr.bf16.mxu0 %v1640_v25  ;;  %v1642_v28 = vpack.c.bf16 %v1436_v26, %v1436_v26  ;;  %v8712_v49 = vld [vmem:[%s10948_s3 + $0xab8] sm:$0xff]   ;;  %v8713_v53 = vld [vmem:[%s10948_s3 + $0xa70] sm:$0xff]  }
 0x129   :  { %v5965_v54 = vadd.f32 %v7771_v48, %v9961_v12  ;;  %v7793_v55 = vadd.f32 %v7792_v51, %v7791_v42  ;;  %v8685_v12 = vld [vmem:[%s10948_s3 + $0x968] sm:$0xff]   ;;  %8064 = vmatpush3.bf16.msra.mxu0 %v8683_v46  ;;  %v1641_v51 = vpack.c.bf16 %v1434_v22, %v1434_v22  ;;  %v8714_v46 = vld [vmem:[%s10948_s3 + $0xaf0] sm:$0xff]   ;;  %v8727_v25 = vld [vmem:[%s10948_s3 + $0xa18] sm:$0xff]  }
 0x12a   :  { %v7794_v59 = vpop.f32.mrf.mxu1  ;;  %v7773_v0 = vpop.f32.mrf.mxu0  ;;  %8065 = vmatprep.subr.bf16.mxu0 %v8685_v12  ;;  %6562 = vmatprep.mubr.bf16.mxu1 %v1642_v28 }
 0x12b   :  { %v10106_v1 = vadd.f32 %v7793_v55, %v5965_v54  ;;  %8086 = vmatpush3.bf16.msra.mxu1 %v8684_v63  ;;  %v8715_v59 = vld [vmem:[%s10948_s3 + $0xa30] sm:$0xff]  }
 0x12c   :  { %v7795_v2 = vpop.f32.mrf.mxu1  ;;  %8087 = vmatprep.subr.bf16.mxu1 %v8686_v3  ;;  %v8716_v0 = vld [vmem:[%s10948_s3 + $0xab0] sm:$0xff]  }
 0x12d   :  { %8066 = vmatpush3.bf16.msra.mxu0 %v8687_v62  ;;  %v8718_v62 = vld [vmem:[%s10948_s3 + $0xae8] sm:$0xff]  }
 0x12e   :  { %8067 = vmatprep.subr.bf16.mxu0 %v8689_v6  ;;  %v8721_v6 = vld [vmem:[%s10948_s3 + $0xa60] sm:$0xff]  }
 0x12f   :  { %8088 = vmatpush3.bf16.msra.mxu1 %v8688_v5  ;;  %v8720_v5 = vld [vmem:[%s10948_s3 + $0xaa8] sm:$0xff]  }
 0x130   :  { %8089 = vmatprep.subr.bf16.mxu1 %v8690_v7  ;;  %v8722_v7 = vld [vmem:[%s10948_s3 + $0xae0] sm:$0xff]  }
 0x131   :  { %8068 = vmatpush3.bf16.msra.mxu0 %v8691_v8  ;;  %v8723_v8 = vld [vmem:[%s10948_s3 + $0xa20] sm:$0xff]  }
 0x132   :  { %8069 = vmatprep.subr.bf16.mxu0 %v8693_v11  ;;  %v8725_v11 = vld [vmem:[%s10948_s3 + $0xa58] sm:$0xff]  }
 0x133   :  { %8090 = vmatpush3.bf16.msra.mxu1 %v8692_v9  ;;  %v8724_v9 = vld [vmem:[%s10948_s3 + $0xaa0] sm:$0xff]  }
 0x134   :  { %8091 = vmatprep.subr.bf16.mxu1 %v8694_v13  ;;  %v10242_v13 = vld [vmem:[%s10950_s2 + $0x28] sm:$0xff] }
 0x135   :  { %8070 = vmatpush3.bf16.msra.mxu0 %v8695_v15  ;;  %v230_v15 = vrot.slane %v56_v10, %v9036_v32  ;;  %v806_v21 = vrot.slane %v10242_v13, %v9036_v32  ;;  %v810_v22 = vrot.slane %v10242_v13, %v9041_v34 }
 0x136   :  { %8071 = vmatprep.subr.bf16.mxu0 %v8697_v20  ;;  %v10254_v20 = vld [vmem:[%s10951_s0 + $0x28] sm:$0xff] }
 0x137   :  { %8092 = vmatpush3.bf16.msra.mxu1 %v8696_v19  ;;  %v242_v19 = vrot.slane %v56_v10, %v9051_v39  ;;  %v493_v26 = vcombine.low %v230_v15, %v234_v17  ;;  %v1069_v28 = vcombine.low %v806_v21, %v810_v22  ;;  %v8740_v15 = vld [vmem:[%s10948_s3 + $0xa80] sm:$0xff]   ;;  %v8742_v21 = vld [vmem:[%s10948_s3 + $0xbf8] sm:$0xff]  }
 0x138   :  { %8093 = vmatprep.subr.bf16.mxu1 %v8698_v23  ;;  %v814_v23 = vrot.slane %v10242_v13, %v9046_v36 }
 0x139   :  { %8072 = vmatpush3.bf16.msra.mxu0 %v8699_v24  ;;  %v818_v24 = vrot.slane %v10242_v13, %v9051_v39 }
 0x13a   :  { %8073 = vmatprep.subr.bf16.mxu0 %v8701_v27  ;;  %v8729_v27 = vld [vmem:[%s10948_s3 + $0xa50] sm:$0xff]  }
 0x13b   :  { %8094 = vmatpush3.bf16.msra.mxu1 %v8700_v16  ;;  %v494_v16 = vcombine.low %v238_v18, %v242_v19 }
 0x13c   :  { %8095 = vmatprep.subr.bf16.mxu1 %v8702_v29  ;;  %v1070_v29 = vcombine.low %v814_v23, %v818_v24  ;;  %v8743_v23 = vld [vmem:[%s10948_s3 + $0xb38] sm:$0xff]   ;;  %v46_v24 = vunpack.c.h.bf16 %v10254_v20 }
 0x13d   :  { %8074 = vmatpush3.bf16.msra.mxu0 %v8703_v30  ;;  %v8728_v30 = vld [vmem:[%s10948_s3 + $0xa98] sm:$0xff]  }
 0x13e   :  { %8075 = vmatprep.subr.bf16.mxu0 %v8705_v35  ;;  %v501_v35 = vrot.slane %v493_v26, %v9064_v45 }
 0x13f   :  { %8096 = vmatpush3.bf16.msra.mxu1 %v8704_v31  ;;  %v45_v31 = vunpack.c.l.bf16 %v10254_v20  ;;  %v8745_v20 = vld [vmem:[%s10948_s3 + $0xb70] sm:$0xff]  }
 0x140   :  { %8097 = vmatprep.subr.bf16.mxu1 %v8706_v37  ;;  %v508_v37 = vrot.slane %v494_v16, %v9064_v45 }
 0x141   :  { %8076 = vmatpush3.bf16.msra.mxu0 %v8707_v38  ;;  %v8730_v38 = vld [vmem:[%s10948_s3 + $0xad0] sm:$0xff]  }
 0x142   :  { %8105 = vmatprep.subr.bf16.mxu0 %v8709_v41  ;;  %v1084_v41 = vrot.slane %v1070_v29, %v9064_v45 }
 0x143   :  { %8098 = vmatpush3.bf16.msra.mxu1 %v8708_v40  ;;  %v1077_v40 = vrot.slane %v1069_v28, %v9064_v45  ;;  %v8744_v28 = vld [vmem:[%s10948_s3 + $0xbb8] sm:$0xff]  }
 0x144   :  { %v7813_v42 = vpop.f32.mrf.mxu0  ;;  %6523 = vmatmul.mubr.bf16.vlgmr.msra.gmra.mxu0 %v1639_v33  ;;  %8127 = vmatprep.subr.bf16.mxu1 %v8710_v43  ;;  %v8731_v43 = vld [vmem:[%s10948_s3 + $0xa10] sm:$0xff]   ;;  %v509_v33 = vcombine.low %v501_v35, %v508_v37 }
 0x145   :  { %8106 = vmatpush3.bf16.msra.mxu0 %v8711_v44  ;;  %v250_v44 = vrot.slane %v56_v10, %v9083_v57 }
 0x146   :  { %v7835_v48 = vpop.f32.mrf.mxu1  ;;  %v7814_v50 = vpop.f32.mrf.mxu0  ;;  %6563 = vmatmul.mubr.bf16.vlgmr.msra.gmra.mxu1 %v1641_v51  ;;  %8107 = vmatprep.subr.bf16.mxu0 %v8713_v53  ;;  %v1085_v51 = vcombine.low %v1077_v40, %v1084_v41  ;;  %v621_v53 = vmul.f32 %v509_v33, %v45_v31 }
 0x147   :  { %v7815_v52 = vadd.f32 %v7814_v50, %v7813_v42  ;;  %8128 = vmatpush3.bf16.msra.mxu1 %v8712_v49  ;;  %v246_v42 = vrot.slane %v56_v10, %v9069_v47  ;;  %v258_v49 = vrot.slane %v56_v10, %v9087_v61  ;;  %v8733_v50 = vld [vmem:[%s10948_s3 + $0xa48] sm:$0xff]  }
 0x148   :  { %v7836_v54 = vpop.f32.mrf.mxu1  ;;  %v7816_v55 = vpop.f32.mrf.mxu0  ;;  %8129 = vmatprep.subr.bf16.mxu1 %v8714_v46  ;;  %v1197_v46 = vadd.f32 %v1085_v51, %v621_v53 }
 0x149   :  { %v6045_v56 = vadd.f32 %v7815_v52, %v10106_v1  ;;  %v7837_v58 = vadd.f32 %v7836_v54, %v7835_v48  ;;  %v8717_v1 = vld [vmem:[%s10948_s3 + $0xa68] sm:$0xff]   ;;  %8108 = vmatpush3.bf16.msra.mxu0 %v8715_v59  ;;  %v254_v48 = vrot.slane %v56_v10, %v9085_v60  ;;  %v8732_v52 = vld [vmem:[%s10948_s3 + $0xa90] sm:$0xff]   ;;  %v8737_v59 = vld [vmem:[%s10948_s3 + $0xa40] sm:$0xff]  }
 0x14a   :  { %v7838_v63 = vpop.f32.mrf.mxu1  ;;  %v7817_v12 = vpop.f32.mrf.mxu0  ;;  %8109 = vmatprep.subr.bf16.mxu0 %v8717_v1  ;;  %v8734_v54 = vld [vmem:[%s10948_s3 + $0xac8] sm:$0xff]   ;;  %v834_v1 = vrot.slane %v10242_v13, %v9087_v61  ;;  %vm1213_vm10 = vcmp.gt.f32.partialorder %v1197_v46, 0.0  ;;  %v8741_v10 = vld [vmem:[%s10948_s3 + $0xb78] sm:$0xff]  }
 0x14b   :  { %v10207_v2 = vadd.f32 %v7837_v58, %v6045_v56  ;;  %8130 = vmatpush3.bf16.msra.mxu1 %v8716_v0  ;;  %v8735_v55 = vld [vmem:[%s10948_s3 + $0xa08] sm:$0xff]   ;;  %v510_v56 = vcombine.low %v246_v42, %v250_v44  ;;  %v511_v58 = vcombine.low %v254_v48, %v258_v49  ;;  %v822_v63 = vrot.slane %v10242_v13, %v9069_v47  ;;  %v8746_v42 = vld [vmem:[%s10948_s3 + $0xbf0] sm:$0xff]  }
 0x14c   :  { %v7839_v3 = vpop.f32.mrf.mxu1  ;;  %8131 = vmatprep.subr.bf16.mxu1 %v8718_v62  ;;  %v826_v0 = vrot.slane %v10242_v13, %v9083_v57  ;;  %v830_v12 = vrot.slane %v10242_v13, %v9085_v60  ;;  %v1229_v62 = vmul.f32 0.2, %v1197_v46  ;;  %v8747_v44 = vld [vmem:[%s10948_s3 + $0xb30] sm:$0xff]  }
 0x14d   :  { %8110 = vmatpush3.bf16.msra.mxu0 %v8719_v4  ;;  %v8736_v3 = vld [vmem:[%s10948_s3 + $0xa88] sm:$0xff]   ;;  %v8738_v4 = vld [vmem:[%s10948_s3 + $0xac0] sm:$0xff]   ;;  %v8748_v49 = vld [vmem:[%s10948_s3 + $0xbb0] sm:$0xff]  }
 0x14e   :  { %8111 = vmatprep.subr.bf16.mxu0 %v8721_v6  ;;  %v1245_v6 = vsel %vm1213_vm10, %v1197_v46, %v1229_v62  ;;  %v1086_v13 = vcombine.low %v822_v63, %v826_v0  ;;  %v8751_v46 = vld [vmem:[%s10948_s3 + $0xb28] sm:$0xff]   ;;  %v8754_v63 = vld [vmem:[%s10948_s3 + $0xbe0] sm:$0xff]   ;;  %v8758_v62 = vld [vmem:[%s10948_s3 + $0xbd8] sm:$0xff]  }
 0x14f   :  { %8132 = vmatpush3.bf16.msra.mxu1 %v8720_v5  ;;  %v8739_v5 = vld [vmem:[%s10948_s3 + $0xa00] sm:$0xff]  }
 0x150   :  { %8133 = vmatprep.subr.bf16.mxu1 %v8722_v7  ;;  %v518_v7 = vrot.slane %v510_v56, %v9064_v45  ;;  %v8752_v56 = vld [vmem:[%s10948_s3 + $0xba8] sm:$0xff]   ;;  %v8755_v0 = vld [vmem:[%s10948_s3 + $0xb20] sm:$0xff]  }
 0x151   :  { %8112 = vmatpush3.bf16.msra.mxu0 %v8723_v8  ;;  %v525_v8 = vrot.slane %v511_v58, %v9064_v45 }
 0x152   :  { %8113 = vmatprep.subr.bf16.mxu0 %v8725_v11  ;;  %v1437_v11 = vcombine.high %v1245_v6, %v1245_v6 }
 0x153   :  { %8134 = vmatpush3.bf16.msra.mxu1 %v8724_v9  ;;  %v1444_v9 = vrot.slane %v1245_v6, %v9064_v45  ;;  %v8760_v6 = vld [vmem:[%s10948_s3 + $0xb98] sm:$0xff]  }
 0x154   :  { %8135 = vmatprep.subr.bf16.mxu1 %v8726_v14  ;;  %v1087_v14 = vcombine.low %v830_v12, %v834_v1  ;;  %v1451_v18 = vrot.slane %v1437_v11, %v9064_v45  ;;  %v8756_v12 = vld [vmem:[%s10948_s3 + $0xba0] sm:$0xff]   ;;  %v8757_v1 = vld [vmem:[%s10948_s3 + $0xb58] sm:$0xff]   ;;  %v8762_v11 = vld [vmem:[%s10948_s3 + $0xbd0] sm:$0xff]  }
 0x155   :  { %8114 = vmatpush3.bf16.msra.mxu0 %v8727_v25  ;;  %v1452_v17 = vcombine.high %v1444_v9, %v1444_v9  ;;  %v1643_v22 = vpack.c.bf16 %v1444_v9, %v1444_v9  ;;  %v526_v25 = vcombine.low %v518_v7, %v525_v8  ;;  %v8761_v9 = vld [vmem:[%s10948_s3 + $0xb50] sm:$0xff]  }
 0x156   :  { %8115 = vmatprep.subr.bf16.mxu0 %v8729_v27  ;;  %v1453_v16 = vcombine.high %v1451_v18, %v1451_v18  ;;  %v1101_v31 = vrot.slane %v1087_v14, %v9064_v45  ;;  %v1645_v35 = vpack.c.bf16 %v1451_v18, %v1451_v18  ;;  %v8763_v14 = vld [vmem:[%s10948_s3 + $0xb10] sm:$0xff]  }
 0x157   :  { %8136 = vmatpush3.bf16.msra.mxu1 %v8728_v30  ;;  %v1644_v26 = vpack.c.bf16 %v1452_v17, %v1452_v17  ;;  %v1094_v30 = vrot.slane %v1086_v13, %v9064_v45  ;;  %v622_v51 = vmul.f32 %v526_v25, %v46_v24  ;;  %v8768_v24 = vld [vmem:[%s10948_s3 + $0xb88] sm:$0xff]   ;;  %v8769_v25 = vld [vmem:[%s10948_s3 + $0xb40] sm:$0xff]  }
 0x158   :  { %8137 = vmatprep.subr.bf16.mxu1 %v8730_v38  ;;  %v1646_v38 = vpack.c.bf16 %v1453_v16, %v1453_v16  ;;  %v8771_v16 = vld [vmem:[%s10948_s3 + $0xb00] sm:$0xff]  }
 0x159   :  { %8116 = vmatpush3.bf16.msra.mxu0 %v8731_v43  ;;  %6602 = vmatprep.mubr.bf16.mxu0 %v1644_v26  ;;  %v8770_v26 = vld [vmem:[%s10948_s3 + $0xbc0] sm:$0xff]  }
 0x15a   :  { %8117 = vmatprep.subr.bf16.mxu0 %v8733_v50  ;;  %6642 = vmatprep.mubr.bf16.mxu1 %v1646_v38 }
 0x15b   :  { %8138 = vmatpush3.bf16.msra.mxu1 %v8732_v52  ;;  %v1102_v52 = vcombine.low %v1094_v30, %v1101_v31  ;;  %v8774_v30 = vld [vmem:[%s10948_s3 + $0xcf8] sm:$0xff]  }
 0x15c   :  { %8139 = vmatprep.subr.bf16.mxu1 %v8734_v54 }
 0x15d   :  { %8118 = vmatpush3.bf16.msra.mxu0 %v8735_v55  ;;  %v8750_v55 = vld [vmem:[%s10948_s3 + $0xbe8] sm:$0xff]   ;;  %v1198_v58 = vadd.f32 %v1102_v52, %v622_v51  ;;  %v8780_v52 = vld [vmem:[%s10948_s3 + $0xcb0] sm:$0xff]  }
 0x15e   :  { %8119 = vmatprep.subr.bf16.mxu0 %v8737_v59  ;;  %v8753_v59 = vld [vmem:[%s10948_s3 + $0xb60] sm:$0xff]  }
 0x15f   :  { %8140 = vmatpush3.bf16.msra.mxu1 %v8736_v3  ;;  %vm1214_vm11 = vcmp.gt.f32.partialorder %v1198_v58, 0.0  ;;  %v1230_v3 = vmul.f32 0.2, %v1198_v58 }
 0x160   :  { %8141 = vmatprep.subr.bf16.mxu1 %v8738_v4  ;;  %v8759_v4 = vld [vmem:[%s10948_s3 + $0xb18] sm:$0xff]  }
 0x161   :  { %8120 = vmatpush3.bf16.msra.mxu0 %v8739_v5  ;;  %v1246_v5 = vsel %vm1214_vm11, %v1198_v58, %v1230_v3  ;;  %v8784_v58 = vld [vmem:[%s10948_s3 + $0xca8] sm:$0xff]   ;;  %v8790_v3 = vld [vmem:[%s10948_s3 + $0xcd8] sm:$0xff]  }
 0x162   :  { %8149 = vmatprep.subr.bf16.mxu0 %v8741_v10  ;;  %v1461_v7 = vrot.slane %v1246_v5, %v9064_v45  ;;  %v1454_v8 = vcombine.high %v1246_v5, %v1246_v5 }
 0x163   :  { %8142 = vmatpush3.bf16.msra.mxu1 %v8740_v15  ;;  %v8764_v15 = vld [vmem:[%s10948_s3 + $0xb90] sm:$0xff]  }
 0x164   :  { %v7857_v19 = vpop.f32.mrf.mxu0  ;;  %8171 = vmatprep.subr.bf16.mxu1 %v8742_v21  ;;  %6603 = vmatmul.mubr.bf16.vlgmr.msra.gmra.mxu0 %v1643_v22  ;;  %v1469_v10 = vcombine.high %v1461_v7, %v1461_v7  ;;  %v1468_v13 = vrot.slane %v1454_v8, %v9064_v45  ;;  %v8766_v21 = vld [vmem:[%s10948_s3 + $0xbc8] sm:$0xff]   ;;  %v1647_v31 = vpack.c.bf16 %v1461_v7, %v1461_v7  ;;  %v10497_v7 = vld [vmem:[%s10950_s2 + $0x30] sm:$0xff]  ;;  %v8791_v8 = vld [vmem:[%s10948_s3 + $0xc18] sm:$0xff]  }
 0x165   :  { %8150 = vmatpush3.bf16.msra.mxu0 %v8743_v23  ;;  %v8767_v23 = vld [vmem:[%s10948_s3 + $0xb08] sm:$0xff]  }
 0x166   :  { %v7879_v27 = vpop.f32.mrf.mxu1  ;;  %v7858_v29 = vpop.f32.mrf.mxu0  ;;  %6643 = vmatmul.mubr.bf16.vlgmr.msra.gmra.mxu1 %v1645_v35  ;;  %8151 = vmatprep.subr.bf16.mxu0 %v8745_v20  ;;  %v1648_v17 = vpack.c.bf16 %v1469_v10, %v1469_v10  ;;  %v1470_v18 = vcombine.high %v1468_v13, %v1468_v13  ;;  %v8775_v35 = vld [vmem:[%s10948_s3 + $0xc38] sm:$0xff]   ;;  %v842_v10 = vrot.slane %v10497_v7, %v9041_v34 }
 0x167   :  { %v7859_v37 = vadd.f32 %v7858_v29, %v7857_v19  ;;  %8172 = vmatpush3.bf16.msra.mxu1 %v8744_v28  ;;  %v8765_v19 = vld [vmem:[%s10948_s3 + $0xb48] sm:$0xff]   ;;  %v8773_v28 = vld [vmem:[%s10948_s3 + $0xc78] sm:$0xff]  }
 0x168   :  { %v7880_v40 = vpop.f32.mrf.mxu1  ;;  %v7860_v41 = vpop.f32.mrf.mxu0  ;;  %8173 = vmatprep.subr.bf16.mxu1 %v8746_v42  ;;  %6682 = vmatprep.mubr.bf16.mxu0 %v1648_v17  ;;  %v1650_v22 = vpack.c.bf16 %v1470_v18, %v1470_v18  ;;  %v8776_v20 = vld [vmem:[%s10948_s3 + $0xcb8] sm:$0xff]   ;;  %v8777_v42 = vld [vmem:[%s10948_s3 + $0xc70] sm:$0xff]   ;;  %v850_v17 = vrot.slane %v10497_v7, %v9051_v39 }
 0x169   :  { %v6125_v43 = vadd.f32 %v7859_v37, %v10207_v2  ;;  %v7881_v33 = vadd.f32 %v7880_v40, %v7879_v27  ;;  %v8749_v2 = vld [vmem:[%s10948_s3 + $0xb68] sm:$0xff]   ;;  %8152 = vmatpush3.bf16.msra.mxu0 %v8747_v44  ;;  %v8772_v27 = vld [vmem:[%s10948_s3 + $0xb80] sm:$0xff]   ;;  %v1649_v40 = vpack.c.bf16 %v1468_v13, %v1468_v13  ;;  %v8778_v44 = vld [vmem:[%s10948_s3 + $0xcf0] sm:$0xff]   ;;  %v846_v13 = vrot.slane %v10497_v7, %v9046_v36 }
 0x16a   :  { %v7882_v48 = vpop.f32.mrf.mxu1  ;;  %v7861_v50 = vpop.f32.mrf.mxu0  ;;  %8153 = vmatprep.subr.bf16.mxu0 %v8749_v2  ;;  %6722 = vmatprep.mubr.bf16.mxu1 %v1650_v22  ;;  %v8793_v18 = vld [vmem:[%s10948_s3 + $0xc50] sm:$0xff]   ;;  %v8792_v22 = vld [vmem:[%s10948_s3 + $0xc98] sm:$0xff]  }
 0x16b   :  { %v10355_v53 = vadd.f32 %v7881_v33, %v6125_v43  ;;  %8174 = vmatpush3.bf16.msra.mxu1 %v8748_v49  ;;  %v8779_v50 = vld [vmem:[%s10948_s3 + $0xc30] sm:$0xff]  }
 0x16c   :  { %v7883_v54 = vpop.f32.mrf.mxu1  ;;  %8175 = vmatprep.subr.bf16.mxu1 %v8750_v55 }
 0x16d   :  { %8154 = vmatpush3.bf16.msra.mxu0 %v8751_v46  ;;  %v8782_v46 = vld [vmem:[%s10948_s3 + $0xce8] sm:$0xff]  }
 0x16e   :  { %8155 = vmatprep.subr.bf16.mxu0 %v8753_v59  ;;  %v8785_v59 = vld [vmem:[%s10948_s3 + $0xc60] sm:$0xff]  }
 0x16f   :  { %8176 = vmatpush3.bf16.msra.mxu1 %v8752_v56  ;;  %v8783_v56 = vld [vmem:[%s10948_s3 + $0xc28] sm:$0xff]  }
 0x170   :  { %8177 = vmatprep.subr.bf16.mxu1 %v8754_v63  ;;  %v8786_v63 = vld [vmem:[%s10948_s3 + $0xce0] sm:$0xff]  }
 0x171   :  { %8156 = vmatpush3.bf16.msra.mxu0 %v8755_v0  ;;  %v8787_v0 = vld [vmem:[%s10948_s3 + $0xc20] sm:$0xff]  }
 0x172   :  { %8157 = vmatprep.subr.bf16.mxu0 %v8757_v1  ;;  %v8789_v1 = vld [vmem:[%s10948_s3 + $0xc58] sm:$0xff]  }
 0x173   :  { %8178 = vmatpush3.bf16.msra.mxu1 %v8756_v12  ;;  %v8788_v12 = vld [vmem:[%s10948_s3 + $0xca0] sm:$0xff]  }
 0x174   :  { %8179 = vmatprep.subr.bf16.mxu1 %v8758_v62  ;;  %v57_v62 = vld [vmem:[%s10949_s1 + $0x30] sm:$0xff] }
 0x175   :  { %8158 = vmatpush3.bf16.msra.mxu0 %v8759_v4  ;;  %v262_v4 = vrot.slane %v57_v62, %v9036_v32  ;;  %v266_v5 = vrot.slane %v57_v62, %v9041_v34 }
 0x176   :  { %8159 = vmatprep.subr.bf16.mxu0 %v8761_v9  ;;  %v274_v9 = vrot.slane %v57_v62, %v9051_v39 }
 0x177   :  { %8180 = vmatpush3.bf16.msra.mxu1 %v8760_v6  ;;  %v270_v6 = vrot.slane %v57_v62, %v9046_v36 }
 0x178   :  { %8181 = vmatprep.subr.bf16.mxu1 %v8762_v11  ;;  %v838_v11 = vrot.slane %v10497_v7, %v9036_v32 }
 0x179   :  { %8160 = vmatpush3.bf16.msra.mxu0 %v8763_v14  ;;  %v10512_v14 = vld [vmem:[%s10951_s0 + $0x30] sm:$0xff] }
 0x17a   :  { %8161 = vmatprep.subr.bf16.mxu0 %v8765_v19  ;;  %v528_v19 = vcombine.low %v270_v6, %v274_v9  ;;  %v8806_v6 = vld [vmem:[%s10948_s3 + $0xdf8] sm:$0xff]  }
 0x17b   :  { %8182 = vmatpush3.bf16.msra.mxu1 %v8764_v15  ;;  %v527_v15 = vcombine.low %v262_v4, %v266_v5 }
 0x17c   :  { %8183 = vmatprep.subr.bf16.mxu1 %v8766_v21  ;;  %v1103_v21 = vcombine.low %v838_v11, %v842_v10  ;;  %v48_v11 = vunpack.c.h.bf16 %v10512_v14 }
 0x17d   :  { %8162 = vmatpush3.bf16.msra.mxu0 %v8767_v23  ;;  %v535_v23 = vrot.slane %v527_v15, %v9064_v45 }
 0x17e   :  { %8163 = vmatprep.subr.bf16.mxu0 %v8769_v25  ;;  %v8794_v25 = vld [vmem:[%s10948_s3 + $0xcd0] sm:$0xff]  }
 0x17f   :  { %8184 = vmatpush3.bf16.msra.mxu1 %v8768_v24  ;;  %v1104_v24 = vcombine.low %v846_v13, %v850_v17  ;;  %v8807_v13 = vld [vmem:[%s10948_s3 + $0xd38] sm:$0xff]  }
 0x180   :  { %8185 = vmatprep.subr.bf16.mxu1 %v8770_v26  ;;  %v47_v26 = vunpack.c.l.bf16 %v10512_v14 }
 0x181   :  { %8164 = vmatpush3.bf16.msra.mxu0 %v8771_v16  ;;  %v542_v16 = vrot.slane %v528_v19, %v9064_v45 }
 0x182   :  { %8193 = vmatprep.subr.bf16.mxu0 %v8773_v28  ;;  %v8795_v28 = vld [vmem:[%s10948_s3 + $0xc10] sm:$0xff]  }
 0x183   :  { %8186 = vmatpush3.bf16.msra.mxu1 %v8772_v27  ;;  %v1111_v27 = vrot.slane %v1103_v21, %v9064_v45 }
 0x184   :  { %v7901_v29 = vpop.f32.mrf.mxu0  ;;  %6683 = vmatmul.mubr.bf16.vlgmr.msra.gmra.mxu0 %v1647_v31  ;;  %8215 = vmatprep.subr.bf16.mxu1 %v8774_v30  ;;  %v278_v30 = vrot.slane %v57_v62, %v9069_v47  ;;  %v282_v31 = vrot.slane %v57_v62, %v9083_v57 }
 0x185   :  { %8194 = vmatpush3.bf16.msra.mxu0 %v8775_v35  ;;  %v8797_v35 = vld [vmem:[%s10948_s3 + $0xc48] sm:$0xff]  }
 0x186   :  { %v7923_v37 = vpop.f32.mrf.mxu1  ;;  %v7902_v38 = vpop.f32.mrf.mxu0  ;;  %6723 = vmatmul.mubr.bf16.vlgmr.msra.gmra.mxu1 %v1649_v40  ;;  %8195 = vmatprep.subr.bf16.mxu0 %v8777_v42  ;;  %v8796_v40 = vld [vmem:[%s10948_s3 + $0xc90] sm:$0xff]   ;;  %v8798_v42 = vld [vmem:[%s10948_s3 + $0xcc8] sm:$0xff]  }
 0x187   :  { %v7903_v41 = vadd.f32 %v7902_v38, %v7901_v29  ;;  %8216 = vmatpush3.bf16.msra.mxu1 %v8776_v20  ;;  %v1118_v29 = vrot.slane %v1104_v24, %v9064_v45  ;;  %v286_v20 = vrot.slane %v57_v62, %v9085_v60  ;;  %v290_v38 = vrot.slane %v57_v62, %v9087_v61  ;;  %v8804_v62 = vld [vmem:[%s10948_s3 + $0xc80] sm:$0xff]  }
 0x188   :  { %v7924_v43 = vpop.f32.mrf.mxu1  ;;  %v7904_v33 = vpop.f32.mrf.mxu0  ;;  %8217 = vmatprep.subr.bf16.mxu1 %v8778_v44  ;;  %v544_v44 = vcombine.low %v278_v30, %v282_v31 }
 0x189   :  { %v6205_v48 = vadd.f32 %v7903_v41, %v10355_v53  ;;  %v7925_v49 = vadd.f32 %v7924_v43, %v7923_v37  ;;  %v8781_v53 = vld [vmem:[%s10948_s3 + $0xc68] sm:$0xff]   ;;  %8196 = vmatpush3.bf16.msra.mxu0 %v8779_v50  ;;  %v543_v37 = vcombine.low %v535_v23, %v542_v16  ;;  %v1119_v41 = vcombine.low %v1111_v27, %v1118_v29  ;;  %v8801_v50 = vld [vmem:[%s10948_s3 + $0xc40] sm:$0xff]   ;;  %v8808_v23 = vld [vmem:[%s10948_s3 + $0xdb8] sm:$0xff]  }
 0x18a   :  { %v7926_v51 = vpop.f32.mrf.mxu1  ;;  %v7905_v2 = vpop.f32.mrf.mxu0  ;;  %8197 = vmatprep.subr.bf16.mxu0 %v8781_v53  ;;  %v8799_v33 = vld [vmem:[%s10948_s3 + $0xc08] sm:$0xff]   ;;  %v866_v53 = vrot.slane %v10497_v7, %v9087_v61  ;;  %v8810_v29 = vld [vmem:[%s10948_s3 + $0xdf0] sm:$0xff]  }
 0x18b   :  { %v10456_v54 = vadd.f32 %v7925_v49, %v6205_v48  ;;  %8218 = vmatpush3.bf16.msra.mxu1 %v8780_v52  ;;  %v623_v43 = vmul.f32 %v543_v37, %v47_v26  ;;  %v854_v48 = vrot.slane %v10497_v7, %v9069_v47  ;;  %v858_v49 = vrot.slane %v10497_v7, %v9083_v57  ;;  %v8809_v26 = vld [vmem:[%s10948_s3 + $0xd70] sm:$0xff]  }
 0x18c   :  { %v7927_v55 = vpop.f32.mrf.mxu1  ;;  %8219 = vmatprep.subr.bf16.mxu1 %v8782_v46  ;;  %v545_v52 = vcombine.low %v286_v20, %v290_v38  ;;  %v862_v2 = vrot.slane %v10497_v7, %v9085_v60  ;;  %v8802_v46 = vld [vmem:[%s10948_s3 + $0xcc0] sm:$0xff]  }
 0x18d   :  { %8198 = vmatpush3.bf16.msra.mxu0 %v8783_v56  ;;  %v1199_v51 = vadd.f32 %v1119_v41, %v623_v43  ;;  %v8800_v55 = vld [vmem:[%s10948_s3 + $0xc88] sm:$0xff]  }
 0x18e   :  { %8199 = vmatprep.subr.bf16.mxu0 %v8785_v59  ;;  %v552_v59 = vrot.slane %v544_v44, %v9064_v45  ;;  %v8815_v44 = vld [vmem:[%s10948_s3 + $0xd28] sm:$0xff]  }
 0x18f   :  { %8220 = vmatpush3.bf16.msra.mxu1 %v8784_v58  ;;  %vm1215_vm12 = vcmp.gt.f32.partialorder %v1199_v51, 0.0  ;;  %v1231_v56 = vmul.f32 0.2, %v1199_v51  ;;  %v8803_v58 = vld [vmem:[%s10948_s3 + $0xc00] sm:$0xff]  }
 0x190   :  { %8221 = vmatprep.subr.bf16.mxu1 %v8786_v63 }
 0x191   :  { %8200 = vmatpush3.bf16.msra.mxu0 %v8787_v0  ;;  %v1247_v63 = vsel %vm1215_vm12, %v1199_v51, %v1231_v56  ;;  %v8805_v0 = vld [vmem:[%s10948_s3 + $0xd78] sm:$0xff]   ;;  %v8818_v51 = vld [vmem:[%s10948_s3 + $0xde0] sm:$0xff]  }
 0x192   :  { %8201 = vmatprep.subr.bf16.mxu0 %v8789_v1  ;;  %v1120_v1 = vcombine.low %v854_v48, %v858_v49  ;;  %v1478_v4 = vrot.slane %v1247_v63, %v9064_v45  ;;  %v1471_v5 = vcombine.high %v1247_v63, %v1247_v63  ;;  %v8816_v49 = vld [vmem:[%s10948_s3 + $0xda8] sm:$0xff]  }
 0x193   :  { %8222 = vmatpush3.bf16.msra.mxu1 %v8788_v12  ;;  %v559_v12 = vrot.slane %v545_v52, %v9064_v45  ;;  %v8819_v52 = vld [vmem:[%s10948_s3 + $0xd20] sm:$0xff]  }
 0x194   :  { %8223 = vmatprep.subr.bf16.mxu1 %v8790_v3  ;;  %v1121_v3 = vcombine.low %v862_v2, %v866_v53  ;;  %v1486_v7 = vcombine.high %v1478_v4, %v1478_v4  ;;  %v1651_v10 = vpack.c.bf16 %v1478_v4, %v1478_v4  ;;  %v1128_v17 = vrot.slane %v1120_v1, %v9064_v45  ;;  %v8820_v2 = vld [vmem:[%s10948_s3 + $0xda0] sm:$0xff]   ;;  %v8821_v53 = vld [vmem:[%s10948_s3 + $0xd58] sm:$0xff]   ;;  %v8827_v4 = vld [vmem:[%s10948_s3 + $0xd10] sm:$0xff]  }
 0x195   :  { %8202 = vmatpush3.bf16.msra.mxu0 %v8791_v8  ;;  %v1485_v8 = vrot.slane %v1471_v5, %v9064_v45  ;;  %v560_v15 = vcombine.low %v552_v59, %v559_v12  ;;  %v8825_v12 = vld [vmem:[%s10948_s3 + $0xd50] sm:$0xff]  }
 0x196   :  { %8203 = vmatprep.subr.bf16.mxu0 %v8793_v18  ;;  %v1135_v18 = vrot.slane %v1121_v3, %v9064_v45  ;;  %v1652_v19 = vpack.c.bf16 %v1486_v7, %v1486_v7  ;;  %v8828_v7 = vld [vmem:[%s10948_s3 + $0xd90] sm:$0xff]  }
 0x197   :  { %8224 = vmatpush3.bf16.msra.mxu1 %v8792_v22  ;;  %v1487_v21 = vcombine.high %v1485_v8, %v1485_v8  ;;  %v1653_v24 = vpack.c.bf16 %v1485_v8, %v1485_v8  ;;  %v624_v37 = vmul.f32 %v560_v15, %v48_v11  ;;  %v8829_v8 = vld [vmem:[%s10948_s3 + $0xd48] sm:$0xff]   ;;  %v8833_v15 = vld [vmem:[%s10948_s3 + $0xd40] sm:$0xff]  }
 0x198   :  { %8225 = vmatprep.subr.bf16.mxu1 %v8794_v25  ;;  %6762 = vmatprep.mubr.bf16.mxu0 %v1652_v19  ;;  %v1136_v20 = vcombine.low %v1128_v17, %v1135_v18  ;;  %v8830_v11 = vld [vmem:[%s10948_s3 + $0xdc8] sm:$0xff]   ;;  %v8834_v17 = vld [vmem:[%s10948_s3 + $0xdc0] sm:$0xff]  }
 0x199   :  { %8204 = vmatpush3.bf16.msra.mxu0 %v8795_v28  ;;  %v1654_v16 = vpack.c.bf16 %v1487_v21, %v1487_v21  ;;  %v8835_v18 = vld [vmem:[%s10948_s3 + $0xd00] sm:$0xff]   ;;  %v8837_v21 = vld [vmem:[%s10948_s3 + $0xe78] sm:$0xff]  }
 0x19a   :  { %8205 = vmatprep.subr.bf16.mxu0 %v8797_v35  ;;  %v8811_v35 = vld [vmem:[%s10948_s3 + $0xd30] sm:$0xff]   ;;  %v1200_v48 = vadd.f32 %v1136_v20, %v624_v37  ;;  %v8836_v19 = vld [vmem:[%s10948_s3 + $0xd80] sm:$0xff]  }
 0x19b   :  { %8226 = vmatpush3.bf16.msra.mxu1 %v8796_v40  ;;  %6802 = vmatprep.mubr.bf16.mxu1 %v1654_v16  ;;  %v8812_v40 = vld [vmem:[%s10948_s3 + $0xdb0] sm:$0xff]  }
 0x19c   :  { %8227 = vmatprep.subr.bf16.mxu1 %v8798_v42  ;;  %vm1216_vm13 = vcmp.gt.f32.partialorder %v1200_v48, 0.0 }
 0x19d   :  { %8206 = vmatpush3.bf16.msra.mxu0 %v8799_v33  ;;  %v8814_v33 = vld [vmem:[%s10948_s3 + $0xde8] sm:$0xff]  }
 0x19e   :  { %8207 = vmatprep.subr.bf16.mxu0 %v8801_v50  ;;  %v8817_v50 = vld [vmem:[%s10948_s3 + $0xd60] sm:$0xff]  }
 0x19f   :  { %8228 = vmatpush3.bf16.msra.mxu1 %v8800_v55  ;;  %v1232_v55 = vmul.f32 0.2, %v1200_v48 }
 0x1a0   :  { %8229 = vmatprep.subr.bf16.mxu1 %v8802_v46  ;;  %v8822_v46 = vld [vmem:[%s10948_s3 + $0xdd8] sm:$0xff]  }
 0x1a1   :  { %8208 = vmatpush3.bf16.msra.mxu0 %v8803_v58  ;;  %v1248_v56 = vsel %vm1216_vm13, %v1200_v48, %v1232_v55  ;;  %v8823_v58 = vld [vmem:[%s10948_s3 + $0xd18] sm:$0xff]   ;;  %v8847_v48 = vld [vmem:[%s10948_s3 + $0xe28] sm:$0xff]  }
 0x1a2   :  { %8237 = vmatprep.subr.bf16.mxu0 %v8805_v0  ;;  %v1495_v59 = vrot.slane %v1248_v56, %v9064_v45  ;;  %v1488_v63 = vcombine.high %v1248_v56, %v1248_v56  ;;  %v8824_v0 = vld [vmem:[%s10948_s3 + $0xd98] sm:$0xff]  }
 0x1a3   :  { %8230 = vmatpush3.bf16.msra.mxu1 %v8804_v62  ;;  %v8826_v62 = vld [vmem:[%s10948_s3 + $0xdd0] sm:$0xff]   ;;  %v58_v55 = vld [vmem:[%s10949_s1 + $0x38] sm:$0xff] }
 0x1a4   :  { %v7945_v9 = vpop.f32.mrf.mxu0  ;;  %8259 = vmatprep.subr.bf16.mxu1 %v8806_v6  ;;  %6763 = vmatmul.mubr.bf16.vlgmr.msra.gmra.mxu0 %v1651_v10  ;;  %v1503_v1 = vcombine.high %v1495_v59, %v1495_v59  ;;  %v1502_v3 = vrot.slane %v1488_v63, %v9064_v45  ;;  %v8831_v10 = vld [vmem:[%s10948_s3 + $0xd08] sm:$0xff]   ;;  %v8854_v56 = vld [vmem:[%s10948_s3 + $0xed8] sm:$0xff]   ;;  %v302_v63 = vrot.slane %v58_v55, %v9046_v36 }
 0x1a5   :  { %8238 = vmatpush3.bf16.msra.mxu0 %v8807_v13  ;;  %v8832_v13 = vld [vmem:[%s10948_s3 + $0xd88] sm:$0xff]  }
 0x1a6   :  { %v7967_v22 = vpop.f32.mrf.mxu1  ;;  %v7946_v14 = vpop.f32.mrf.mxu0  ;;  %6803 = vmatmul.mubr.bf16.vlgmr.msra.gmra.mxu1 %v1653_v24  ;;  %8239 = vmatprep.subr.bf16.mxu0 %v8809_v26  ;;  %v1656_v5 = vpack.c.bf16 %v1503_v1, %v1503_v1  ;;  %v1504_v6 = vcombine.high %v1502_v3, %v1502_v3  ;;  %v8839_v24 = vld [vmem:[%s10948_s3 + $0xe38] sm:$0xff]  }
 0x1a7   :  { %v7947_v25 = vadd.f32 %v7946_v14, %v7945_v9  ;;  %8260 = vmatpush3.bf16.msra.mxu1 %v8808_v23  ;;  %v8838_v23 = vld [vmem:[%s10948_s3 + $0xef8] sm:$0xff]   ;;  %v1655_v14 = vpack.c.bf16 %v1495_v59, %v1495_v59  ;;  %v298_v59 = vrot.slane %v58_v55, %v9041_v34 }
 0x1a8   :  { %v7968_v27 = vpop.f32.mrf.mxu1  ;;  %v7948_v28 = vpop.f32.mrf.mxu0  ;;  %8261 = vmatprep.subr.bf16.mxu1 %v8810_v29  ;;  %6842 = vmatprep.mubr.bf16.mxu0 %v1656_v5  ;;  %v1658_v9 = vpack.c.bf16 %v1504_v6, %v1504_v6  ;;  %v8840_v26 = vld [vmem:[%s10948_s3 + $0xeb8] sm:$0xff]   ;;  %v8841_v29 = vld [vmem:[%s10948_s3 + $0xe70] sm:$0xff]  }
 0x1a9   :  { %v6285_v30 = vadd.f32 %v7947_v25, %v10456_v54  ;;  %v7969_v31 = vadd.f32 %v7968_v27, %v7967_v22  ;;  %v8813_v54 = vld [vmem:[%s10948_s3 + $0xd68] sm:$0xff]   ;;  %8240 = vmatpush3.bf16.msra.mxu0 %v8811_v35  ;;  %v1657_v27 = vpack.c.bf16 %v1502_v3, %v1502_v3  ;;  %v8842_v35 = vld [vmem:[%s10948_s3 + $0xef0] sm:$0xff]   ;;  %v8855_v5 = vld [vmem:[%s10948_s3 + $0xe18] sm:$0xff]  }
 0x1aa   :  { %v7970_v38 = vpop.f32.mrf.mxu1  ;;  %v7949_v41 = vpop.f32.mrf.mxu0  ;;  %8241 = vmatprep.subr.bf16.mxu0 %v8813_v54  ;;  %6882 = vmatprep.mubr.bf16.mxu1 %v1658_v9 }
 0x1ab   :  { %v10604_v42 = vadd.f32 %v7969_v31, %v6285_v30  ;;  %8262 = vmatpush3.bf16.msra.mxu1 %v8812_v40  ;;  %v8843_v38 = vld [vmem:[%s10948_s3 + $0xe30] sm:$0xff]  }
 0x1ac   :  { %v7971_v43 = vpop.f32.mrf.mxu1  ;;  %8263 = vmatprep.subr.bf16.mxu1 %v8814_v33  ;;  %v8844_v41 = vld [vmem:[%s10948_s3 + $0xeb0] sm:$0xff]  }
 0x1ad   :  { %8242 = vmatpush3.bf16.msra.mxu0 %v8815_v44  ;;  %v8846_v44 = vld [vmem:[%s10948_s3 + $0xee8] sm:$0xff]  }
 0x1ae   :  { %8243 = vmatprep.subr.bf16.mxu0 %v8817_v50  ;;  %v8849_v50 = vld [vmem:[%s10948_s3 + $0xe60] sm:$0xff]  }
 0x1af   :  { %8264 = vmatpush3.bf16.msra.mxu1 %v8816_v49  ;;  %v8848_v49 = vld [vmem:[%s10948_s3 + $0xea8] sm:$0xff]  }
 0x1b0   :  { %8265 = vmatprep.subr.bf16.mxu1 %v8818_v51  ;;  %v8850_v51 = vld [vmem:[%s10948_s3 + $0xee0] sm:$0xff]  }
 0x1b1   :  { %8244 = vmatpush3.bf16.msra.mxu0 %v8819_v52  ;;  %v8851_v52 = vld [vmem:[%s10948_s3 + $0xe20] sm:$0xff]  }
 0x1b2   :  { %8245 = vmatprep.subr.bf16.mxu0 %v8821_v53  ;;  %v8853_v53 = vld [vmem:[%s10948_s3 + $0xe58] sm:$0xff]  }
 0x1b3   :  { %8266 = vmatpush3.bf16.msra.mxu1 %v8820_v2  ;;  %v8852_v2 = vld [vmem:[%s10948_s3 + $0xea0] sm:$0xff]  }
 0x1b4   :  { %8267 = vmatprep.subr.bf16.mxu1 %v8822_v46  ;;  %v10740_v46 = vld [vmem:[%s10950_s2 + $0x38] sm:$0xff] }
 0x1b5   :  { %8246 = vmatpush3.bf16.msra.mxu0 %v8823_v58  ;;  %v294_v58 = vrot.slane %v58_v55, %v9036_v32  ;;  %v870_v1 = vrot.slane %v10740_v46, %v9036_v32  ;;  %v874_v3 = vrot.slane %v10740_v46, %v9041_v34  ;;  %v8857_v32 = vld [vmem:[%s10948_s3 + $0xe50] sm:$0xff]  }
 0x1b6   :  { %8247 = vmatprep.subr.bf16.mxu0 %v8825_v12  ;;  %v10752_v12 = vld [vmem:[%s10951_s0 + $0x38] sm:$0xff] }
 0x1b7   :  { %8268 = vmatpush3.bf16.msra.mxu1 %v8824_v0  ;;  %v306_v0 = vrot.slane %v58_v55, %v9051_v39  ;;  %v561_v6 = vcombine.low %v294_v58, %v298_v59 }
 0x1b8   :  { %8269 = vmatprep.subr.bf16.mxu1 %v8826_v62  ;;  %v878_v62 = vrot.slane %v10740_v46, %v9046_v36  ;;  %v8856_v36 = vld [vmem:[%s10948_s3 + $0xe98] sm:$0xff]  }
 0x1b9   :  { %8248 = vmatpush3.bf16.msra.mxu0 %v8827_v4  ;;  %v882_v4 = vrot.slane %v10740_v46, %v9051_v39  ;;  %v49_v39 = vunpack.c.l.bf16 %v10752_v12  ;;  %v569_v9 = vrot.slane %v561_v6, %v9064_v45  ;;  %v8872_v6 = vld [vmem:[%s10948_s3 + $0xfb8] sm:$0xff]  }
 0x1ba   :  { %8249 = vmatprep.subr.bf16.mxu0 %v8829_v8  ;;  %v1137_v8 = vcombine.low %v870_v1, %v874_v3 }
 0x1bb   :  { %8270 = vmatpush3.bf16.msra.mxu1 %v8828_v7  ;;  %v562_v7 = vcombine.low %v302_v63, %v306_v0  ;;  %v1138_v34 = vcombine.low %v878_v62, %v882_v4  ;;  %v8871_v63 = vld [vmem:[%s10948_s3 + $0xf38] sm:$0xff]  }
 0x1bc   :  { %8271 = vmatprep.subr.bf16.mxu1 %v8830_v11 }
 0x1bd   :  { %8250 = vmatpush3.bf16.msra.mxu0 %v8831_v10  ;;  %v576_v11 = vrot.slane %v562_v7, %v9064_v45  ;;  %v8858_v10 = vld [vmem:[%s10948_s3 + $0xed0] sm:$0xff]  }
 0x1be   :  { %8251 = vmatprep.subr.bf16.mxu0 %v8833_v15  ;;  %v1152_v15 = vrot.slane %v1138_v34, %v9064_v45  ;;  %v8874_v34 = vld [vmem:[%s10948_s3 + $0xff0] sm:$0xff]  }
 0x1bf   :  { %8272 = vmatpush3.bf16.msra.mxu1 %v8832_v13  ;;  %v1145_v13 = vrot.slane %v1137_v8, %v9064_v45 }
 0x1c0   :  { %8273 = vmatprep.subr.bf16.mxu1 %v8834_v17  ;;  %v310_v17 = vrot.slane %v58_v55, %v9069_v47 }
 0x1c1   :  { %8252 = vmatpush3.bf16.msra.mxu0 %v8835_v18  ;;  %v8859_v18 = vld [vmem:[%s10948_s3 + $0xe10] sm:$0xff]  }
 0x1c2   :  { %8281 = vmatprep.subr.bf16.mxu0 %v8837_v21  ;;  %v314_v21 = vrot.slane %v58_v55, %v9083_v57 }
 0x1c3   :  { %8274 = vmatpush3.bf16.msra.mxu1 %v8836_v19  ;;  %v577_v19 = vcombine.low %v569_v9, %v576_v11  ;;  %v8875_v11 = vld [vmem:[%s10948_s3 + $0xf30] sm:$0xff]  }
 0x1c4   :  { %v7989_v22 = vpop.f32.mrf.mxu0  ;;  %6843 = vmatmul.mubr.bf16.vlgmr.msra.gmra.mxu0 %v1655_v14  ;;  %8303 = vmatprep.subr.bf16.mxu1 %v8838_v23  ;;  %v322_v23 = vrot.slane %v58_v55, %v9087_v61  ;;  %v8861_v14 = vld [vmem:[%s10948_s3 + $0xe48] sm:$0xff]  }
 0x1c5   :  { %8282 = vmatpush3.bf16.msra.mxu0 %v8839_v24  ;;  %v1153_v24 = vcombine.low %v1145_v13, %v1152_v15 }
 0x1c6   :  { %v8011_v25 = vpop.f32.mrf.mxu1  ;;  %v7990_v16 = vpop.f32.mrf.mxu0  ;;  %6883 = vmatmul.mubr.bf16.vlgmr.msra.gmra.mxu1 %v1657_v27  ;;  %8283 = vmatprep.subr.bf16.mxu0 %v8841_v29  ;;  %v8863_v27 = vld [vmem:[%s10948_s3 + $0xe08] sm:$0xff]   ;;  %v578_v29 = vcombine.low %v310_v17, %v314_v21 }
 0x1c7   :  { %v7991_v28 = vadd.f32 %v7990_v16, %v7989_v22  ;;  %8304 = vmatpush3.bf16.msra.mxu1 %v8840_v26  ;;  %v318_v22 = vrot.slane %v58_v55, %v9085_v60  ;;  %v625_v26 = vmul.f32 %v577_v19, %v49_v39  ;;  %v8862_v16 = vld [vmem:[%s10948_s3 + $0xec8] sm:$0xff]  }
 0x1c8   :  { %v8012_v30 = vpop.f32.mrf.mxu1  ;;  %v7992_v31 = vpop.f32.mrf.mxu0  ;;  %8305 = vmatprep.subr.bf16.mxu1 %v8842_v35  ;;  %v886_v35 = vrot.slane %v10740_v46, %v9069_v47  ;;  %v8866_v47 = vld [vmem:[%s10948_s3 + $0xec0] sm:$0xff]   ;;  %v8877_v17 = vld [vmem:[%s10948_s3 + $0xf68] sm:$0xff]  }
 0x1c9   :  { %v6365_v37 = vadd.f32 %v7991_v28, %v10604_v42  ;;  %v8013_v20 = vadd.f32 %v8012_v30, %v8011_v25  ;;  %v8845_v42 = vld [vmem:[%s10948_s3 + $0xe68] sm:$0xff]   ;;  %8284 = vmatpush3.bf16.msra.mxu0 %v8843_v38  ;;  %v8860_v25 = vld [vmem:[%s10948_s3 + $0xe90] sm:$0xff]   ;;  %v1201_v28 = vadd.f32 %v1153_v24, %v625_v26  ;;  %v579_v30 = vcombine.low %v318_v22, %v322_v23  ;;  %v8865_v31 = vld [vmem:[%s10948_s3 + $0xe40] sm:$0xff]  }
 0x1ca   :  { %v8014_v40 = vpop.f32.mrf.mxu1  ;;  %v7993_v54 = vpop.f32.mrf.mxu0  ;;  %8285 = vmatprep.subr.bf16.mxu0 %v8845_v42  ;;  %v898_v38 = vrot.slane %v10740_v46, %v9087_v61  ;;  %v586_v61 = vrot.slane %v578_v29, %v9064_v45  ;;  %v8878_v21 = vld [vmem:[%s10948_s3 + $0xfe8] sm:$0xff]   ;;  %v8883_v26 = vld [vmem:[%s10948_s3 + $0xf20] sm:$0xff]   ;;  %v8886_v29 = vld [vmem:[%s10948_s3 + $0xfd8] sm:$0xff]  }
 0x1cb   :  { %v10705_v43 = vadd.f32 %v8013_v20, %v6365_v37  ;;  %8306 = vmatpush3.bf16.msra.mxu1 %v8844_v41  ;;  %v890_v37 = vrot.slane %v10740_v46, %v9083_v57  ;;  %v894_v20 = vrot.slane %v10740_v46, %v9085_v60  ;;  %v8864_v40 = vld [vmem:[%s10948_s3 + $0xe88] sm:$0xff]   ;;  %vm1217_vm14 = vcmp.gt.f32.partialorder %v1201_v28, 0.0  ;;  %v8867_v57 = vld [vmem:[%s10948_s3 + $0xe00] sm:$0xff]  }
 0x1cc   :  { %v8015_v33 = vpop.f32.mrf.mxu1  ;;  %8307 = vmatprep.subr.bf16.mxu1 %v8846_v44  ;;  %v1233_v41 = vmul.f32 0.2, %v1201_v28  ;;  %v593_v54 = vrot.slane %v579_v30, %v9064_v45  ;;  %v8869_v44 = vld [vmem:[%s10948_s3 + $0xf78] sm:$0xff]   ;;  %v50_v46 = vunpack.c.h.bf16 %v10752_v12  ;;  %v8873_v12 = vld [vmem:[%s10948_s3 + $0xf70] sm:$0xff]   ;;  %v8879_v22 = vld [vmem:[%s10948_s3 + $0xf28] sm:$0xff]  }
 0x1cd   :  { %8286 = vmatpush3.bf16.msra.mxu0 %v8847_v48  ;;  %v1154_v48 = vcombine.low %v886_v35, %v890_v37  ;;  %v8880_v24 = vld [vmem:[%s10948_s3 + $0xfa8] sm:$0xff]  }
 0x1ce   :  { %8287 = vmatprep.subr.bf16.mxu0 %v8849_v50  ;;  %v1249_v60 = vsel %vm1217_vm14, %v1201_v28, %v1233_v41  ;;  %v8868_v50 = vld [vmem:[%s10948_s3 + $0xe80] sm:$0xff]  }
 0x1cf   :  { %8308 = vmatpush3.bf16.msra.mxu1 %v8848_v49  ;;  %v1512_v42 = vrot.slane %v1249_v60, %v9064_v45  ;;  %v1505_v33 = vcombine.high %v1249_v60, %v1249_v60  ;;  %v1155_v49 = vcombine.low %v894_v20, %v898_v38  ;;  %v1162_v0 = vrot.slane %v1154_v48, %v9064_v45  ;;  %v8884_v28 = vld [vmem:[%s10948_s3 + $0xfa0] sm:$0xff]   ;;  %v8889_v20 = vld [vmem:[%s10948_s3 + $0xf50] sm:$0xff]   ;;  %v8888_v38 = vld [vmem:[%s10948_s3 + $0xf98] sm:$0xff]  }
 0x1d0   :  { %8309 = vmatprep.subr.bf16.mxu1 %v8850_v51  ;;  %v8897_v48 = vld [vmem:[%s10948_s3 + $0xf40] sm:$0xff]  }
 0x1d1   :  { %8288 = vmatpush3.bf16.msra.mxu0 %v8851_v52  ;;  %v1520_v51 = vcombine.high %v1512_v42, %v1512_v42  ;;  %v1519_v52 = vrot.slane %v1505_v33, %v9064_v45  ;;  %v1659_v55 = vpack.c.bf16 %v1512_v42, %v1512_v42  ;;  %v1169_v1 = vrot.slane %v1155_v49, %v9064_v45  ;;  %v8894_v33 = vld [vmem:[%s10948_s3 + $0xfc8] sm:$0xff]  }
 0x1d2   :  { %8289 = vmatprep.subr.bf16.mxu0 %v8853_v53  ;;  %v8896_v49 = vld [vmem:[%s10948_s3 + $0xf88] sm:$0xff]  }
 0x1d3   :  { %8310 = vmatpush3.bf16.msra.mxu1 %v8852_v2  ;;  %v8870_v2 = vld [vmem:[%s10948_s3 + $0xff8] sm:$0xff]   ;;  %v1660_v58 = vpack.c.bf16 %v1520_v51, %v1520_v51  ;;  %v1521_v59 = vcombine.high %v1519_v52, %v1519_v52  ;;  %v1661_v62 = vpack.c.bf16 %v1519_v52, %v1519_v52  ;;  %v8899_v51 = vld [vmem:[%s10948_s3 + $0xf00] sm:$0xff]  }
 0x1d4   :  { %8311 = vmatprep.subr.bf16.mxu1 %v8854_v56  ;;  %v594_v56 = vcombine.low %v586_v61, %v593_v54  ;;  %v8893_v54 = vld [vmem:[%s10948_s3 + $0xf48] sm:$0xff]   ;;  %v8900_v52 = vld [vmem:[%s10948_s3 + $0xf80] sm:$0xff]  }
 0x1d5   :  { %8290 = vmatpush3.bf16.msra.mxu0 %v8855_v5  ;;  %6922 = vmatprep.mubr.bf16.mxu0 %v1660_v58  ;;  %v1662_v5 = vpack.c.bf16 %v1521_v59, %v1521_v59 }
 0x1d6   :  { %8291 = vmatprep.subr.bf16.mxu0 %v8857_v32 }
 0x1d7   :  { %8312 = vmatpush3.bf16.msra.mxu1 %v8856_v36  ;;  %v626_v36 = vmul.f32 %v594_v56, %v50_v46  ;;  %6962 = vmatprep.mubr.bf16.mxu1 %v1662_v5 }
 0x1d8   :  { %8313 = vmatprep.subr.bf16.mxu1 %v8858_v10  ;;  %v1170_v10 = vcombine.low %v1162_v0, %v1169_v1 }
 0x1d9   :  { %8292 = vmatpush3.bf16.msra.mxu0 %v8859_v18 }
 0x1da   :  { %8293 = vmatprep.subr.bf16.mxu0 %v8861_v14  ;;  %v1202_v23 = vadd.f32 %v1170_v10, %v626_v36  ;;  %v8881_v14 = vld [vmem:[%s10948_s3 + $0xf60] sm:$0xff]  }
 0x1db   :  { %8314 = vmatpush3.bf16.msra.mxu1 %v8860_v25  ;;  %v8882_v25 = vld [vmem:[%s10948_s3 + $0xfe0] sm:$0xff]  }
 0x1dc   :  { %8315 = vmatprep.subr.bf16.mxu1 %v8862_v16  ;;  %vm1218_vm15 = vcmp.gt.f32.partialorder %v1202_v23, 0.0  ;;  %v8885_v16 = vld [vmem:[%s10948_s3 + $0xf58] sm:$0xff]  }
 0x1dd   :  { %8294 = vmatpush3.bf16.msra.mxu0 %v8863_v27  ;;  %v1234_v27 = vmul.f32 0.2, %v1202_v23 }
 0x1de   :  { %8295 = vmatprep.subr.bf16.mxu0 %v8865_v31  ;;  %v8887_v31 = vld [vmem:[%s10948_s3 + $0xf18] sm:$0xff]  }
 0x1df   :  { %8316 = vmatpush3.bf16.msra.mxu1 %v8864_v40  ;;  %v1250_v30 = vsel %vm1218_vm15, %v1202_v23, %v1234_v27 }
 0x1e0   :  { %8317 = vmatprep.subr.bf16.mxu1 %v8866_v47  ;;  %v1529_v35 = vrot.slane %v1250_v30, %v9064_v45  ;;  %v1522_v37 = vcombine.high %v1250_v30, %v1250_v30  ;;  %v8890_v47 = vld [vmem:[%s10948_s3 + $0xfd0] sm:$0xff]   ;;  %v8904_v30 = vld [vmem:[%s10953_s5] sm:$0xff]  }
 0x1e1   :  { %8296 = vmatpush3.bf16.msra.mxu0 %v8867_v57  ;;  %v8891_v57 = vld [vmem:[%s10948_s3 + $0xf10] sm:$0xff]  }
 0x1e2   :  { %8325 = vmatprep.subr.bf16.mxu0 %v8869_v44  ;;  %v1537_v40 = vcombine.high %v1529_v35, %v1529_v35  ;;  %v1536_v41 = vrot.slane %v1522_v37, %v9064_v45  ;;  %v8892_v45 = vld [vmem:[%s10948_s3 + $0xf90] sm:$0xff]   ;;  %v8895_v44 = vld [vmem:[%s10948_s3 + $0xf08] sm:$0xff]  }
 0x1e3   :  { %8318 = vmatpush3.bf16.msra.mxu1 %v8868_v50  ;;  %v8898_v50 = vld [vmem:[%s10948_s3 + $0xfc0] sm:$0xff]  }
 0x1e4   :  { %v8033_v53 = vpop.f32.mrf.mxu0  ;;  %8347 = vmatprep.subr.bf16.mxu1 %v8870_v2  ;;  %6923 = vmatmul.mubr.bf16.vlgmr.msra.gmra.mxu0 %v1659_v55  ;;  %v1664_v60 = vpack.c.bf16 %v1537_v40, %v1537_v40  ;;  %v1538_v61 = vcombine.high %v1536_v41, %v1536_v41  ;;  %v1665_v46 = vpack.c.bf16 %v1536_v41, %v1536_v41 }
 0x1e5   :  { %8326 = vmatpush3.bf16.msra.mxu0 %v8871_v63 }
 0x1e6   :  { %v8055_v3 = vpop.f32.mrf.mxu1  ;;  %v8034_v4 = vpop.f32.mrf.mxu0  ;;  %6963 = vmatmul.mubr.bf16.vlgmr.msra.gmra.mxu1 %v1661_v62  ;;  %8327 = vmatprep.subr.bf16.mxu0 %v8873_v12  ;;  %v1666_v42 = vpack.c.bf16 %v1538_v61, %v1538_v61 }
 0x1e7   :  { %v8035_v7 = vadd.f32 %v8034_v4, %v8033_v53  ;;  %8348 = vmatpush3.bf16.msra.mxu1 %v8872_v6  ;;  %7002 = vmatprep.mubr.bf16.mxu0 %v1664_v60  ;;  %v1663_v53 = vpack.c.bf16 %v1529_v35, %v1529_v35 }
 0x1e8   :  { %v8056_v32 = vpop.f32.mrf.mxu1  ;;  %v8036_v8 = vpop.f32.mrf.mxu0  ;;  %8349 = vmatprep.subr.bf16.mxu1 %v8874_v34  ;;  %7042 = vmatprep.mubr.bf16.mxu1 %v1666_v42 }
 0x1e9   :  { %v6445_v39 = vadd.f32 %v8035_v7, %v10705_v43  ;;  %v8057_v9 = vadd.f32 %v8056_v32, %v8055_v3  ;;  %v8876_v43 = vld [vmem:[%s10948_s3 + $0xfb0] sm:$0xff]   ;;  %8328 = vmatpush3.bf16.msra.mxu0 %v8875_v11 }
 0x1ea   :  { %v8058_v13 = vpop.f32.mrf.mxu1  ;;  %v8037_v15 = vpop.f32.mrf.mxu0  ;;  %8329 = vmatprep.subr.bf16.mxu0 %v8877_v17  ;;  %v8901_v17 = vld [vmem:[%s10953_s5 + $0x18] sm:$0xff]  }
 0x1eb   :  { %v10853_v18 = vadd.f32 %v8057_v9, %v6445_v39  ;;  %8350 = vmatpush3.bf16.msra.mxu1 %v8876_v43  ;;  %v8910_v15 = vmov 0.0  }
 0x1ec   :  { %v8059_v19 = vpop.f32.mrf.mxu1  ;;  %8351 = vmatprep.subr.bf16.mxu1 %v8878_v21 }
 0x1ed   :  { %8330 = vmatpush3.bf16.msra.mxu0 %v8879_v22  ;;  %v8902_v22 = vld [vmem:[%s10953_s5 + $0x10] sm:$0xff]  }
 0x1ee   :  { %8331 = vmatprep.subr.bf16.mxu0 %v8881_v14 }
 0x1ef   :  { %8352 = vmatpush3.bf16.msra.mxu1 %v8880_v24 }
 0x1f0   :  { %8353 = vmatprep.subr.bf16.mxu1 %v8882_v25 }
 0x1f1   :  { %8332 = vmatpush3.bf16.msra.mxu0 %v8883_v26 }
 0x1f2   :  { %8333 = vmatprep.subr.bf16.mxu0 %v8885_v16 }
 0x1f3   :  { %8354 = vmatpush3.bf16.msra.mxu1 %v8884_v28  ;;  %v8903_v28 = vld [vmem:[%s10953_s5 + $0x8] sm:$0xff]  }
 0x1f4   :  { %8355 = vmatprep.subr.bf16.mxu1 %v8886_v29 }
 0x1f5   :  { %8334 = vmatpush3.bf16.msra.mxu0 %v8887_v31 }
 0x1f6   :  { %8335 = vmatprep.subr.bf16.mxu0 %v8889_v20 }
 0x1f7   :  { %8356 = vmatpush3.bf16.msra.mxu1 %v8888_v38 }
 0x1f8   :  { %8357 = vmatprep.subr.bf16.mxu1 %v8890_v47 }
 0x1f9   :  { %8336 = vmatpush3.bf16.msra.mxu0 %v8891_v57 }
 0x1fa   :  { %8337 = vmatprep.subr.bf16.mxu0 %v8893_v54 }
 0x1fb   :  { %8358 = vmatpush3.bf16.msra.mxu1 %v8892_v45 }
 0x1fc   :  { %8359 = vmatprep.subr.bf16.mxu1 %v8894_v33 }
 0x1fd   :  { %8338 = vmatpush3.bf16.msra.mxu0 %v8895_v44 }
 0x1fe   :  { %8339 = vmatprep.subr.bf16.mxu0 %v8897_v48 }
 0x1ff   :  { %8360 = vmatpush3.bf16.msra.mxu1 %v8896_v49 }
 0x200   :  { %8361 = vmatprep.subr.bf16.mxu1 %v8898_v50 }
 0x201   :  { %8340 = vmatpush3.bf16.msra.mxu0 %v8899_v51 }
 0x202   :  { %8374 = vmatprep.subr.bf16.mxu0 %v8910_v15 }
 0x203   :  { %8362 = vmatpush3.bf16.msra.mxu1 %v8900_v52 }
 0x204   :  { %v8077_v2 = vpop.f32.mrf.mxu0  ;;  %7003 = vmatmul.mubr.bf16.vlgmr.msra.gmra.mxu0 %v1663_v53 }
 0x205   :  { %8375 = vmatpush3.bf16.msra.mxu0 %v8901_v17  ;;  %8382 = vmatprep.mubr.msk.bf16.mxu0 %vm8911_vm0, %v8910_v15 }
 0x206   :  { %v8099_v55 = vpop.f32.mrf.mxu1  ;;  %v8078_v56 = vpop.f32.mrf.mxu0  ;;  %7043 = vmatmul.mubr.bf16.vlgmr.msra.gmra.mxu1 %v1665_v46  ;;  %8376 = vmatprep.subr.bf16.mxu0 %v8910_v15 }
 0x207   :  { %v8079_v58 = vadd.f32 %v8078_v56, %v8077_v2 }
 0x208   :  { %v8100_v59 = vpop.f32.mrf.mxu1  ;;  %v8080_v63 = vpop.f32.mrf.mxu0 }
 0x209   :  { %v6525_v0 = vadd.f32 %v8079_v58, %v10853_v18  ;;  %v8101_v1 = vadd.f32 %v8100_v59, %v8099_v55  ;;  %8377 = vmatpush3.bf16.msra.mxu0 %v8902_v22 }
 0x20a   :  { %v8102_v3 = vpop.f32.mrf.mxu1  ;;  %v8081_v62 = vpop.f32.mrf.mxu0  ;;  %8378 = vmatprep.subr.bf16.mxu0 %v8910_v15 }
 0x20b   :  { %v6565_v4 = vadd.f32 %v8101_v1, %v6525_v0 }
 0x20c   :  { %v8103_v12 = vpop.f32.mrf.mxu1 }
 0x20d   :  { %8379 = vmatpush3.bf16.msra.mxu0 %v8903_v28 }
 0x20e   :  { %8380 = vmatprep.subr.bf16.mxu0 %v8910_v15 }
 0x211   :  { %8381 = vmatpush3.bf16.msra.mxu0 %v8904_v30 }
 0x224   :  { %v8121_v5 = vpop.f32.mrf.mxu0 }
 0x226   :  { %v8143_v6 = vpop.f32.mrf.mxu1  ;;  %v8122_v7 = vpop.f32.mrf.mxu0 }
 0x227   :  { %v8123_v32 = vadd.f32 %v8122_v7, %v8121_v5 }
 0x228   :  { %v8144_v8 = vpop.f32.mrf.mxu1  ;;  %v8124_v34 = vpop.f32.mrf.mxu0 }
 0x229   :  { %v6605_v36 = vadd.f32 %v8123_v32, %v6565_v4  ;;  %v8145_v39 = vadd.f32 %v8144_v8, %v8143_v6 }
 0x22a   :  { %v8146_v9 = vpop.f32.mrf.mxu1  ;;  %v8125_v11 = vpop.f32.mrf.mxu0 }
 0x22b   :  { %v6645_v10 = vadd.f32 %v8145_v39, %v6605_v36 }
 0x22c   :  { %v8147_v13 = vpop.f32.mrf.mxu1 }
 0x244   :  { %v8165_v18 = vpop.f32.mrf.mxu0 }
 0x246   :  { %v8187_v43 = vpop.f32.mrf.mxu1  ;;  %v8166_v19 = vpop.f32.mrf.mxu0 }
 0x247   :  { %v8167_v21 = vadd.f32 %v8166_v19, %v8165_v18  ;;  %v7658_v18 = vld [vmem:[%s10954_s6] ss:$0 sm:$0xff] }
 0x248   :  { %v8188_v23 = vpop.f32.mrf.mxu1  ;;  %v8168_v14 = vpop.f32.mrf.mxu0 }
 0x249   :  { %v6685_v24 = vadd.f32 %v8167_v21, %v6645_v10  ;;  %v8189_v25 = vadd.f32 %v8188_v23, %v8187_v43 }
 0x24a   :  { %v8190_v26 = vpop.f32.mrf.mxu1  ;;  %v8169_v16 = vpop.f32.mrf.mxu0 }
 0x24b   :  { %v6725_v27 = vadd.f32 %v8189_v25, %v6685_v24 }
 0x24c   :  { %v8191_v29 = vpop.f32.mrf.mxu1 }
 0x264   :  { %v8209_v31 = vpop.f32.mrf.mxu0 }
 0x266   :  { %v8231_v35 = vpop.f32.mrf.mxu1  ;;  %v8210_v37 = vpop.f32.mrf.mxu0 }
 0x267   :  { %v8211_v20 = vadd.f32 %v8210_v37, %v8209_v31 }
 0x268   :  { %v8232_v38 = vpop.f32.mrf.mxu1  ;;  %v8212_v40 = vpop.f32.mrf.mxu0 }
 0x269   :  { %v6765_v41 = vadd.f32 %v8211_v20, %v6725_v27  ;;  %v8233_v47 = vadd.f32 %v8232_v38, %v8231_v35 }
 0x26a   :  { %v8234_v57 = vpop.f32.mrf.mxu1  ;;  %v8213_v60 = vpop.f32.mrf.mxu0 }
 0x26b   :  { %v6805_v61 = vadd.f32 %v8233_v47, %v6765_v41 }
 0x26c   :  { %v8235_v54 = vpop.f32.mrf.mxu1 }
 0x284   :  { %v8253_v45 = vpop.f32.mrf.mxu0 }
 0x286   :  { %v8275_v42 = vpop.f32.mrf.mxu1  ;;  %v8254_v33 = vpop.f32.mrf.mxu0 }
 0x287   :  { %v8255_v63 = vadd.f32 %v8254_v33, %v8253_v45 }
 0x288   :  { %v8276_v44 = vpop.f32.mrf.mxu1  ;;  %v8256_v48 = vpop.f32.mrf.mxu0 }
 0x289   :  { %v6845_v0 = vadd.f32 %v8255_v63, %v6805_v61  ;;  %v8277_v1 = vadd.f32 %v8276_v44, %v8275_v42 }
 0x28a   :  { %v8278_v49 = vpop.f32.mrf.mxu1  ;;  %v8257_v50 = vpop.f32.mrf.mxu0 }
 0x28b   :  { %v6885_v62 = vadd.f32 %v8277_v1, %v6845_v0 }
 0x28c   :  { %v8279_v51 = vpop.f32.mrf.mxu1 }
 0x2a4   :  { %v8297_v52 = vpop.f32.mrf.mxu0 }
 0x2a6   :  { %v8319_v2 = vpop.f32.mrf.mxu1  ;;  %v8298_v53 = vpop.f32.mrf.mxu0 }
 0x2a7   :  { %v8299_v3 = vadd.f32 %v8298_v53, %v8297_v52 }
 0x2a8   :  { %v8320_v55 = vpop.f32.mrf.mxu1  ;;  %v8300_v46 = vpop.f32.mrf.mxu0 }
 0x2a9   :  { %v6925_v4 = vadd.f32 %v8299_v3, %v6885_v62  ;;  %v8321_v12 = vadd.f32 %v8320_v55, %v8319_v2 }
 0x2aa   :  { %v8322_v56 = vpop.f32.mrf.mxu1  ;;  %v8301_v58 = vpop.f32.mrf.mxu0 }
 0x2ab   :  { %v6965_v32 = vadd.f32 %v8321_v12, %v6925_v4 }
 0x2ac   :  { %v8323_v59 = vpop.f32.mrf.mxu1 }
 0x2c4   :  { %v8341_v5 = vpop.f32.mrf.mxu0 }
 0x2c6   :  { %v8363_v6 = vpop.f32.mrf.mxu1  ;;  %v8342_v7 = vpop.f32.mrf.mxu0 }
 0x2c7   :  { %v8343_v8 = vadd.f32 %v8342_v7, %v8341_v5 }
 0x2c8   :  { %v8364_v34 = vpop.f32.mrf.mxu1  ;;  %v8344_v36 = vpop.f32.mrf.mxu0 }
 0x2c9   :  { %v7005_v39 = vadd.f32 %v8343_v8, %v6965_v32  ;;  %v8365_v9 = vadd.f32 %v8364_v34, %v8363_v6 }
 0x2ca   :  { %v8366_v11 = vpop.f32.mrf.mxu1  ;;  %v8345_v10 = vpop.f32.mrf.mxu0 }
 0x2cb   :  { %v7045_v13 = vadd.f32 %v8365_v9, %v7005_v39 }
 0x2cc   :  { %v8367_v15 = vpop.f32.mrf.mxu1 }
 0x2cd   :  { %v7050_v17 = vpack.c.bf16 %v7045_v13, %v7045_v13 }
 0x2cf   :  { %8383 = vmatmul.mubr.msk.bf16.vlgmr.msra.gmra.mxu0 %vm7090_vm1, %v7050_v17 }
 0x38f   :  { %v7128_v43 = vpop.f32.mrf.mxu0 }
 0x390   :  { %v7129_v19 = vadd.f32 %v7658_v18, %v7128_v43 }
 0x391   :  { %v8384_v21 = vpop.f32.mrf.mxu0 }
 0x392   :  { %v7664_v22 = vmul.f32 -1.442695, %v7129_v19 }
 0x393   :  { %v7131_v23 = vpop.f32.mrf.mxu0 }
 0x394   :  { %8905 = vpow2.f32 %v7664_v22 }
 0x395   :  { %v8385_v14 = vpop.f32.mrf.mxu0 }
 0x3a1   :  { %v8906_v24 = vpop.eup %8905 }
 0x3a2   :  { %v7137_v25 = vadd.f32 1.0, %v8906_v24 }
 0x3a4   :  { %8907 = vrcp.f32 %v7137_v25 }
 0x3b1   :  { %v8908_v26 = vpop.eup %8907 }
 0x3b2   :  { %7140 = vst [vmem:[%s10955_s7] sm:$0x3] %v8908_v26 }

</bundles_post_ra>
